<compile_context>
chip_gen: v7x
topology: tpu7x:2x2x1
jax: 0.10.0
libtpu: 0.0.40
codegen_flags: <defaults>
</compile_context>

<pallas_src>
import jax
import jax.numpy as jnp
from jax.experimental import pallas as pl
from jax.experimental.pallas import tpu as pltpu

IMG_SHAPE = (1, 33, 257)
N_OUT = IMG_SHAPE[0] * IMG_SHAPE[1] * IMG_SHAPE[2]   # 8481
HID = 1024
Z_DIM = 100
BN_EPS = 1e-5
LRELU_SLOPE = 0.2
TN = 2176                          # final-layer tile width (multiple of 128)
N_TILES = pl.cdiv(N_OUT, TN)       # 4   (even -> clean 2/2 split on v7x)
N_PAD = N_TILES * TN               # 8704


def _leaky_relu(x):
    return jnp.where(x > 0, x, LRELU_SLOPE * x)


def _front_kernel(z_ref, w1_ref, b1_ref, w2_ref, b2_ref, g_ref, be_ref, h_ref):
    """Linear(100,1024) -> LeakyReLU -> Linear(1024,1024) -> BatchNorm1d -> LeakyReLU.

    Everything fits in VMEM (~2.5 MB with bf16 weights), so this is a single
    un-gridded call.  Matmul operands are bf16, accumulation is f32; BatchNorm
    statistics are computed in f32.
    """
    z = z_ref[...].astype(jnp.bfloat16)
    h1 = jnp.dot(z, w1_ref[...],
                 preferred_element_type=jnp.float32) + b1_ref[...]
    h1 = _leaky_relu(h1)
    h2 = jnp.dot(h1.astype(jnp.bfloat16), w2_ref[...],
                 preferred_element_type=jnp.float32) + b2_ref[...]
    # BatchNorm1d default (training mode): batch statistics, biased variance.
    mean = jnp.mean(h2, axis=0, keepdims=True)
    var = jnp.mean((h2 - mean) * (h2 - mean), axis=0, keepdims=True)
    hn = (h2 - mean) * jax.lax.rsqrt(var + BN_EPS) * g_ref[...] + be_ref[...]
    h_ref[...] = _leaky_relu(hn).astype(jnp.bfloat16)


def _tail_kernel(h_ref, w3_ref, b3_ref, out_ref):
    """One lane-dense output tile of Linear(1024, N_OUT) followed by Tanh."""
    o = jnp.dot(h_ref[...], w3_ref[0],
                preferred_element_type=jnp.float32) + b3_ref[...]
    out_ref[...] = jnp.tanh(o)


@jax.jit
def decoder_forward(z, prepared_params):
    w1, b1, w2, b2, gamma, beta, w3_t, b3_p = prepared_params
    B = z.shape[0]

    # Front network (small): whole arrays resident in VMEM, no grid.
    h = pl.pallas_call(
        _front_kernel,
        out_shape=jax.ShapeDtypeStruct((B, HID), jnp.bfloat16),
    )(z, w1, b1, w2, b2, gamma, beta)

    # Final Linear(1024, 8481) + Tanh, tiled over the output dim.  w3 is
    # pre-tiled into (N_TILES, HID, TN) contiguous bf16 slabs.  Output is
    # emitted unpadded; Pallas masks the partial last tile's store.
    tail_cost = pl.CostEstimate(
        flops=2 * B * HID * N_PAD,
        transcendentals=B * N_PAD,
        bytes_accessed=(HID * N_PAD * 2      # bf16 w3
                        + B * HID * 2        # bf16 h
                        + N_PAD * 4          # f32 b3
                        + B * N_OUT * 4),    # f32 out
    )
    out = pl.pallas_call(
        _tail_kernel,
        out_shape=jax.ShapeDtypeStruct((B, N_OUT), jnp.float32),
        grid_spec=pltpu.PrefetchScalarGridSpec(
            num_scalar_prefetch=0,
            grid=(N_TILES,),
            in_specs=[
                pl.BlockSpec((B, HID), lambda j: (0, 0)),      # h (constant)
                pl.BlockSpec((1, HID, TN), lambda j: (j, 0, 0)),  # w3 tile (contiguous)
                pl.BlockSpec((1, TN), lambda j: (0, j)),       # b3 tile
            ],
            out_specs=pl.BlockSpec((B, TN), lambda j: (0, j)),
        ),
        compiler_params=pltpu.CompilerParams(
            # No cross-step scratch carry -> steps are independent, so the
            # grid can be sharded across TensorCores on multi-TC chips (v7x).
            dimension_semantics=("parallel",),
            # ~10 MB actually used with bf16 weights; keep the explicit limit:
            # the default scoped VMEM (16 MiB v5e / 32 MiB v6e) would not fit
            # the double-buffered w3 tiles, and 48 MiB stays under v7x's 64 MiB.
            vmem_limit_bytes=48 * 1024 * 1024,
        ),
        cost_estimate=tail_cost,
    )(h, w3_t, b3_p)
    return out


def init_params(key):
    """Deterministic PyTorch-style init: U(-1/sqrt(fan_in), 1/sqrt(fan_in))."""
    ks = jax.random.split(key, 6)

    def lin(kw, kb, fan_in, fan_out):
        bound = 1.0 / jnp.sqrt(fan_in)
        w = jax.random.uniform(kw, (fan_in, fan_out), jnp.float32, -bound, bound)
        b = jax.random.uniform(kb, (1, fan_out), jnp.float32, -bound, bound)
        return w, b

    w1, b1 = lin(ks[0], ks[1], Z_DIM, HID)
    w2, b2 = lin(ks[2], ks[3], HID, HID)
    w3, b3 = lin(ks[4], ks[5], HID, N_OUT)
    gamma = jnp.ones((1, HID), jnp.float32)
    beta = jnp.zeros((1, HID), jnp.float32)
    return (w1, b1, w2, b2, gamma, beta, w3, b3)


def prepare_params(params):
    """One-time weight prep: bf16 cast, pad, and pre-tile the last layer.

    Done at setup, NOT inside the per-call forward path, so the bf16 / padded
    copies live in HBM once instead of being re-materialized every call.
    """
    w1, b1, w2, b2, gamma, beta, w3, b3 = params
    w1_bf = w1.astype(jnp.bfloat16)
    w2_bf = w2.astype(jnp.bfloat16)
    w3_p = (jnp.zeros((HID, N_PAD), jnp.float32)
            .at[:, :N_OUT].set(w3).astype(jnp.bfloat16))
    # Pre-tile so each grid step streams one fully contiguous (HID, TN) slab.
    w3_t = w3_p.reshape(HID, N_TILES, TN).transpose(1, 0, 2)
    b3_p = jnp.zeros((1, N_PAD), jnp.float32).at[:, :N_OUT].set(b3)
    return (w1_bf, b1, w2_bf, b2, gamma, beta, w3_t, b3_p)


def _reference(z, prepared_params):
    """Pure-JAX reference in matching (bf16-weight / f32-accumulate) precision."""
    w1, b1, w2, b2, gamma, beta, w3_t, b3_p = prepared_params
    h1 = jnp.dot(z.astype(jnp.bfloat16), w1,
                 preferred_element_type=jnp.float32) + b1
    h1 = jnp.where(h1 > 0, h1, LRELU_SLOPE * h1)
    h2 = jnp.dot(h1.astype(jnp.bfloat16), w2,
                 preferred_element_type=jnp.float32) + b2
    mu = jnp.mean(h2, axis=0, keepdims=True)
    var = jnp.mean((h2 - mu) ** 2, axis=0, keepdims=True)
    hn = (h2 - mu) * jax.lax.rsqrt(var + BN_EPS) * gamma + beta
    h = jnp.where(hn > 0, hn, LRELU_SLOPE * hn).astype(jnp.bfloat16)
    w3 = w3_t.transpose(1, 0, 2).reshape(HID, N_PAD)
    o = jnp.dot(h, w3, preferred_element_type=jnp.float32) + b3_p
    return jnp.tanh(o)[:, :N_OUT]


if __name__ == "__main__":
    key = jax.random.PRNGKey(0)
    kz, kp = jax.random.split(key)

    B = 8
    z = jax.random.normal(kz, (B, Z_DIM), jnp.float32)
    params = init_params(kp)

    # Cast / pad / pre-tile once, outside the forward path.
    prepared = prepare_params(params)
    prepared = jax.tree_util.tree_map(jax.block_until_ready, prepared)

    out = decoder_forward(z, prepared)
    out = jax.block_until_ready(out)

    assert out.shape == (B, N_OUT), out.shape
    ref = _reference(z, prepared)
    assert jnp.allclose(out, ref, atol=2e-3, rtol=0), float(
        jnp.max(jnp.abs(out - ref)))

    print("KERNEL_OK")
</pallas_src>

<mosaic_0001>
module attributes {stable_mosaic.version = 11 : i64} {
  func.func @_tail_kernel(%arg0: i32, %arg1: memref<8x1024xbf16, #tpu.memory_space<vmem>>, %arg2: memref<1x1024x2176xbf16, #tpu.memory_space<vmem>>, %arg3: memref<1x2176xf32, #tpu.memory_space<vmem>>, %arg4: memref<8x2176xf32, #tpu.memory_space<vmem>>) attributes {dimension_semantics = [#tpu.dimension_semantics<parallel>], iteration_bounds = array<i64: 4>, scalar_prefetch = 0 : i64, scratch_operands = 0 : i64, tpu.core_type = #tpu.core_type<tc>, window_params = [{pipeline_mode = #tpu.pipeline_mode<synchronous>, transform_indices = @transform_0, window_bounds = array<i64: 8, 1024>}, {transform_indices = @transform_1, window_bounds = array<i64: 1, 1024, 2176>}, {transform_indices = @transform_2, window_bounds = array<i64: 1, 2176>}, {transform_indices = @transform_3, window_bounds = array<i64: 8, 2176>}]} {
    %c0 = arith.constant 0 : index
    %c0_0 = arith.constant 0 : index
    %0 = vector.load %arg1[%c0, %c0_0] : memref<8x1024xbf16, #tpu.memory_space<vmem>>, vector<8x1024xbf16>
    %c0_1 = arith.constant 0 : index
    %c0_2 = arith.constant 0 : index
    %c0_3 = arith.constant 0 : index
    %1 = vector.load %arg2[%c0_1, %c0_2, %c0_3] : memref<1x1024x2176xbf16, #tpu.memory_space<vmem>>, vector<1x1024x2176xbf16>
    %2 = vector.shape_cast %1 : vector<1x1024x2176xbf16> to vector<1024x2176xbf16>
    %cst = arith.constant dense<0.000000e+00> : vector<8x2176xf32>
    %3 = tpu.matmul %0, %2, %cst {dimension_numbers = #tpu.dot_dimension_numbers<[1], [0], [0], [1], [0, 0, 1, 1], [], []>} : vector<8x1024xbf16>, vector<1024x2176xbf16>, vector<8x2176xf32> -> vector<8x2176xf32>
    %c0_4 = arith.constant 0 : index
    %c0_5 = arith.constant 0 : index
    %4 = vector.load %arg3[%c0_4, %c0_5] : memref<1x2176xf32, #tpu.memory_space<vmem>>, vector<1x2176xf32>
    %5 = vector.broadcast %4 : vector<1x2176xf32> to vector<8x2176xf32>
    %6 = arith.addf %3, %5 : vector<8x2176xf32>
    %7 = math.tanh %6 : vector<8x2176xf32>
    %c0_6 = arith.constant 0 : index
    %c0_7 = arith.constant 0 : index
    %8 = vector.load %arg4[%c0_6, %c0_7] : memref<8x2176xf32, #tpu.memory_space<vmem>>, vector<8x2176xf32>
    tpu.vector_store %arg4[%c0_6, %c0_7], %7 {strides = array<i32>} : memref<8x2176xf32, #tpu.memory_space<vmem>>, vector<8x2176xf32>,
    return
  }
  func.func @transform_0(%arg0: i32) -> (i32, i32) {
    %c0_i32 = arith.constant 0 : i32
    %c0_i32_0 = arith.constant 0 : i32
    %c0_i32_1 = arith.constant 0 : i32
    return %c0_i32, %c0_i32_0 : i32, i32
  }
  func.func @transform_1(%arg0: i32) -> (i32, i32, i32) {
    %c0_i32 = arith.constant 0 : i32
    %c0_i32_0 = arith.constant 0 : i32
    %c0_i32_1 = arith.constant 0 : i32
    return %arg0, %c0_i32, %c0_i32_0 : i32, i32, i32
  }
  func.func @transform_2(%arg0: i32) -> (i32, i32) {
    %c0_i32 = arith.constant 0 : i32
    %c0_i32_0 = arith.constant 0 : i32
    return %c0_i32, %arg0 : i32, i32
  }
  func.func @transform_3(%arg0: i32) -> (i32, i32) {
    %c0_i32 = arith.constant 0 : i32
    %c0_i32_0 = arith.constant 0 : i32
    return %c0_i32, %arg0 : i32, i32
  }
}

module attributes {stable_mosaic.version = 11 : i64} {
  func.func @_front_kernel(%arg0: memref<8x100xf32, #tpu.memory_space<vmem>>, %arg1: memref<100x1024xbf16, #tpu.memory_space<vmem>>, %arg2: memref<1x1024xf32, #tpu.memory_space<vmem>>, %arg3: memref<1024x1024xbf16, #tpu.memory_space<vmem>>, %arg4: memref<1x1024xf32, #tpu.memory_space<vmem>>, %arg5: memref<1x1024xf32, #tpu.memory_space<vmem>>, %arg6: memref<1x1024xf32, #tpu.memory_space<vmem>>, %arg7: memref<8x1024xbf16, #tpu.memory_space<vmem>>) attributes {dimension_semantics = [], scalar_prefetch = 0 : i64, scratch_operands = 0 : i64, tpu.core_type = #tpu.core_type<tc>} {
    %c0 = arith.constant 0 : index
    %c0_0 = arith.constant 0 : index
    %0 = vector.load %arg0[%c0, %c0_0] : memref<8x100xf32, #tpu.memory_space<vmem>>, vector<8x100xf32>
    %1 = arith.truncf %0 : vector<8x100xf32> to vector<8x100xbf16>
    %c0_1 = arith.constant 0 : index
    %c0_2 = arith.constant 0 : index
    %2 = vector.load %arg1[%c0_1, %c0_2] : memref<100x1024xbf16, #tpu.memory_space<vmem>>, vector<100x1024xbf16>
    %cst = arith.constant dense<0.000000e+00> : vector<8x1024xf32>
    %3 = tpu.matmul %1, %2, %cst {dimension_numbers = #tpu.dot_dimension_numbers<[1], [0], [0], [1], [0, 0, 1, 1], [], []>} : vector<8x100xbf16>, vector<100x1024xbf16>, vector<8x1024xf32> -> vector<8x1024xf32>
    %c0_3 = arith.constant 0 : index
    %c0_4 = arith.constant 0 : index
    %4 = vector.load %arg2[%c0_3, %c0_4] : memref<1x1024xf32, #tpu.memory_space<vmem>>, vector<1x1024xf32>
    %5 = vector.broadcast %4 : vector<1x1024xf32> to vector<8x1024xf32>
    %6 = arith.addf %3, %5 : vector<8x1024xf32>
    %cst_5 = arith.constant 0.000000e+00 : f32
    %7 = vector.broadcast %cst_5 : f32 to vector<8x1024xf32>
    %8 = arith.cmpf ogt, %6, %7 : vector<8x1024xf32>
    %cst_6 = arith.constant 2.000000e-01 : f32
    %9 = vector.broadcast %cst_6 : f32 to vector<8x1024xf32>
    %10 = arith.mulf %9, %6 : vector<8x1024xf32>
    %11 = arith.select %8, %6, %10 : vector<8x1024xi1>, vector<8x1024xf32>
    %12 = arith.truncf %11 : vector<8x1024xf32> to vector<8x1024xbf16>
    %c0_7 = arith.constant 0 : index
    %c0_8 = arith.constant 0 : index
    %13 = vector.load %arg3[%c0_7, %c0_8] : memref<1024x1024xbf16, #tpu.memory_space<vmem>>, vector<1024x1024xbf16>
    %cst_9 = arith.constant dense<0.000000e+00> : vector<8x1024xf32>
    %14 = tpu.matmul %12, %13, %cst_9 {dimension_numbers = #tpu.dot_dimension_numbers<[1], [0], [0], [1], [0, 0, 1, 1], [], []>} : vector<8x1024xbf16>, vector<1024x1024xbf16>, vector<8x1024xf32> -> vector<8x1024xf32>
    %c0_10 = arith.constant 0 : index
    %c0_11 = arith.constant 0 : index
    %15 = vector.load %arg4[%c0_10, %c0_11] : memref<1x1024xf32, #tpu.memory_space<vmem>>, vector<1x1024xf32>
    %16 = vector.broadcast %15 : vector<1x1024xf32> to vector<8x1024xf32>
    %17 = arith.addf %14, %16 : vector<8x1024xf32>
    %cst_12 = arith.constant dense<0.000000e+00> : vector<1024xf32>
    %18 = vector.multi_reduction <add>, %17, %cst_12 [0] : vector<8x1024xf32> to vector<1024xf32>
    %19 = vector.shape_cast %18 : vector<1024xf32> to vector<1x1024xf32>
    %cst_13 = arith.constant 8.000000e+00 : f32
    %20 = vector.broadcast %cst_13 : f32 to vector<1x1024xf32>
    %21 = arith.divf %19, %20 : vector<1x1024xf32>
    %22 = vector.broadcast %21 : vector<1x1024xf32> to vector<8x1024xf32>
    %23 = arith.subf %17, %22 : vector<8x1024xf32>
    %24 = vector.broadcast %21 : vector<1x1024xf32> to vector<8x1024xf32>
    %25 = arith.subf %17, %24 : vector<8x1024xf32>
    %26 = arith.mulf %23, %25 : vector<8x1024xf32>
    %cst_14 = arith.constant dense<0.000000e+00> : vector<1024xf32>
    %27 = vector.multi_reduction <add>, %26, %cst_14 [0] : vector<8x1024xf32> to vector<1024xf32>
    %28 = vector.shape_cast %27 : vector<1024xf32> to vector<1x1024xf32>
    %cst_15 = arith.constant 8.000000e+00 : f32
    %29 = vector.broadcast %cst_15 : f32 to vector<1x1024xf32>
    %30 = arith.divf %28, %29 : vector<1x1024xf32>
    %31 = vector.broadcast %21 : vector<1x1024xf32> to vector<8x1024xf32>
    %32 = arith.subf %17, %31 : vector<8x1024xf32>
    %cst_16 = arith.constant 9.99999974E-6 : f32
    %33 = vector.broadcast %cst_16 : f32 to vector<1x1024xf32>
    %34 = arith.addf %30, %33 : vector<1x1024xf32>
    %35 = math.rsqrt %34 : vector<1x1024xf32>
    %36 = vector.broadcast %35 : vector<1x1024xf32> to vector<8x1024xf32>
    %37 = arith.mulf %32, %36 : vector<8x1024xf32>
    %c0_17 = arith.constant 0 : index
    %c0_18 = arith.constant 0 : index
    %38 = vector.load %arg5[%c0_17, %c0_18] : memref<1x1024xf32, #tpu.memory_space<vmem>>, vector<1x1024xf32>
    %39 = vector.broadcast %38 : vector<1x1024xf32> to vector<8x1024xf32>
    %40 = arith.mulf %37, %39 : vector<8x1024xf32>
    %c0_19 = arith.constant 0 : index
    %c0_20 = arith.constant 0 : index
    %41 = vector.load %arg6[%c0_19, %c0_20] : memref<1x1024xf32, #tpu.memory_space<vmem>>, vector<1x1024xf32>
    %42 = vector.broadcast %41 : vector<1x1024xf32> to vector<8x1024xf32>
    %43 = arith.addf %40, %42 : vector<8x1024xf32>
    %cst_21 = arith.constant 0.000000e+00 : f32
    %44 = vector.broadcast %cst_21 : f32 to vector<8x1024xf32>
    %45 = arith.cmpf ogt, %43, %44 : vector<8x1024xf32>
    %cst_22 = arith.constant 2.000000e-01 : f32
    %46 = vector.broadcast %cst_22 : f32 to vector<8x1024xf32>
    %47 = arith.mulf %46, %43 : vector<8x1024xf32>
    %48 = arith.select %45, %43, %47 : vector<8x1024xi1>, vector<8x1024xf32>
    %49 = arith.truncf %48 : vector<8x1024xf32> to vector<8x1024xbf16>
    %c0_23 = arith.constant 0 : index
    %c0_24 = arith.constant 0 : index
    %50 = vector.load %arg7[%c0_23, %c0_24] : memref<8x1024xbf16, #tpu.memory_space<vmem>>, vector<8x1024xbf16>
    tpu.vector_store %arg7[%c0_23, %c0_24], %49 {strides = array<i32>} : memref<8x1024xbf16, #tpu.memory_space<vmem>>, vector<8x1024xbf16>,
    return
  }
}

</mosaic_0001>

<bundles_post_ra>
// kernel: decoder_forward.2
= control target key start
LH: loop header
LB: loop body
LE: loop exit
PB: predicated region body
PF: predicated region fallthrough
CT: control target
= control target key end

     0   :  { %12 = vsyncpa [#allocation3], 0  ;;  %s5989_s0 = inlined_call_operand.hbm [shape: f32[8,100], index: 0, kind: input, shape index: {}]   ;;  %s5990_s1 = inlined_call_operand.hbm [shape: bf16[100,1024], index: 1, kind: input, shape index: {}]   ;;  %s5991_s2 = inlined_call_operand.hbm [shape: f32[1,1024], index: 2, kind: input, shape index: {}]   ;;  %s5992_s3 = inlined_call_operand.hbm [shape: bf16[1024,1024], index: 3, kind: input, shape index: {}]   ;;  %s5993_s4 = inlined_call_operand.hbm [shape: f32[1,1024], index: 4, kind: input, shape index: {}]   ;;  %s5994_s5 = inlined_call_operand.hbm [shape: f32[1,1024], index: 5, kind: input, shape index: {}]   ;;  %s5995_s6 = inlined_call_operand.hbm [shape: f32[1,1024], index: 6, kind: input, shape index: {}]   ;;  %s5996_s7 = inlined_call_operand.vmem [shape: bf16[8,1024], index: 7, kind: output, shape index: {}]  }
   0x1   :  { %13 = vsyncpa [#allocation5], 0 }
   0x2   :  { %14 = vsyncpa [#allocation8], 0 }
   0x3   :  { %15 = vsyncpa [#allocation11], 0  ;;  %s5621_s24 = smov [#allocation4]   ;;  %s5459_s28 = scalar_lea.hbm %s5990_s1, 6656 }
   0x4   :  { %s31_s25 = sshll.u32 %s5621_s24, 4  ;;  %p5460_p0 = scmp.ne.s32.totalorder %s5990_s1, %s5459_s28  ;;  %s32_s25 = int_to_ptr.vmem [resolvable:$true] %s31_s25 }
   0x5   :  { %p5463_p1 = scmp.lt.u32.totalorder %s5459_s28, %s5990_s1 }
   0x7   :  { %p5465_p2 = pnand %p5463_p1, %p5460_p0 }
   0x9   :  { %5468 = shalt.err (!%p5465_p2)
}
   0xa   :  { %s5469_s10 = scalar_lea.vmem %s32_s25, 6656  ;;  %p5474_p4 = scmp.lt.s32.totalorder %s32_s25, %s32_s25 }
   0xb   :  { %p5470_p3 = scmp.ne.s32.totalorder %s32_s25, %s5469_s10  ;;  %p5475_p5 = scmp.lt.s32.totalorder %s5469_s10, %s5469_s10 }
   0xd   :  { %p5476_p6 = por %p5475_p5, %p5474_p4 }
   0xf   :  { %p5477_p7 = pnand %p5476_p6, %p5470_p3 }
  0x11   :  { %5480 = shalt.err (!%p5477_p7)
}
  0x12   :  { %s5622_s11 = smov 512   ;;  %s5623_s12 = smov 32  }
  0x13   :  { %37 = dma.hbm_to_vmem [thread:$0]  %s5990_s1, 6656, %s32_s25, [#allocation5], %s5622_s11, %s5622_s11, %s5623_s12  }
  0x14   :  { %s5624_s15 = smov [#allocation7]   ;;  %s5625_s17 = smov [#allocation10]  }
  0x15   :  { %s53_s16 = sshll.u32 %s5624_s15, 4  ;;  %s76_s18 = sshll.u32 %s5625_s17, 4  ;;  %s54_s16 = int_to_ptr.vmem [resolvable:$true] %s53_s16  ;;  %s77_s18 = int_to_ptr.vmem [resolvable:$true] %s76_s18 }
  0x16   :  { %s5481_s21 = scalar_lea.hbm %s5992_s3, 65536 }
  0x17   :  { %p5482_p8 = scmp.ne.s32.totalorder %s5992_s3, %s5481_s21  ;;  %p5485_p9 = scmp.lt.u32.totalorder %s5481_s21, %s5992_s3 }
  0x19   :  { %p5487_p10 = pnand %p5485_p9, %p5482_p8 }
  0x1b   :  { %5490 = shalt.err (!%p5487_p10)
}
  0x1c   :  { %s5491_s1 = scalar_lea.vmem %s54_s16, 65536  ;;  %p5496_p12 = scmp.lt.s32.totalorder %s54_s16, %s54_s16 }
  0x1d   :  { %p5492_p11 = scmp.ne.s32.totalorder %s54_s16, %s5491_s1  ;;  %p5497_p13 = scmp.lt.s32.totalorder %s5491_s1, %s5491_s1 }
  0x1f   :  { %p5498_p0 = por %p5497_p13, %p5496_p12 }
  0x21   :  { %p5499_p1 = pnand %p5498_p0, %p5492_p11 }
  0x23   :  { %5502 = shalt.err (!%p5499_p1)
}
  0x24   :  { %59 = dma.hbm_to_vmem [thread:$0]  %s5992_s3, 65536, %s54_s16, [#allocation8], %s5622_s11, %s5622_s11, %s5623_s12  }
  0x25   :  { %s5503_s30 = scalar_lea.hbm %s5994_s5, 128 }
  0x26   :  { %p5504_p2 = scmp.ne.s32.totalorder %s5994_s5, %s5503_s30  ;;  %p5507_p3 = scmp.lt.u32.totalorder %s5503_s30, %s5994_s5 }
  0x28   :  { %p5509_p4 = pnand %p5507_p3, %p5504_p2 }
  0x2a   :  { %5512 = shalt.err (!%p5509_p4)
}
  0x2b   :  { %s5513_s14 = scalar_lea.vmem %s77_s18, 128  ;;  %p5518_p6 = scmp.lt.s32.totalorder %s77_s18, %s77_s18 }
  0x2c   :  { %p5514_p5 = scmp.ne.s32.totalorder %s77_s18, %s5513_s14  ;;  %p5519_p7 = scmp.lt.s32.totalorder %s5513_s14, %s5513_s14 }
  0x2e   :  { %p5520_p8 = por %p5519_p7, %p5518_p6 }
  0x30   :  { %p5521_p9 = pnand %p5520_p8, %p5514_p5 }
  0x32   :  { %5524 = shalt.err (!%p5521_p9)
}
  0x33   :  { %79 = dma.hbm_to_vmem [thread:$0]  %s5994_s5, 128, %s77_s18, [#allocation11]  }
  0x34   :  { %s5626_s12 = smov [#allocation2]   ;;  %s5627_s16 = smov [#allocation6]  }
  0x35   :  { %s22_s15 = sshll.u32 %s5626_s12, 4  ;;  %s44_s17 = sshll.u32 %s5627_s16, 4  ;;  %s23_s15 = int_to_ptr.vmem [resolvable:$true] %s22_s15  ;;  %s45_s17 = int_to_ptr.vmem [resolvable:$true] %s44_s17 }
  0x36   :  { %s5525_s21 = scalar_lea.hbm %s5989_s0, 128 }
  0x37   :  { %p5526_p10 = scmp.ne.s32.totalorder %s5989_s0, %s5525_s21  ;;  %p5529_p11 = scmp.lt.u32.totalorder %s5525_s21, %s5989_s0 }
  0x39   :  { %p5531_p12 = pnand %p5529_p11, %p5526_p10 }
  0x3b   :  { %5534 = shalt.err (!%p5531_p12)
}
  0x3c   :  { %s5535_s5 = scalar_lea.vmem %s23_s15, 128  ;;  %p5540_p0 = scmp.lt.s32.totalorder %s23_s15, %s23_s15 }
  0x3d   :  { %p5536_p13 = scmp.ne.s32.totalorder %s23_s15, %s5535_s5  ;;  %p5541_p1 = scmp.lt.s32.totalorder %s5535_s5, %s5535_s5 }
  0x3f   :  { %p5542_p2 = por %p5541_p1, %p5540_p0 }
  0x41   :  { %p5543_p3 = pnand %p5542_p2, %p5536_p13 }
  0x43   :  { %5546 = shalt.err (!%p5543_p3)
}
  0x44   :  { %25 = dma.hbm_to_vmem [thread:$0]  %s5989_s0, 128, %s23_s15, [#allocation3]  }
  0x45   :  { %s5547_s28 = scalar_lea.hbm %s5991_s2, 128 }
  0x46   :  { %p5548_p4 = scmp.ne.s32.totalorder %s5991_s2, %s5547_s28  ;;  %p5551_p5 = scmp.lt.u32.totalorder %s5547_s28, %s5991_s2 }
  0x48   :  { %p5553_p6 = pnand %p5551_p5, %p5548_p4 }
  0x4a   :  { %5556 = shalt.err (!%p5553_p6)
}
  0x4b   :  { %s5557_s10 = scalar_lea.vmem %s45_s17, 128  ;;  %p5562_p8 = scmp.lt.s32.totalorder %s45_s17, %s45_s17 }
  0x4c   :  { %p5558_p7 = scmp.ne.s32.totalorder %s45_s17, %s5557_s10  ;;  %p5563_p9 = scmp.lt.s32.totalorder %s5557_s10, %s5557_s10 }
  0x4e   :  { %p5564_p10 = por %p5563_p9, %p5562_p8 }
  0x50   :  { %p5565_p11 = pnand %p5564_p10, %p5558_p7 }
  0x52   :  { %5568 = shalt.err (!%p5565_p11)
}
  0x53   :  { %47 = dma.hbm_to_vmem [thread:$0]  %s5991_s2, 128, %s45_s17, [#allocation5]  }
  0x54   :  { %s5628_s14 = smov [#allocation9]   ;;  %s5629_s11 = smov [#allocation12]  }
  0x55   :  { %s66_s3 = sshll.u32 %s5628_s14, 4  ;;  %s86_s12 = sshll.u32 %s5629_s11, 4  ;;  %s67_s3 = int_to_ptr.vmem [resolvable:$true] %s66_s3  ;;  %s87_s12 = int_to_ptr.vmem [resolvable:$true] %s86_s12 }
  0x56   :  { %s5569_s19 = scalar_lea.hbm %s5993_s4, 128 }
  0x57   :  { %p5570_p12 = scmp.ne.s32.totalorder %s5993_s4, %s5569_s19  ;;  %p5573_p13 = scmp.lt.u32.totalorder %s5569_s19, %s5993_s4 }
  0x59   :  { %p5575_p0 = pnand %p5573_p13, %p5570_p12 }
  0x5b   :  { %5578 = shalt.err (!%p5575_p0)
}
  0x5c   :  { %s5579_s2 = scalar_lea.vmem %s67_s3, 128  ;;  %p5584_p2 = scmp.lt.s32.totalorder %s67_s3, %s67_s3 }
  0x5d   :  { %p5580_p1 = scmp.ne.s32.totalorder %s67_s3, %s5579_s2  ;;  %p5585_p3 = scmp.lt.s32.totalorder %s5579_s2, %s5579_s2 }
  0x5f   :  { %p5586_p4 = por %p5585_p3, %p5584_p2 }
  0x61   :  { %p5587_p5 = pnand %p5586_p4, %p5580_p1 }
  0x63   :  { %5590 = shalt.err (!%p5587_p5)
}
  0x64   :  { %69 = dma.hbm_to_vmem [thread:$0]  %s5993_s4, 128, %s67_s3, [#allocation8]  }
  0x65   :  { %s5591_s18 = scalar_lea.hbm %s5995_s6, 128 }
  0x66   :  { %p5592_p6 = scmp.ne.s32.totalorder %s5995_s6, %s5591_s18  ;;  %p5595_p7 = scmp.lt.u32.totalorder %s5591_s18, %s5995_s6 }
  0x68   :  { %p5597_p8 = pnand %p5595_p7, %p5592_p6 }
  0x6a   :  { %5600 = shalt.err (!%p5597_p8)
}
  0x6b   :  { %s5601_s29 = scalar_lea.vmem %s87_s12, 128  ;;  %p5606_p10 = scmp.lt.s32.totalorder %s87_s12, %s87_s12 }
  0x6c   :  { %p5602_p9 = scmp.ne.s32.totalorder %s87_s12, %s5601_s29  ;;  %p5607_p11 = scmp.lt.s32.totalorder %s5601_s29, %s5601_s29 }
  0x6e   :  { %p5608_p12 = por %p5607_p11, %p5606_p10 }
  0x70   :  { %p5609_p13 = pnand %p5608_p12, %p5602_p9 }
  0x72   :  { %5612 = shalt.err (!%p5609_p13)
}
  0x73   :  { %89 = dma.hbm_to_vmem [thread:$0]  %s5995_s6, 128, %s87_s12, [#allocation11]  }
  0x74   :  { %5613 = dma.done.wait [#allocation3], 128  }
  0x75   :  { %5614 = vsyncadd [#allocation3], 4294967168 }
  0x76   :  { %5615 = dma.done.wait [#allocation5], 6784  }
  0x77   :  { %5616 = vsyncadd [#allocation5], 4294960512 }
  0x78   :  { %5617 = dma.done.wait [#allocation8], 65664  }
  0x79   :  { %5618 = vsyncadd [#allocation8], 4294901632 }
  0x7a   :  { %5619 = dma.done.wait [#allocation11], 256  }
  0x7b   :  { %5620 = vsyncadd [#allocation11], 4294967040  ;;  %v5630_v0 = vmov 0   ;;  %v114_v1 = vld [vmem:[#allocation4] sm:$0xff]  ;;  %v115_v11 = vld [vmem:[#allocation4 + $0x8] sm:$0xff]  ;;  %vm472_vm0 = vcmask 1041408  }
  0x7c   :  { %529 = vmatprep.mubr.bf16.mxu0 %v5630_v0  ;;  %570 = vmatprep.mubr.bf16.mxu1 %v5630_v0  ;;  %v118_v2 = vld [vmem:[#allocation4 + $0x20] sm:$0xff]  ;;  %v119_v13 = vld [vmem:[#allocation4 + $0x28] sm:$0xff]  ;;  %v116_v51 = vld [vmem:[#allocation4 + $0x10] sm:$0xff]  ;;  %vm468_vm1 = vcmask 818176  }
  0x7d   :  { %v122_v3 = vld [vmem:[#allocation4 + $0x40] sm:$0xff]  ;;  %v4785_v4 = vcombine.high %v114_v1, %v118_v2  ;;  %v4784_v5 = vcombine.low %v114_v1, %v118_v2  ;;  %v123_v14 = vld [vmem:[#allocation4 + $0x48] sm:$0xff]  ;;  %v4787_v18 = vcombine.high %v115_v11, %v119_v13  ;;  %v4786_v19 = vcombine.low %v115_v11, %v119_v13  ;;  %v120_v52 = vld [vmem:[#allocation4 + $0x30] sm:$0xff] }
  0x7e   :  { %v126_v6 = vld [vmem:[#allocation4 + $0x60] sm:$0xff]  ;;  %v127_v15 = vld [vmem:[#allocation4 + $0x68] sm:$0xff]  ;;  %v112_v54 = vld [vmem:[#allocation2] sm:$0xff]  ;;  %v4789_v57 = vcombine.high %v116_v51, %v120_v52  ;;  %v4788_v2 = vcombine.low %v116_v51, %v120_v52 }
  0x7f   :  { %v4793_v7 = vcombine.high %v122_v3, %v126_v6  ;;  %v130_v8 = vld [vmem:[#allocation4 + $0x80] sm:$0xff]  ;;  %497 = vmatprep.subr.bf16.mxu0 %v4785_v4  ;;  %v4792_v10 = vcombine.low %v122_v3, %v126_v6  ;;  %v4795_v20 = vcombine.high %v123_v14, %v127_v15  ;;  %v131_v21 = vld [vmem:[#allocation4 + $0x88] sm:$0xff]  ;;  %538 = vmatprep.subr.bf16.mxu1 %v4787_v18  ;;  %v124_v60 = vld [vmem:[#allocation4 + $0x50] sm:$0xff] }
  0x80   :  { %v134_v9 = vld [vmem:[#allocation4 + $0xa0] sm:$0xff]  ;;  %498 = vmatpush1.bf16.msra.mxu0 %v4784_v5  ;;  %v135_v22 = vld [vmem:[#allocation4 + $0xa8] sm:$0xff]  ;;  %539 = vmatpush1.bf16.msra.mxu1 %v4786_v19  ;;  %v4794_v25 = vcombine.low %v123_v14, %v127_v15  ;;  %v128_v61 = vld [vmem:[#allocation4 + $0x70] sm:$0xff]  ;;  %v5759_v62 = vpack.c.bf16 %v112_v54, %v112_v54 }
  0x81   :  { %499 = vmatprep.subr.bf16.mxu0 %v4793_v7  ;;  %v4801_v12 = vcombine.high %v130_v8, %v134_v9  ;;  %v138_v16 = vld [vmem:[#allocation4 + $0xc0] sm:$0xff]  ;;  %v4800_v23 = vcombine.low %v130_v8, %v134_v9  ;;  %540 = vmatprep.subr.bf16.mxu1 %v4795_v20  ;;  %v4803_v28 = vcombine.high %v131_v21, %v135_v22  ;;  %v139_v29 = vld [vmem:[#allocation4 + $0xc8] sm:$0xff]  ;;  %v117_v63 = vld [vmem:[#allocation4 + $0x18] sm:$0xff] }
  0x82   :  { %v142_v17 = vld [vmem:[#allocation4 + $0xe0] sm:$0xff]  ;;  %v143_v30 = vld [vmem:[#allocation4 + $0xe8] sm:$0xff]  ;;  %v4802_v33 = vcombine.low %v131_v21, %v135_v22  ;;  %v121_v1 = vld [vmem:[#allocation4 + $0x38] sm:$0xff]  ;;  %v4797_v3 = vcombine.high %v124_v60, %v128_v61 }
  0x83   :  { %v4809_v24 = vcombine.high %v138_v16, %v142_v17  ;;  %v146_v26 = vld [vmem:[#allocation4 + $0x100] sm:$0xff]  ;;  %v4808_v31 = vcombine.low %v138_v16, %v142_v17  ;;  %v4811_v36 = vcombine.high %v139_v29, %v143_v30  ;;  %v147_v37 = vld [vmem:[#allocation4 + $0x108] sm:$0xff]  ;;  %v4810_v41 = vcombine.low %v139_v29, %v143_v30  ;;  %v132_v5 = vld [vmem:[#allocation4 + $0x90] sm:$0xff] }
  0x84   :  { %500 = vmatpush1.bf16.msra.mxu0 %v4792_v10  ;;  %v150_v27 = vld [vmem:[#allocation4 + $0x120] sm:$0xff]  ;;  %541 = vmatpush1.bf16.msra.mxu1 %v4794_v25  ;;  %v151_v38 = vld [vmem:[#allocation4 + $0x128] sm:$0xff]  ;;  %v136_v6 = vld [vmem:[#allocation4 + $0xb0] sm:$0xff]  ;;  %v4791_v7 = vcombine.high %v117_v63, %v121_v1  ;;  %v4796_v10 = vcombine.low %v124_v60, %v128_v61 }
  0x85   :  { %501 = vmatprep.subr.bf16.mxu0 %v4801_v12  ;;  %v4817_v32 = vcombine.high %v146_v26, %v150_v27  ;;  %v154_v34 = vld [vmem:[#allocation4 + $0x140] sm:$0xff]  ;;  %542 = vmatprep.subr.bf16.mxu1 %v4803_v28  ;;  %v4816_v39 = vcombine.low %v146_v26, %v150_v27  ;;  %v4819_v43 = vcombine.high %v147_v37, %v151_v38  ;;  %v155_v44 = vld [vmem:[#allocation4 + $0x148] sm:$0xff]  ;;  %v125_v8 = vld [vmem:[#allocation4 + $0x58] sm:$0xff] }
  0x86   :  { %v158_v35 = vld [vmem:[#allocation4 + $0x160] sm:$0xff]  ;;  %v159_v45 = vld [vmem:[#allocation4 + $0x168] sm:$0xff]  ;;  %v4818_v49 = vcombine.low %v147_v37, %v151_v38  ;;  %v129_v9 = vld [vmem:[#allocation4 + $0x78] sm:$0xff]  ;;  %v4805_v11 = vcombine.high %v132_v5, %v136_v6  ;;  %v4790_v12 = vcombine.low %v117_v63, %v121_v1  ;;  %v4804_v18 = vcombine.low %v132_v5, %v136_v6 }
  0x87   :  { %v4825_v40 = vcombine.high %v154_v34, %v158_v35  ;;  %v162_v42 = vld [vmem:[#allocation4 + $0x180] sm:$0x33]  ;;  %v4824_v46 = vcombine.low %v154_v34, %v158_v35  ;;  %v4827_v50 = vcombine.high %v155_v44, %v159_v45  ;;  %v163_v53 = vld [vmem:[#allocation4 + $0x188] sm:$0x33]  ;;  %v4826_v56 = vcombine.low %v155_v44, %v159_v45  ;;  %v140_v13 = vld [vmem:[#allocation4 + $0xd0] sm:$0xff] }
  0x88   :  { %502 = vmatpush1.bf16.msra.mxu0 %v4800_v23  ;;  %543 = vmatpush1.bf16.msra.mxu1 %v4802_v33  ;;  %v4833_v47 = vcombine.high %v162_v42, %v162_v42  ;;  %v4832_v48 = vcombine.low %v162_v42, %v162_v42  ;;  %v4835_v58 = vcombine.high %v163_v53, %v163_v53  ;;  %v144_v14 = vld [vmem:[#allocation4 + $0xf0] sm:$0xff]  ;;  %v133_v16 = vld [vmem:[#allocation4 + $0x98] sm:$0xff]  ;;  %v693_v45 = vld [vmem:[#allocation7] sm:$0xff] }
  0x89   :  { %503 = vmatprep.subr.bf16.mxu0 %v4809_v24  ;;  %544 = vmatprep.subr.bf16.mxu1 %v4811_v36  ;;  %v4834_v59 = vcombine.low %v163_v53, %v163_v53  ;;  %v4799_v15 = vcombine.high %v125_v8, %v129_v9  ;;  %v137_v17 = vld [vmem:[#allocation4 + $0xb8] sm:$0xff]  ;;  %v4813_v19 = vcombine.high %v140_v13, %v144_v14  ;;  %v148_v21 = vld [vmem:[#allocation4 + $0x110] sm:$0xff]  ;;  %v701_v53 = vld [vmem:[#allocation7 + $0x40] sm:$0xff] }
  0x8a   :  { %v474_v55 = vsel %vm472_vm0, %v4832_v48, 0  ;;  %v4798_v20 = vcombine.low %v125_v8, %v129_v9  ;;  %v152_v22 = vld [vmem:[#allocation4 + $0x130] sm:$0xff]  ;;  %v4807_v23 = vcombine.high %v133_v16, %v137_v17  ;;  %v141_v24 = vld [vmem:[#allocation4 + $0xd8] sm:$0xff]  ;;  %v4812_v26 = vcombine.low %v140_v13, %v144_v14  ;;  %v705_v54 = vld [vmem:[#allocation7 + $0x60] sm:$0xff] }
  0x8b   :  { %v480_v4 = vsel %vm472_vm0, %v4834_v59, 0  ;;  %v145_v25 = vld [vmem:[#allocation4 + $0xf8] sm:$0xff]  ;;  %v4821_v27 = vcombine.high %v148_v21, %v152_v22  ;;  %v4806_v28 = vcombine.low %v133_v16, %v137_v17  ;;  %v156_v29 = vld [vmem:[#allocation4 + $0x150] sm:$0xff]  ;;  %v4820_v34 = vcombine.low %v148_v21, %v152_v22  ;;  %v709_v61 = vld [vmem:[#allocation7 + $0x80] sm:$0xff] }
  0x8c   :  { %504 = vmatpush1.bf16.msra.mxu0 %v4808_v31  ;;  %545 = vmatpush1.bf16.msra.mxu1 %v4810_v41  ;;  %v160_v30 = vld [vmem:[#allocation4 + $0x170] sm:$0xff]  ;;  %v4815_v31 = vcombine.high %v141_v24, %v145_v25  ;;  %v153_v33 = vld [vmem:[#allocation4 + $0x138] sm:$0xff]  ;;  %v713_v63 = vld [vmem:[#allocation7 + $0xa0] sm:$0xff] }
  0x8d   :  { %505 = vmatprep.subr.bf16.mxu0 %v4817_v32  ;;  %546 = vmatprep.subr.bf16.mxu1 %v4819_v43  ;;  %v149_v32 = vld [vmem:[#allocation4 + $0x118] sm:$0xff]  ;;  %v4829_v35 = vcombine.high %v156_v29, %v160_v30  ;;  %v164_v36 = vld [vmem:[#allocation4 + $0x190] sm:$0x33]  ;;  %v4865_v5 = vcombine.high %v709_v61, %v713_v63  ;;  %v721_v8 = vld [vmem:[#allocation7 + $0xe0] sm:$0xff] }
  0x8e   :  { %v4823_v37 = vcombine.high %v149_v32, %v153_v33  ;;  %v157_v38 = vld [vmem:[#allocation4 + $0x158] sm:$0xff]  ;;  %v4837_v41 = vcombine.high %v164_v36, %v164_v36  ;;  %v4836_v42 = vcombine.low %v164_v36, %v164_v36  ;;  %v4822_v43 = vcombine.low %v149_v32, %v153_v33  ;;  %v702_v1 = vld [vmem:[#allocation7 + $0x48] sm:$0xff]  ;;  %v729_v16 = vld [vmem:[#allocation7 + $0x120] sm:$0xff] }
  0x8f   :  { %v710_v9 = vld [vmem:[#allocation7 + $0x88] sm:$0xff]  ;;  %v733_v22 = vld [vmem:[#allocation7 + $0x140] sm:$0xff] }
  0x90   :  { %506 = vmatpush1.bf16.msra.mxu0 %v4816_v39  ;;  %547 = vmatpush1.bf16.msra.mxu1 %v4818_v49  ;;  %v161_v39 = vld [vmem:[#allocation4 + $0x178] sm:$0xff]  ;;  %v486_v48 = vsel %vm472_vm0, %v4836_v42, 0  ;;  %v718_v17 = vld [vmem:[#allocation7 + $0xc8] sm:$0xff] }
  0x91   :  { %507 = vmatprep.subr.bf16.mxu0 %v4825_v40  ;;  %548 = vmatprep.subr.bf16.mxu1 %v4827_v50  ;;  %v4828_v40 = vcombine.low %v156_v29, %v160_v30  ;;  %v4831_v44 = vcombine.high %v157_v38, %v161_v39  ;;  %v4830_v49 = vcombine.low %v157_v38, %v161_v39  ;;  %v741_v30 = vld [vmem:[#allocation7 + $0x180] sm:$0xff]  ;;  %v734_v32 = vld [vmem:[#allocation7 + $0x148] sm:$0xff] }
  0x92   :  { %v738_v33 = vld [vmem:[#allocation7 + $0x168] sm:$0xff]  ;;  %v753_v38 = vld [vmem:[#allocation7 + $0x1e0] sm:$0xff] }
  0x93   :  { %v4891_v36 = vcombine.high %v734_v32, %v738_v33  ;;  %v742_v39 = vld [vmem:[#allocation7 + $0x188] sm:$0xff]  ;;  %v4890_v42 = vcombine.low %v734_v32, %v738_v33 }
  0x94   :  { %508 = vmatpush1.bf16.msra.mxu0 %v4824_v46  ;;  %549 = vmatpush1.bf16.msra.mxu1 %v4826_v56  ;;  %v697_v46 = vld [vmem:[#allocation7 + $0x20] sm:$0xff]  ;;  %v698_v56 = vld [vmem:[#allocation7 + $0x28] sm:$0xff] }
  0x95   :  { %4840 = vmatprep.subr.msk.bf16.mxu0 %vm472_vm0, %v4833_v47  ;;  %4842 = vmatprep.subr.msk.bf16.mxu1 %vm472_vm0, %v4835_v58  ;;  %v165_v47 = vld [vmem:[#allocation4 + $0x198] sm:$0x33]  ;;  %v4849_v50 = vcombine.high %v693_v45, %v697_v46  ;;  %v4857_v58 = vcombine.high %v701_v53, %v705_v54 }
  0x96   :  { %v4839_v51 = vcombine.high %v165_v47, %v165_v47  ;;  %v4838_v52 = vcombine.low %v165_v47, %v165_v47  ;;  %v750_v47 = vld [vmem:[#allocation7 + $0x1c8] sm:$0xff] }
  0x98   :  { %510 = vmatpush1.bf16.msra.mxu0 %v474_v55  ;;  %551 = vmatpush1.bf16.msra.mxu1 %v480_v4  ;;  %v694_v55 = vld [vmem:[#allocation7 + $0x8] sm:$0xff]  ;;  %v492_v59 = vsel %vm472_vm0, %v4838_v52, 0 }
  0x99   :  { %579 = vmatprep.subr.bf16.mxu0 %v4789_v57  ;;  %620 = vmatprep.subr.bf16.mxu1 %v4791_v7  ;;  %v4848_v57 = vcombine.low %v693_v45, %v697_v46  ;;  %v4851_v60 = vcombine.high %v694_v55, %v698_v56  ;;  %v4850_v4 = vcombine.low %v694_v55, %v698_v56  ;;  %v717_v7 = vld [vmem:[#allocation7 + $0xc0] sm:$0xff]  ;;  %v758_v55 = vld [vmem:[#allocation7 + $0x208] sm:$0xff] }
  0x9a   :  { %v4873_v13 = vcombine.high %v717_v7, %v721_v8  ;;  %v757_v45 = vld [vmem:[#allocation7 + $0x200] sm:$0xff]  ;;  %v762_v56 = vld [vmem:[#allocation7 + $0x228] sm:$0xff] }
  0x9b   :  { %4841 = vmatmul.mubr.msk.bf16.vlgmr.msra.gmra.mrb[0].mxu0 %vm468_vm1, %v5759_v62  ;;  %4843 = vmatmul.mubr.msk.bf16.vlgmr.msra.gmra.mrb[0].mxu1 %vm468_vm1, %v5759_v62  ;;  %v761_v46 = vld [vmem:[#allocation7 + $0x220] sm:$0xff] }
  0x9c   :  { %580 = vmatpush1.bf16.msra.mxu0 %v4788_v2  ;;  %611 = vmatprep.mubr.bf16.mxu0 %v5630_v0  ;;  %v706_v2 = vld [vmem:[#allocation7 + $0x68] sm:$0xff] }
  0x9d   :  { %581 = vmatprep.subr.bf16.mxu0 %v4797_v3  ;;  %621 = vmatpush1.bf16.msra.mxu1 %v4790_v12  ;;  %v4856_v3 = vcombine.low %v701_v53, %v705_v54  ;;  %v4859_v6 = vcombine.high %v702_v1, %v706_v2  ;;  %v4858_v12 = vcombine.low %v702_v1, %v706_v2  ;;  %v765_v53 = vld [vmem:[#allocation7 + $0x240] sm:$0xff]  ;;  %v766_v1 = vld [vmem:[#allocation7 + $0x248] sm:$0xff] }
  0x9e   :  { %622 = vmatprep.subr.bf16.mxu1 %v4799_v15  ;;  %652 = vmatprep.mubr.bf16.mxu1 %v5630_v0  ;;  %v4814_v0 = vcombine.low %v141_v24, %v145_v25  ;;  %v725_v15 = vld [vmem:[#allocation7 + $0x100] sm:$0xff]  ;;  %v726_v24 = vld [vmem:[#allocation7 + $0x108] sm:$0xff] }
  0x9f   :  { %v4881_v21 = vcombine.high %v725_v15, %v729_v16  ;;  %v730_v25 = vld [vmem:[#allocation7 + $0x128] sm:$0xff]  ;;  %v769_v54 = vld [vmem:[#allocation7 + $0x260] sm:$0xff] }
  0xa0   :  { %582 = vmatpush1.bf16.msra.mxu0 %v4796_v10  ;;  %v714_v10 = vld [vmem:[#allocation7 + $0xa8] sm:$0xff]  ;;  %v4883_v29 = vcombine.high %v726_v24, %v730_v25 }
  0xa1   :  { %583 = vmatprep.subr.bf16.mxu0 %v4805_v11  ;;  %623 = vmatpush1.bf16.msra.mxu1 %v4798_v20  ;;  %v4864_v11 = vcombine.low %v709_v61, %v713_v63  ;;  %v4867_v14 = vcombine.high %v710_v9, %v714_v10  ;;  %v4866_v20 = vcombine.low %v710_v9, %v714_v10  ;;  %v773_v61 = vld [vmem:[#allocation7 + $0x280] sm:$0xff]  ;;  %v770_v2 = vld [vmem:[#allocation7 + $0x268] sm:$0xff] }
  0xa2   :  { %624 = vmatprep.subr.bf16.mxu1 %v4807_v23  ;;  %v737_v23 = vld [vmem:[#allocation7 + $0x160] sm:$0xff]  ;;  %v774_v9 = vld [vmem:[#allocation7 + $0x288] sm:$0xff] }
  0xa3   :  { %v777_v63 = vld [vmem:[#allocation7 + $0x2a0] sm:$0xff]  ;;  %v778_v10 = vld [vmem:[#allocation7 + $0x2a8] sm:$0xff] }
  0xa4   :  { %584 = vmatpush1.bf16.msra.mxu0 %v4804_v18  ;;  %v722_v18 = vld [vmem:[#allocation7 + $0xe8] sm:$0xff] }
  0xa5   :  { %585 = vmatprep.subr.bf16.mxu0 %v4813_v19  ;;  %625 = vmatpush1.bf16.msra.mxu1 %v4806_v28  ;;  %v4872_v19 = vcombine.low %v717_v7, %v721_v8  ;;  %v4889_v28 = vcombine.high %v733_v22, %v737_v23  ;;  %v781_v7 = vld [vmem:[#allocation7 + $0x2c0] sm:$0xff] }
  0xa6   :  { %626 = vmatprep.subr.bf16.mxu1 %v4815_v31  ;;  %v745_v31 = vld [vmem:[#allocation7 + $0x1a0] sm:$0xff] }
  0xa7   :  { %v785_v8 = vld [vmem:[#allocation7 + $0x2e0] sm:$0xff] }
  0xa8   :  { %586 = vmatpush1.bf16.msra.mxu0 %v4812_v26  ;;  %v4880_v26 = vcombine.low %v725_v15, %v729_v16  ;;  %v789_v15 = vld [vmem:[#allocation7 + $0x300] sm:$0xff] }
  0xa9   :  { %587 = vmatprep.subr.bf16.mxu0 %v4821_v27  ;;  %627 = vmatpush1.bf16.msra.mxu1 %v4814_v0  ;;  %v4874_v27 = vcombine.low %v718_v17, %v722_v18  ;;  %v4897_v0 = vcombine.high %v741_v30, %v745_v31  ;;  %v793_v16 = vld [vmem:[#allocation7 + $0x320] sm:$0xff] }
  0xaa   :  { %628 = vmatprep.subr.bf16.mxu1 %v4823_v37  ;;  %v749_v37 = vld [vmem:[#allocation7 + $0x1c0] sm:$0xff] }
  0xac   :  { %588 = vmatpush1.bf16.msra.mxu0 %v4820_v34  ;;  %v4888_v34 = vcombine.low %v733_v22, %v737_v23  ;;  %v797_v22 = vld [vmem:[#allocation7 + $0x340] sm:$0xff] }
  0xad   :  { %589 = vmatprep.subr.bf16.mxu0 %v4829_v35  ;;  %629 = vmatpush1.bf16.msra.mxu1 %v4822_v43  ;;  %v4882_v35 = vcombine.low %v726_v24, %v730_v25  ;;  %v4905_v43 = vcombine.high %v749_v37, %v753_v38  ;;  %v801_v23 = vld [vmem:[#allocation7 + $0x360] sm:$0xff]  ;;  %v790_v24 = vld [vmem:[#allocation7 + $0x308] sm:$0xff] }
  0xae   :  { %630 = vmatprep.subr.bf16.mxu1 %v4831_v44  ;;  %v794_v25 = vld [vmem:[#allocation7 + $0x328] sm:$0xff]  ;;  %v4952_v32 = vcombine.low %v797_v22, %v801_v23 }
  0xaf   :  { %v4946_v33 = vcombine.low %v790_v24, %v794_v25 }
  0xb0   :  { %590 = vmatpush1.bf16.msra.mxu0 %v4828_v40  ;;  %v746_v40 = vld [vmem:[#allocation7 + $0x1a8] sm:$0xff] }
  0xb1   :  { %4844 = vmatprep.subr.msk.bf16.mxu0 %vm472_vm0, %v4837_v41  ;;  %631 = vmatpush1.bf16.msra.mxu1 %v4830_v49  ;;  %v4896_v41 = vcombine.low %v741_v30, %v745_v31  ;;  %v4899_v44 = vcombine.high %v742_v39, %v746_v40  ;;  %v4904_v49 = vcombine.low %v749_v37, %v753_v38  ;;  %v798_v30 = vld [vmem:[#allocation7 + $0x348] sm:$0xff] }
  0xb2   :  { %4846 = vmatprep.subr.msk.bf16.mxu1 %vm472_vm0, %v4839_v51  ;;  %v4913_v51 = vcombine.high %v757_v45, %v761_v46  ;;  %v802_v31 = vld [vmem:[#allocation7 + $0x368] sm:$0xff] }
  0xb3   :  { %v4954_v37 = vcombine.low %v798_v30, %v802_v31 }
  0xb4   :  { %592 = vmatpush1.bf16.msra.mxu0 %v486_v48  ;;  %v754_v48 = vld [vmem:[#allocation7 + $0x1e8] sm:$0xff] }
  0xb5   :  { %3807 = vmatprep.subr.bf16.mxu0 %v4849_v50  ;;  %633 = vmatpush1.bf16.msra.mxu1 %v492_v59  ;;  %v4898_v50 = vcombine.low %v742_v39, %v746_v40  ;;  %v4907_v52 = vcombine.high %v750_v47, %v754_v48  ;;  %v4921_v59 = vcombine.high %v765_v53, %v769_v54  ;;  %v810_v39 = vld [vmem:[#allocation7 + $0x3a8] sm:$0xff] }
  0xb6   :  { %3971 = vmatprep.subr.bf16.mxu1 %v4851_v60  ;;  %v4915_v60 = vcombine.high %v758_v55, %v762_v56 }
  0xb7   :  { %4845 = vmatmul.mubr.msk.bf16.vlgmr.msra.gmra.mrb[4].mxu0 %vm468_vm1, %v5759_v62 }
  0xb8   :  { %3808 = vmatpush1.bf16.msra.mxu0 %v4848_v57  ;;  %4847 = vmatmul.mubr.msk.bf16.vlgmr.msra.gmra.mrb[4].mxu1 %vm468_vm1, %v5759_v62  ;;  %v4875_v62 = vcombine.high %v718_v17, %v722_v18  ;;  %v4912_v57 = vcombine.low %v757_v45, %v761_v46  ;;  %v782_v17 = vld [vmem:[#allocation7 + $0x2c8] sm:$0xff] }
  0xb9   :  { %3809 = vmatprep.subr.bf16.mxu0 %v4857_v58  ;;  %3972 = vmatpush1.bf16.msra.mxu1 %v4850_v4  ;;  %v4906_v58 = vcombine.low %v750_v47, %v754_v48  ;;  %v4914_v4 = vcombine.low %v758_v55, %v762_v56  ;;  %v786_v18 = vld [vmem:[#allocation7 + $0x2e8] sm:$0xff] }
  0xba   :  { %3973 = vmatprep.subr.bf16.mxu1 %v4859_v6  ;;  %v4923_v6 = vcombine.high %v766_v1, %v770_v2  ;;  %v818_v47 = vld [vmem:[#allocation7 + $0x3e8] sm:$0xff] }
  0xbb   :  { %v826_v55 = vld [vmem:[#allocation7 + $0x428] sm:$0xff] }
  0xbc   :  { %3810 = vmatpush1.bf16.msra.mxu0 %v4856_v3  ;;  %v4920_v3 = vcombine.low %v765_v53, %v769_v54 }
  0xbd   :  { %3811 = vmatprep.subr.bf16.mxu0 %v4865_v5  ;;  %3974 = vmatpush1.bf16.msra.mxu1 %v4858_v12  ;;  %v4929_v5 = vcombine.high %v773_v61, %v777_v63  ;;  %v4922_v12 = vcombine.low %v766_v1, %v770_v2 }
  0xbe   :  { %3975 = vmatprep.subr.bf16.mxu1 %v4867_v14  ;;  %v4931_v14 = vcombine.high %v774_v9, %v778_v10 }
  0xc0   :  { %3812 = vmatpush1.bf16.msra.mxu0 %v4864_v11  ;;  %v4928_v11 = vcombine.low %v773_v61, %v777_v63  ;;  %v5782_v63 = vld [vmem:[#allocation6] sm:$0xff] }
  0xc1   :  { %3813 = vmatprep.subr.bf16.mxu0 %v4873_v13  ;;  %3976 = vmatpush1.bf16.msra.mxu1 %v4866_v20  ;;  %v4937_v13 = vcombine.high %v781_v7, %v785_v8  ;;  %v4930_v20 = vcombine.low %v774_v9, %v778_v10 }
  0xc2   :  { %3977 = vmatprep.subr.bf16.mxu1 %v4875_v62  ;;  %v4939_v62 = vcombine.high %v782_v17, %v786_v18 }
  0xc4   :  { %3814 = vmatpush1.bf16.msra.mxu0 %v4872_v19  ;;  %v4936_v19 = vcombine.low %v781_v7, %v785_v8 }
  0xc5   :  { %3815 = vmatprep.subr.bf16.mxu0 %v4881_v21  ;;  %3978 = vmatpush1.bf16.msra.mxu1 %v4874_v27  ;;  %v4945_v21 = vcombine.high %v789_v15, %v793_v16  ;;  %v4938_v27 = vcombine.low %v782_v17, %v786_v18  ;;  %v830_v17 = vld [vmem:[#allocation7 + $0x448] sm:$0xff] }
  0xc6   :  { %3979 = vmatprep.subr.bf16.mxu1 %v4883_v29  ;;  %v4947_v29 = vcombine.high %v790_v24, %v794_v25  ;;  %v834_v18 = vld [vmem:[#allocation7 + $0x468] sm:$0xff] }
  0xc8   :  { %3816 = vmatpush1.bf16.msra.mxu0 %v4880_v26  ;;  %v4944_v26 = vcombine.low %v789_v15, %v793_v16  ;;  %v833_v16 = vld [vmem:[#allocation7 + $0x460] sm:$0xff] }
  0xc9   :  { %3817 = vmatprep.subr.bf16.mxu0 %v4889_v28  ;;  %3980 = vmatpush1.bf16.msra.mxu1 %v4882_v35  ;;  %v4953_v28 = vcombine.high %v797_v22, %v801_v23  ;;  %v805_v35 = vld [vmem:[#allocation7 + $0x380] sm:$0xff] }
  0xca   :  { %3981 = vmatprep.subr.bf16.mxu1 %v4891_v36  ;;  %v806_v36 = vld [vmem:[#allocation7 + $0x388] sm:$0xff] }
  0xcb   :  { %v4962_v45 = vcombine.low %v806_v36, %v810_v39 }
  0xcc   :  { %3818 = vmatpush1.bf16.msra.mxu0 %v4888_v34  ;;  %v4955_v34 = vcombine.high %v798_v30, %v802_v31  ;;  %v838_v30 = vld [vmem:[#allocation7 + $0x488] sm:$0xff] }
  0xcd   :  { %3819 = vmatprep.subr.bf16.mxu0 %v4897_v0  ;;  %3982 = vmatpush1.bf16.msra.mxu1 %v4890_v42  ;;  %v809_v0 = vld [vmem:[#allocation7 + $0x3a0] sm:$0xff]  ;;  %v842_v31 = vld [vmem:[#allocation7 + $0x4a8] sm:$0xff] }
  0xce   :  { %3983 = vmatprep.subr.bf16.mxu1 %v4899_v44  ;;  %v4961_v38 = vcombine.high %v805_v35, %v809_v0  ;;  %v4960_v40 = vcombine.low %v805_v35, %v809_v0  ;;  %v813_v42 = vld [vmem:[#allocation7 + $0x3c0] sm:$0xff]  ;;  %v814_v44 = vld [vmem:[#allocation7 + $0x3c8] sm:$0xff] }
  0xcf   :  { %v4970_v53 = vcombine.low %v814_v44, %v818_v47 }
  0xd0   :  { %3820 = vmatpush1.bf16.msra.mxu0 %v4896_v41  ;;  %v4963_v41 = vcombine.high %v806_v36, %v810_v39  ;;  %v4995_v36 = vcombine.high %v838_v30, %v842_v31  ;;  %v849_v39 = vld [vmem:[#allocation7 + $0x4e0] sm:$0xff] }
  0xd1   :  { %3821 = vmatprep.subr.bf16.mxu0 %v4905_v43  ;;  %3984 = vmatpush1.bf16.msra.mxu1 %v4898_v50  ;;  %v817_v43 = vld [vmem:[#allocation7 + $0x3e0] sm:$0xff] }
  0xd2   :  { %3985 = vmatprep.subr.bf16.mxu1 %v4907_v52  ;;  %v4969_v46 = vcombine.high %v813_v42, %v817_v43  ;;  %v4968_v48 = vcombine.low %v813_v42, %v817_v43  ;;  %v821_v50 = vld [vmem:[#allocation7 + $0x400] sm:$0xff]  ;;  %v822_v52 = vld [vmem:[#allocation7 + $0x408] sm:$0xff]  ;;  %v4994_v43 = vcombine.low %v838_v30, %v842_v31 }
  0xd3   :  { %v890_v30 = vld [vmem:[#allocation7 + $0x628] sm:$0xff] }
  0xd4   :  { %3822 = vmatpush1.bf16.msra.mxu0 %v4904_v49  ;;  %v4971_v49 = vcombine.high %v814_v44, %v818_v47  ;;  %v857_v47 = vld [vmem:[#allocation7 + $0x520] sm:$0xff] }
  0xd5   :  { %3823 = vmatprep.subr.bf16.mxu0 %v4913_v51  ;;  %3986 = vmatpush1.bf16.msra.mxu1 %v4906_v58  ;;  %v825_v51 = vld [vmem:[#allocation7 + $0x420] sm:$0xff]  ;;  %v4979_v58 = vcombine.high %v822_v52, %v826_v55 }
  0xd6   :  { %3987 = vmatprep.subr.bf16.mxu1 %v4915_v60  ;;  %v4977_v54 = vcombine.high %v821_v50, %v825_v51  ;;  %v4976_v56 = vcombine.low %v821_v50, %v825_v51 }
  0xd8   :  { %3824 = vmatpush1.bf16.msra.mxu0 %v4912_v57  ;;  %v4978_v57 = vcombine.low %v822_v52, %v826_v55  ;;  %v865_v55 = vld [vmem:[#allocation7 + $0x560] sm:$0xff] }
  0xd9   :  { %3825 = vmatprep.subr.bf16.mxu0 %v4921_v59  ;;  %3988 = vmatpush1.bf16.msra.mxu1 %v4914_v4  ;;  %v168_v59 = vlaneseq }
  0xda   :  { %3989 = vmatprep.subr.bf16.mxu1 %v4923_v6 }
  0xdb   :  { %v5777_v60 = vshrl.u32 %v168_v59, 7 }
  0xdc   :  { %3826 = vmatpush1.bf16.msra.mxu0 %v4920_v3 }
  0xdd   :  { %3827 = vmatprep.subr.bf16.mxu0 %v4929_v5  ;;  %3990 = vmatpush1.bf16.msra.mxu1 %v4922_v12  ;;  %v5780_v61 = vsub.s32 0, %v5777_v60  ;;  %v5785_v1 = vsub.s32 1, %v5777_v60  ;;  %v5792_v4 = vsub.s32 3, %v5777_v60 }
  0xde   :  { %3991 = vmatprep.subr.bf16.mxu1 %v4931_v14  ;;  %v829_v14 = vld [vmem:[#allocation7 + $0x440] sm:$0xff] }
  0xdf   :  { %v171_v2 = vrot.slane %v5782_v63, %v5780_v61  ;;  %v175_v3 = vrot.slane %v5782_v63, %v5785_v1  ;;  %v183_v12 = vrot.slane %v5782_v63, %v5792_v4  ;;  %v4985_v25 = vcombine.high %v829_v14, %v833_v16 }
  0xe0   :  { %3828 = vmatpush1.bf16.msra.mxu0 %v4928_v11 }
  0xe1   :  { %3829 = vmatprep.subr.bf16.mxu0 %v4937_v13  ;;  %3992 = vmatpush1.bf16.msra.mxu1 %v4930_v20 }
  0xe2   :  { %3993 = vmatprep.subr.bf16.mxu1 %v4939_v62 }
  0xe4   :  { %3830 = vmatpush1.bf16.msra.mxu0 %v4936_v19 }
  0xe5   :  { %3831 = vmatprep.subr.bf16.mxu0 %v4945_v21  ;;  %3994 = vmatpush1.bf16.msra.mxu1 %v4938_v27  ;;  %v837_v27 = vld [vmem:[#allocation7 + $0x480] sm:$0xff] }
  0xe6   :  { %3995 = vmatprep.subr.bf16.mxu1 %v4947_v29  ;;  %v841_v29 = vld [vmem:[#allocation7 + $0x4a0] sm:$0xff] }
  0xe7   :  { %v4993_v0 = vcombine.high %v837_v27, %v841_v29  ;;  %v4992_v42 = vcombine.low %v837_v27, %v841_v29  ;;  %v885_v27 = vld [vmem:[#allocation7 + $0x600] sm:$0xff]  ;;  %v886_v29 = vld [vmem:[#allocation7 + $0x608] sm:$0xff] }
  0xe8   :  { %3832 = vmatpush1.bf16.msra.mxu0 %v4944_v26  ;;  %v4987_v26 = vcombine.high %v830_v17, %v834_v18 }
  0xe9   :  { %3833 = vmatprep.subr.bf16.mxu0 %v4953_v28  ;;  %3996 = vmatpush1.bf16.msra.mxu1 %v4946_v33  ;;  %v4984_v33 = vcombine.low %v829_v14, %v833_v16  ;;  %v878_v16 = vld [vmem:[#allocation7 + $0x5c8] sm:$0xff] }
  0xea   :  { %3997 = vmatprep.subr.bf16.mxu1 %v4955_v34  ;;  %v4986_v34 = vcombine.low %v830_v17, %v834_v18  ;;  %v882_v17 = vld [vmem:[#allocation7 + $0x5e8] sm:$0xff] }
  0xec   :  { %3834 = vmatpush1.bf16.msra.mxu0 %v4952_v32 }
  0xed   :  { %3835 = vmatprep.subr.bf16.mxu0 %v4961_v38  ;;  %3998 = vmatpush1.bf16.msra.mxu1 %v4954_v37  ;;  %v845_v37 = vld [vmem:[#allocation7 + $0x4c0] sm:$0xff] }
  0xee   :  { %3999 = vmatprep.subr.bf16.mxu1 %v4963_v41  ;;  %v850_v41 = vld [vmem:[#allocation7 + $0x4e8] sm:$0xff]  ;;  %v5001_v44 = vcombine.high %v845_v37, %v849_v39  ;;  %v5000_v50 = vcombine.low %v845_v37, %v849_v39  ;;  %v893_v37 = vld [vmem:[#allocation7 + $0x640] sm:$0xff] }
  0xf0   :  { %3836 = vmatpush1.bf16.msra.mxu0 %v4960_v40  ;;  %v846_v40 = vld [vmem:[#allocation7 + $0x4c8] sm:$0xff] }
  0xf1   :  { %3837 = vmatprep.subr.bf16.mxu0 %v4969_v46  ;;  %4000 = vmatpush1.bf16.msra.mxu1 %v4962_v45  ;;  %v5003_v45 = vcombine.high %v846_v40, %v850_v41  ;;  %v853_v46 = vld [vmem:[#allocation7 + $0x500] sm:$0xff]  ;;  %v5002_v51 = vcombine.low %v846_v40, %v850_v41  ;;  %v894_v41 = vld [vmem:[#allocation7 + $0x648] sm:$0xff] }
  0xf2   :  { %4001 = vmatprep.subr.bf16.mxu1 %v4971_v49  ;;  %v858_v49 = vld [vmem:[#allocation7 + $0x528] sm:$0xff]  ;;  %v5009_v52 = vcombine.high %v853_v46, %v857_v47  ;;  %v897_v40 = vld [vmem:[#allocation7 + $0x660] sm:$0xff] }
  0xf4   :  { %3838 = vmatpush1.bf16.msra.mxu0 %v4968_v48  ;;  %v854_v48 = vld [vmem:[#allocation7 + $0x508] sm:$0xff] }
  0xf5   :  { %3848 = vmatprep.subr.bf16.mxu0 %v4977_v54  ;;  %4002 = vmatpush1.bf16.msra.mxu1 %v4970_v53  ;;  %v5011_v53 = vcombine.high %v854_v48, %v858_v49  ;;  %v861_v54 = vld [vmem:[#allocation7 + $0x540] sm:$0xff]  ;;  %v5010_v59 = vcombine.low %v854_v48, %v858_v49  ;;  %v902_v49 = vld [vmem:[#allocation7 + $0x688] sm:$0xff] }
  0xf6   :  { %4012 = vmatprep.subr.bf16.mxu1 %v4979_v58  ;;  %v5008_v58 = vcombine.low %v853_v46, %v857_v47  ;;  %v901_v47 = vld [vmem:[#allocation7 + $0x680] sm:$0xff] }
  0xf7   :  { %v905_v48 = vld [vmem:[#allocation7 + $0x6a0] sm:$0xff] }
 0x16e   :  { %v531_v5 = vpop.f32.mrb[0].mxu0  ;;  %v5796_v19 = vpop.f32.mrb[0].mxu1 }
 0x16f   :  { %v532_v6 = vadd.f32 %v531_v5, %v171_v2  ;;  %v533_v7 = vpop.f32.mrb[1].mxu0  ;;  %v574_v21 = vpop.f32.mrb[1].mxu1  ;;  %v5017_v2 = vcombine.high %v861_v54, %v865_v55  ;;  %v869_v5 = vld [vmem:[#allocation7 + $0x580] sm:$0xff] }
 0x170   :  { %v534_v8 = vadd.f32 %v533_v7, %v175_v3  ;;  %v535_v9 = vpop.f32.mrb[2].mxu0  ;;  %v575_v22 = vadd.f32 %v574_v21, %v183_v12  ;;  %v576_v23 = vpop.f32.mrb[2].mxu1  ;;  %v870_v7 = vld [vmem:[#allocation7 + $0x588] sm:$0xff] }
 0x171   :  { %vm661_vm2 = vcmp.gt.f32.partialorder %v532_v6, 0.0  ;;  %v669_v10 = vmul.f32 0.2, %v532_v6  ;;  %v536_v11 = vpop.f32.mrb[3].mxu0  ;;  %v577_v28 = vpop.f32.mrb[3].mxu1  ;;  %v5016_v9 = vcombine.low %v861_v54, %v865_v55  ;;  %v909_v55 = vld [vmem:[#allocation7 + $0x6c0] sm:$0xff] }
 0x172   :  { %vm662_vm3 = vcmp.gt.f32.partialorder %v534_v8, 0.0  ;;  %v670_v13 = vmul.f32 0.2, %v534_v8  ;;  %vm664_vm4 = vcmp.gt.f32.partialorder %v575_v22, 0.0  ;;  %v672_v32 = vmul.f32 0.2, %v575_v22 }
 0x173   :  { %v677_v15 = vsel %vm661_vm2, %v532_v6, %v669_v10  ;;  %v873_v6 = vld [vmem:[#allocation7 + $0x5a0] sm:$0xff] }
 0x174   :  { %v678_v20 = vsel %vm662_vm3, %v534_v8, %v670_v13  ;;  %v5800_v24 = vpack.c.bf16 %v677_v15, %v677_v15  ;;  %v680_v35 = vsel %vm664_vm4, %v575_v22, %v672_v32  ;;  %v874_v8 = vld [vmem:[#allocation7 + $0x5a8] sm:$0xff]  ;;  %v5025_v11 = vcombine.high %v869_v5, %v873_v6  ;;  %v877_v13 = vld [vmem:[#allocation7 + $0x5c0] sm:$0xff] }
 0x175   :  { %v5798_v62 = vpack.c.bf16 %v678_v20, %v678_v20  ;;  %v5806_v38 = vpack.c.bf16 %v680_v35, %v680_v35  ;;  %v5027_v12 = vcombine.high %v870_v7, %v874_v8  ;;  %v881_v15 = vld [vmem:[#allocation7 + $0x5e0] sm:$0xff]  ;;  %v5024_v21 = vcombine.low %v869_v5, %v873_v6 }
 0x176   :  { %v5026_v22 = vcombine.low %v870_v7, %v874_v8  ;;  %v889_v28 = vld [vmem:[#allocation7 + $0x620] sm:$0xff]  ;;  %v918_v8 = vld [vmem:[#allocation7 + $0x708] sm:$0xff] }
 0x177   :  { %3839 = vmatprep.mubr.bf16.mxu0 %v5798_v62  ;;  %4003 = vmatprep.mubr.bf16.mxu1 %v5798_v62  ;;  %v917_v6 = vld [vmem:[#allocation7 + $0x700] sm:$0xff] }
 0x178   :  { %3840 = vmatmul.mubr.bf16.vlgmr.msra.gmra.mrb[8].mxu0 %v5800_v24  ;;  %4004 = vmatmul.mubr.bf16.vlgmr.msra.gmra.mrb[8].mxu1 %v5800_v24  ;;  %v921_v7 = vld [vmem:[#allocation7 + $0x720] sm:$0xff] }
 0x179   :  { %3849 = vmatpush1.bf16.msra.mxu0 %v4976_v56  ;;  %4013 = vmatpush1.bf16.msra.mxu1 %v4978_v57  ;;  %v862_v56 = vld [vmem:[#allocation7 + $0x548] sm:$0xff] }
 0x17a   :  { %3850 = vmatprep.subr.bf16.mxu0 %v4985_v25  ;;  %4014 = vmatprep.subr.bf16.mxu1 %v4987_v26  ;;  %v866_v57 = vld [vmem:[#allocation7 + $0x568] sm:$0xff]  ;;  %v5033_v25 = vcombine.high %v877_v13, %v881_v15  ;;  %v5035_v26 = vcombine.high %v878_v16, %v882_v17 }
 0x17b   :  { %3880 = vmatprep.mubr.bf16.mxu0 %v5806_v38  ;;  %4044 = vmatprep.mubr.bf16.mxu1 %v5806_v38  ;;  %v5019_v3 = vcombine.high %v862_v56, %v866_v57  ;;  %v5018_v10 = vcombine.low %v862_v56, %v866_v57  ;;  %v913_v56 = vld [vmem:[#allocation7 + $0x6e0] sm:$0xff]  ;;  %v910_v57 = vld [vmem:[#allocation7 + $0x6c8] sm:$0xff] }
 0x17d   :  { %3851 = vmatpush1.bf16.msra.mxu0 %v4984_v33  ;;  %4015 = vmatpush1.bf16.msra.mxu1 %v4986_v34  ;;  %v5032_v33 = vcombine.low %v877_v13, %v881_v15  ;;  %v5034_v34 = vcombine.low %v878_v16, %v882_v17  ;;  %v925_v15 = vld [vmem:[#allocation7 + $0x740] sm:$0xff]  ;;  %v5819_v16 = vsub.s32 2, %v5777_v60 }
 0x17e   :  { %3852 = vmatprep.subr.bf16.mxu0 %v4993_v0  ;;  %4016 = vmatprep.subr.bf16.mxu1 %v4995_v36  ;;  %v5041_v0 = vcombine.high %v885_v27, %v889_v28  ;;  %v5043_v36 = vcombine.high %v886_v29, %v890_v30  ;;  %v929_v17 = vld [vmem:[#allocation7 + $0x760] sm:$0xff] }
 0x181   :  { %3853 = vmatpush1.bf16.msra.mxu0 %v4992_v42  ;;  %4017 = vmatpush1.bf16.msra.mxu1 %v4994_v43  ;;  %v898_v42 = vld [vmem:[#allocation7 + $0x668] sm:$0xff]  ;;  %v5040_v43 = vcombine.low %v885_v27, %v889_v28  ;;  %v933_v28 = vld [vmem:[#allocation7 + $0x780] sm:$0xff] }
 0x182   :  { %3854 = vmatprep.subr.bf16.mxu0 %v5001_v44  ;;  %4018 = vmatprep.subr.bf16.mxu1 %v5003_v45  ;;  %v5042_v44 = vcombine.low %v886_v29, %v890_v30  ;;  %v5049_v45 = vcombine.high %v893_v37, %v897_v40  ;;  %v5051_v46 = vcombine.high %v894_v41, %v898_v42  ;;  %v937_v30 = vld [vmem:[#allocation7 + $0x7a0] sm:$0xff] }
 0x183   :  { %v179_v29 = vrot.slane %v5782_v63, %v5819_v16 }
 0x185   :  { %3855 = vmatpush1.bf16.msra.mxu0 %v5000_v50  ;;  %4019 = vmatpush1.bf16.msra.mxu1 %v5002_v51  ;;  %v906_v50 = vld [vmem:[#allocation7 + $0x6a8] sm:$0xff]  ;;  %v5048_v51 = vcombine.low %v893_v37, %v897_v40  ;;  %v5089_v37 = vcombine.high %v933_v28, %v937_v30  ;;  %v941_v40 = vld [vmem:[#allocation7 + $0x7c0] sm:$0xff] }
 0x186   :  { %3856 = vmatprep.subr.bf16.mxu0 %v5009_v52  ;;  %4020 = vmatprep.subr.bf16.mxu1 %v5011_v53  ;;  %v5050_v52 = vcombine.low %v894_v41, %v898_v42  ;;  %v5057_v53 = vcombine.high %v901_v47, %v905_v48  ;;  %v5059_v54 = vcombine.high %v902_v49, %v906_v50  ;;  %v945_v42 = vld [vmem:[#allocation7 + $0x7e0] sm:$0xff] }
 0x187   :  { %v573_v41 = vadd.f32 %v5796_v19, %v179_v29  ;;  %v974_v29 = vld [vmem:[#allocation7 + $0x8c8] sm:$0xff] }
 0x189   :  { %3857 = vmatpush1.bf16.msra.mxu0 %v5008_v58  ;;  %4021 = vmatpush1.bf16.msra.mxu1 %v5010_v59  ;;  %v914_v58 = vld [vmem:[#allocation7 + $0x6e8] sm:$0xff]  ;;  %v5056_v59 = vcombine.low %v901_v47, %v905_v48  ;;  %v5097_v48 = vcombine.high %v941_v40, %v945_v42  ;;  %vm663_vm5 = vcmp.gt.f32.partialorder %v573_v41, 0.0 }
 0x18a   :  { %3858 = vmatprep.subr.bf16.mxu0 %v5017_v2  ;;  %4022 = vmatprep.subr.bf16.mxu1 %v5019_v3  ;;  %v5810_v14 = vpop.f32.mrb[4].mxu0  ;;  %v5058_v2 = vcombine.low %v902_v49, %v906_v50  ;;  %v5065_v3 = vcombine.high %v909_v55, %v913_v56  ;;  %v5067_v5 = vcombine.high %v910_v57, %v914_v58  ;;  %v949_v50 = vld [vmem:[#allocation7 + $0x800] sm:$0xff] }
 0x18b   :  { %v5812_v18 = vpop.f32.mrb[5].mxu0  ;;  %v5814_v31 = vpop.f32.mrb[4].mxu1 }
 0x18c   :  { %v617_v20 = vpop.f32.mrb[6].mxu0  ;;  %v5816_v32 = vpop.f32.mrb[5].mxu1 }
 0x18d   :  { %3859 = vmatpush1.bf16.msra.mxu0 %v5016_v9  ;;  %4023 = vmatpush1.bf16.msra.mxu1 %v5018_v10  ;;  %v618_v23 = vpop.f32.mrb[7].mxu0  ;;  %v658_v35 = vpop.f32.mrb[6].mxu1  ;;  %v922_v9 = vld [vmem:[#allocation7 + $0x728] sm:$0xff]  ;;  %v5064_v10 = vcombine.low %v909_v55, %v913_v56  ;;  %v5096_v55 = vcombine.low %v941_v40, %v945_v42 }
 0x18e   :  { %3860 = vmatprep.subr.bf16.mxu0 %v5025_v11  ;;  %4024 = vmatprep.subr.bf16.mxu1 %v5027_v12  ;;  %v659_v39 = vpop.f32.mrb[7].mxu1  ;;  %v5066_v11 = vcombine.low %v910_v57, %v914_v58  ;;  %v5073_v12 = vcombine.high %v917_v6, %v921_v7  ;;  %v5075_v13 = vcombine.high %v918_v8, %v922_v9  ;;  %v926_v20 = vld [vmem:[#allocation7 + $0x748] sm:$0xff]  ;;  %v957_v58 = vld [vmem:[#allocation7 + $0x840] sm:$0xff] }
 0x18f   :  { %v5072_v23 = vcombine.low %v917_v6, %v921_v7  ;;  %v986_v40 = vld [vmem:[#allocation7 + $0x928] sm:$0xff] }
 0x191   :  { %3861 = vmatpush1.bf16.msra.mxu0 %v5024_v21  ;;  %4025 = vmatpush1.bf16.msra.mxu1 %v5026_v22  ;;  %v930_v21 = vld [vmem:[#allocation7 + $0x768] sm:$0xff]  ;;  %v5822_v22 = vsub.s32 5, %v5777_v60 }
 0x192   :  { %3862 = vmatprep.subr.bf16.mxu0 %v5033_v25  ;;  %4026 = vmatprep.subr.bf16.mxu1 %v5035_v26  ;;  %v5074_v25 = vcombine.low %v918_v8, %v922_v9  ;;  %v5081_v26 = vcombine.high %v925_v15, %v929_v17  ;;  %v5083_v27 = vcombine.high %v926_v20, %v930_v21 }
 0x193   :  { %v191_v35 = vrot.slane %v5782_v63, %v5822_v22 }
 0x195   :  { %3863 = vmatpush1.bf16.msra.mxu0 %v5032_v33  ;;  %4027 = vmatpush1.bf16.msra.mxu1 %v5034_v34  ;;  %v934_v33 = vld [vmem:[#allocation7 + $0x788] sm:$0xff] }
 0x196   :  { %3864 = vmatprep.subr.bf16.mxu0 %v5041_v0  ;;  %4028 = vmatprep.subr.bf16.mxu1 %v5043_v36  ;;  %v938_v34 = vld [vmem:[#allocation7 + $0x7a8] sm:$0xff]  ;;  %v5080_v0 = vcombine.low %v925_v15, %v929_v17  ;;  %v5082_v36 = vcombine.low %v926_v20, %v930_v21 }
 0x197   :  { %v5091_v39 = vcombine.high %v934_v33, %v938_v34  ;;  %v5090_v47 = vcombine.low %v934_v33, %v938_v34  ;;  %v966_v15 = vld [vmem:[#allocation7 + $0x888] sm:$0xff] }
 0x198   :  { %v970_v17 = vld [vmem:[#allocation7 + $0x8a8] sm:$0xff] }
 0x199   :  { %3865 = vmatpush1.bf16.msra.mxu0 %v5040_v43  ;;  %4029 = vmatpush1.bf16.msra.mxu1 %v5042_v44  ;;  %v942_v43 = vld [vmem:[#allocation7 + $0x7c8] sm:$0xff]  ;;  %v5122_v34 = vcombine.low %v966_v15, %v970_v17 }
 0x19a   :  { %3866 = vmatprep.subr.bf16.mxu0 %v5049_v45  ;;  %4030 = vmatprep.subr.bf16.mxu1 %v5051_v46  ;;  %v946_v44 = vld [vmem:[#allocation7 + $0x7e8] sm:$0xff]  ;;  %v616_v45 = vadd.f32 %v5812_v18, %v191_v35  ;;  %v5088_v46 = vcombine.low %v933_v28, %v937_v30  ;;  %v977_v28 = vld [vmem:[#allocation7 + $0x8e0] sm:$0xff] }
 0x19b   :  { %v5099_v49 = vcombine.high %v942_v43, %v946_v44  ;;  %v5098_v56 = vcombine.low %v942_v43, %v946_v44  ;;  %v978_v30 = vld [vmem:[#allocation7 + $0x8e8] sm:$0xff] }
 0x19c   :  { %v674_v19 = vmul.f32 0.2, %v616_v45  ;;  %vm666_vm6 = vcmp.gt.f32.partialorder %v616_v45, 0.0  ;;  %v5130_v42 = vcombine.low %v974_v29, %v978_v30 }
 0x19d   :  { %3867 = vmatpush1.bf16.msra.mxu0 %v5048_v51  ;;  %4031 = vmatpush1.bf16.msra.mxu1 %v5050_v52  ;;  %v671_v51 = vmul.f32 0.2, %v573_v41  ;;  %v953_v52 = vld [vmem:[#allocation7 + $0x820] sm:$0xff] }
 0x19e   :  { %3868 = vmatprep.subr.bf16.mxu0 %v5057_v53  ;;  %4032 = vmatprep.subr.bf16.mxu1 %v5059_v54  ;;  %v950_v53 = vld [vmem:[#allocation7 + $0x808] sm:$0xff]  ;;  %v5105_v18 = vcombine.high %v949_v50, %v953_v52  ;;  %v682_v6 = vsel %vm666_vm6, %v616_v45, %v674_v19  ;;  %v5104_v7 = vcombine.low %v949_v50, %v953_v52  ;;  %v989_v45 = vld [vmem:[#allocation7 + $0x940] sm:$0xff] }
 0x19f   :  { %v954_v54 = vld [vmem:[#allocation7 + $0x828] sm:$0xff]  ;;  %v5832_v20 = vpack.c.bf16 %v682_v6, %v682_v6 }
 0x1a0   :  { %v5107_v57 = vcombine.high %v950_v53, %v954_v54  ;;  %v5106_v8 = vcombine.low %v950_v53, %v954_v54  ;;  %v997_v53 = vld [vmem:[#allocation7 + $0x980] sm:$0xff]  ;;  %v998_v19 = vld [vmem:[#allocation7 + $0x988] sm:$0xff] }
 0x1a1   :  { %3869 = vmatpush1.bf16.msra.mxu0 %v5056_v59  ;;  %4033 = vmatpush1.bf16.msra.mxu1 %v5058_v2  ;;  %v679_v59 = vsel %vm663_vm5, %v573_v41, %v671_v51  ;;  %v961_v2 = vld [vmem:[#allocation7 + $0x860] sm:$0xff] }
 0x1a2   :  { %3870 = vmatprep.subr.bf16.mxu0 %v5065_v3  ;;  %4034 = vmatprep.subr.bf16.mxu1 %v5067_v5  ;;  %v958_v3 = vld [vmem:[#allocation7 + $0x848] sm:$0xff]  ;;  %v5830_v9 = vpack.c.bf16 %v679_v59, %v679_v59  ;;  %v5112_v21 = vcombine.low %v957_v58, %v961_v2  ;;  %v1001_v54 = vld [vmem:[#allocation7 + $0x9a0] sm:$0xff] }
 0x1a3   :  { %v962_v5 = vld [vmem:[#allocation7 + $0x868] sm:$0xff]  ;;  %v1005_v59 = vld [vmem:[#allocation7 + $0x9c0] sm:$0xff]  ;;  %v5152_v6 = vcombine.low %v997_v53, %v1001_v54 }
 0x1a5   :  { %3871 = vmatpush1.bf16.msra.mxu0 %v5064_v10  ;;  %4035 = vmatpush1.bf16.msra.mxu1 %v5066_v11  ;;  %v5113_v10 = vcombine.high %v957_v58, %v961_v2  ;;  %v5115_v11 = vcombine.high %v958_v3, %v962_v5  ;;  %v1009_v2 = vld [vmem:[#allocation7 + $0x9e0] sm:$0xff] }
 0x1a6   :  { %3872 = vmatprep.subr.bf16.mxu0 %v5073_v12  ;;  %4036 = vmatprep.subr.bf16.mxu1 %v5075_v13  ;;  %v965_v12 = vld [vmem:[#allocation7 + $0x880] sm:$0xff] }
 0x1a7   :  { %v969_v13 = vld [vmem:[#allocation7 + $0x8a0] sm:$0xff] }
 0x1a8   :  { %v5120_v33 = vcombine.low %v965_v12, %v969_v13 }
 0x1a9   :  { %3873 = vmatpush1.bf16.msra.mxu0 %v5072_v23  ;;  %4037 = vmatpush1.bf16.msra.mxu1 %v5074_v25  ;;  %v5114_v23 = vcombine.low %v958_v3, %v962_v5  ;;  %v5121_v25 = vcombine.high %v965_v12, %v969_v13  ;;  %v1006_v3 = vld [vmem:[#allocation7 + $0x9c8] sm:$0xff]  ;;  %v1017_v12 = vld [vmem:[#allocation7 + $0xa20] sm:$0xff] }
 0x1aa   :  { %3874 = vmatprep.subr.bf16.mxu0 %v5081_v26  ;;  %4038 = vmatprep.subr.bf16.mxu1 %v5083_v27  ;;  %v5123_v26 = vcombine.high %v966_v15, %v970_v17  ;;  %v973_v27 = vld [vmem:[#allocation7 + $0x8c0] sm:$0xff]  ;;  %v1010_v5 = vld [vmem:[#allocation7 + $0x9e8] sm:$0xff]  ;;  %v5160_v17 = vcombine.low %v1005_v59, %v1009_v2 }
 0x1ab   :  { %v5129_v35 = vcombine.high %v973_v27, %v977_v28  ;;  %v5128_v41 = vcombine.low %v973_v27, %v977_v28  ;;  %v1014_v13 = vld [vmem:[#allocation7 + $0xa08] sm:$0xff]  ;;  %v1025_v27 = vld [vmem:[#allocation7 + $0xa60] sm:$0xff] }
 0x1ac   :  { %v1018_v15 = vld [vmem:[#allocation7 + $0xa28] sm:$0xff] }
 0x1ad   :  { %3875 = vmatpush1.bf16.msra.mxu0 %v5080_v0  ;;  %4039 = vmatpush1.bf16.msra.mxu1 %v5082_v36  ;;  %v5131_v0 = vcombine.high %v974_v29, %v978_v30  ;;  %v981_v36 = vld [vmem:[#allocation7 + $0x900] sm:$0xff]  ;;  %v1022_v28 = vld [vmem:[#allocation7 + $0xa48] sm:$0xff] }
 0x1ae   :  { %3876 = vmatprep.subr.bf16.mxu0 %v5089_v37  ;;  %4040 = vmatprep.subr.bf16.mxu1 %v5091_v39  ;;  %v985_v37 = vld [vmem:[#allocation7 + $0x920] sm:$0xff]  ;;  %v982_v39 = vld [vmem:[#allocation7 + $0x908] sm:$0xff] }
 0x1af   :  { %v5137_v43 = vcombine.high %v981_v36, %v985_v37  ;;  %v5139_v44 = vcombine.high %v982_v39, %v986_v40  ;;  %v5138_v50 = vcombine.low %v982_v39, %v986_v40  ;;  %v1026_v29 = vld [vmem:[#allocation7 + $0xa68] sm:$0xff] }
 0x1b0   :  { %v1034_v39 = vld [vmem:[#allocation7 + $0xaa8] sm:$0xff] }
 0x1b1   :  { %3877 = vmatpush1.bf16.msra.mxu0 %v5088_v46  ;;  %4041 = vmatpush1.bf16.msra.mxu1 %v5090_v47  ;;  %v993_v46 = vld [vmem:[#allocation7 + $0x960] sm:$0xff]  ;;  %v990_v47 = vld [vmem:[#allocation7 + $0x948] sm:$0xff] }
 0x1b2   :  { %3878 = vmatprep.subr.bf16.mxu0 %v5097_v48  ;;  %4042 = vmatprep.subr.bf16.mxu1 %v5099_v49  ;;  %v994_v48 = vld [vmem:[#allocation7 + $0x968] sm:$0xff]  ;;  %v5136_v49 = vcombine.low %v981_v36, %v985_v37  ;;  %v5145_v51 = vcombine.high %v989_v45, %v993_v46  ;;  %v1033_v36 = vld [vmem:[#allocation7 + $0xaa0] sm:$0xff] }
 0x1b3   :  { %v5147_v52 = vcombine.high %v990_v47, %v994_v48  ;;  %v1030_v37 = vld [vmem:[#allocation7 + $0xa88] sm:$0xff] }
 0x1b5   :  { %3879 = vmatpush1.bf16.msra.mxu0 %v5096_v55  ;;  %4043 = vmatpush1.bf16.msra.mxu1 %v5098_v56  ;;  %v1002_v55 = vld [vmem:[#allocation7 + $0x9a8] sm:$0xff]  ;;  %v5144_v56 = vcombine.low %v989_v45, %v993_v46  ;;  %v1041_v45 = vld [vmem:[#allocation7 + $0xae0] sm:$0xff] }
 0x1b6   :  { %3889 = vmatprep.subr.bf16.mxu0 %v5105_v18  ;;  %4053 = vmatprep.subr.bf16.mxu1 %v5107_v57  ;;  %v5146_v18 = vcombine.low %v990_v47, %v994_v48  ;;  %v5153_v57 = vcombine.high %v997_v53, %v1001_v54  ;;  %v5155_v58 = vcombine.high %v998_v19, %v1002_v55  ;;  %v1038_v46 = vld [vmem:[#allocation7 + $0xac8] sm:$0xff]  ;;  %v1049_v53 = vld [vmem:[#allocation7 + $0xb20] sm:$0xff] }
 0x1b7   :  { %v1042_v47 = vld [vmem:[#allocation7 + $0xae8] sm:$0xff] }
 0x1b8   :  { %3881 = vmatmul.mubr.bf16.vlgmr.msra.gmra.mrb[8].mxu0 %v5830_v9  ;;  %4045 = vmatmul.mubr.bf16.vlgmr.msra.gmra.mrb[8].mxu1 %v5830_v9  ;;  %v1046_v54 = vld [vmem:[#allocation7 + $0xb08] sm:$0xff] }
 0x1b9   :  { %3890 = vmatpush1.bf16.msra.mxu0 %v5104_v7  ;;  %4054 = vmatpush1.bf16.msra.mxu1 %v5106_v8  ;;  %v5154_v7 = vcombine.low %v998_v19, %v1002_v55  ;;  %v5161_v8 = vcombine.high %v1005_v59, %v1009_v2  ;;  %v1050_v19 = vld [vmem:[#allocation7 + $0xb28] sm:$0xff]  ;;  %v5839_v59 = vsub.s32 4, %v5777_v60  ;;  %v1057_v2 = vld [vmem:[#allocation7 + $0xb60] sm:$0xff] }
 0x1ba   :  { %3891 = vmatprep.subr.bf16.mxu0 %v5113_v10  ;;  %4055 = vmatprep.subr.bf16.mxu1 %v5115_v11  ;;  %v5163_v10 = vcombine.high %v1006_v3, %v1010_v5  ;;  %v1013_v11 = vld [vmem:[#allocation7 + $0xa00] sm:$0xff] }
 0x1bb   :  { %3921 = vmatprep.mubr.bf16.mxu0 %v5832_v20  ;;  %4085 = vmatprep.mubr.bf16.mxu1 %v5832_v20  ;;  %v5168_v30 = vcombine.low %v1013_v11, %v1017_v12 }
 0x1bd   :  { %3892 = vmatpush1.bf16.msra.mxu0 %v5112_v21  ;;  %4056 = vmatpush1.bf16.msra.mxu1 %v5114_v23  ;;  %v5162_v21 = vcombine.low %v1006_v3, %v1010_v5  ;;  %v5169_v23 = vcombine.high %v1013_v11, %v1017_v12  ;;  %v1054_v3 = vld [vmem:[#allocation7 + $0xb48] sm:$0xff]  ;;  %v1061_v12 = vld [vmem:[#allocation7 + $0xb80] sm:$0xff] }
 0x1be   :  { %3893 = vmatprep.subr.bf16.mxu0 %v5121_v25  ;;  %4057 = vmatprep.subr.bf16.mxu1 %v5123_v26  ;;  %v5171_v25 = vcombine.high %v1014_v13, %v1018_v15  ;;  %v1021_v26 = vld [vmem:[#allocation7 + $0xa40] sm:$0xff]  ;;  %v1058_v5 = vld [vmem:[#allocation7 + $0xb68] sm:$0xff] }
 0x1bf   :  { %v5176_v40 = vcombine.low %v1021_v26, %v1025_v27  ;;  %v5211_v11 = vcombine.high %v1054_v3, %v1058_v5 }
 0x1c1   :  { %3894 = vmatpush1.bf16.msra.mxu0 %v5120_v33  ;;  %4058 = vmatpush1.bf16.msra.mxu1 %v5122_v34  ;;  %v5170_v33 = vcombine.low %v1014_v13, %v1018_v15  ;;  %v5177_v34 = vcombine.high %v1021_v26, %v1025_v27  ;;  %v187_v13 = vrot.slane %v5782_v63, %v5839_v59  ;;  %v1065_v15 = vld [vmem:[#allocation7 + $0xba0] sm:$0xff] }
 0x1c2   :  { %3895 = vmatprep.subr.bf16.mxu0 %v5129_v35  ;;  %4059 = vmatprep.subr.bf16.mxu1 %v5131_v0  ;;  %v5179_v35 = vcombine.high %v1022_v28, %v1026_v29  ;;  %v1029_v0 = vld [vmem:[#allocation7 + $0xa80] sm:$0xff]  ;;  %v5210_v26 = vcombine.low %v1054_v3, %v1058_v5  ;;  %v5217_v27 = vcombine.high %v1061_v12, %v1065_v15  ;;  %v1098_v3 = vld [vmem:[#allocation7 + $0xca8] sm:$0xff] }
 0x1c3   :  { %v5184_v48 = vcombine.low %v1029_v0, %v1033_v36 }
 0x1c5   :  { %3896 = vmatpush1.bf16.msra.mxu0 %v5128_v41  ;;  %4060 = vmatpush1.bf16.msra.mxu1 %v5130_v42  ;;  %v5178_v41 = vcombine.low %v1022_v28, %v1026_v29  ;;  %v5185_v42 = vcombine.high %v1029_v0, %v1033_v36  ;;  %v1069_v29 = vld [vmem:[#allocation7 + $0xbc0] sm:$0xff]  ;;  %v5216_v36 = vcombine.low %v1061_v12, %v1065_v15  ;;  %v1102_v15 = vld [vmem:[#allocation7 + $0xcc8] sm:$0xff] }
 0x1c6   :  { %3897 = vmatprep.subr.bf16.mxu0 %v5137_v43  ;;  %4061 = vmatprep.subr.bf16.mxu1 %v5139_v44  ;;  %v5187_v43 = vcombine.high %v1030_v37, %v1034_v39  ;;  %v1037_v44 = vld [vmem:[#allocation7 + $0xac0] sm:$0xff] }
 0x1c7   :  { %v5192_v55 = vcombine.low %v1037_v44, %v1041_v45  ;;  %v1101_v12 = vld [vmem:[#allocation7 + $0xcc0] sm:$0xff] }
 0x1c9   :  { %3898 = vmatpush1.bf16.msra.mxu0 %v5136_v49  ;;  %4062 = vmatpush1.bf16.msra.mxu1 %v5138_v50  ;;  %v5186_v49 = vcombine.low %v1030_v37, %v1034_v39  ;;  %v5193_v50 = vcombine.high %v1037_v44, %v1041_v45  ;;  %v1082_v44 = vld [vmem:[#allocation7 + $0xc28] sm:$0xff] }
 0x1ca   :  { %3899 = vmatprep.subr.bf16.mxu0 %v5145_v51  ;;  %4063 = vmatprep.subr.bf16.mxu1 %v5147_v52  ;;  %v5195_v51 = vcombine.high %v1038_v46, %v1042_v47  ;;  %v1045_v52 = vld [vmem:[#allocation7 + $0xb00] sm:$0xff] }
 0x1cd   :  { %3900 = vmatpush1.bf16.msra.mxu0 %v5144_v56  ;;  %4064 = vmatpush1.bf16.msra.mxu1 %v5146_v18  ;;  %v5194_v56 = vcombine.low %v1038_v46, %v1042_v47  ;;  %v5201_v18 = vcombine.high %v1045_v52, %v1049_v53 }
 0x1ce   :  { %3901 = vmatprep.subr.bf16.mxu0 %v5153_v57  ;;  %4065 = vmatprep.subr.bf16.mxu1 %v5155_v58  ;;  %v5203_v57 = vcombine.high %v1046_v54, %v1050_v19  ;;  %v1053_v58 = vld [vmem:[#allocation7 + $0xb40] sm:$0xff] }
 0x1d1   :  { %3902 = vmatpush1.bf16.msra.mxu0 %v5152_v6  ;;  %4066 = vmatpush1.bf16.msra.mxu1 %v5154_v7  ;;  %v5842_v6 = vsub.s32 7, %v5777_v60  ;;  %v5200_v7 = vcombine.low %v1045_v52, %v1049_v53  ;;  %v1090_v52 = vld [vmem:[#allocation7 + $0xc68] sm:$0xff] }
 0x1d2   :  { %3903 = vmatprep.subr.bf16.mxu0 %v5161_v8  ;;  %4067 = vmatprep.subr.bf16.mxu1 %v5163_v10  ;;  %v5202_v8 = vcombine.low %v1046_v54, %v1050_v19  ;;  %v5209_v10 = vcombine.high %v1053_v58, %v1057_v2 }
 0x1d5   :  { %3904 = vmatpush1.bf16.msra.mxu0 %v5160_v17  ;;  %4068 = vmatpush1.bf16.msra.mxu1 %v5162_v21  ;;  %v1062_v17 = vld [vmem:[#allocation7 + $0xb88] sm:$0xff] }
 0x1d6   :  { %3905 = vmatprep.subr.bf16.mxu0 %v5169_v23  ;;  %4069 = vmatprep.subr.bf16.mxu1 %v5171_v25  ;;  %v1066_v21 = vld [vmem:[#allocation7 + $0xba8] sm:$0xff]  ;;  %v199_v23 = vrot.slane %v5782_v63, %v5842_v6  ;;  %v5208_v25 = vcombine.low %v1053_v58, %v1057_v2  ;;  %v1097_v58 = vld [vmem:[#allocation7 + $0xca0] sm:$0xff] }
 0x1d7   :  { %v5219_v28 = vcombine.high %v1062_v17, %v1066_v21  ;;  %v5218_v63 = vcombine.low %v1062_v17, %v1066_v21  ;;  %v1094_v2 = vld [vmem:[#allocation7 + $0xc88] sm:$0xff] }
 0x1d8   :  { %v657_v0 = vadd.f32 %v5816_v32, %v199_v23  ;;  %v1106_v17 = vld [vmem:[#allocation7 + $0xce8] sm:$0xff]  ;;  %v5250_v23 = vcombine.low %v1094_v2, %v1098_v3 }
 0x1d9   :  { %3906 = vmatpush1.bf16.msra.mxu0 %v5168_v30  ;;  %4070 = vmatpush1.bf16.msra.mxu1 %v5170_v33  ;;  %v614_v30 = vadd.f32 %v5810_v14, %v187_v13  ;;  %v1073_v33 = vld [vmem:[#allocation7 + $0xbe0] sm:$0xff] }
 0x1da   :  { %3907 = vmatprep.subr.bf16.mxu0 %v5177_v34  ;;  %4071 = vmatprep.subr.bf16.mxu1 %v5179_v35  ;;  %v1070_v34 = vld [vmem:[#allocation7 + $0xbc8] sm:$0xff]  ;;  %v5225_v37 = vcombine.high %v1069_v29, %v1073_v33  ;;  %v676_v14 = vmul.f32 0.2, %v657_v0  ;;  %v5224_v45 = vcombine.low %v1069_v29, %v1073_v33  ;;  %vm668_vm8 = vcmp.gt.f32.partialorder %v657_v0, 0.0  ;;  %v1105_v13 = vld [vmem:[#allocation7 + $0xce0] sm:$0xff] }
 0x1db   :  { %v1074_v35 = vld [vmem:[#allocation7 + $0xbe8] sm:$0xff]  ;;  %vm665_vm7 = vcmp.gt.f32.partialorder %v614_v30, 0.0  ;;  %v5256_v33 = vcombine.low %v1101_v12, %v1105_v13 }
 0x1dc   :  { %v5227_v39 = vcombine.high %v1070_v34, %v1074_v35  ;;  %v5226_v46 = vcombine.low %v1070_v34, %v1074_v35  ;;  %v684_v53 = vsel %vm668_vm8, %v657_v0, %v676_v14  ;;  %v1110_v29 = vld [vmem:[#allocation7 + $0xd08] sm:$0xff]  ;;  %v5258_v34 = vcombine.low %v1102_v15, %v1106_v17  ;;  %v1129_v14 = vld [vmem:[#allocation7 + $0xda0] sm:$0xff] }
 0x1dd   :  { %3908 = vmatpush1.bf16.msra.mxu0 %v5176_v40  ;;  %4072 = vmatpush1.bf16.msra.mxu1 %v5178_v41  ;;  %v1077_v40 = vld [vmem:[#allocation7 + $0xc00] sm:$0xff]  ;;  %v673_v41 = vmul.f32 0.2, %v614_v30  ;;  %v5852_v5 = vpack.c.bf16 %v684_v53, %v684_v53  ;;  %v1138_v53 = vld [vmem:[#allocation7 + $0xde8] sm:$0xff] }
 0x1de   :  { %3909 = vmatprep.subr.bf16.mxu0 %v5185_v42  ;;  %4073 = vmatprep.subr.bf16.mxu1 %v5187_v43  ;;  %v1081_v42 = vld [vmem:[#allocation7 + $0xc20] sm:$0xff]  ;;  %v1078_v43 = vld [vmem:[#allocation7 + $0xc08] sm:$0xff] }
 0x1df   :  { %v5233_v32 = vcombine.high %v1077_v40, %v1081_v42  ;;  %v5235_v47 = vcombine.high %v1078_v43, %v1082_v44  ;;  %v5232_v54 = vcombine.low %v1077_v40, %v1081_v42  ;;  %v5234_v19 = vcombine.low %v1078_v43, %v1082_v44  ;;  %v1125_v44 = vld [vmem:[#allocation7 + $0xd80] sm:$0xff] }
 0x1e1   :  { %3910 = vmatpush1.bf16.msra.mxu0 %v5184_v48  ;;  %4074 = vmatpush1.bf16.msra.mxu1 %v5186_v49  ;;  %v1085_v48 = vld [vmem:[#allocation7 + $0xc40] sm:$0xff]  ;;  %v681_v49 = vsel %vm665_vm7, %v614_v30, %v673_v41  ;;  %v1114_v30 = vld [vmem:[#allocation7 + $0xd28] sm:$0xff] }
 0x1e2   :  { %3911 = vmatprep.subr.bf16.mxu0 %v5193_v50  ;;  %4075 = vmatprep.subr.bf16.mxu1 %v5195_v51  ;;  %v1089_v50 = vld [vmem:[#allocation7 + $0xc60] sm:$0xff]  ;;  %v1086_v51 = vld [vmem:[#allocation7 + $0xc48] sm:$0xff]  ;;  %v5267_v0 = vcombine.high %v1110_v29, %v1114_v30  ;;  %v5266_v41 = vcombine.low %v1110_v29, %v1114_v30 }
 0x1e3   :  { %v1158_v29 = vld [vmem:[#allocation7 + $0xe88] sm:$0xff] }
 0x1e4   :  { %v1162_v30 = vld [vmem:[#allocation7 + $0xea8] sm:$0xff] }
 0x1e5   :  { %3912 = vmatpush1.bf16.msra.mxu0 %v5192_v55  ;;  %4076 = vmatpush1.bf16.msra.mxu1 %v5194_v56  ;;  %v5850_v55 = vpack.c.bf16 %v681_v49, %v681_v49  ;;  %v5241_v56 = vcombine.high %v1085_v48, %v1089_v50 }
 0x1e6   :  { %3913 = vmatprep.subr.bf16.mxu0 %v5201_v18  ;;  %4077 = vmatprep.subr.bf16.mxu1 %v5203_v57  ;;  %v5243_v18 = vcombine.high %v1086_v51, %v1090_v52  ;;  %v1093_v57 = vld [vmem:[#allocation7 + $0xc80] sm:$0xff] }
 0x1e7   :  { %v5248_v21 = vcombine.low %v1093_v57, %v1097_v58 }
 0x1e9   :  { %3914 = vmatpush1.bf16.msra.mxu0 %v5200_v7  ;;  %4078 = vmatpush1.bf16.msra.mxu1 %v5202_v8  ;;  %v5240_v7 = vcombine.low %v1085_v48, %v1089_v50  ;;  %v5242_v8 = vcombine.low %v1086_v51, %v1090_v52  ;;  %v5281_v48 = vcombine.high %v1125_v44, %v1129_v14  ;;  %v1133_v50 = vld [vmem:[#allocation7 + $0xdc0] sm:$0xff]  ;;  %v1134_v52 = vld [vmem:[#allocation7 + $0xdc8] sm:$0xff] }
 0x1ea   :  { %3915 = vmatprep.subr.bf16.mxu0 %v5209_v10  ;;  %4079 = vmatprep.subr.bf16.mxu1 %v5211_v11  ;;  %v5249_v10 = vcombine.high %v1093_v57, %v1097_v58  ;;  %v5251_v11 = vcombine.high %v1094_v2, %v1098_v3  ;;  %v1137_v51 = vld [vmem:[#allocation7 + $0xde0] sm:$0xff]  ;;  %v1142_v2 = vld [vmem:[#allocation7 + $0xe08] sm:$0xff] }
 0x1eb   :  { %v1141_v57 = vld [vmem:[#allocation7 + $0xe00] sm:$0xff]  ;;  %v1146_v3 = vld [vmem:[#allocation7 + $0xe28] sm:$0xff] }
 0x1ec   :  { %v1145_v58 = vld [vmem:[#allocation7 + $0xe20] sm:$0xff] }
 0x1ed   :  { %3916 = vmatpush1.bf16.msra.mxu0 %v5208_v25  ;;  %4080 = vmatpush1.bf16.msra.mxu1 %v5210_v26  ;;  %v5257_v25 = vcombine.high %v1101_v12, %v1105_v13  ;;  %v5259_v26 = vcombine.high %v1102_v15, %v1106_v17  ;;  %v1149_v12 = vld [vmem:[#allocation7 + $0xe40] sm:$0xff]  ;;  %v1150_v15 = vld [vmem:[#allocation7 + $0xe48] sm:$0xff] }
 0x1ee   :  { %3917 = vmatprep.subr.bf16.mxu0 %v5217_v27  ;;  %4081 = vmatprep.subr.bf16.mxu1 %v5219_v28  ;;  %v1109_v27 = vld [vmem:[#allocation7 + $0xd00] sm:$0xff]  ;;  %v1154_v17 = vld [vmem:[#allocation7 + $0xe68] sm:$0xff] }
 0x1ef   :  { %v1113_v28 = vld [vmem:[#allocation7 + $0xd20] sm:$0xff] }
 0x1f0   :  { %v5265_v35 = vcombine.high %v1109_v27, %v1113_v28  ;;  %v5264_v40 = vcombine.low %v1109_v27, %v1113_v28  ;;  %v1153_v13 = vld [vmem:[#allocation7 + $0xe60] sm:$0xff] }
 0x1f1   :  { %3918 = vmatpush1.bf16.msra.mxu0 %v5216_v36  ;;  %4082 = vmatpush1.bf16.msra.mxu1 %v5218_v63  ;;  %v1117_v36 = vld [vmem:[#allocation7 + $0xd40] sm:$0xff] }
 0x1f2   :  { %3919 = vmatprep.subr.bf16.mxu0 %v5225_v37  ;;  %4083 = vmatprep.subr.bf16.mxu1 %v5227_v39  ;;  %v1121_v63 = vld [vmem:[#allocation7 + $0xd60] sm:$0xff]  ;;  %v1118_v37 = vld [vmem:[#allocation7 + $0xd48] sm:$0xff] }
 0x1f3   :  { %v1122_v39 = vld [vmem:[#allocation7 + $0xd68] sm:$0xff]  ;;  %v5273_v42 = vcombine.high %v1117_v36, %v1121_v63  ;;  %v1157_v27 = vld [vmem:[#allocation7 + $0xe80] sm:$0xff] }
 0x1f4   :  { %v5275_v43 = vcombine.high %v1118_v37, %v1122_v39  ;;  %v1161_v28 = vld [vmem:[#allocation7 + $0xea0] sm:$0xff] }
 0x1f5   :  { %3920 = vmatpush1.bf16.msra.mxu0 %v5224_v45  ;;  %4084 = vmatpush1.bf16.msra.mxu1 %v5226_v46  ;;  %v1126_v45 = vld [vmem:[#allocation7 + $0xd88] sm:$0xff] }
 0x1f6   :  { %3930 = vmatprep.subr.bf16.mxu0 %v5233_v32  ;;  %4094 = vmatprep.subr.bf16.mxu1 %v5235_v47  ;;  %v1130_v46 = vld [vmem:[#allocation7 + $0xda8] sm:$0xff]  ;;  %v5272_v32 = vcombine.low %v1117_v36, %v1121_v63  ;;  %v5274_v47 = vcombine.low %v1118_v37, %v1122_v39  ;;  %v1165_v36 = vld [vmem:[#allocation7 + $0xec0] sm:$0xff] }
 0x1f7   :  { %v5283_v49 = vcombine.high %v1126_v45, %v1130_v46  ;;  %v1169_v63 = vld [vmem:[#allocation7 + $0xee0] sm:$0xff]  ;;  %v1166_v37 = vld [vmem:[#allocation7 + $0xec8] sm:$0xff] }
 0x1f8   :  { %3922 = vmatmul.mubr.bf16.vlgmr.msra.gmra.mrb[8].mxu0 %v5850_v55  ;;  %4086 = vmatmul.mubr.bf16.vlgmr.msra.gmra.mrb[8].mxu1 %v5850_v55  ;;  %v1170_v39 = vld [vmem:[#allocation7 + $0xee8] sm:$0xff] }
 0x1f9   :  { %3931 = vmatpush1.bf16.msra.mxu0 %v5232_v54  ;;  %4095 = vmatpush1.bf16.msra.mxu1 %v5234_v19  ;;  %v5280_v54 = vcombine.low %v1125_v44, %v1129_v14  ;;  %v5282_v19 = vcombine.low %v1126_v45, %v1130_v46  ;;  %v1173_v44 = vld [vmem:[#allocation7 + $0xf00] sm:$0xff]  ;;  %v1174_v45 = vld [vmem:[#allocation7 + $0xf08] sm:$0xff] }
 0x1fa   :  { %3932 = vmatprep.subr.bf16.mxu0 %v5241_v56  ;;  %4096 = vmatprep.subr.bf16.mxu1 %v5243_v18  ;;  %v5289_v56 = vcombine.high %v1133_v50, %v1137_v51  ;;  %v5291_v18 = vcombine.high %v1134_v52, %v1138_v53  ;;  %v1177_v14 = vld [vmem:[#allocation7 + $0xf20] sm:$0xff]  ;;  %v1178_v46 = vld [vmem:[#allocation7 + $0xf28] sm:$0xff] }
 0x1fb   :  { %3962 = vmatprep.mubr.bf16.mxu0 %v5852_v5  ;;  %4126 = vmatprep.mubr.bf16.mxu1 %v5852_v5 }
 0x1fd   :  { %3933 = vmatpush1.bf16.msra.mxu0 %v5240_v7  ;;  %4097 = vmatpush1.bf16.msra.mxu1 %v5242_v8  ;;  %v5288_v7 = vcombine.low %v1133_v50, %v1137_v51  ;;  %v5290_v8 = vcombine.low %v1134_v52, %v1138_v53  ;;  %v1181_v50 = vld [vmem:[#allocation7 + $0xf40] sm:$0xff]  ;;  %v5859_v51 = vsub.s32 6, %v5777_v60  ;;  %v1182_v53 = vld [vmem:[#allocation7 + $0xf48] sm:$0xff] }
 0x1fe   :  { %3934 = vmatprep.subr.bf16.mxu0 %v5249_v10  ;;  %4098 = vmatprep.subr.bf16.mxu1 %v5251_v11  ;;  %v5297_v10 = vcombine.high %v1141_v57, %v1145_v58  ;;  %v5299_v11 = vcombine.high %v1142_v2, %v1146_v3  ;;  %v1185_v52 = vld [vmem:[#allocation7 + $0xf60] sm:$0xff] }
 0x1ff   :  { %v5336_v60 = vcombine.low %v1181_v50, %v1185_v52 }
 0x201   :  { %3935 = vmatpush1.bf16.msra.mxu0 %v5248_v21  ;;  %4099 = vmatpush1.bf16.msra.mxu1 %v5250_v23  ;;  %v5296_v21 = vcombine.low %v1141_v57, %v1145_v58  ;;  %v5298_v23 = vcombine.low %v1142_v2, %v1146_v3  ;;  %v1189_v58 = vld [vmem:[#allocation7 + $0xf80] sm:$0xff]  ;;  %v5458_v2 = vld [vmem:[#allocation6] sm:$0xff] }
 0x202   :  { %3936 = vmatprep.subr.bf16.mxu0 %v5257_v25  ;;  %4100 = vmatprep.subr.bf16.mxu1 %v5259_v26  ;;  %v5305_v25 = vcombine.high %v1149_v12, %v1153_v13  ;;  %v5307_v26 = vcombine.high %v1150_v15, %v1154_v17  ;;  %v195_v3 = vrot.slane %v5458_v2, %v5859_v51 }
 0x205   :  { %3937 = vmatpush1.bf16.msra.mxu0 %v5256_v33  ;;  %4101 = vmatpush1.bf16.msra.mxu1 %v5258_v34  ;;  %v5304_v33 = vcombine.low %v1149_v12, %v1153_v13  ;;  %v5306_v34 = vcombine.low %v1150_v15, %v1154_v17  ;;  %v1197_v15 = vld [vmem:[#allocation7 + $0xfc0] sm:$0xff]  ;;  %v655_v17 = vadd.f32 %v5814_v31, %v195_v3 }
 0x206   :  { %3938 = vmatprep.subr.bf16.mxu0 %v5265_v35  ;;  %4102 = vmatprep.subr.bf16.mxu1 %v5267_v0  ;;  %v5313_v35 = vcombine.high %v1157_v27, %v1161_v28  ;;  %v5315_v0 = vcombine.high %v1158_v29, %v1162_v30 }
 0x207   :  { %vm667_vm9 = vcmp.gt.f32.partialorder %v655_v17, 0.0 }
 0x209   :  { %3939 = vmatpush1.bf16.msra.mxu0 %v5264_v40  ;;  %4103 = vmatpush1.bf16.msra.mxu1 %v5266_v41  ;;  %v5312_v40 = vcombine.low %v1157_v27, %v1161_v28  ;;  %v5314_v41 = vcombine.low %v1158_v29, %v1162_v30  ;;  %v695_v30 = vld [vmem:[#allocation7 + $0x10] sm:$0xff] }
 0x20a   :  { %3940 = vmatprep.subr.bf16.mxu0 %v5273_v42  ;;  %4104 = vmatprep.subr.bf16.mxu1 %v5275_v43  ;;  %v5321_v42 = vcombine.high %v1165_v36, %v1169_v63  ;;  %v5323_v43 = vcombine.high %v1166_v37, %v1170_v39 }
 0x20d   :  { %3941 = vmatpush1.bf16.msra.mxu0 %v5272_v32  ;;  %4105 = vmatpush1.bf16.msra.mxu1 %v5274_v47  ;;  %v5320_v32 = vcombine.low %v1165_v36, %v1169_v63  ;;  %v5322_v47 = vcombine.low %v1166_v37, %v1170_v39 }
 0x20e   :  { %3942 = vmatprep.subr.bf16.mxu0 %v5281_v48  ;;  %4106 = vmatprep.subr.bf16.mxu1 %v5283_v49  ;;  %v5329_v48 = vcombine.high %v1173_v44, %v1177_v14  ;;  %v5331_v49 = vcombine.high %v1174_v45, %v1178_v46 }
 0x211   :  { %3943 = vmatpush1.bf16.msra.mxu0 %v5280_v54  ;;  %4107 = vmatpush1.bf16.msra.mxu1 %v5282_v19  ;;  %v1186_v54 = vld [vmem:[#allocation7 + $0xf68] sm:$0xff]  ;;  %v5328_v19 = vcombine.low %v1173_v44, %v1177_v14 }
 0x212   :  { %3944 = vmatprep.subr.bf16.mxu0 %v5289_v56  ;;  %4108 = vmatprep.subr.bf16.mxu1 %v5291_v18  ;;  %v5330_v56 = vcombine.low %v1174_v45, %v1178_v46  ;;  %v5337_v18 = vcombine.high %v1181_v50, %v1185_v52  ;;  %v5339_v57 = vcombine.high %v1182_v53, %v1186_v54  ;;  %v716_v50 = vld [vmem:[#allocation7 + $0xb8] sm:$0xff] }
 0x215   :  { %3945 = vmatpush1.bf16.msra.mxu0 %v5288_v7  ;;  %4109 = vmatpush1.bf16.msra.mxu1 %v5290_v8  ;;  %v1193_v7 = vld [vmem:[#allocation7 + $0xfa0] sm:$0xff]  ;;  %v1190_v8 = vld [vmem:[#allocation7 + $0xf88] sm:$0xff] }
 0x216   :  { %3946 = vmatprep.subr.bf16.mxu0 %v5297_v10  ;;  %4110 = vmatprep.subr.bf16.mxu1 %v5299_v11  ;;  %v1194_v10 = vld [vmem:[#allocation7 + $0xfa8] sm:$0xff]  ;;  %v5338_v11 = vcombine.low %v1182_v53, %v1186_v54  ;;  %v5345_v12 = vcombine.high %v1189_v58, %v1193_v7 }
 0x217   :  { %v5347_v13 = vcombine.high %v1190_v8, %v1194_v10  ;;  %v5346_v27 = vcombine.low %v1190_v8, %v1194_v10  ;;  %v727_v10 = vld [vmem:[#allocation7 + $0x110] sm:$0xff] }
 0x219   :  { %3947 = vmatpush1.bf16.msra.mxu0 %v5296_v21  ;;  %4111 = vmatpush1.bf16.msra.mxu1 %v5298_v23  ;;  %v1201_v21 = vld [vmem:[#allocation7 + $0xfe0] sm:$0xff]  ;;  %v1198_v23 = vld [vmem:[#allocation7 + $0xfc8] sm:$0xff] }
 0x21a   :  { %3948 = vmatprep.subr.bf16.mxu0 %v5305_v25  ;;  %4112 = vmatprep.subr.bf16.mxu1 %v5307_v26  ;;  %v1202_v25 = vld [vmem:[#allocation7 + $0xfe8] sm:$0xff]  ;;  %v5344_v26 = vcombine.low %v1189_v58, %v1193_v7  ;;  %v5353_v28 = vcombine.high %v1197_v15, %v1201_v21  ;;  %v5352_v31 = vcombine.low %v1197_v15, %v1201_v21  ;;  %v724_v58 = vld [vmem:[#allocation7 + $0xf8] sm:$0xff]  ;;  %v735_v21 = vld [vmem:[#allocation7 + $0x150] sm:$0xff] }
 0x21b   :  { %v5355_v29 = vcombine.high %v1198_v23, %v1202_v25  ;;  %v5354_v36 = vcombine.low %v1198_v23, %v1202_v25  ;;  %v739_v23 = vld [vmem:[#allocation7 + $0x170] sm:$0xff]  ;;  %v736_v25 = vld [vmem:[#allocation7 + $0x158] sm:$0xff] }
 0x21d   :  { %3949 = vmatpush1.bf16.msra.mxu0 %v5304_v33  ;;  %4113 = vmatpush1.bf16.msra.mxu1 %v5306_v34  ;;  %v675_v33 = vmul.f32 0.2, %v655_v17  ;;  %v699_v34 = vld [vmem:[#allocation7 + $0x30] sm:$0xff] }
 0x21e   :  { %3950 = vmatprep.subr.bf16.mxu0 %v5313_v35  ;;  %4114 = vmatprep.subr.bf16.mxu1 %v5315_v0  ;;  %v696_v35 = vld [vmem:[#allocation7 + $0x18] sm:$0xff]  ;;  %v4853_v63 = vcombine.high %v695_v30, %v699_v34  ;;  %v4852_v44 = vcombine.low %v695_v30, %v699_v34  ;;  %v747_v34 = vld [vmem:[#allocation7 + $0x1b0] sm:$0xff] }
 0x21f   :  { %v700_v0 = vld [vmem:[#allocation7 + $0x38] sm:$0xff]  ;;  %v683_v39 = vsel %vm667_vm9, %v655_v17, %v675_v33  ;;  %v743_v33 = vld [vmem:[#allocation7 + $0x190] sm:$0xff] }
 0x220   :  { %v4855_v37 = vcombine.high %v696_v35, %v700_v0  ;;  %v5863_v14 = vpack.c.bf16 %v683_v39, %v683_v39  ;;  %v4854_v45 = vcombine.low %v696_v35, %v700_v0  ;;  %v744_v35 = vld [vmem:[#allocation7 + $0x198] sm:$0xff]  ;;  %v751_v39 = vld [vmem:[#allocation7 + $0x1d0] sm:$0xff] }
 0x221   :  { %3951 = vmatpush1.bf16.msra.mxu0 %v5312_v40  ;;  %4115 = vmatpush1.bf16.msra.mxu1 %v5314_v41  ;;  %v703_v40 = vld [vmem:[#allocation7 + $0x50] sm:$0xff]  ;;  %v748_v0 = vld [vmem:[#allocation7 + $0x1b8] sm:$0xff] }
 0x222   :  { %3952 = vmatprep.subr.bf16.mxu0 %v5321_v42  ;;  %4116 = vmatprep.subr.bf16.mxu1 %v5323_v43  ;;  %v707_v41 = vld [vmem:[#allocation7 + $0x70] sm:$0xff]  ;;  %v704_v42 = vld [vmem:[#allocation7 + $0x58] sm:$0xff] }
 0x223   :  { %v708_v43 = vld [vmem:[#allocation7 + $0x78] sm:$0xff]  ;;  %v4861_v46 = vcombine.high %v703_v40, %v707_v41  ;;  %v4860_v52 = vcombine.low %v703_v40, %v707_v41  ;;  %v755_v40 = vld [vmem:[#allocation7 + $0x1f0] sm:$0xff] }
 0x224   :  { %v4862_v53 = vcombine.low %v704_v42, %v708_v43  ;;  %v752_v41 = vld [vmem:[#allocation7 + $0x1d8] sm:$0xff] }
 0x225   :  { %3953 = vmatpush1.bf16.msra.mxu0 %v5320_v32  ;;  %4117 = vmatpush1.bf16.msra.mxu1 %v5322_v47  ;;  %v4863_v32 = vcombine.high %v704_v42, %v708_v43  ;;  %v711_v47 = vld [vmem:[#allocation7 + $0x90] sm:$0xff]  ;;  %v756_v42 = vld [vmem:[#allocation7 + $0x1f8] sm:$0xff]  ;;  %v4900_v43 = vcombine.low %v743_v33, %v747_v34 }
 0x226   :  { %3954 = vmatprep.subr.bf16.mxu0 %v5329_v48  ;;  %4118 = vmatprep.subr.bf16.mxu1 %v5331_v49  ;;  %v715_v48 = vld [vmem:[#allocation7 + $0xb0] sm:$0xff]  ;;  %v712_v49 = vld [vmem:[#allocation7 + $0x98] sm:$0xff] }
 0x227   :  { %v4869_v54 = vcombine.high %v711_v47, %v715_v48  ;;  %v4868_v2 = vcombine.low %v711_v47, %v715_v48  ;;  %v4870_v3 = vcombine.low %v712_v49, %v716_v50  ;;  %v763_v47 = vld [vmem:[#allocation7 + $0x230] sm:$0xff]  ;;  %v760_v48 = vld [vmem:[#allocation7 + $0x218] sm:$0xff] }
 0x229   :  { %3955 = vmatpush1.bf16.msra.mxu0 %v5328_v19  ;;  %4119 = vmatpush1.bf16.msra.mxu1 %v5330_v56  ;;  %v4871_v19 = vcombine.high %v712_v49, %v716_v50  ;;  %v719_v56 = vld [vmem:[#allocation7 + $0xd0] sm:$0xff]  ;;  %v764_v49 = vld [vmem:[#allocation7 + $0x238] sm:$0xff]  ;;  %v4908_v50 = vcombine.low %v751_v39, %v755_v40 }
 0x22a   :  { %3956 = vmatprep.subr.bf16.mxu0 %v5337_v18  ;;  %4120 = vmatprep.subr.bf16.mxu1 %v5339_v57  ;;  %v723_v18 = vld [vmem:[#allocation7 + $0xf0] sm:$0xff]  ;;  %v720_v57 = vld [vmem:[#allocation7 + $0xd8] sm:$0xff] }
 0x22b   :  { %v4877_v7 = vcombine.high %v719_v56, %v723_v18  ;;  %v4879_v8 = vcombine.high %v720_v57, %v724_v58 }
 0x22d   :  { %3957 = vmatpush1.bf16.msra.mxu0 %v5336_v60  ;;  %4121 = vmatpush1.bf16.msra.mxu1 %v5338_v11  ;;  %v731_v60 = vld [vmem:[#allocation7 + $0x130] sm:$0xff]  ;;  %v732_v11 = vld [vmem:[#allocation7 + $0x138] sm:$0xff] }
 0x22e   :  { %3958 = vmatprep.subr.bf16.mxu0 %v5345_v12  ;;  %4122 = vmatprep.subr.bf16.mxu1 %v5347_v13  ;;  %v4876_v12 = vcombine.low %v719_v56, %v723_v18  ;;  %v4878_v13 = vcombine.low %v720_v57, %v724_v58  ;;  %v4885_v15 = vcombine.high %v727_v10, %v731_v60  ;;  %v771_v56 = vld [vmem:[#allocation7 + $0x270] sm:$0xff]  ;;  %v768_v18 = vld [vmem:[#allocation7 + $0x258] sm:$0xff] }
 0x22f   :  { %v772_v57 = vld [vmem:[#allocation7 + $0x278] sm:$0xff] }
 0x231   :  { %3959 = vmatpush1.bf16.msra.mxu0 %v5344_v26  ;;  %4123 = vmatpush1.bf16.msra.mxu1 %v5346_v27  ;;  %v740_v26 = vld [vmem:[#allocation7 + $0x178] sm:$0xff]  ;;  %v4884_v27 = vcombine.low %v727_v10, %v731_v60  ;;  %v779_v10 = vld [vmem:[#allocation7 + $0x2b0] sm:$0xff] }
 0x232   :  { %3960 = vmatprep.subr.bf16.mxu0 %v5353_v28  ;;  %4124 = vmatprep.subr.bf16.mxu1 %v5355_v29  ;;  %v4893_v29 = vcombine.high %v735_v21, %v739_v23  ;;  %v4895_v30 = vcombine.high %v736_v25, %v740_v26  ;;  %v776_v60 = vld [vmem:[#allocation7 + $0x298] sm:$0xff] }
 0x235   :  { %3961 = vmatpush1.bf16.msra.mxu0 %v5352_v31  ;;  %4125 = vmatpush1.bf16.msra.mxu1 %v5354_v36  ;;  %v4892_v31 = vcombine.low %v735_v21, %v739_v23  ;;  %v4894_v36 = vcombine.low %v736_v25, %v740_v26  ;;  %v787_v21 = vld [vmem:[#allocation7 + $0x2f0] sm:$0xff]  ;;  %v784_v23 = vld [vmem:[#allocation7 + $0x2d8] sm:$0xff] }
 0x236   :  { %4135 = vmatprep.subr.bf16.mxu0 %v4853_v63  ;;  %4299 = vmatprep.subr.bf16.mxu1 %v4855_v37  ;;  %v4901_v63 = vcombine.high %v743_v33, %v747_v34  ;;  %v4903_v37 = vcombine.high %v744_v35, %v748_v0  ;;  %v788_v25 = vld [vmem:[#allocation7 + $0x2f8] sm:$0xff]  ;;  %v795_v33 = vld [vmem:[#allocation7 + $0x330] sm:$0xff] }
 0x237   :  { %v792_v34 = vld [vmem:[#allocation7 + $0x318] sm:$0xff] }
 0x238   :  { %3963 = vmatmul.mubr.bf16.vlgmr.msra.gmra.mrb[8].mxu0 %v5863_v14  ;;  %4127 = vmatmul.mubr.bf16.vlgmr.msra.gmra.mrb[8].mxu1 %v5863_v14 }
 0x239   :  { %4136 = vmatpush1.bf16.msra.mxu0 %v4852_v44  ;;  %4167 = vmatprep.mubr.bf16.mxu0 %v5798_v62  ;;  %v4902_v44 = vcombine.low %v744_v35, %v748_v0  ;;  %v796_v35 = vld [vmem:[#allocation7 + $0x338] sm:$0xff] }
 0x23a   :  { %4300 = vmatpush1.bf16.msra.mxu1 %v4854_v45  ;;  %4331 = vmatprep.mubr.bf16.mxu1 %v5798_v62  ;;  %v728_v62 = vld [vmem:[#allocation7 + $0x118] sm:$0xff]  ;;  %v4909_v45 = vcombine.high %v751_v39, %v755_v40  ;;  %v803_v39 = vld [vmem:[#allocation7 + $0x370] sm:$0xff] }
 0x23b   :  { %4137 = vmatprep.subr.bf16.mxu0 %v4861_v46  ;;  %4301 = vmatprep.subr.bf16.mxu1 %v4863_v32  ;;  %v4887_v17 = vcombine.high %v728_v62, %v732_v11  ;;  %v4886_v28 = vcombine.low %v728_v62, %v732_v11  ;;  %v4911_v46 = vcombine.high %v752_v41, %v756_v42  ;;  %v759_v32 = vld [vmem:[#allocation7 + $0x210] sm:$0xff]  ;;  %v780_v62 = vld [vmem:[#allocation7 + $0x2b8] sm:$0xff] }
 0x23c   :  { %v4916_v58 = vcombine.low %v759_v32, %v763_v47  ;;  %v800_v40 = vld [vmem:[#allocation7 + $0x358] sm:$0xff] }
 0x23d   :  { %4138 = vmatpush1.bf16.msra.mxu0 %v4860_v52  ;;  %v4910_v52 = vcombine.low %v752_v41, %v756_v42  ;;  %v804_v41 = vld [vmem:[#allocation7 + $0x378] sm:$0xff] }
 0x23e   :  { %4302 = vmatpush1.bf16.msra.mxu1 %v4862_v53  ;;  %4139 = vmatprep.subr.bf16.mxu0 %v4869_v54  ;;  %v4917_v53 = vcombine.high %v759_v32, %v763_v47  ;;  %v4919_v54 = vcombine.high %v760_v48, %v764_v49  ;;  %v811_v32 = vld [vmem:[#allocation7 + $0x3b0] sm:$0xff]  ;;  %v808_v47 = vld [vmem:[#allocation7 + $0x398] sm:$0xff] }
 0x23f   :  { %4303 = vmatprep.subr.bf16.mxu1 %v4871_v19  ;;  %v767_v19 = vld [vmem:[#allocation7 + $0x250] sm:$0xff] }
 0x240   :  { %v4924_v11 = vcombine.low %v767_v19, %v771_v56 }
 0x241   :  { %4140 = vmatpush1.bf16.msra.mxu0 %v4868_v2  ;;  %v4918_v2 = vcombine.low %v760_v48, %v764_v49  ;;  %v812_v48 = vld [vmem:[#allocation7 + $0x3b8] sm:$0xff] }
 0x242   :  { %4304 = vmatpush1.bf16.msra.mxu1 %v4870_v3  ;;  %4141 = vmatprep.subr.bf16.mxu0 %v4877_v7  ;;  %v4925_v3 = vcombine.high %v767_v19, %v771_v56  ;;  %v4927_v7 = vcombine.high %v768_v18, %v772_v57  ;;  %v819_v19 = vld [vmem:[#allocation7 + $0x3f0] sm:$0xff]  ;;  %v816_v56 = vld [vmem:[#allocation7 + $0x3d8] sm:$0xff] }
 0x243   :  { %4305 = vmatprep.subr.bf16.mxu1 %v4879_v8  ;;  %v775_v8 = vld [vmem:[#allocation7 + $0x290] sm:$0xff] }
 0x244   :  { %v4932_v26 = vcombine.low %v775_v8, %v779_v10 }
 0x245   :  { %4142 = vmatpush1.bf16.msra.mxu0 %v4876_v12  ;;  %v4926_v12 = vcombine.low %v768_v18, %v772_v57  ;;  %v820_v18 = vld [vmem:[#allocation7 + $0x3f8] sm:$0xff] }
 0x246   :  { %4306 = vmatpush1.bf16.msra.mxu1 %v4878_v13  ;;  %4143 = vmatprep.subr.bf16.mxu0 %v4885_v15  ;;  %v4933_v13 = vcombine.high %v775_v8, %v779_v10  ;;  %v4935_v15 = vcombine.high %v776_v60, %v780_v62  ;;  %v827_v8 = vld [vmem:[#allocation7 + $0x430] sm:$0xff]  ;;  %v824_v10 = vld [vmem:[#allocation7 + $0x418] sm:$0xff] }
 0x247   :  { %4307 = vmatprep.subr.bf16.mxu1 %v4887_v17  ;;  %v783_v17 = vld [vmem:[#allocation7 + $0x2d0] sm:$0xff] }
 0x248   :  { %v4940_v0 = vcombine.low %v783_v17, %v787_v21 }
 0x249   :  { %4144 = vmatpush1.bf16.msra.mxu0 %v4884_v27  ;;  %v4934_v27 = vcombine.low %v776_v60, %v780_v62  ;;  %v828_v60 = vld [vmem:[#allocation7 + $0x438] sm:$0xff] }
 0x24a   :  { %4308 = vmatpush1.bf16.msra.mxu1 %v4886_v28  ;;  %4145 = vmatprep.subr.bf16.mxu0 %v4893_v29  ;;  %v4941_v28 = vcombine.high %v783_v17, %v787_v21  ;;  %v4943_v29 = vcombine.high %v784_v23, %v788_v25  ;;  %v835_v17 = vld [vmem:[#allocation7 + $0x470] sm:$0xff] }
 0x24b   :  { %4309 = vmatprep.subr.bf16.mxu1 %v4895_v30  ;;  %v791_v30 = vld [vmem:[#allocation7 + $0x310] sm:$0xff] }
 0x24c   :  { %v4948_v42 = vcombine.low %v791_v30, %v795_v33 }
 0x24d   :  { %4146 = vmatpush1.bf16.msra.mxu0 %v4892_v31  ;;  %v4942_v31 = vcombine.low %v784_v23, %v788_v25  ;;  %v832_v23 = vld [vmem:[#allocation7 + $0x458] sm:$0xff] }
 0x24e   :  { %4310 = vmatpush1.bf16.msra.mxu1 %v4894_v36  ;;  %4147 = vmatprep.subr.bf16.mxu0 %v4901_v63  ;;  %v4949_v36 = vcombine.high %v791_v30, %v795_v33  ;;  %v4951_v63 = vcombine.high %v792_v34, %v796_v35  ;;  %v836_v25 = vld [vmem:[#allocation7 + $0x478] sm:$0xff] }
 0x24f   :  { %4311 = vmatprep.subr.bf16.mxu1 %v4903_v37  ;;  %v799_v37 = vld [vmem:[#allocation7 + $0x350] sm:$0xff]  ;;  %v4991_v30 = vcombine.high %v832_v23, %v836_v25  ;;  %v840_v33 = vld [vmem:[#allocation7 + $0x498] sm:$0xff] }
 0x250   :  { %v4956_v49 = vcombine.low %v799_v37, %v803_v39 }
 0x251   :  { %4148 = vmatpush1.bf16.msra.mxu0 %v4900_v43  ;;  %v4950_v43 = vcombine.low %v792_v34, %v796_v35  ;;  %v844_v34 = vld [vmem:[#allocation7 + $0x4b8] sm:$0xff] }
 0x252   :  { %4312 = vmatpush1.bf16.msra.mxu1 %v4902_v44  ;;  %4149 = vmatprep.subr.bf16.mxu0 %v4909_v45  ;;  %v4957_v44 = vcombine.high %v799_v37, %v803_v39  ;;  %v4959_v45 = vcombine.high %v800_v40, %v804_v41  ;;  %v851_v37 = vld [vmem:[#allocation7 + $0x4f0] sm:$0xff]  ;;  %v848_v39 = vld [vmem:[#allocation7 + $0x4d8] sm:$0xff] }
 0x253   :  { %4313 = vmatprep.subr.bf16.mxu1 %v4911_v46  ;;  %v807_v46 = vld [vmem:[#allocation7 + $0x390] sm:$0xff] }
 0x254   :  { %v4964_v57 = vcombine.low %v807_v46, %v811_v32 }
 0x255   :  { %4150 = vmatpush1.bf16.msra.mxu0 %v4908_v50  ;;  %v4958_v50 = vcombine.low %v800_v40, %v804_v41  ;;  %v852_v40 = vld [vmem:[#allocation7 + $0x4f8] sm:$0xff] }
 0x256   :  { %4314 = vmatpush1.bf16.msra.mxu1 %v4910_v52  ;;  %4151 = vmatprep.subr.bf16.mxu0 %v4917_v53  ;;  %v4965_v52 = vcombine.high %v807_v46, %v811_v32  ;;  %v4967_v53 = vcombine.high %v808_v47, %v812_v48  ;;  %v856_v46 = vld [vmem:[#allocation7 + $0x518] sm:$0xff] }
 0x257   :  { %4315 = vmatprep.subr.bf16.mxu1 %v4919_v54  ;;  %v815_v54 = vld [vmem:[#allocation7 + $0x3d0] sm:$0xff]  ;;  %v860_v32 = vld [vmem:[#allocation7 + $0x538] sm:$0xff] }
 0x258   :  { %v4972_v62 = vcombine.low %v815_v54, %v819_v19 }
 0x259   :  { %4152 = vmatpush1.bf16.msra.mxu0 %v4916_v58  ;;  %v4966_v58 = vcombine.low %v808_v47, %v812_v48  ;;  %v5006_v47 = vcombine.low %v848_v39, %v852_v40 }
 0x25a   :  { %4316 = vmatpush1.bf16.msra.mxu1 %v4918_v2  ;;  %4153 = vmatprep.subr.bf16.mxu0 %v4925_v3  ;;  %v4973_v2 = vcombine.high %v815_v54, %v819_v19  ;;  %v4975_v3 = vcombine.high %v816_v56, %v820_v18  ;;  %v868_v54 = vld [vmem:[#allocation7 + $0x578] sm:$0xff] }
 0x25b   :  { %4317 = vmatprep.subr.bf16.mxu1 %v4927_v7  ;;  %v823_v7 = vld [vmem:[#allocation7 + $0x410] sm:$0xff] }
 0x25c   :  { %v4980_v21 = vcombine.low %v823_v7, %v827_v8 }
 0x25d   :  { %4154 = vmatpush1.bf16.msra.mxu0 %v4924_v11  ;;  %v4974_v11 = vcombine.low %v816_v56, %v820_v18  ;;  %v5014_v56 = vcombine.low %v856_v46, %v860_v32 }
 0x25e   :  { %4318 = vmatpush1.bf16.msra.mxu1 %v4926_v12  ;;  %4155 = vmatprep.subr.bf16.mxu0 %v4933_v13  ;;  %v4981_v12 = vcombine.high %v823_v7, %v827_v8  ;;  %v4983_v13 = vcombine.high %v824_v10, %v828_v60  ;;  %v876_v7 = vld [vmem:[#allocation7 + $0x5b8] sm:$0xff] }
 0x25f   :  { %4319 = vmatprep.subr.bf16.mxu1 %v4935_v15  ;;  %v831_v15 = vld [vmem:[#allocation7 + $0x450] sm:$0xff] }
 0x260   :  { %v4988_v35 = vcombine.low %v831_v15, %v835_v17 }
 0x261   :  { %4156 = vmatpush1.bf16.msra.mxu0 %v4932_v26  ;;  %v4982_v26 = vcombine.low %v824_v10, %v828_v60 }
 0x262   :  { %4320 = vmatpush1.bf16.msra.mxu1 %v4934_v27  ;;  %4157 = vmatprep.subr.bf16.mxu0 %v4941_v28  ;;  %v4989_v27 = vcombine.high %v831_v15, %v835_v17  ;;  %v839_v28 = vld [vmem:[#allocation7 + $0x490] sm:$0xff]  ;;  %v884_v15 = vld [vmem:[#allocation7 + $0x5f8] sm:$0xff] }
 0x263   :  { %4321 = vmatprep.subr.bf16.mxu1 %v4943_v29  ;;  %v843_v29 = vld [vmem:[#allocation7 + $0x4b0] sm:$0xff] }
 0x264   :  { %v4996_v41 = vcombine.low %v839_v28, %v843_v29 }
 0x265   :  { %4158 = vmatpush1.bf16.msra.mxu0 %v4940_v0  ;;  %v4990_v0 = vcombine.low %v832_v23, %v836_v25 }
 0x266   :  { %4322 = vmatpush1.bf16.msra.mxu1 %v4942_v31  ;;  %4159 = vmatprep.subr.bf16.mxu0 %v4949_v36  ;;  %v4997_v31 = vcombine.high %v839_v28, %v843_v29  ;;  %v4999_v36 = vcombine.high %v840_v33, %v844_v34  ;;  %v888_v28 = vld [vmem:[#allocation7 + $0x618] sm:$0xff] }
 0x267   :  { %4323 = vmatprep.subr.bf16.mxu1 %v4951_v63  ;;  %v847_v63 = vld [vmem:[#allocation7 + $0x4d0] sm:$0xff]  ;;  %v892_v29 = vld [vmem:[#allocation7 + $0x638] sm:$0xff] }
 0x269   :  { %4160 = vmatpush1.bf16.msra.mxu0 %v4948_v42  ;;  %v5005_v42 = vcombine.high %v847_v63, %v851_v37 }
 0x26a   :  { %4324 = vmatpush1.bf16.msra.mxu1 %v4950_v43  ;;  %4161 = vmatprep.subr.bf16.mxu0 %v4957_v44  ;;  %v5007_v43 = vcombine.high %v848_v39, %v852_v40  ;;  %v855_v44 = vld [vmem:[#allocation7 + $0x510] sm:$0xff]  ;;  %v5046_v39 = vcombine.low %v888_v28, %v892_v29 }
 0x26b   :  { %4325 = vmatprep.subr.bf16.mxu1 %v4959_v45  ;;  %v859_v45 = vld [vmem:[#allocation7 + $0x530] sm:$0xff] }
 0x26c   :  { %v5013_v48 = vcombine.high %v855_v44, %v859_v45  ;;  %v5012_v19 = vcombine.low %v855_v44, %v859_v45  ;;  %v908_v44 = vld [vmem:[#allocation7 + $0x6b8] sm:$0xff] }
 0x26d   :  { %4162 = vmatpush1.bf16.msra.mxu0 %v4956_v49  ;;  %v5015_v49 = vcombine.high %v856_v46, %v860_v32 }
 0x26e   :  { %4326 = vmatpush1.bf16.msra.mxu1 %v4958_v50  ;;  %4163 = vmatprep.subr.bf16.mxu0 %v4965_v52  ;;  %v863_v50 = vld [vmem:[#allocation7 + $0x550] sm:$0xff] }
 0x26f   :  { %4327 = vmatprep.subr.bf16.mxu1 %v4967_v53  ;;  %v867_v52 = vld [vmem:[#allocation7 + $0x570] sm:$0xff]  ;;  %v864_v53 = vld [vmem:[#allocation7 + $0x558] sm:$0xff] }
 0x270   :  { %v5021_v18 = vcombine.high %v863_v50, %v867_v52  ;;  %v5020_v8 = vcombine.low %v863_v50, %v867_v52  ;;  %v5022_v10 = vcombine.low %v864_v53, %v868_v54  ;;  %v916_v50 = vld [vmem:[#allocation7 + $0x6f8] sm:$0xff] }
 0x271   :  { %4164 = vmatpush1.bf16.msra.mxu0 %v4964_v57  ;;  %v5023_v57 = vcombine.high %v864_v53, %v868_v54 }
 0x272   :  { %4328 = vmatpush1.bf16.msra.mxu1 %v4966_v58  ;;  %4165 = vmatprep.subr.bf16.mxu0 %v4973_v2  ;;  %v871_v58 = vld [vmem:[#allocation7 + $0x590] sm:$0xff] }
 0x273   :  { %4329 = vmatprep.subr.bf16.mxu1 %v4975_v3  ;;  %v875_v2 = vld [vmem:[#allocation7 + $0x5b0] sm:$0xff]  ;;  %v872_v3 = vld [vmem:[#allocation7 + $0x598] sm:$0xff] }
 0x274   :  { %v5029_v60 = vcombine.high %v871_v58, %v875_v2  ;;  %v5028_v17 = vcombine.low %v871_v58, %v875_v2  ;;  %v924_v58 = vld [vmem:[#allocation7 + $0x738] sm:$0xff] }
 0x275   :  { %4166 = vmatpush1.bf16.msra.mxu0 %v4972_v62  ;;  %v5031_v62 = vcombine.high %v872_v3, %v876_v7 }
 0x276   :  { %4330 = vmatpush1.bf16.msra.mxu1 %v4974_v11  ;;  %4176 = vmatprep.subr.bf16.mxu0 %v4981_v12  ;;  %v879_v11 = vld [vmem:[#allocation7 + $0x5d0] sm:$0xff] }
 0x277   :  { %4340 = vmatprep.subr.bf16.mxu1 %v4983_v13  ;;  %v883_v12 = vld [vmem:[#allocation7 + $0x5f0] sm:$0xff]  ;;  %v880_v13 = vld [vmem:[#allocation7 + $0x5d8] sm:$0xff] }
 0x278   :  { %4168 = vmatmul.mubr.bf16.vlgmr.msra.gmra.mrb[12].mxu0 %v5800_v24  ;;  %v5037_v23 = vcombine.high %v879_v11, %v883_v12  ;;  %v5039_v25 = vcombine.high %v880_v13, %v884_v15 }
 0x279   :  { %4332 = vmatmul.mubr.bf16.vlgmr.msra.gmra.mrb[12].mxu1 %v5800_v24  ;;  %4177 = vmatpush1.bf16.msra.mxu0 %v4980_v21  ;;  %v4998_v24 = vcombine.low %v840_v33, %v844_v34  ;;  %v5030_v21 = vcombine.low %v872_v3, %v876_v7  ;;  %v5038_v33 = vcombine.low %v880_v13, %v884_v15 }
 0x27a   :  { %4208 = vmatprep.mubr.bf16.mxu0 %v5806_v38  ;;  %4341 = vmatpush1.bf16.msra.mxu1 %v4982_v26  ;;  %v887_v26 = vld [vmem:[#allocation7 + $0x610] sm:$0xff] }
 0x27b   :  { %4372 = vmatprep.mubr.bf16.mxu1 %v5806_v38  ;;  %4178 = vmatprep.subr.bf16.mxu0 %v4989_v27  ;;  %v5004_v38 = vcombine.low %v847_v63, %v851_v37  ;;  %v891_v27 = vld [vmem:[#allocation7 + $0x630] sm:$0xff]  ;;  %v900_v63 = vld [vmem:[#allocation7 + $0x678] sm:$0xff] }
 0x27c   :  { %4342 = vmatprep.subr.bf16.mxu1 %v4991_v30  ;;  %v5036_v30 = vcombine.low %v879_v11, %v883_v12  ;;  %v5045_v34 = vcombine.high %v887_v26, %v891_v27  ;;  %v5044_v37 = vcombine.low %v887_v26, %v891_v27  ;;  %v932_v11 = vld [vmem:[#allocation7 + $0x778] sm:$0xff] }
 0x27d   :  { %4179 = vmatpush1.bf16.msra.mxu0 %v4988_v35  ;;  %v5047_v35 = vcombine.high %v888_v28, %v892_v29  ;;  %v940_v26 = vld [vmem:[#allocation7 + $0x7b8] sm:$0xff] }
 0x27e   :  { %4343 = vmatpush1.bf16.msra.mxu1 %v4990_v0  ;;  %4180 = vmatprep.subr.bf16.mxu0 %v4997_v31  ;;  %v895_v0 = vld [vmem:[#allocation7 + $0x650] sm:$0xff] }
 0x27f   :  { %4344 = vmatprep.subr.bf16.mxu1 %v4999_v36  ;;  %v899_v31 = vld [vmem:[#allocation7 + $0x670] sm:$0xff]  ;;  %v896_v36 = vld [vmem:[#allocation7 + $0x658] sm:$0xff] }
 0x280   :  { %v5053_v40 = vcombine.high %v895_v0, %v899_v31  ;;  %v5052_v45 = vcombine.low %v895_v0, %v899_v31  ;;  %v5054_v46 = vcombine.low %v896_v36, %v900_v63  ;;  %v948_v0 = vld [vmem:[#allocation7 + $0x7f8] sm:$0xff] }
 0x281   :  { %4181 = vmatpush1.bf16.msra.mxu0 %v4996_v41  ;;  %v5055_v41 = vcombine.high %v896_v36, %v900_v63 }
 0x282   :  { %4345 = vmatpush1.bf16.msra.mxu1 %v4998_v24  ;;  %4182 = vmatprep.subr.bf16.mxu0 %v5005_v42  ;;  %v903_v24 = vld [vmem:[#allocation7 + $0x690] sm:$0xff] }
 0x283   :  { %4346 = vmatprep.subr.bf16.mxu1 %v5007_v43  ;;  %v907_v42 = vld [vmem:[#allocation7 + $0x6b0] sm:$0xff]  ;;  %v904_v43 = vld [vmem:[#allocation7 + $0x698] sm:$0xff] }
 0x284   :  { %v5061_v32 = vcombine.high %v903_v24, %v907_v42  ;;  %v5060_v52 = vcombine.low %v903_v24, %v907_v42  ;;  %v5062_v53 = vcombine.low %v904_v43, %v908_v44  ;;  %v956_v24 = vld [vmem:[#allocation7 + $0x838] sm:$0xff] }
 0x285   :  { %4183 = vmatpush1.bf16.msra.mxu0 %v5004_v38  ;;  %v5063_v38 = vcombine.high %v904_v43, %v908_v44 }
 0x286   :  { %4347 = vmatpush1.bf16.msra.mxu1 %v5006_v47  ;;  %4184 = vmatprep.subr.bf16.mxu0 %v5013_v48  ;;  %v911_v47 = vld [vmem:[#allocation7 + $0x6d0] sm:$0xff] }
 0x287   :  { %4348 = vmatprep.subr.bf16.mxu1 %v5015_v49  ;;  %v915_v48 = vld [vmem:[#allocation7 + $0x6f0] sm:$0xff]  ;;  %v912_v49 = vld [vmem:[#allocation7 + $0x6d8] sm:$0xff] }
 0x288   :  { %v5069_v54 = vcombine.high %v911_v47, %v915_v48  ;;  %v5068_v2 = vcombine.low %v911_v47, %v915_v48  ;;  %v5070_v3 = vcombine.low %v912_v49, %v916_v50  ;;  %v960_v47 = vld [vmem:[#allocation7 + $0x858] sm:$0xff] }
 0x289   :  { %4185 = vmatpush1.bf16.msra.mxu0 %v5012_v19  ;;  %v5071_v19 = vcombine.high %v912_v49, %v916_v50  ;;  %v964_v48 = vld [vmem:[#allocation7 + $0x878] sm:$0xff] }
 0x28a   :  { %4349 = vmatpush1.bf16.msra.mxu1 %v5014_v56  ;;  %4186 = vmatprep.subr.bf16.mxu0 %v5021_v18  ;;  %v919_v56 = vld [vmem:[#allocation7 + $0x710] sm:$0xff] }
 0x28b   :  { %4350 = vmatprep.subr.bf16.mxu1 %v5023_v57  ;;  %v923_v18 = vld [vmem:[#allocation7 + $0x730] sm:$0xff]  ;;  %v920_v57 = vld [vmem:[#allocation7 + $0x718] sm:$0xff] }
 0x28c   :  { %v5077_v7 = vcombine.high %v919_v56, %v923_v18  ;;  %v5076_v12 = vcombine.low %v919_v56, %v923_v18  ;;  %v5078_v13 = vcombine.low %v920_v57, %v924_v58  ;;  %v972_v56 = vld [vmem:[#allocation7 + $0x8b8] sm:$0xff] }
 0x28d   :  { %4187 = vmatpush1.bf16.msra.mxu0 %v5020_v8  ;;  %v5079_v8 = vcombine.high %v920_v57, %v924_v58  ;;  %v5118_v57 = vcombine.low %v960_v47, %v964_v48 }
 0x28e   :  { %4351 = vmatpush1.bf16.msra.mxu1 %v5022_v10  ;;  %4188 = vmatprep.subr.bf16.mxu0 %v5029_v60  ;;  %v927_v10 = vld [vmem:[#allocation7 + $0x750] sm:$0xff] }
 0x28f   :  { %4352 = vmatprep.subr.bf16.mxu1 %v5031_v62  ;;  %v931_v60 = vld [vmem:[#allocation7 + $0x770] sm:$0xff]  ;;  %v928_v62 = vld [vmem:[#allocation7 + $0x758] sm:$0xff] }
 0x290   :  { %v5085_v15 = vcombine.high %v927_v10, %v931_v60  ;;  %v5084_v27 = vcombine.low %v927_v10, %v931_v60  ;;  %v5086_v28 = vcombine.low %v928_v62, %v932_v11  ;;  %v980_v10 = vld [vmem:[#allocation7 + $0x8f8] sm:$0xff] }
 0x291   :  { %4189 = vmatpush1.bf16.msra.mxu0 %v5028_v17  ;;  %v5087_v17 = vcombine.high %v928_v62, %v932_v11 }
 0x292   :  { %4353 = vmatpush1.bf16.msra.mxu1 %v5030_v21  ;;  %4190 = vmatprep.subr.bf16.mxu0 %v5037_v23  ;;  %v935_v21 = vld [vmem:[#allocation7 + $0x790] sm:$0xff] }
 0x293   :  { %4354 = vmatprep.subr.bf16.mxu1 %v5039_v25  ;;  %v939_v23 = vld [vmem:[#allocation7 + $0x7b0] sm:$0xff]  ;;  %v936_v25 = vld [vmem:[#allocation7 + $0x798] sm:$0xff] }
 0x294   :  { %v5093_v29 = vcombine.high %v935_v21, %v939_v23  ;;  %v5092_v31 = vcombine.low %v935_v21, %v939_v23  ;;  %v5094_v36 = vcombine.low %v936_v25, %v940_v26 }
 0x295   :  { %4191 = vmatpush1.bf16.msra.mxu0 %v5036_v30  ;;  %v5095_v30 = vcombine.high %v936_v25, %v940_v26  ;;  %v991_v26 = vld [vmem:[#allocation7 + $0x950] sm:$0xff] }
 0x296   :  { %4355 = vmatpush1.bf16.msra.mxu1 %v5038_v33  ;;  %4192 = vmatprep.subr.bf16.mxu0 %v5045_v34  ;;  %v943_v33 = vld [vmem:[#allocation7 + $0x7d0] sm:$0xff] }
 0x297   :  { %4356 = vmatprep.subr.bf16.mxu1 %v5047_v35  ;;  %v947_v34 = vld [vmem:[#allocation7 + $0x7f0] sm:$0xff]  ;;  %v944_v35 = vld [vmem:[#allocation7 + $0x7d8] sm:$0xff] }
 0x298   :  { %v5101_v63 = vcombine.high %v943_v33, %v947_v34  ;;  %v5100_v42 = vcombine.low %v943_v33, %v947_v34  ;;  %v5102_v43 = vcombine.low %v944_v35, %v948_v0 }
 0x299   :  { %4193 = vmatpush1.bf16.msra.mxu0 %v5044_v37  ;;  %v5103_v37 = vcombine.high %v944_v35, %v948_v0  ;;  %v999_v0 = vld [vmem:[#allocation7 + $0x990] sm:$0xff] }
 0x29a   :  { %4357 = vmatpush1.bf16.msra.mxu1 %v5046_v39  ;;  %4194 = vmatprep.subr.bf16.mxu0 %v5053_v40  ;;  %v951_v39 = vld [vmem:[#allocation7 + $0x810] sm:$0xff] }
 0x29b   :  { %4358 = vmatprep.subr.bf16.mxu1 %v5055_v41  ;;  %v955_v40 = vld [vmem:[#allocation7 + $0x830] sm:$0xff]  ;;  %v952_v41 = vld [vmem:[#allocation7 + $0x818] sm:$0xff] }
 0x29c   :  { %v5109_v44 = vcombine.high %v951_v39, %v955_v40  ;;  %v5110_v49 = vcombine.low %v952_v41, %v956_v24 }
 0x29d   :  { %4195 = vmatpush1.bf16.msra.mxu0 %v5052_v45  ;;  %v5111_v45 = vcombine.high %v952_v41, %v956_v24  ;;  %v1007_v24 = vld [vmem:[#allocation7 + $0x9d0] sm:$0xff] }
 0x29e   :  { %4359 = vmatpush1.bf16.msra.mxu1 %v5054_v46  ;;  %4196 = vmatprep.subr.bf16.mxu0 %v5061_v32  ;;  %v959_v46 = vld [vmem:[#allocation7 + $0x850] sm:$0xff] }
 0x29f   :  { %4360 = vmatprep.subr.bf16.mxu1 %v5063_v38  ;;  %v963_v32 = vld [vmem:[#allocation7 + $0x870] sm:$0xff]  ;;  %v5108_v38 = vcombine.low %v951_v39, %v955_v40 }
 0x2a0   :  { %v5117_v50 = vcombine.high %v959_v46, %v963_v32  ;;  %v5116_v18 = vcombine.low %v959_v46, %v963_v32 }
 0x2a1   :  { %4197 = vmatpush1.bf16.msra.mxu0 %v5060_v52  ;;  %v967_v52 = vld [vmem:[#allocation7 + $0x890] sm:$0xff] }
 0x2a2   :  { %4361 = vmatpush1.bf16.msra.mxu1 %v5062_v53  ;;  %4198 = vmatprep.subr.bf16.mxu0 %v5069_v54  ;;  %v971_v53 = vld [vmem:[#allocation7 + $0x8b0] sm:$0xff]  ;;  %v5119_v54 = vcombine.high %v960_v47, %v964_v48 }
 0x2a3   :  { %4362 = vmatprep.subr.bf16.mxu1 %v5071_v19  ;;  %v968_v19 = vld [vmem:[#allocation7 + $0x898] sm:$0xff]  ;;  %v5125_v58 = vcombine.high %v967_v52, %v971_v53  ;;  %v5124_v60 = vcombine.low %v967_v52, %v971_v53  ;;  %v1015_v47 = vld [vmem:[#allocation7 + $0xa10] sm:$0xff] }
 0x2a4   :  { %v1019_v48 = vld [vmem:[#allocation7 + $0xa30] sm:$0xff] }
 0x2a5   :  { %4199 = vmatpush1.bf16.msra.mxu0 %v5068_v2  ;;  %v5127_v2 = vcombine.high %v968_v19, %v972_v56 }
 0x2a6   :  { %4363 = vmatpush1.bf16.msra.mxu1 %v5070_v3  ;;  %4200 = vmatprep.subr.bf16.mxu0 %v5077_v7  ;;  %v975_v3 = vld [vmem:[#allocation7 + $0x8d0] sm:$0xff] }
 0x2a7   :  { %4364 = vmatprep.subr.bf16.mxu1 %v5079_v8  ;;  %v979_v7 = vld [vmem:[#allocation7 + $0x8f0] sm:$0xff]  ;;  %v976_v8 = vld [vmem:[#allocation7 + $0x8d8] sm:$0xff] }
 0x2a8   :  { %v5133_v62 = vcombine.high %v975_v3, %v979_v7  ;;  %v5135_v11 = vcombine.high %v976_v8, %v980_v10  ;;  %v5134_v21 = vcombine.low %v976_v8, %v980_v10  ;;  %v1031_v10 = vld [vmem:[#allocation7 + $0xa90] sm:$0xff] }
 0x2a9   :  { %4201 = vmatpush1.bf16.msra.mxu0 %v5076_v12  ;;  %v983_v12 = vld [vmem:[#allocation7 + $0x910] sm:$0xff] }
 0x2aa   :  { %4365 = vmatpush1.bf16.msra.mxu1 %v5078_v13  ;;  %4202 = vmatprep.subr.bf16.mxu0 %v5085_v15  ;;  %v987_v13 = vld [vmem:[#allocation7 + $0x930] sm:$0xff]  ;;  %v984_v15 = vld [vmem:[#allocation7 + $0x918] sm:$0xff] }
 0x2ab   :  { %4366 = vmatprep.subr.bf16.mxu1 %v5087_v17  ;;  %v988_v17 = vld [vmem:[#allocation7 + $0x938] sm:$0xff]  ;;  %v5141_v23 = vcombine.high %v983_v12, %v987_v13 }
 0x2ac   :  { %v5143_v25 = vcombine.high %v984_v15, %v988_v17  ;;  %v5142_v33 = vcombine.low %v984_v15, %v988_v17  ;;  %v1039_v17 = vld [vmem:[#allocation7 + $0xad0] sm:$0xff] }
 0x2ad   :  { %4203 = vmatpush1.bf16.msra.mxu0 %v5084_v27  ;;  %v995_v27 = vld [vmem:[#allocation7 + $0x970] sm:$0xff] }
 0x2ae   :  { %4367 = vmatpush1.bf16.msra.mxu1 %v5086_v28  ;;  %4204 = vmatprep.subr.bf16.mxu0 %v5093_v29  ;;  %v992_v28 = vld [vmem:[#allocation7 + $0x958] sm:$0xff]  ;;  %v5149_v34 = vcombine.high %v991_v26, %v995_v27 }
 0x2af   :  { %4368 = vmatprep.subr.bf16.mxu1 %v5095_v30  ;;  %v996_v29 = vld [vmem:[#allocation7 + $0x978] sm:$0xff]  ;;  %v5140_v30 = vcombine.low %v983_v12, %v987_v13 }
 0x2b0   :  { %v5151_v35 = vcombine.high %v992_v28, %v996_v29  ;;  %v5150_v39 = vcombine.low %v992_v28, %v996_v29  ;;  %v1047_v29 = vld [vmem:[#allocation7 + $0xb10] sm:$0xff] }
 0x2b1   :  { %4205 = vmatpush1.bf16.msra.mxu0 %v5092_v31  ;;  %v1003_v31 = vld [vmem:[#allocation7 + $0x9b0] sm:$0xff] }
 0x2b2   :  { %4369 = vmatpush1.bf16.msra.mxu1 %v5094_v36  ;;  %4206 = vmatprep.subr.bf16.mxu0 %v5101_v63  ;;  %v1000_v36 = vld [vmem:[#allocation7 + $0x998] sm:$0xff]  ;;  %v5157_v40 = vcombine.high %v999_v0, %v1003_v31 }
 0x2b3   :  { %4370 = vmatprep.subr.bf16.mxu1 %v5103_v37  ;;  %v1004_v63 = vld [vmem:[#allocation7 + $0x9b8] sm:$0xff]  ;;  %v5148_v37 = vcombine.low %v991_v26, %v995_v27 }
 0x2b4   :  { %v5159_v41 = vcombine.high %v1000_v36, %v1004_v63  ;;  %v5158_v46 = vcombine.low %v1000_v36, %v1004_v63  ;;  %v1055_v63 = vld [vmem:[#allocation7 + $0xb50] sm:$0xff] }
 0x2b5   :  { %4207 = vmatpush1.bf16.msra.mxu0 %v5100_v42  ;;  %v1011_v42 = vld [vmem:[#allocation7 + $0x9f0] sm:$0xff] }
 0x2b6   :  { %4371 = vmatpush1.bf16.msra.mxu1 %v5102_v43  ;;  %4217 = vmatprep.subr.bf16.mxu0 %v5109_v44  ;;  %v1008_v43 = vld [vmem:[#allocation7 + $0x9d8] sm:$0xff]  ;;  %v5165_v32 = vcombine.high %v1007_v24, %v1011_v42  ;;  %v5164_v52 = vcombine.low %v1007_v24, %v1011_v42 }
 0x2b7   :  { %4381 = vmatprep.subr.bf16.mxu1 %v5111_v45  ;;  %v1012_v44 = vld [vmem:[#allocation7 + $0x9f8] sm:$0xff]  ;;  %v5156_v45 = vcombine.low %v999_v0, %v1003_v31 }
 0x2b8   :  { %4209 = vmatmul.mubr.bf16.vlgmr.msra.gmra.mrb[12].mxu0 %v5830_v9  ;;  %v5166_v53 = vcombine.low %v1008_v43, %v1012_v44 }
 0x2b9   :  { %4373 = vmatmul.mubr.bf16.vlgmr.msra.gmra.mrb[12].mxu1 %v5830_v9  ;;  %4218 = vmatpush1.bf16.msra.mxu0 %v5108_v38  ;;  %v5126_v9 = vcombine.low %v968_v19, %v972_v56  ;;  %v5167_v38 = vcombine.high %v1008_v43, %v1012_v44  ;;  %v1023_v56 = vld [vmem:[#allocation7 + $0xa50] sm:$0xff] }
 0x2ba   :  { %4249 = vmatprep.mubr.bf16.mxu0 %v5832_v20  ;;  %4382 = vmatpush1.bf16.msra.mxu1 %v5110_v49  ;;  %v1016_v49 = vld [vmem:[#allocation7 + $0xa18] sm:$0xff]  ;;  %v1063_v44 = vld [vmem:[#allocation7 + $0xb90] sm:$0xff] }
 0x2bb   :  { %4413 = vmatprep.mubr.bf16.mxu1 %v5832_v20  ;;  %4219 = vmatprep.subr.bf16.mxu0 %v5117_v50  ;;  %v5132_v20 = vcombine.low %v975_v3, %v979_v7  ;;  %v1020_v50 = vld [vmem:[#allocation7 + $0xa38] sm:$0xff] }
 0x2bc   :  { %4383 = vmatprep.subr.bf16.mxu1 %v5119_v54  ;;  %v5173_v54 = vcombine.high %v1015_v47, %v1019_v48  ;;  %v5175_v19 = vcombine.high %v1016_v49, %v1020_v50  ;;  %v5174_v3 = vcombine.low %v1016_v49, %v1020_v50  ;;  %v1071_v50 = vld [vmem:[#allocation7 + $0xbd0] sm:$0xff] }
 0x2bd   :  { %4220 = vmatpush1.bf16.msra.mxu0 %v5116_v18  ;;  %v1027_v18 = vld [vmem:[#allocation7 + $0xa70] sm:$0xff] }
 0x2be   :  { %4384 = vmatpush1.bf16.msra.mxu1 %v5118_v57  ;;  %4221 = vmatprep.subr.bf16.mxu0 %v5125_v58  ;;  %v1024_v57 = vld [vmem:[#allocation7 + $0xa58] sm:$0xff]  ;;  %v5181_v7 = vcombine.high %v1023_v56, %v1027_v18 }
 0x2bf   :  { %4385 = vmatprep.subr.bf16.mxu1 %v5127_v2  ;;  %v1028_v58 = vld [vmem:[#allocation7 + $0xa78] sm:$0xff]  ;;  %v5172_v2 = vcombine.low %v1015_v47, %v1019_v48 }
 0x2c0   :  { %v5183_v8 = vcombine.high %v1024_v57, %v1028_v58  ;;  %v5182_v12 = vcombine.low %v1024_v57, %v1028_v58  ;;  %v1079_v58 = vld [vmem:[#allocation7 + $0xc10] sm:$0xff] }
 0x2c1   :  { %4222 = vmatpush1.bf16.msra.mxu0 %v5124_v60  ;;  %v1035_v60 = vld [vmem:[#allocation7 + $0xab0] sm:$0xff] }
 0x2c2   :  { %4386 = vmatpush1.bf16.msra.mxu1 %v5126_v9  ;;  %4223 = vmatprep.subr.bf16.mxu0 %v5133_v62  ;;  %v1032_v9 = vld [vmem:[#allocation7 + $0xa98] sm:$0xff]  ;;  %v5189_v13 = vcombine.high %v1031_v10, %v1035_v60 }
 0x2c3   :  { %4387 = vmatprep.subr.bf16.mxu1 %v5135_v11  ;;  %v1036_v62 = vld [vmem:[#allocation7 + $0xab8] sm:$0xff]  ;;  %v5180_v11 = vcombine.low %v1023_v56, %v1027_v18 }
 0x2c4   :  { %v5191_v15 = vcombine.high %v1032_v9, %v1036_v62  ;;  %v5190_v26 = vcombine.low %v1032_v9, %v1036_v62  ;;  %v1087_v62 = vld [vmem:[#allocation7 + $0xc50] sm:$0xff] }
 0x2c5   :  { %4224 = vmatpush1.bf16.msra.mxu0 %v5132_v20  ;;  %v1043_v20 = vld [vmem:[#allocation7 + $0xaf0] sm:$0xff] }
 0x2c6   :  { %4388 = vmatpush1.bf16.msra.mxu1 %v5134_v21  ;;  %4225 = vmatprep.subr.bf16.mxu0 %v5141_v23  ;;  %v1040_v21 = vld [vmem:[#allocation7 + $0xad8] sm:$0xff]  ;;  %v5197_v27 = vcombine.high %v1039_v17, %v1043_v20 }
 0x2c7   :  { %4389 = vmatprep.subr.bf16.mxu1 %v5143_v25  ;;  %v1044_v23 = vld [vmem:[#allocation7 + $0xaf8] sm:$0xff]  ;;  %v5188_v25 = vcombine.low %v1031_v10, %v1035_v60 }
 0x2c8   :  { %v5199_v28 = vcombine.high %v1040_v21, %v1044_v23  ;;  %v5198_v0 = vcombine.low %v1040_v21, %v1044_v23  ;;  %v1095_v21 = vld [vmem:[#allocation7 + $0xc90] sm:$0xff] }
 0x2c9   :  { %4226 = vmatpush1.bf16.msra.mxu0 %v5140_v30  ;;  %v1051_v30 = vld [vmem:[#allocation7 + $0xb30] sm:$0xff] }
 0x2ca   :  { %4390 = vmatpush1.bf16.msra.mxu1 %v5142_v33  ;;  %4227 = vmatprep.subr.bf16.mxu0 %v5149_v34  ;;  %v1048_v33 = vld [vmem:[#allocation7 + $0xb18] sm:$0xff]  ;;  %v5205_v31 = vcombine.high %v1047_v29, %v1051_v30  ;;  %v1099_v23 = vld [vmem:[#allocation7 + $0xcb0] sm:$0xff] }
 0x2cb   :  { %4391 = vmatprep.subr.bf16.mxu1 %v5151_v35  ;;  %v1052_v34 = vld [vmem:[#allocation7 + $0xb38] sm:$0xff]  ;;  %v5196_v35 = vcombine.low %v1039_v17, %v1043_v20 }
 0x2cc   :  { %v5207_v36 = vcombine.high %v1048_v33, %v1052_v34  ;;  %v5206_v24 = vcombine.low %v1048_v33, %v1052_v34  ;;  %v1103_v34 = vld [vmem:[#allocation7 + $0xcd0] sm:$0xff] }
 0x2cd   :  { %4228 = vmatpush1.bf16.msra.mxu0 %v5148_v37  ;;  %v1059_v37 = vld [vmem:[#allocation7 + $0xb70] sm:$0xff] }
 0x2ce   :  { %4392 = vmatpush1.bf16.msra.mxu1 %v5150_v39  ;;  %4229 = vmatprep.subr.bf16.mxu0 %v5157_v40  ;;  %v1056_v39 = vld [vmem:[#allocation7 + $0xb58] sm:$0xff]  ;;  %v5213_v42 = vcombine.high %v1055_v63, %v1059_v37 }
 0x2cf   :  { %4393 = vmatprep.subr.bf16.mxu1 %v5159_v41  ;;  %v1060_v40 = vld [vmem:[#allocation7 + $0xb78] sm:$0xff]  ;;  %v5204_v41 = vcombine.low %v1047_v29, %v1051_v30  ;;  %v5253_v30 = vcombine.high %v1095_v21, %v1099_v23 }
 0x2d0   :  { %v5215_v43 = vcombine.high %v1056_v39, %v1060_v40  ;;  %v5214_v47 = vcombine.low %v1056_v39, %v1060_v40  ;;  %v1111_v39 = vld [vmem:[#allocation7 + $0xd10] sm:$0xff] }
 0x2d1   :  { %4230 = vmatpush1.bf16.msra.mxu0 %v5156_v45  ;;  %v1067_v45 = vld [vmem:[#allocation7 + $0xbb0] sm:$0xff] }
 0x2d2   :  { %4394 = vmatpush1.bf16.msra.mxu1 %v5158_v46  ;;  %4231 = vmatprep.subr.bf16.mxu0 %v5165_v32  ;;  %v1064_v46 = vld [vmem:[#allocation7 + $0xb98] sm:$0xff]  ;;  %v5221_v48 = vcombine.high %v1063_v44, %v1067_v45  ;;  %v1115_v40 = vld [vmem:[#allocation7 + $0xd30] sm:$0xff] }
 0x2d3   :  { %4395 = vmatprep.subr.bf16.mxu1 %v5167_v38  ;;  %v1068_v32 = vld [vmem:[#allocation7 + $0xbb8] sm:$0xff]  ;;  %v5212_v38 = vcombine.low %v1055_v63, %v1059_v37 }
 0x2d4   :  { %v5223_v49 = vcombine.high %v1064_v46, %v1068_v32  ;;  %v5222_v56 = vcombine.low %v1064_v46, %v1068_v32  ;;  %v1123_v46 = vld [vmem:[#allocation7 + $0xd70] sm:$0xff]  ;;  %v1120_v32 = vld [vmem:[#allocation7 + $0xd58] sm:$0xff] }
 0x2d5   :  { %4232 = vmatpush1.bf16.msra.mxu0 %v5164_v52  ;;  %v1075_v52 = vld [vmem:[#allocation7 + $0xbf0] sm:$0xff] }
 0x2d6   :  { %4396 = vmatpush1.bf16.msra.mxu1 %v5166_v53  ;;  %4233 = vmatprep.subr.bf16.mxu0 %v5173_v54  ;;  %v1072_v53 = vld [vmem:[#allocation7 + $0xbd8] sm:$0xff]  ;;  %v5229_v18 = vcombine.high %v1071_v50, %v1075_v52 }
 0x2d7   :  { %4397 = vmatprep.subr.bf16.mxu1 %v5175_v19  ;;  %v1076_v54 = vld [vmem:[#allocation7 + $0xbf8] sm:$0xff]  ;;  %v5220_v19 = vcombine.low %v1063_v44, %v1067_v45  ;;  %v1119_v45 = vld [vmem:[#allocation7 + $0xd50] sm:$0xff] }
 0x2d8   :  { %v5231_v57 = vcombine.high %v1072_v53, %v1076_v54  ;;  %v5230_v10 = vcombine.low %v1072_v53, %v1076_v54  ;;  %v1127_v53 = vld [vmem:[#allocation7 + $0xd90] sm:$0xff] }
 0x2d9   :  { %4234 = vmatpush1.bf16.msra.mxu0 %v5172_v2  ;;  %v1083_v2 = vld [vmem:[#allocation7 + $0xc30] sm:$0xff] }
 0x2da   :  { %4398 = vmatpush1.bf16.msra.mxu1 %v5174_v3  ;;  %4235 = vmatprep.subr.bf16.mxu0 %v5181_v7  ;;  %v1080_v3 = vld [vmem:[#allocation7 + $0xc18] sm:$0xff]  ;;  %v5237_v60 = vcombine.high %v1079_v58, %v1083_v2  ;;  %v1131_v54 = vld [vmem:[#allocation7 + $0xdb0] sm:$0xff] }
 0x2db   :  { %4399 = vmatprep.subr.bf16.mxu1 %v5183_v8  ;;  %v1084_v7 = vld [vmem:[#allocation7 + $0xc38] sm:$0xff]  ;;  %v5228_v8 = vcombine.low %v1071_v50, %v1075_v52  ;;  %v5277_v50 = vcombine.high %v1119_v45, %v1123_v46 }
 0x2dc   :  { %v5239_v9 = vcombine.high %v1080_v3, %v1084_v7  ;;  %v5238_v17 = vcombine.low %v1080_v3, %v1084_v7  ;;  %v5276_v3 = vcombine.low %v1119_v45, %v1123_v46 }
 0x2dd   :  { %4236 = vmatpush1.bf16.msra.mxu0 %v5180_v11  ;;  %v1091_v11 = vld [vmem:[#allocation7 + $0xc70] sm:$0xff] }
 0x2de   :  { %4400 = vmatpush1.bf16.msra.mxu1 %v5182_v12  ;;  %4237 = vmatprep.subr.bf16.mxu0 %v5189_v13  ;;  %v5236_v12 = vcombine.low %v1079_v58, %v1083_v2  ;;  %v1088_v13 = vld [vmem:[#allocation7 + $0xc58] sm:$0xff]  ;;  %v5245_v20 = vcombine.high %v1087_v62, %v1091_v11 }
 0x2df   :  { %4401 = vmatprep.subr.bf16.mxu1 %v5191_v15  ;;  %v1092_v15 = vld [vmem:[#allocation7 + $0xc78] sm:$0xff] }
 0x2e0   :  { %v5246_v29 = vcombine.low %v1088_v13, %v1092_v15 }
 0x2e1   :  { %4238 = vmatpush1.bf16.msra.mxu0 %v5188_v25  ;;  %v5247_v25 = vcombine.high %v1088_v13, %v1092_v15 }
 0x2e2   :  { %4402 = vmatpush1.bf16.msra.mxu1 %v5190_v26  ;;  %4239 = vmatprep.subr.bf16.mxu0 %v5197_v27  ;;  %v1096_v26 = vld [vmem:[#allocation7 + $0xc98] sm:$0xff] }
 0x2e3   :  { %4403 = vmatprep.subr.bf16.mxu1 %v5199_v28  ;;  %v1100_v27 = vld [vmem:[#allocation7 + $0xcb8] sm:$0xff]  ;;  %v5244_v28 = vcombine.low %v1087_v62, %v1091_v11  ;;  %v1135_v62 = vld [vmem:[#allocation7 + $0xdd0] sm:$0xff] }
 0x2e4   :  { %v5255_v33 = vcombine.high %v1096_v26, %v1100_v27  ;;  %v1139_v11 = vld [vmem:[#allocation7 + $0xdf0] sm:$0xff] }
 0x2e5   :  { %4240 = vmatpush1.bf16.msra.mxu0 %v5196_v35  ;;  %v1107_v35 = vld [vmem:[#allocation7 + $0xcf0] sm:$0xff] }
 0x2e6   :  { %4404 = vmatpush1.bf16.msra.mxu1 %v5198_v0  ;;  %4241 = vmatprep.subr.bf16.mxu0 %v5205_v31  ;;  %v1104_v0 = vld [vmem:[#allocation7 + $0xcd8] sm:$0xff]  ;;  %v5261_v63 = vcombine.high %v1103_v34, %v1107_v35 }
 0x2e7   :  { %4405 = vmatprep.subr.bf16.mxu1 %v5207_v36  ;;  %v1108_v31 = vld [vmem:[#allocation7 + $0xcf8] sm:$0xff]  ;;  %v5252_v36 = vcombine.low %v1095_v21, %v1099_v23 }
 0x2e8   :  { %v5263_v37 = vcombine.high %v1104_v0, %v1108_v31  ;;  %v1140_v21 = vld [vmem:[#allocation7 + $0xdf8] sm:$0xff] }
 0x2e9   :  { %4242 = vmatpush1.bf16.msra.mxu0 %v5204_v41  ;;  %v1112_v41 = vld [vmem:[#allocation7 + $0xd18] sm:$0xff] }
 0x2ea   :  { %4406 = vmatpush1.bf16.msra.mxu1 %v5206_v24  ;;  %4243 = vmatprep.subr.bf16.mxu0 %v5213_v42  ;;  %v1116_v24 = vld [vmem:[#allocation7 + $0xd38] sm:$0xff]  ;;  %v5262_v42 = vcombine.low %v1104_v0, %v1108_v31  ;;  %v5293_v0 = vcombine.high %v1135_v62, %v1139_v11 }
 0x2eb   :  { %4407 = vmatprep.subr.bf16.mxu1 %v5215_v43  ;;  %v5269_v43 = vcombine.high %v1111_v39, %v1115_v40  ;;  %v5271_v44 = vcombine.high %v1112_v41, %v1116_v24 }
 0x2ed   :  { %4244 = vmatpush1.bf16.msra.mxu0 %v5212_v38  ;;  %v1124_v38 = vld [vmem:[#allocation7 + $0xd78] sm:$0xff] }
 0x2ee   :  { %4408 = vmatpush1.bf16.msra.mxu1 %v5214_v47  ;;  %4245 = vmatprep.subr.bf16.mxu0 %v5221_v48  ;;  %v5268_v47 = vcombine.low %v1111_v39, %v1115_v40  ;;  %v5881_v48 = vld [vmem:[#allocation9] sm:$0xff]  ;;  %v5279_v52 = vcombine.high %v1120_v32, %v1124_v38  ;;  %v5278_v7 = vcombine.low %v1120_v32, %v1124_v38 }
 0x2ef   :  { %4409 = vmatprep.subr.bf16.mxu1 %v5223_v49  ;;  %v5270_v49 = vcombine.low %v1112_v41, %v1116_v24  ;;  %v1214_v58 = vrot.slane %v5881_v48, %v5785_v1  ;;  %v1222_v2 = vrot.slane %v5881_v48, %v5792_v4  ;;  %v1144_v41 = vld [vmem:[#allocation7 + $0xe18] sm:$0xff] }
 0x2f0   :  { %v1148_v24 = vld [vmem:[#allocation7 + $0xe38] sm:$0xff] }
 0x2f1   :  { %4246 = vmatpush1.bf16.msra.mxu0 %v5220_v19  ;;  %v1210_v19 = vrot.slane %v5881_v48, %v5780_v61 }
 0x2f2   :  { %4410 = vmatpush1.bf16.msra.mxu1 %v5222_v56  ;;  %4247 = vmatprep.subr.bf16.mxu0 %v5229_v18  ;;  %v1218_v56 = vrot.slane %v5881_v48, %v5819_v16  ;;  %v1128_v18 = vld [vmem:[#allocation7 + $0xd98] sm:$0xff] }
 0x2f3   :  { %4411 = vmatprep.subr.bf16.mxu1 %v5231_v57  ;;  %v1132_v57 = vld [vmem:[#allocation7 + $0xdb8] sm:$0xff] }
 0x2f5   :  { %4248 = vmatpush1.bf16.msra.mxu0 %v5228_v8  ;;  %v5285_v8 = vcombine.high %v1127_v53, %v1131_v54 }
 0x2f6   :  { %4412 = vmatpush1.bf16.msra.mxu1 %v5230_v10  ;;  %4258 = vmatprep.subr.bf16.mxu0 %v5237_v60 }
 0x2f7   :  { %4422 = vmatprep.subr.bf16.mxu1 %v5239_v9  ;;  %v5287_v9 = vcombine.high %v1128_v18, %v1132_v57 }
 0x2f8   :  { %4250 = vmatmul.mubr.bf16.vlgmr.msra.gmra.mrb[12].mxu0 %v5850_v55 }
 0x2f9   :  { %4414 = vmatmul.mubr.bf16.vlgmr.msra.gmra.mrb[12].mxu1 %v5850_v55  ;;  %4259 = vmatpush1.bf16.msra.mxu0 %v5236_v12  ;;  %v5254_v55 = vcombine.low %v1096_v26, %v1100_v27 }
 0x2fa   :  { %4290 = vmatprep.mubr.bf16.mxu0 %v5852_v5  ;;  %4423 = vmatpush1.bf16.msra.mxu1 %v5238_v17 }
 0x2fb   :  { %4454 = vmatprep.mubr.bf16.mxu1 %v5852_v5  ;;  %4260 = vmatprep.subr.bf16.mxu0 %v5245_v20  ;;  %v5260_v5 = vcombine.low %v1103_v34, %v1107_v35  ;;  %v1136_v20 = vld [vmem:[#allocation7 + $0xdd8] sm:$0xff]  ;;  %v5286_v35 = vcombine.low %v1128_v18, %v1132_v57 }
 0x2fc   :  { %4424 = vmatprep.subr.bf16.mxu1 %v5247_v25  ;;  %v5294_v46 = vcombine.low %v1136_v20, %v1140_v21 }
 0x2fd   :  { %4261 = vmatpush1.bf16.msra.mxu0 %v5244_v28  ;;  %v5284_v28 = vcombine.low %v1127_v53, %v1131_v54 }
 0x2fe   :  { %4425 = vmatpush1.bf16.msra.mxu1 %v5246_v29  ;;  %4262 = vmatprep.subr.bf16.mxu0 %v5253_v30 }
 0x2ff   :  { %4426 = vmatprep.subr.bf16.mxu1 %v5255_v33 }
 0x301   :  { %4263 = vmatpush1.bf16.msra.mxu0 %v5252_v36 }
 0x302   :  { %4427 = vmatpush1.bf16.msra.mxu1 %v5254_v55  ;;  %4264 = vmatprep.subr.bf16.mxu0 %v5261_v63  ;;  %v5295_v55 = vcombine.high %v1136_v20, %v1140_v21  ;;  %v1143_v63 = vld [vmem:[#allocation7 + $0xe10] sm:$0xff]  ;;  %v1160_v20 = vld [vmem:[#allocation7 + $0xe98] sm:$0xff] }
 0x303   :  { %4428 = vmatprep.subr.bf16.mxu1 %v5263_v37  ;;  %v1147_v37 = vld [vmem:[#allocation7 + $0xe30] sm:$0xff]  ;;  %v1164_v21 = vld [vmem:[#allocation7 + $0xeb8] sm:$0xff] }
 0x304   :  { %v5301_v32 = vcombine.high %v1143_v63, %v1147_v37 }
 0x305   :  { %4265 = vmatpush1.bf16.msra.mxu0 %v5260_v5 }
 0x306   :  { %4429 = vmatpush1.bf16.msra.mxu1 %v5262_v42  ;;  %4266 = vmatprep.subr.bf16.mxu0 %v5269_v43  ;;  %v5292_v43 = vcombine.low %v1135_v62, %v1139_v11  ;;  %v1159_v62 = vld [vmem:[#allocation7 + $0xe90] sm:$0xff] }
 0x307   :  { %4430 = vmatprep.subr.bf16.mxu1 %v5271_v44  ;;  %v1163_v11 = vld [vmem:[#allocation7 + $0xeb0] sm:$0xff] }
 0x309   :  { %4267 = vmatpush1.bf16.msra.mxu0 %v5268_v47 }
 0x30a   :  { %4431 = vmatpush1.bf16.msra.mxu1 %v5270_v49  ;;  %4268 = vmatprep.subr.bf16.mxu0 %v5277_v50  ;;  %v5303_v49 = vcombine.high %v1144_v41, %v1148_v24  ;;  %v1151_v50 = vld [vmem:[#allocation7 + $0xe50] sm:$0xff] }
 0x30b   :  { %v3964_v10 = vpop.f32.mrb[8].mxu0  ;;  %v4128_v60 = vpop.f32.mrb[8].mxu1  ;;  %4432 = vmatprep.subr.bf16.mxu1 %v5279_v52  ;;  %v1155_v52 = vld [vmem:[#allocation7 + $0xe70] sm:$0xff] }
 0x30c   :  { %v5891_v12 = vadd.f32 %v3964_v10, %v1210_v19  ;;  %v5893_v13 = vadd.f32 %v4128_v60, %v1218_v56  ;;  %v3966_v15 = vpop.f32.mrb[9].mxu0  ;;  %v4130_v17 = vpop.f32.mrb[9].mxu1  ;;  %v1152_v19 = vld [vmem:[#allocation7 + $0xe58] sm:$0xff] }
 0x30d   :  { %v5895_v23 = vadd.f32 %v3966_v15, %v1214_v58  ;;  %v5897_v25 = vadd.f32 %v4130_v17, %v1222_v2  ;;  %v3968_v26 = vpop.f32.mrb[10].mxu0  ;;  %v4132_v27 = vpop.f32.mrb[10].mxu1  ;;  %4269 = vmatpush1.bf16.msra.mxu0 %v5276_v3  ;;  %v1156_v56 = vld [vmem:[#allocation7 + $0xe78] sm:$0xff]  ;;  %v5300_v58 = vcombine.low %v1143_v63, %v1147_v37 }
 0x30e   :  { %v4463_v29 = vrot.slane %v5891_v12, 4  ;;  %v4475_v30 = vrot.slane %v5893_v13, 4  ;;  %4433 = vmatpush1.bf16.msra.mxu1 %v5278_v7  ;;  %v3969_v33 = vpop.f32.mrb[11].mxu0  ;;  %v4133_v34 = vpop.f32.mrb[11].mxu1  ;;  %4270 = vmatprep.subr.bf16.mxu0 %v5285_v8  ;;  %v5302_v7 = vcombine.low %v1144_v41, %v1148_v24  ;;  %v5309_v8 = vcombine.high %v1151_v50, %v1155_v52 }
 0x30f   :  { %v4469_v31 = vrot.slane %v5895_v23, 4  ;;  %v4481_v36 = vrot.slane %v5897_v25, 4  ;;  %4434 = vmatprep.subr.bf16.mxu1 %v5287_v9  ;;  %v5311_v9 = vcombine.high %v1152_v19, %v1156_v56  ;;  %v5310_v33 = vcombine.low %v1152_v19, %v1156_v56 }
 0x310   :  { %v4464_v39 = vadd.f32 %v5891_v12, %v4463_v29  ;;  %v4476_v40 = vadd.f32 %v5893_v13, %v4475_v30  ;;  %v5317_v34 = vcombine.high %v1159_v62, %v1163_v11 }
 0x311   :  { %v4470_v5 = vadd.f32 %v5895_v23, %v4469_v31  ;;  %v4482_v42 = vadd.f32 %v5897_v25, %v4481_v36  ;;  %4271 = vmatpush1.bf16.msra.mxu0 %v5284_v28  ;;  %v5308_v28 = vcombine.low %v1151_v50, %v1155_v52  ;;  %v5319_v31 = vcombine.high %v1160_v20, %v1164_v21  ;;  %v1167_v36 = vld [vmem:[#allocation7 + $0xed0] sm:$0xff] }
 0x312   :  { %v4465_v44 = vrot.slane %v4464_v39, 2  ;;  %v4477_v45 = vrot.slane %v4476_v40, 2  ;;  %4435 = vmatpush1.bf16.msra.mxu1 %v5286_v35  ;;  %4272 = vmatprep.subr.bf16.mxu0 %v5293_v0 }
 0x313   :  { %v4471_v38 = vrot.slane %v4470_v5, 2  ;;  %v4483_v47 = vrot.slane %v4482_v42, 2  ;;  %4436 = vmatprep.subr.bf16.mxu1 %v5295_v55  ;;  %v1171_v55 = vld [vmem:[#allocation7 + $0xef0] sm:$0xff] }
 0x314   :  { %v4466_v53 = vadd.f32 %v4465_v44, %v4464_v39  ;;  %v4478_v54 = vadd.f32 %v4477_v45, %v4476_v40  ;;  %v1168_v39 = vld [vmem:[#allocation7 + $0xed8] sm:$0xff]  ;;  %v1175_v45 = vld [vmem:[#allocation7 + $0xf10] sm:$0xff] }
 0x315   :  { %v4472_v18 = vadd.f32 %v4471_v38, %v4470_v5  ;;  %v4484_v57 = vadd.f32 %v4483_v47, %v4482_v42  ;;  %4273 = vmatpush1.bf16.msra.mxu0 %v5292_v43  ;;  %v1172_v40 = vld [vmem:[#allocation7 + $0xef8] sm:$0xff]  ;;  %v5316_v5 = vcombine.low %v1159_v62, %v1163_v11  ;;  %v5318_v42 = vcombine.low %v1160_v20, %v1164_v21 }
 0x316   :  { %v4467_v2 = vrot.slane %v4466_v53, 1  ;;  %v4479_v3 = vrot.slane %v4478_v54, 1  ;;  %4437 = vmatpush1.bf16.msra.mxu1 %v5294_v46  ;;  %4274 = vmatprep.subr.bf16.mxu0 %v5301_v32  ;;  %v1179_v46 = vld [vmem:[#allocation7 + $0xf30] sm:$0xff]  ;;  %v1176_v47 = vld [vmem:[#allocation7 + $0xf18] sm:$0xff] }
 0x317   :  { %v4473_v10 = vrot.slane %v4472_v18, 1  ;;  %v4485_v60 = vrot.slane %v4484_v57, 1  ;;  %4438 = vmatprep.subr.bf16.mxu1 %v5303_v49  ;;  %v1180_v49 = vld [vmem:[#allocation7 + $0xf38] sm:$0xff] }
 0x318   :  { %v4468_v15 = vadd.f32 %v4467_v2, %v4466_v53  ;;  %v4480_v17 = vadd.f32 %v4479_v3, %v4478_v54  ;;  %v5324_v53 = vcombine.low %v1167_v36, %v1171_v55  ;;  %v5326_v54 = vcombine.low %v1168_v39, %v1172_v40  ;;  %v1183_v3 = vld [vmem:[#allocation7 + $0xf50] sm:$0xff] }
 0x319   :  { %v4474_v26 = vadd.f32 %v4473_v10, %v4472_v18  ;;  %v4486_v27 = vadd.f32 %v4485_v60, %v4484_v57  ;;  %4275 = vmatpush1.bf16.msra.mxu0 %v5300_v58  ;;  %v5333_v18 = vcombine.high %v1175_v45, %v1179_v46  ;;  %v5335_v2 = vcombine.high %v1176_v47, %v1180_v49  ;;  %v1184_v60 = vld [vmem:[#allocation7 + $0xf58] sm:$0xff] }
 0x31a   :  { %v4512_v29 = vmul.f32 0.125, %v4468_v15  ;;  %v4514_v30 = vmul.f32 0.125, %v4480_v17  ;;  %4439 = vmatpush1.bf16.msra.mxu1 %v5302_v7  ;;  %4276 = vmatprep.subr.bf16.mxu0 %v5309_v8  ;;  %v1187_v7 = vld [vmem:[#allocation7 + $0xf70] sm:$0xff]  ;;  %v5332_v15 = vcombine.low %v1175_v45, %v1179_v46  ;;  %v5334_v17 = vcombine.low %v1176_v47, %v1180_v49 }
 0x31b   :  { %v4513_v35 = vmul.f32 0.125, %v4474_v26  ;;  %v4515_v0 = vmul.f32 0.125, %v4486_v27  ;;  %4440 = vmatprep.subr.bf16.mxu1 %v5311_v9  ;;  %v1188_v9 = vld [vmem:[#allocation7 + $0xf78] sm:$0xff]  ;;  %v5341_v26 = vcombine.high %v1183_v3, %v1187_v7 }
 0x31c   :  { %v5908_v63 = vsub.f32 %v5891_v12, %v4512_v29  ;;  %v5911_v37 = vsub.f32 %v5893_v13, %v4514_v30  ;;  %v5325_v13 = vcombine.high %v1167_v36, %v1171_v55  ;;  %v5343_v29 = vcombine.high %v1184_v60, %v1188_v9  ;;  %v1191_v30 = vld [vmem:[#allocation7 + $0xf90] sm:$0xff] }
 0x31d   :  { %v5914_v41 = vsub.f32 %v5895_v23, %v4513_v35  ;;  %v5917_v24 = vsub.f32 %v5897_v25, %v4515_v0  ;;  %4277 = vmatpush1.bf16.msra.mxu0 %v5308_v28  ;;  %v5327_v25 = vcombine.high %v1168_v39, %v1172_v40  ;;  %v1192_v0 = vld [vmem:[#allocation7 + $0xf98] sm:$0xff]  ;;  %v5340_v39 = vcombine.low %v1183_v3, %v1187_v7  ;;  %v5927_v3 = vld [vmem:[#allocation10] sm:$0xff]  ;;  %v5929_v7 = vld [vmem:[#allocation12] sm:$0xff] }
 0x31e   :  { %v4528_v43 = vmul.f32 %v5908_v63, %v5908_v63  ;;  %v4530_v12 = vmul.f32 %v5911_v37, %v5911_v37  ;;  %4441 = vmatpush1.bf16.msra.mxu1 %v5310_v33  ;;  %4278 = vmatprep.subr.bf16.mxu0 %v5317_v34  ;;  %v1195_v33 = vld [vmem:[#allocation7 + $0xfb0] sm:$0xff]  ;;  %v5342_v40 = vcombine.low %v1184_v60, %v1188_v9 }
 0x31f   :  { %v4529_v44 = vmul.f32 %v5914_v41, %v5914_v41  ;;  %v4531_v23 = vmul.f32 %v5917_v24, %v5917_v24  ;;  %4442 = vmatprep.subr.bf16.mxu1 %v5319_v31  ;;  %v1196_v31 = vld [vmem:[#allocation7 + $0xfb8] sm:$0xff]  ;;  %v4629_v60 = vrot.slane %v5927_v3, %v5819_v16 }
 0x320   :  { %v4536_v32 = vrot.slane %v4528_v43, 4  ;;  %v4548_v38 = vrot.slane %v4530_v12, 4 }
 0x321   :  { %v4542_v50 = vrot.slane %v4529_v44, 4  ;;  %v4554_v52 = vrot.slane %v4531_v23, 4  ;;  %4279 = vmatpush1.bf16.msra.mxu0 %v5316_v5 }
 0x322   :  { %v4537_v19 = vadd.f32 %v4536_v32, %v4528_v43  ;;  %v4549_v56 = vadd.f32 %v4548_v38, %v4530_v12  ;;  %4443 = vmatpush1.bf16.msra.mxu1 %v5318_v42  ;;  %4280 = vmatprep.subr.bf16.mxu0 %v5325_v13  ;;  %v5349_v43 = vcombine.high %v1191_v30, %v1195_v33  ;;  %v1200_v32 = vld [vmem:[#allocation7 + $0xfd8] sm:$0xff] }
 0x323   :  { %v4543_v57 = vadd.f32 %v4542_v50, %v4529_v44  ;;  %v4555_v58 = vadd.f32 %v4554_v52, %v4531_v23  ;;  %4444 = vmatprep.subr.bf16.mxu1 %v5327_v25  ;;  %v5351_v44 = vcombine.high %v1192_v0, %v1196_v31  ;;  %v1199_v23 = vld [vmem:[#allocation7 + $0xfd0] sm:$0xff]  ;;  %v1204_v38 = vld [vmem:[#allocation7 + $0xff8] sm:$0xff]  ;;  %v5348_v50 = vcombine.low %v1191_v30, %v1195_v33 }
 0x324   :  { %v4538_v8 = vrot.slane %v4537_v19, 2  ;;  %v4550_v10 = vrot.slane %v4549_v56, 2  ;;  %v1203_v25 = vld [vmem:[#allocation7 + $0xff0] sm:$0xff]  ;;  %v4683_v30 = vrot.slane %v5929_v7, %v5792_v4 }
 0x325   :  { %v4544_v62 = vrot.slane %v4543_v57, 2  ;;  %v4556_v11 = vrot.slane %v4555_v58, 2  ;;  %4281 = vmatpush1.bf16.msra.mxu0 %v5324_v53 }
 0x326   :  { %v4539_v20 = vadd.f32 %v4538_v8, %v4537_v19  ;;  %v4551_v21 = vadd.f32 %v4550_v10, %v4549_v56  ;;  %4445 = vmatpush1.bf16.msra.mxu1 %v5326_v54  ;;  %4282 = vmatprep.subr.bf16.mxu0 %v5333_v18  ;;  %v5350_v54 = vcombine.low %v1192_v0, %v1196_v31 }
 0x327   :  { %v4545_v27 = vadd.f32 %v4544_v62, %v4543_v57  ;;  %v4557_v28 = vadd.f32 %v4556_v11, %v4555_v58  ;;  %4446 = vmatprep.subr.bf16.mxu1 %v5335_v2  ;;  %v5357_v19 = vcombine.high %v1199_v23, %v1203_v25  ;;  %v5359_v57 = vcombine.high %v1200_v32, %v1204_v38 }
 0x328   :  { %v4540_v34 = vrot.slane %v4539_v20, 1  ;;  %v4552_v35 = vrot.slane %v4551_v21, 1  ;;  %v5356_v58 = vcombine.low %v1199_v23, %v1203_v25  ;;  %v5358_v2 = vcombine.low %v1200_v32, %v1204_v38 }
 0x329   :  { %v4546_v36 = vrot.slane %v4545_v27, 1  ;;  %v4558_v55 = vrot.slane %v4557_v28, 1  ;;  %4283 = vmatpush1.bf16.msra.mxu0 %v5332_v15  ;;  %v4621_v8 = vrot.slane %v5927_v3, %v5780_v61  ;;  %v4671_v11 = vrot.slane %v5929_v7, %v5780_v61 }
 0x32a   :  { %v4541_v5 = vadd.f32 %v4540_v34, %v4539_v20  ;;  %v4553_v42 = vadd.f32 %v4552_v35, %v4551_v21  ;;  %4447 = vmatpush1.bf16.msra.mxu1 %v5334_v17  ;;  %4284 = vmatprep.subr.bf16.mxu0 %v5341_v26  ;;  %v4625_v15 = vrot.slane %v5927_v3, %v5785_v1 }
 0x32b   :  { %v4547_v12 = vadd.f32 %v4546_v36, %v4545_v27  ;;  %v4559_v13 = vadd.f32 %v4558_v55, %v4557_v28  ;;  %4448 = vmatprep.subr.bf16.mxu1 %v5343_v29  ;;  %v4679_v21 = vrot.slane %v5929_v7, %v5819_v16 }
 0x32c   :  { %v4584_v45 = vmul.f32 0.125, %v4541_v5  ;;  %v4586_v46 = vmul.f32 0.125, %v4553_v42  ;;  %v1226_v42 = vrot.slane %v5881_v48, %v5839_v59 }
 0x32d   :  { %v4585_v47 = vmul.f32 0.125, %v4547_v12  ;;  %v4587_v49 = vmul.f32 0.125, %v4559_v13  ;;  %4285 = vmatpush1.bf16.msra.mxu0 %v5340_v39  ;;  %v1230_v12 = vrot.slane %v5881_v48, %v5822_v22  ;;  %v1238_v13 = vrot.slane %v5881_v48, %v5842_v6 }
 0x32e   :  { %v4592_v52 = vadd.f32 1e-05, %v4584_v45  ;;  %v4594_v53 = vadd.f32 1e-05, %v4586_v46  ;;  %4449 = vmatpush1.bf16.msra.mxu1 %v5342_v40  ;;  %4286 = vmatprep.subr.bf16.mxu0 %v5349_v43  ;;  %v1234_v43 = vrot.slane %v5881_v48, %v5859_v51 }
 0x32f   :  { %v4593_v56 = vadd.f32 1e-05, %v4585_v47  ;;  %v4595_v18 = vadd.f32 1e-05, %v4587_v49  ;;  %4450 = vmatprep.subr.bf16.mxu1 %v5351_v44 }
 0x330   :  { %5442 = vrsqrt.f32 %v4592_v52 }
 0x331   :  { %5444 = vrsqrt.f32 %v4594_v53  ;;  %4287 = vmatpush1.bf16.msra.mxu0 %v5348_v50 }
 0x332   :  { %5446 = vrsqrt.f32 %v4593_v56  ;;  %4451 = vmatpush1.bf16.msra.mxu1 %v5350_v54  ;;  %4288 = vmatprep.subr.bf16.mxu0 %v5357_v19 }
 0x333   :  { %5448 = vrsqrt.f32 %v4595_v18  ;;  %4452 = vmatprep.subr.bf16.mxu1 %v5359_v57 }
 0x335   :  { %4289 = vmatpush1.bf16.msra.mxu0 %v5356_v58 }
 0x336   :  { %4453 = vmatpush1.bf16.msra.mxu1 %v5358_v2 }
 0x338   :  { %4291 = vmatmul.mubr.bf16.vlgmr.msra.gmra.mrb[12].mxu0 %v5863_v14 }
 0x339   :  { %4455 = vmatmul.mubr.bf16.vlgmr.msra.gmra.mrb[12].mxu1 %v5863_v14  ;;  %v4633_v14 = vrot.slane %v5927_v3, %v5792_v4 }
 0x33a   :  { %v5443_v10 = vpop.eup %5442 }
 0x33b   :  { %v5445_v9 = vpop.eup %5444  ;;  %v4608_v62 = vmul.f32 %v5443_v10, %v5908_v63  ;;  %v4675_v63 = vrot.slane %v5929_v7, %v5785_v1 }
 0x33c   :  { %v5447_v17 = vpop.eup %5446  ;;  %v4610_v20 = vmul.f32 %v5445_v9, %v5911_v37 }
 0x33d   :  { %v5449_v26 = vpop.eup %5448  ;;  %v4658_v27 = vmul.f32 %v4621_v8, %v4608_v62  ;;  %v4609_v28 = vmul.f32 %v5447_v17, %v5914_v41 }
 0x33e   :  { %v4660_v61 = vmul.f32 %v4629_v60, %v4610_v20  ;;  %v4611_v29 = vmul.f32 %v5449_v26, %v5917_v24 }
 0x33f   :  { %v4708_v37 = vadd.f32 %v4671_v11, %v4658_v27  ;;  %v4659_v33 = vmul.f32 %v4625_v15, %v4609_v28 }
 0x340   :  { %v4710_v34 = vadd.f32 %v4679_v21, %v4660_v61  ;;  %v4661_v16 = vmul.f32 %v4633_v14, %v4611_v29 }
 0x341   :  { %vm4716_vm10 = vcmp.gt.f32.partialorder %v4708_v37, 0.0  ;;  %v4724_v35 = vmul.f32 0.2, %v4708_v37  ;;  %v4709_v0 = vadd.f32 %v4675_v63, %v4659_v33 }
 0x342   :  { %vm4718_vm11 = vcmp.gt.f32.partialorder %v4710_v34, 0.0  ;;  %v4726_v31 = vmul.f32 0.2, %v4710_v34  ;;  %v4711_v36 = vadd.f32 %v4683_v30, %v4661_v16 }
 0x343   :  { %v4732_v41 = vsel %vm4716_vm10, %v4708_v37, %v4724_v35  ;;  %vm4717_vm12 = vcmp.gt.f32.partialorder %v4709_v0, 0.0  ;;  %v4725_v55 = vmul.f32 0.2, %v4709_v0 }
 0x344   :  { %v4734_v1 = vsel %vm4718_vm11, %v4710_v34, %v4726_v31  ;;  %vm4719_vm13 = vcmp.gt.f32.partialorder %v4711_v36, 0.0  ;;  %v4727_v39 = vmul.f32 0.2, %v4711_v36 }
 0x345   :  { %v4733_v24 = vsel %vm4717_vm12, %v4709_v0, %v4725_v55 }
 0x346   :  { %v5364_v40 = vpack.c.bf16 %v4733_v24, %v4732_v41  ;;  %v4735_v5 = vsel %vm4719_vm13, %v4711_v36, %v4727_v39 }
 0x347   :  { %v5365_v4 = vpack.c.bf16 %v4735_v5, %v4734_v1 }
 0x348   :  { %4772 = vst [vmem:[%s5996_s7] sm:$0xff] %v5364_v40 }
 0x349   :  { %4773 = vst [vmem:[%s5996_s7 + $0x8] sm:$0xff] %v5365_v4 }
 0x40b   :  { %v4292_v44 = vpop.f32.mrb[12].mxu0 }
 0x40c   :  { %v5372_v23 = vadd.f32 %v4292_v44, %v1226_v42  ;;  %v4456_v25 = vpop.f32.mrb[12].mxu1  ;;  %v4294_v45 = vpop.f32.mrb[13].mxu0 }
 0x40d   :  { %v5374_v46 = vadd.f32 %v4456_v25, %v1234_v43  ;;  %v5373_v32 = vadd.f32 %v4294_v45, %v1230_v12  ;;  %v4458_v38 = vpop.f32.mrb[13].mxu1  ;;  %v4296_v47 = vpop.f32.mrb[14].mxu0 }
 0x40e   :  { %v4487_v49 = vrot.slane %v5372_v23, 4  ;;  %v5375_v50 = vadd.f32 %v4458_v38, %v1238_v13  ;;  %v4460_v52 = vpop.f32.mrb[14].mxu1  ;;  %v4297_v53 = vpop.f32.mrb[15].mxu0 }
 0x40f   :  { %v4499_v54 = vrot.slane %v5374_v46, 4  ;;  %v4493_v19 = vrot.slane %v5373_v32, 4  ;;  %v4461_v56 = vpop.f32.mrb[15].mxu1 }
 0x410   :  { %v4488_v18 = vadd.f32 %v5372_v23, %v4487_v49  ;;  %v4505_v57 = vrot.slane %v5375_v50, 4 }
 0x411   :  { %v4500_v58 = vadd.f32 %v5374_v46, %v4499_v54  ;;  %v4494_v2 = vadd.f32 %v5373_v32, %v4493_v19 }
 0x412   :  { %v4489_v48 = vrot.slane %v4488_v18, 2  ;;  %v4506_v8 = vadd.f32 %v5375_v50, %v4505_v57 }
 0x413   :  { %v4501_v10 = vrot.slane %v4500_v58, 2  ;;  %v4495_v60 = vrot.slane %v4494_v2, 2 }
 0x414   :  { %v4490_v9 = vadd.f32 %v4489_v48, %v4488_v18  ;;  %v4507_v62 = vrot.slane %v4506_v8, 2 }
 0x415   :  { %v4502_v11 = vadd.f32 %v4501_v10, %v4500_v58  ;;  %v4496_v15 = vadd.f32 %v4495_v60, %v4494_v2  ;;  %v4637_v60 = vrot.slane %v5927_v3, %v5839_v59 }
 0x416   :  { %v4491_v17 = vrot.slane %v4490_v9, 1  ;;  %v4508_v20 = vadd.f32 %v4507_v62, %v4506_v8  ;;  %v4645_v62 = vrot.slane %v5927_v3, %v5859_v51 }
 0x417   :  { %v4503_v21 = vrot.slane %v4502_v11, 1  ;;  %v4497_v14 = vrot.slane %v4496_v15, 1 }
 0x418   :  { %v4492_v26 = vadd.f32 %v4491_v17, %v4490_v9  ;;  %v4509_v27 = vrot.slane %v4508_v20, 1  ;;  %v4687_v17 = vrot.slane %v5929_v7, %v5839_v59  ;;  %v4699_v59 = vrot.slane %v5929_v7, %v5842_v6 }
 0x419   :  { %v4504_v28 = vadd.f32 %v4503_v21, %v4502_v11  ;;  %v4498_v63 = vadd.f32 %v4497_v14, %v4496_v15 }
 0x41a   :  { %v4516_v61 = vmul.f32 0.125, %v4492_v26  ;;  %v4510_v29 = vadd.f32 %v4509_v27, %v4508_v20  ;;  %v4641_v20 = vrot.slane %v5927_v3, %v5822_v22  ;;  %v4695_v26 = vrot.slane %v5929_v7, %v5859_v51 }
 0x41b   :  { %v4518_v30 = vmul.f32 0.125, %v4504_v28  ;;  %v4517_v37 = vmul.f32 0.125, %v4498_v63  ;;  %v4649_v27 = vrot.slane %v5927_v3, %v5842_v6 }
 0x41c   :  { %v4524_v33 = vsub.f32 %v5372_v23, %v4516_v61  ;;  %v4519_v34 = vmul.f32 0.125, %v4510_v29  ;;  %v4691_v29 = vrot.slane %v5929_v7, %v5822_v22 }
 0x41d   :  { %v4526_v16 = vsub.f32 %v5374_v46, %v4518_v30  ;;  %v4525_v35 = vsub.f32 %v5373_v32, %v4517_v37 }
 0x41e   :  { %v4532_v0 = vmul.f32 %v4524_v33, %v4524_v33  ;;  %v4527_v31 = vsub.f32 %v5375_v50, %v4519_v34 }
 0x41f   :  { %v4534_v36 = vmul.f32 %v4526_v16, %v4526_v16  ;;  %v4533_v41 = vmul.f32 %v4525_v35, %v4525_v35 }
 0x420   :  { %v4560_v55 = vrot.slane %v4532_v0, 4  ;;  %v4535_v1 = vmul.f32 %v4527_v31, %v4527_v31 }
 0x421   :  { %v4572_v39 = vrot.slane %v4534_v36, 4  ;;  %v4566_v24 = vrot.slane %v4533_v41, 4 }
 0x422   :  { %v4561_v40 = vadd.f32 %v4560_v55, %v4532_v0  ;;  %v4578_v5 = vrot.slane %v4535_v1, 4 }
 0x423   :  { %v4573_v4 = vadd.f32 %v4572_v39, %v4534_v36  ;;  %v4567_v42 = vadd.f32 %v4566_v24, %v4533_v41 }
 0x424   :  { %v4562_v43 = vrot.slane %v4561_v40, 2  ;;  %v4579_v12 = vadd.f32 %v4578_v5, %v4535_v1 }
 0x425   :  { %v4574_v13 = vrot.slane %v4573_v4, 2  ;;  %v4568_v44 = vrot.slane %v4567_v42, 2 }
 0x426   :  { %v4563_v23 = vadd.f32 %v4562_v43, %v4561_v40  ;;  %v4580_v25 = vrot.slane %v4579_v12, 2 }
 0x427   :  { %v4575_v45 = vadd.f32 %v4574_v13, %v4573_v4  ;;  %v4569_v46 = vadd.f32 %v4568_v44, %v4567_v42 }
 0x428   :  { %v4564_v32 = vrot.slane %v4563_v23, 1  ;;  %v4581_v38 = vadd.f32 %v4580_v25, %v4579_v12 }
 0x429   :  { %v4576_v47 = vrot.slane %v4575_v45, 1  ;;  %v4570_v49 = vrot.slane %v4569_v46, 1 }
 0x42a   :  { %v4565_v50 = vadd.f32 %v4564_v32, %v4563_v23  ;;  %v4582_v52 = vrot.slane %v4581_v38, 1 }
 0x42b   :  { %v4577_v53 = vadd.f32 %v4576_v47, %v4575_v45  ;;  %v4571_v54 = vadd.f32 %v4570_v49, %v4569_v46 }
 0x42c   :  { %v4588_v19 = vmul.f32 0.125, %v4565_v50  ;;  %v4583_v56 = vadd.f32 %v4582_v52, %v4581_v38 }
 0x42d   :  { %v4590_v18 = vmul.f32 0.125, %v4577_v53  ;;  %v4589_v57 = vmul.f32 0.125, %v4571_v54 }
 0x42e   :  { %v4596_v58 = vadd.f32 1e-05, %v4588_v19  ;;  %v4591_v2 = vmul.f32 0.125, %v4583_v56 }
 0x42f   :  { %v4598_v48 = vadd.f32 1e-05, %v4590_v18  ;;  %v4597_v8 = vadd.f32 1e-05, %v4589_v57 }
 0x430   :  { %5450 = vrsqrt.f32 %v4596_v58  ;;  %v4599_v10 = vadd.f32 1e-05, %v4591_v2 }
 0x431   :  { %5452 = vrsqrt.f32 %v4598_v48 }
 0x432   :  { %5454 = vrsqrt.f32 %v4597_v8 }
 0x433   :  { %5456 = vrsqrt.f32 %v4599_v10 }
 0x43a   :  { %v5451_v9 = vpop.eup %5450 }
 0x43b   :  { %v5453_v11 = vpop.eup %5452  ;;  %v4612_v15 = vmul.f32 %v5451_v9, %v4524_v33 }
 0x43c   :  { %v5455_v21 = vpop.eup %5454  ;;  %v4614_v14 = vmul.f32 %v5453_v11, %v4526_v16 }
 0x43d   :  { %v5457_v28 = vpop.eup %5456  ;;  %v4662_v63 = vmul.f32 %v4637_v60, %v4612_v15  ;;  %v4613_v61 = vmul.f32 %v5455_v21, %v4525_v35 }
 0x43e   :  { %v4664_v30 = vmul.f32 %v4645_v62, %v4614_v14  ;;  %v4615_v37 = vmul.f32 %v5457_v28, %v4527_v31 }
 0x43f   :  { %v4712_v33 = vadd.f32 %v4687_v17, %v4662_v63  ;;  %v4663_v34 = vmul.f32 %v4641_v20, %v4613_v61 }
 0x440   :  { %v4714_v16 = vadd.f32 %v4695_v26, %v4664_v30  ;;  %v4665_v0 = vmul.f32 %v4649_v27, %v4615_v37 }
 0x441   :  { %vm4720_vm14 = vcmp.gt.f32.partialorder %v4712_v33, 0.0  ;;  %v4728_v51 = vmul.f32 0.2, %v4712_v33  ;;  %v4713_v36 = vadd.f32 %v4691_v29, %v4663_v34 }
 0x442   :  { %vm4722_vm15 = vcmp.gt.f32.partialorder %v4714_v16, 0.0  ;;  %v4730_v3 = vmul.f32 0.2, %v4714_v16  ;;  %v4715_v41 = vadd.f32 %v4699_v59, %v4665_v0 }
 0x443   :  { %v4736_v55 = vsel %vm4720_vm14, %v4712_v33, %v4728_v51  ;;  %vm4721_vm0 = vcmp.gt.f32.partialorder %v4713_v36, 0.0  ;;  %v4729_v35 = vmul.f32 0.2, %v4713_v36 }
 0x444   :  { %v4738_v1 = vsel %vm4722_vm15, %v4714_v16, %v4730_v3  ;;  %vm4723_vm1 = vcmp.gt.f32.partialorder %v4715_v41, 0.0  ;;  %v4731_v22 = vmul.f32 0.2, %v4715_v41 }
 0x445   :  { %v4737_v31 = vsel %vm4721_vm0, %v4713_v36, %v4729_v35 }
 0x446   :  { %v5366_v39 = vpack.c.bf16 %v4737_v31, %v4736_v55  ;;  %v4739_v24 = vsel %vm4723_vm1, %v4715_v41, %v4731_v22 }
 0x447   :  { %v5367_v6 = vpack.c.bf16 %v4739_v24, %v4738_v1 }
 0x448   :  { %4774 = vst [vmem:[%s5996_s7 + $0x10] sm:$0xff] %v5366_v39 }
 0x449   :  { %4775 = vst [vmem:[%s5996_s7 + $0x18] sm:$0xff] %v5367_v6 }
 0x44a   :  { %4780 = vsyncpa [#allocation3], 1 }
 0x44b   :  { %4781 = vsyncpa [#allocation5], 1 }
 0x44c   :  { %4782 = vsyncpa [#allocation8], 1 }
 0x44d   :  { %4783 = vsyncpa [#allocation11], 1 }

// kernel: decoder_forward.3
= control target key start
LH: loop header
LB: loop body
LE: loop exit
PB: predicated region body
PF: predicated region fallthrough
CT: control target
= control target key end

     0   :  { %8 = vsyncpa [#allocation3], 0  ;;  %s13292_s0 = inlined_call_operand.vmem [shape: bf16[8,1024], index: 0, kind: input, shape index: {}]   ;;  %s13293_s1 = inlined_call_operand.hbm [shape: bf16[4,1024,2176], index: 1, kind: input, shape index: {}]   ;;  %s13294_s2 = inlined_call_operand.hbm [shape: f32[1,8704], index: 2, kind: input, shape index: {}]   ;;  %s13295_s3 = inlined_call_operand.hbm [shape: f32[8,8481], index: 3, kind: output, shape index: {}]  }
   0x1   :  { %10 = vsyncpa [#allocation3 + $0x1], 0 }
   0x2   :  { %11 = vsyncpa [#allocation6], 0 }
   0x3   :  { %13 = vsyncpa [#allocation6 + $0x1], 0 }
   0x4   :  { %14 = vsyncpa [#allocation4], 0 }
   0x5   :  { %16 = vsyncpa [#allocation4 + $0x1], 0  ;;  %s11803_s12 = smov 0   ;;  %s11805_s13 = smov 0  }
   0x6   :  { %s11807_s14 = smov 0   ;;  %s11809_s15 = smov 0  }
   0x7 LB: > { %s11824_s16 = sadd.s32 4294967295, %s11776_s15   ;;  %s8633_s17 = sadd.s32 4294967294, %s11776_s15   ;;  %s11776_s15 = sphi %s11809_s15, %s13309_s15   ;;  %s11772_s14 = sphi %s11807_s14, %s13308_s14   ;;  %s11768_s13 = sphi %s11805_s13, %s13307_s13   ;;  %s11764_s12 = sphi %s11803_s12, %s13306_s12  }
   0x8   : > { %s11828_s18 = sadd.s32 1, %s11776_s15   ;;  %s50_s19 = sadd.s32 1, %s11772_s14 }
   0x9   : > { %s47_s20 = ssub.s32 %s11776_s15, %s11828_s18  ;;  %p57_p0 = scmp.ne.s32.totalorder %s11772_s14, %s11768_s13 }
   0xa   : > { %p48_p1 = scmp.eq.s32.totalorder %s47_s20, 0  ;;  %p58_p2 = scmp.eq.s32.totalorder %s11776_s15, 0 }
   0xb   : > { %p63_p3 = scmp.ne.s32.totalorder %s11768_s13, %s11764_s12  ;;  %p64_p4 = scmp.eq.s32.totalorder %s11824_s16, 0 }
   0xc   : > { %s11840_s21 = scalar_select %p48_p1, %s11772_s14, %s50_s19  }
   0xd   : > { %p59_p5 = por %p58_p2, %p57_p0  ;;  %p11842_p6 = por %p64_p4, %p63_p3 }
   0xe   : > { %p113_p7 = scmp.eq.s32.totalorder %s11824_s16, 3  ;;  %p119_p8 = scmp.eq.s32.totalorder %s8633_s17, 3 }
   0xf   : > { %s13297_s22 = scalar_select %p11842_p6, 1, 0 }
  0x10   : > { %p9967_p9 = scmp.lt.s32.totalorder %s11776_s15, 4  ;;  %p11848_p10 = por %p113_p7, %p57_p0 }
  0x11   : > { %p11852_p11 = por %p119_p8, %p63_p3  ;;  %s11857_s25 = sand.u32 1, %s11772_s14  }
  0x12   : > { %s13298_s23 = scalar_select %p11848_p10, 1, 0 }
  0x13   : > { %s13299_s24 = scalar_select %p11852_p11, 1, 0 }
  0x14   : > { %s9946_s26 = smul.u32 139264, %s11776_s15  ;;  %p11866_p12 = pnand %p9967_p9, %p59_p5 }
  0x15   : > { %s9945_s27 = smul.u32 8704, %s11857_s25  ;;  %s143_s7 = scalar_lea.sflag [#allocation3], %s11857_s25 }
  0x16   : > { %s11864_s30 = scalar_lea.hbm %s13293_s1, %s9946_s26  ;;  %p11648_p0 = pneg %p11866_p12 }
  0x17   : > { %s146_s5 = scalar_lea.vmem [#allocation2], %s9945_s27  ;;  %s11646_s8 = scalar_lea.hbm %s11864_s30, 139264 }
  0x18   : > { %s153_s6 = sshll.u32 %s146_s5, 4  ;;  %p11647_p13 = scmp.ne.s32.totalorder %s11864_s30, %s11646_s8  ;;  %s11870_s6 = int_to_ptr.vmem [resolvable:$true] %s153_s6 }
  0x19   : > { %s11651_s11 = scalar_lea.hbm %s13293_s1, 557056  ;;  %p11652_p3 = scmp.lt.u32.totalorder %s11864_s30, %s13293_s1 }
  0x1a   : > { %p11649_p1 = pnand %p11648_p0, %p11647_p13  ;;  %p11653_p4 = scmp.lt.u32.totalorder %s11651_s11, %s11646_s8 }
  0x1b   : > { %p11655_p7 = scmp.lt.u32.totalorder %s11646_s8, %s11864_s30 }
  0x1c   : > { %p11650_p2 = pneg %p11649_p1  ;;  %p11654_p5 = por %p11653_p4, %p11652_p3 }
  0x1e   : > { %p11656_p8 = por %p11655_p7, %p11654_p5 }
  0x20   : > { %p11657_p9 = pnand %p11656_p8, %p11650_p2 }
  0x22   : > { %11660 = shalt.err (!%p11657_p9)
}
  0x23   : > { %s11661_s20 = scalar_lea.vmem %s11870_s6, 139264  ;;  %s11778_s26 = smov [#allocation2]  }
  0x24   : > { %p11662_p13 = scmp.ne.s32.totalorder %s11870_s6, %s11661_s20  ;;  %s11666_s27 = sshll.u32 %s11778_s26, 4  ;;  %s11667_s27 = int_to_ptr.vmem [resolvable:$false] %s11666_s27 }
  0x25   : > { %s11668_s28 = scalar_lea.vmem %s11667_s27, 278528  ;;  %p11669_p10 = scmp.lt.s32.totalorder %s11870_s6, %s11667_s27 }
  0x26   : > { %p11664_p1 = pnand %p11662_p13, %p11648_p0  ;;  %p11670_p3 = scmp.lt.s32.totalorder %s11668_s28, %s11661_s20 }
  0x28   : > { %p11665_p11 = pneg %p11664_p1  ;;  %p11671_p4 = por %p11670_p3, %p11669_p10 }
  0x2a   : > { %p11672_p5 = pnand %p11671_p4, %p11665_p11 }
  0x2c   : > { %11675 = shalt.err (!%p11672_p5)
}
  0x2d   : > { %s11779_s29 = smov 1088   ;;  %s11780_s5 = smov 68  }
  0x2e   : > { %9959 = dma.hbm_to_vmem [thread:$0]  (!%p11866_p12), %s11864_s30, 139264, %s11870_s6, %s143_s7, %s11779_s29, %s11779_s29, %s11780_s5  }
  0x2f   : > { %p8638_p2 = scmp.ge.s32.totalorder %s11776_s15, 1  ;;  %p180_p7 = scmp.lt.s32.totalorder %s11776_s15, 5 }
  0x30   : > { %s9947_s8 = smul.u32 17, %s11857_s25  ;;  %s164_s30 = scalar_lea.sflag [#allocation6], %s11857_s25 }
  0x31   : > { %p11903_p10 = pnand %p8638_p2, %p180_p7  ;;  %s9743_s10 = smul.u32 272, %s11776_s15 }
  0x32   : > { %s167_s20 = scalar_lea.vmem [#allocation5], %s9947_s8  ;;  %s11681_s28 = scalar_lea.hbm %s13294_s2, 1088 }
  0x33   : > { %s13301_s9 = scalar_select %p11903_p10, 1, 0 }
  0x34   : > { %s11911_s19 = scalar_lea.hbm %s13294_s2, %s9743_s10  ;;  %s175_s26 = sshll.u32 %s167_s20, 4  ;;  %s176_s26 = int_to_ptr.vmem [resolvable:$true] %s175_s26 }
  0x35   : > { %s11676_s6 = scalar_lea.hbm %s11911_s19, 272  ;;  %p11682_p13 = scmp.lt.u32.totalorder %s11911_s19, %s13294_s2 }
  0x36   : > { %p11677_p11 = scmp.ne.s32.totalorder %s11911_s19, %s11676_s6  ;;  %p11683_p1 = scmp.lt.u32.totalorder %s11681_s28, %s11676_s6 }
  0x37   : > { %p11685_p4 = scmp.lt.u32.totalorder %s11676_s6, %s11911_s19 }
  0x38   : > { %p11679_p8 = pnand %p11677_p11, %p11648_p0  ;;  %p11684_p3 = por %p11683_p1, %p11682_p13 }
  0x3a   : > { %p11680_p9 = pneg %p11679_p8  ;;  %p11686_p5 = por %p11685_p4, %p11684_p3 }
  0x3c   : > { %p11687_p2 = pnand %p11686_p5, %p11680_p9 }
  0x3e   : > { %11690 = shalt.err (!%p11687_p2)
}
  0x3f   : > { %s11691_s25 = scalar_lea.vmem %s176_s26, 272  ;;  %s11781_s8 = smov [#allocation5]  }
  0x40   : > { %p11692_p7 = scmp.ne.s32.totalorder %s176_s26, %s11691_s25  ;;  %s11696_s10 = sshll.u32 %s11781_s8, 4  ;;  %s11697_s10 = int_to_ptr.vmem [resolvable:$false] %s11696_s10 }
  0x41   : > { %s11698_s11 = scalar_lea.vmem %s11697_s10, 544  ;;  %p11699_p6 = scmp.lt.s32.totalorder %s176_s26, %s11697_s10 }
  0x42   : > { %p11694_p11 = pnand %p11692_p7, %p11648_p0  ;;  %p11700_p10 = scmp.lt.s32.totalorder %s11698_s11, %s11691_s25 }
  0x44   : > { %p11695_p8 = pneg %p11694_p11  ;;  %p11701_p1 = por %p11700_p10, %p11699_p6 }
  0x46   : > { %p11702_p13 = pnand %p11701_p1, %p11695_p8 }
  0x48   : > { %11705 = shalt.err (!%p11702_p13)
}
  0x49   : > { %9962 = dma.hbm_to_vmem [thread:$0]  (!%p11866_p12), %s11911_s19, 272, %s176_s26, %s164_s30  }
  0x4a   : > { %p13302_p9 = scmp.ne.s32.totalorder %s13301_s9, 0 }
  0x4b   : > { %s11936_s17 = sand.u32 (!%p13302_p9), 1, %s11768_s13   ;;  %p13303_p6 = scmp.ne.s32.totalorder (!%p13302_p9), %s13297_s22, 0 }
  0x4c   : > { %184 = sbr.rel (%p13302_p9) target bundleno = 1435 (0x59b), region = 32  ;;  %s187_s6 = scalar_lea.sflag (!%p13302_p9), [#allocation3], %s11936_s17 }
  0x4d   : > { %s9948_s20 = smul.u32 (!%p13302_p9), 8704, %s11936_s17 }
  0x4f   : > { %s11940_s7 = scalar_lea.vmem (!%p13302_p9), [#allocation2], %s9948_s20 }
  0x53   : > { %11751 = dma.done.wait (%p13303_p6), %s187_s6, 139264  }
  0x54   : > { %11753 = vsyncadd (%p13303_p6), %s187_s6, 4294828032  ;;  %s9949_s4 = smul.u32 17, %s11936_s17  ;;  %s196_s9 = scalar_lea.sflag [#allocation6], %s11936_s17 }
  0x56   : > { %s11948_s19 = scalar_lea.vmem [#allocation5], %s9949_s4 }
  0x57   : > { %11755 = dma.done.wait (%p13303_p6), %s196_s9, 272  }
  0x58   : > { %11757 = vsyncadd (%p13303_p6), %s196_s9, 4294967024  ;;  %v10003_v0 = vld [vmem:[%s11940_s7 + $0x4] ss:$68 sps:$4 sm:$0xff]   ;;  %v10005_v1 = vld [vmem:[%s11940_s7 + $0xc] ss:$68 sps:$4 sm:$0xff]   ;;  %s9950_s8 = smul.u32 136, %s11936_s17 }
  0x59   : > { %7013 = vmatprep.subr.bf16.mxu0 %v10003_v0  ;;  %v10007_v2 = vld [vmem:[%s11940_s7] ss:$68 sps:$4 sm:$0xff]   ;;  %v10008_v3 = vld [vmem:[%s11940_s7 + $0x8] ss:$68 sps:$4 sm:$0xff]   ;;  %7177 = vmatprep.subr.bf16.mxu1 %v10005_v1  ;;  %v10011_v5 = vld [vmem:[%s11940_s7 + $0x94] ss:$68 sps:$4 sm:$0xff]  }
  0x5a   : > { %v10009_v4 = vld [vmem:[%s11940_s7 + $0x8c] ss:$68 sps:$4 sm:$0xff]   ;;  %7014 = vmatpush1.bf16.msra.mxu0 %v10007_v2  ;;  %7178 = vmatpush1.bf16.msra.mxu1 %v10008_v3  ;;  %v10015_v8 = vld [vmem:[%s11940_s7 + $0x114] ss:$68 sps:$4 sm:$0xff]   ;;  %v10017_v9 = vld [vmem:[%s11940_s7 + $0x11c] ss:$68 sps:$4 sm:$0xff]  }
  0x5b   : > { %v10013_v6 = vld [vmem:[%s11940_s7 + $0x88] ss:$68 sps:$4 sm:$0xff]   ;;  %7015 = vmatprep.subr.bf16.mxu0 %v10009_v4  ;;  %v10014_v7 = vld [vmem:[%s11940_s7 + $0x90] ss:$68 sps:$4 sm:$0xff]   ;;  %7179 = vmatprep.subr.bf16.mxu1 %v10011_v5  ;;  %v10020_v11 = vld [vmem:[%s11940_s7 + $0x118] ss:$68 sps:$4 sm:$0xff]  }
  0x5c   : > { %v10019_v10 = vld [vmem:[%s11940_s7 + $0x110] ss:$68 sps:$4 sm:$0xff]   ;;  %v10021_v12 = vld [vmem:[%s11940_s7 + $0x19c] ss:$68 sps:$4 sm:$0xff]   ;;  %v10023_v13 = vld [vmem:[%s11940_s7 + $0x1a4] ss:$68 sps:$4 sm:$0xff]  }
  0x5d   : > { %v10025_v14 = vld [vmem:[%s11940_s7 + $0x198] ss:$68 sps:$4 sm:$0xff]   ;;  %v10026_v15 = vld [vmem:[%s11940_s7 + $0x1a0] ss:$68 sps:$4 sm:$0xff]   ;;  %v10029_v17 = vld [vmem:[%s11940_s7 + $0x22c] ss:$68 sps:$4 sm:$0xff]  }
  0x5e   : > { %7016 = vmatpush1.bf16.msra.mxu0 %v10013_v6  ;;  %7180 = vmatpush1.bf16.msra.mxu1 %v10014_v7  ;;  %v10027_v16 = vld [vmem:[%s11940_s7 + $0x224] ss:$68 sps:$4 sm:$0xff]   ;;  %v10033_v20 = vld [vmem:[%s11940_s7 + $0x2ac] ss:$68 sps:$4 sm:$0xff]   ;;  %v10035_v21 = vld [vmem:[%s11940_s7 + $0x2b4] ss:$68 sps:$4 sm:$0xff]  }
  0x5f   : > { %7017 = vmatprep.subr.bf16.mxu0 %v10015_v8  ;;  %7181 = vmatprep.subr.bf16.mxu1 %v10017_v9  ;;  %v10031_v18 = vld [vmem:[%s11940_s7 + $0x220] ss:$68 sps:$4 sm:$0xff]   ;;  %v10032_v19 = vld [vmem:[%s11940_s7 + $0x228] ss:$68 sps:$4 sm:$0xff]   ;;  %v10038_v23 = vld [vmem:[%s11940_s7 + $0x2b0] ss:$68 sps:$4 sm:$0xff]  }
  0x60   : > { %v10037_v22 = vld [vmem:[%s11940_s7 + $0x2a8] ss:$68 sps:$4 sm:$0xff]   ;;  %v10039_v24 = vld [vmem:[%s11940_s7 + $0x334] ss:$68 sps:$4 sm:$0xff]   ;;  %v10041_v25 = vld [vmem:[%s11940_s7 + $0x33c] ss:$68 sps:$4 sm:$0xff]  }
  0x61   : > { %v10043_v26 = vld [vmem:[%s11940_s7 + $0x330] ss:$68 sps:$4 sm:$0xff]   ;;  %v10044_v27 = vld [vmem:[%s11940_s7 + $0x338] ss:$68 sps:$4 sm:$0xff]   ;;  %v10047_v29 = vld [vmem:[%s11940_s7 + $0x3c4] ss:$68 sps:$4 sm:$0xff]  }
  0x62   : > { %7018 = vmatpush1.bf16.msra.mxu0 %v10019_v10  ;;  %7182 = vmatpush1.bf16.msra.mxu1 %v10020_v11  ;;  %v10045_v28 = vld [vmem:[%s11940_s7 + $0x3bc] ss:$68 sps:$4 sm:$0xff]   ;;  %v10051_v32 = vld [vmem:[%s11940_s7 + $0x444] ss:$68 sps:$4 sm:$0xff]   ;;  %v10053_v33 = vld [vmem:[%s11940_s7 + $0x44c] ss:$68 sps:$4 sm:$0xff]  }
  0x63   : > { %7019 = vmatprep.subr.bf16.mxu0 %v10021_v12  ;;  %7183 = vmatprep.subr.bf16.mxu1 %v10023_v13  ;;  %v10049_v30 = vld [vmem:[%s11940_s7 + $0x3b8] ss:$68 sps:$4 sm:$0xff]   ;;  %v10050_v31 = vld [vmem:[%s11940_s7 + $0x3c0] ss:$68 sps:$4 sm:$0xff]   ;;  %v10056_v35 = vld [vmem:[%s11940_s7 + $0x448] ss:$68 sps:$4 sm:$0xff]  }
  0x64   : > { %v10055_v34 = vld [vmem:[%s11940_s7 + $0x440] ss:$68 sps:$4 sm:$0xff]   ;;  %v10057_v36 = vld [vmem:[%s11940_s7 + $0x4cc] ss:$68 sps:$4 sm:$0xff]   ;;  %v10059_v37 = vld [vmem:[%s11940_s7 + $0x4d4] ss:$68 sps:$4 sm:$0xff]  }
  0x65   : > { %v10061_v38 = vld [vmem:[%s11940_s7 + $0x4c8] ss:$68 sps:$4 sm:$0xff]   ;;  %v10062_v39 = vld [vmem:[%s11940_s7 + $0x4d0] ss:$68 sps:$4 sm:$0xff]   ;;  %v10065_v41 = vld [vmem:[%s11940_s7 + $0x55c] ss:$68 sps:$4 sm:$0xff]  }
  0x66   : > { %7020 = vmatpush1.bf16.msra.mxu0 %v10025_v14  ;;  %7184 = vmatpush1.bf16.msra.mxu1 %v10026_v15  ;;  %v10063_v40 = vld [vmem:[%s11940_s7 + $0x554] ss:$68 sps:$4 sm:$0xff]   ;;  %v10069_v44 = vld [vmem:[%s11940_s7 + $0x5dc] ss:$68 sps:$4 sm:$0xff]   ;;  %v10071_v45 = vld [vmem:[%s11940_s7 + $0x5e4] ss:$68 sps:$4 sm:$0xff]  }
  0x67   : > { %7021 = vmatprep.subr.bf16.mxu0 %v10027_v16  ;;  %7185 = vmatprep.subr.bf16.mxu1 %v10029_v17  ;;  %v10067_v42 = vld [vmem:[%s11940_s7 + $0x550] ss:$68 sps:$4 sm:$0xff]   ;;  %v10068_v43 = vld [vmem:[%s11940_s7 + $0x558] ss:$68 sps:$4 sm:$0xff]   ;;  %v234_v46 = vld [vmem:[%s13292_s0] sm:$0xff]  ;;  %s12532_s10 = scalar_lea.vmem [#allocation7], %s9950_s8 }
  0x68   : > { %v10073_v47 = vld [vmem:[%s11940_s7 + $0x5d8] ss:$68 sps:$4 sm:$0xff]   ;;  %v12004_v48 = vcombine.high %v234_v46, %v234_v46  ;;  %v10074_v49 = vld [vmem:[%s11940_s7 + $0x5e0] ss:$68 sps:$4 sm:$0xff]   ;;  %v10077_v51 = vld [vmem:[%s11940_s7 + $0x66c] ss:$68 sps:$4 sm:$0xff]   ;;  %v12028_v5 = vcombine.low %v234_v46, %v234_v46 }
  0x69   : > { %v10075_v50 = vld [vmem:[%s11940_s7 + $0x664] ss:$68 sps:$4 sm:$0xff]   ;;  %v10081_v54 = vld [vmem:[%s11940_s7 + $0x6ec] ss:$68 sps:$4 sm:$0xff]   ;;  %v10083_v55 = vld [vmem:[%s11940_s7 + $0x6f4] ss:$68 sps:$4 sm:$0xff]  }
  0x6a   : > { %7022 = vmatpush1.bf16.msra.mxu0 %v10031_v18  ;;  %7186 = vmatpush1.bf16.msra.mxu1 %v10032_v19  ;;  %v10079_v52 = vld [vmem:[%s11940_s7 + $0x660] ss:$68 sps:$4 sm:$0xff]   ;;  %v10080_v53 = vld [vmem:[%s11940_s7 + $0x668] ss:$68 sps:$4 sm:$0xff]   ;;  %v10086_v57 = vld [vmem:[%s11940_s7 + $0x6f0] ss:$68 sps:$4 sm:$0xff]  }
  0x6b   : > { %7023 = vmatprep.subr.bf16.mxu0 %v10033_v20  ;;  %7187 = vmatprep.subr.bf16.mxu1 %v10035_v21  ;;  %v10085_v56 = vld [vmem:[%s11940_s7 + $0x6e8] ss:$68 sps:$4 sm:$0xff]   ;;  %v10087_v58 = vld [vmem:[%s11940_s7 + $0x774] ss:$68 sps:$4 sm:$0xff]   ;;  %v10089_v59 = vld [vmem:[%s11940_s7 + $0x77c] ss:$68 sps:$4 sm:$0xff]  }
  0x6c   : > { %7045 = vmatprep.mubr.bf16.mxu0 %v12004_v48  ;;  %7209 = vmatprep.mubr.bf16.mxu1 %v12004_v48  ;;  %v10091_v60 = vld [vmem:[%s11940_s7 + $0x770] ss:$68 sps:$4 sm:$0xff]   ;;  %v10092_v61 = vld [vmem:[%s11940_s7 + $0x778] ss:$68 sps:$4 sm:$0xff]   ;;  %v10095_v63 = vld [vmem:[%s11940_s7 + $0x804] ss:$68 sps:$4 sm:$0xff]  }
  0x6d   : > { %v10093_v62 = vld [vmem:[%s11940_s7 + $0x7fc] ss:$68 sps:$4 sm:$0xff]   ;;  %v10102_v2 = vld [vmem:[%s11940_s7 + $0x884] ss:$68 sps:$4 sm:$0xff]   ;;  %v10105_v3 = vld [vmem:[%s11940_s7 + $0x88c] ss:$68 sps:$4 sm:$0xff]  }
  0x6e   : > { %7024 = vmatpush1.bf16.msra.mxu0 %v10037_v22  ;;  %7188 = vmatpush1.bf16.msra.mxu1 %v10038_v23  ;;  %v10097_v0 = vld [vmem:[%s11940_s7 + $0x7f8] ss:$68 sps:$4 sm:$0xff]   ;;  %v10098_v1 = vld [vmem:[%s11940_s7 + $0x800] ss:$68 sps:$4 sm:$0xff]   ;;  %v10103_v6 = vld [vmem:[%s11940_s7 + $0x888] ss:$68 sps:$4 sm:$0xff]  }
  0x6f   : > { %7025 = vmatprep.subr.bf16.mxu0 %v10039_v24  ;;  %7189 = vmatprep.subr.bf16.mxu1 %v10041_v25  ;;  %v10100_v4 = vld [vmem:[%s11940_s7 + $0x880] ss:$68 sps:$4 sm:$0xff]   ;;  %v10109_v7 = vld [vmem:[%s11940_s7 + $0x90c] ss:$68 sps:$4 sm:$0xff]   ;;  %v10112_v8 = vld [vmem:[%s11940_s7 + $0x914] ss:$68 sps:$4 sm:$0xff]  }
  0x70   : > { %v10107_v9 = vld [vmem:[%s11940_s7 + $0x908] ss:$68 sps:$4 sm:$0xff]   ;;  %v10110_v10 = vld [vmem:[%s11940_s7 + $0x910] ss:$68 sps:$4 sm:$0xff]   ;;  %v10118_v12 = vld [vmem:[%s11940_s7 + $0x99c] ss:$68 sps:$4 sm:$0xff]  }
  0x71   : > { %v10115_v11 = vld [vmem:[%s11940_s7 + $0x994] ss:$68 sps:$4 sm:$0xff]   ;;  %v10121_v15 = vld [vmem:[%s11940_s7 + $0xa1c] ss:$68 sps:$4 sm:$0xff]   ;;  %v10124_v16 = vld [vmem:[%s11940_s7 + $0xa24] ss:$68 sps:$4 sm:$0xff]  }
  0x72   : > { %7026 = vmatpush1.bf16.msra.mxu0 %v10043_v26  ;;  %7190 = vmatpush1.bf16.msra.mxu1 %v10044_v27  ;;  %v10113_v13 = vld [vmem:[%s11940_s7 + $0x990] ss:$68 sps:$4 sm:$0xff]   ;;  %v10116_v14 = vld [vmem:[%s11940_s7 + $0x998] ss:$68 sps:$4 sm:$0xff]   ;;  %v10122_v18 = vld [vmem:[%s11940_s7 + $0xa20] ss:$68 sps:$4 sm:$0xff]  }
  0x73   : > { %7027 = vmatprep.subr.bf16.mxu0 %v10045_v28  ;;  %7191 = vmatprep.subr.bf16.mxu1 %v10047_v29  ;;  %v10119_v17 = vld [vmem:[%s11940_s7 + $0xa18] ss:$68 sps:$4 sm:$0xff]   ;;  %v10127_v19 = vld [vmem:[%s11940_s7 + $0xaa4] ss:$68 sps:$4 sm:$0xff]   ;;  %v10130_v20 = vld [vmem:[%s11940_s7 + $0xaac] ss:$68 sps:$4 sm:$0xff]  }
  0x74   : > { %v10125_v21 = vld [vmem:[%s11940_s7 + $0xaa0] ss:$68 sps:$4 sm:$0xff]   ;;  %v10128_v22 = vld [vmem:[%s11940_s7 + $0xaa8] ss:$68 sps:$4 sm:$0xff]   ;;  %v10136_v24 = vld [vmem:[%s11940_s7 + $0xb34] ss:$68 sps:$4 sm:$0xff]  }
  0x75   : > { %v10133_v23 = vld [vmem:[%s11940_s7 + $0xb2c] ss:$68 sps:$4 sm:$0xff]   ;;  %v10139_v27 = vld [vmem:[%s11940_s7 + $0xbb4] ss:$68 sps:$4 sm:$0xff]   ;;  %v10142_v28 = vld [vmem:[%s11940_s7 + $0xbbc] ss:$68 sps:$4 sm:$0xff]  }
  0x76   : > { %7028 = vmatpush1.bf16.msra.mxu0 %v10049_v30  ;;  %7192 = vmatpush1.bf16.msra.mxu1 %v10050_v31  ;;  %v10131_v25 = vld [vmem:[%s11940_s7 + $0xb28] ss:$68 sps:$4 sm:$0xff]   ;;  %v10134_v26 = vld [vmem:[%s11940_s7 + $0xb30] ss:$68 sps:$4 sm:$0xff]   ;;  %v10166_v46 = vld [vmem:[%s11940_s7 + $0xddc] ss:$68 sps:$4 sm:$0xff]  }
  0x77   : > { %7029 = vmatprep.subr.bf16.mxu0 %v10051_v32  ;;  %7193 = vmatprep.subr.bf16.mxu1 %v10053_v33  ;;  %v12058_v29 = vld [vmem:[%s13292_s0 + $0x8] sm:$0xff]  ;;  %v10137_v31 = vld [vmem:[%s11940_s7 + $0xbb0] ss:$68 sps:$4 sm:$0xff]   ;;  %v10140_v32 = vld [vmem:[%s11940_s7 + $0xbb8] ss:$68 sps:$4 sm:$0xff]   ;;  %s8520_s11 = scalar_lea.sflag [#allocation4], %s11936_s17 }
  0x78   : > { %v12062_v30 = vcombine.high %v12058_v29, %v12058_v29  ;;  %v10145_v33 = vld [vmem:[%s11940_s7 + $0xc3c] ss:$68 sps:$4 sm:$0xff]   ;;  %p13304_p12 = scmp.ne.s32.totalorder %s13298_s23, 0 }
  0x79   : > { %s8527_s20 = smul.u32 (%p13304_p12), 17, %s11824_s16 }
  0x7a   : > { %7030 = vmatpush1.bf16.msra.mxu0 %v10055_v34  ;;  %7194 = vmatpush1.bf16.msra.mxu1 %v10056_v35  ;;  %v10148_v34 = vld [vmem:[%s11940_s7 + $0xc44] ss:$68 sps:$4 sm:$0xff]   ;;  %v10143_v35 = vld [vmem:[%s11940_s7 + $0xc38] ss:$68 sps:$4 sm:$0xff]  }
  0x7b   : > { %7031 = vmatprep.subr.bf16.mxu0 %v10057_v36  ;;  %7195 = vmatprep.subr.bf16.mxu1 %v10059_v37  ;;  %v10146_v36 = vld [vmem:[%s11940_s7 + $0xc40] ss:$68 sps:$4 sm:$0xff]   ;;  %s8528_s6 = ssub.s32 (%p13304_p12), 67, %s8527_s20 }
  0x7c   : > { %v10151_v37 = vld [vmem:[%s11940_s7 + $0xcc4] ss:$68 sps:$4 sm:$0xff]   ;;  %p8529_p0 = scmp.lt.s32.totalorder (%p13304_p12), %s8528_s6, 17 }
  0x7e   : > { %7032 = vmatpush1.bf16.msra.mxu0 %v10061_v38  ;;  %7196 = vmatpush1.bf16.msra.mxu1 %v10062_v39  ;;  %v10154_v38 = vld [vmem:[%s11940_s7 + $0xccc] ss:$68 sps:$4 sm:$0xff]   ;;  %v10149_v39 = vld [vmem:[%s11940_s7 + $0xcc0] ss:$68 sps:$4 sm:$0xff]  }
  0x7f   : > { %7033 = vmatprep.subr.bf16.mxu0 %v10063_v40  ;;  %7197 = vmatprep.subr.bf16.mxu1 %v10065_v41  ;;  %v10152_v40 = vld [vmem:[%s11940_s7 + $0xcc8] ss:$68 sps:$4 sm:$0xff]  }
  0x80   : > { %v10157_v41 = vld [vmem:[%s11940_s7 + $0xd4c] ss:$68 sps:$4 sm:$0xff]  }
  0x82   : > { %7034 = vmatpush1.bf16.msra.mxu0 %v10067_v42  ;;  %7198 = vmatpush1.bf16.msra.mxu1 %v10068_v43  ;;  %v10160_v42 = vld [vmem:[%s11940_s7 + $0xd54] ss:$68 sps:$4 sm:$0xff]   ;;  %v10155_v43 = vld [vmem:[%s11940_s7 + $0xd48] ss:$68 sps:$4 sm:$0xff]  }
  0x83   : > { %7035 = vmatprep.subr.bf16.mxu0 %v10069_v44  ;;  %7199 = vmatprep.subr.bf16.mxu1 %v10071_v45  ;;  %v10158_v44 = vld [vmem:[%s11940_s7 + $0xd50] ss:$68 sps:$4 sm:$0xff]  }
  0x84   : > { %v10163_v45 = vld [vmem:[%s11940_s7 + $0xdd4] ss:$68 sps:$4 sm:$0xff]  }
  0x86   : > { %7036 = vmatpush1.bf16.msra.mxu0 %v10073_v47  ;;  %7200 = vmatpush1.bf16.msra.mxu1 %v10074_v49  ;;  %v10161_v47 = vld [vmem:[%s11940_s7 + $0xdd0] ss:$68 sps:$4 sm:$0xff]   ;;  %v10164_v49 = vld [vmem:[%s11940_s7 + $0xdd8] ss:$68 sps:$4 sm:$0xff]  }
  0x87   : > { %7037 = vmatprep.subr.bf16.mxu0 %v10075_v50  ;;  %7201 = vmatprep.subr.bf16.mxu1 %v10077_v51  ;;  %v10169_v50 = vld [vmem:[%s11940_s7 + $0xe5c] ss:$68 sps:$4 sm:$0xff]   ;;  %v10172_v51 = vld [vmem:[%s11940_s7 + $0xe64] ss:$68 sps:$4 sm:$0xff]  }
  0x8a   : > { %7038 = vmatpush1.bf16.msra.mxu0 %v10079_v52  ;;  %7202 = vmatpush1.bf16.msra.mxu1 %v10080_v53  ;;  %v10167_v52 = vld [vmem:[%s11940_s7 + $0xe58] ss:$68 sps:$4 sm:$0xff]   ;;  %v10170_v53 = vld [vmem:[%s11940_s7 + $0xe60] ss:$68 sps:$4 sm:$0xff]  }
  0x8b   : > { %7039 = vmatprep.subr.bf16.mxu0 %v10081_v54  ;;  %7203 = vmatprep.subr.bf16.mxu1 %v10083_v55  ;;  %v10175_v54 = vld [vmem:[%s11940_s7 + $0xee4] ss:$68 sps:$4 sm:$0xff]   ;;  %v10178_v55 = vld [vmem:[%s11940_s7 + $0xeec] ss:$68 sps:$4 sm:$0xff]  }
  0x8e   : > { %7040 = vmatpush1.bf16.msra.mxu0 %v10085_v56  ;;  %7204 = vmatpush1.bf16.msra.mxu1 %v10086_v57  ;;  %v10173_v56 = vld [vmem:[%s11940_s7 + $0xee0] ss:$68 sps:$4 sm:$0xff]   ;;  %v10176_v57 = vld [vmem:[%s11940_s7 + $0xee8] ss:$68 sps:$4 sm:$0xff]  }
  0x8f   : > { %7041 = vmatprep.subr.bf16.mxu0 %v10087_v58  ;;  %7205 = vmatprep.subr.bf16.mxu1 %v10089_v59  ;;  %v10181_v58 = vld [vmem:[%s11940_s7 + $0xf6c] ss:$68 sps:$4 sm:$0xff]   ;;  %v10184_v59 = vld [vmem:[%s11940_s7 + $0xf74] ss:$68 sps:$4 sm:$0xff]  }
  0x92   : > { %7042 = vmatpush1.bf16.msra.mxu0 %v10091_v60  ;;  %7206 = vmatpush1.bf16.msra.mxu1 %v10092_v61  ;;  %v10179_v60 = vld [vmem:[%s11940_s7 + $0xf68] ss:$68 sps:$4 sm:$0xff]   ;;  %v10182_v61 = vld [vmem:[%s11940_s7 + $0xf70] ss:$68 sps:$4 sm:$0xff]  }
  0x93   : > { %7043 = vmatprep.subr.bf16.mxu0 %v10093_v62  ;;  %7207 = vmatprep.subr.bf16.mxu1 %v10095_v63  ;;  %v10187_v62 = vld [vmem:[%s11940_s7 + $0xff4] ss:$68 sps:$4 sm:$0xff]   ;;  %v10190_v63 = vld [vmem:[%s11940_s7 + $0xffc] ss:$68 sps:$4 sm:$0xff]  }
  0x96   : > { %7044 = vmatpush1.bf16.msra.mxu0 %v10097_v0  ;;  %7208 = vmatpush1.bf16.msra.mxu1 %v10098_v1  ;;  %v10185_v0 = vld [vmem:[%s11940_s7 + $0xff0] ss:$68 sps:$4 sm:$0xff]   ;;  %v10188_v1 = vld [vmem:[%s11940_s7 + $0xff8] ss:$68 sps:$4 sm:$0xff]  }
  0x97   : > { %7054 = vmatprep.subr.bf16.mxu0 %v10102_v2  ;;  %7218 = vmatprep.subr.bf16.mxu1 %v10105_v3  ;;  %v10193_v2 = vld [vmem:[%s11940_s7 + $0x107c] ss:$68 sps:$4 sm:$0xff]   ;;  %v10196_v3 = vld [vmem:[%s11940_s7 + $0x1084] ss:$68 sps:$4 sm:$0xff]  }
  0x99   : > { %7046 = vmatmul.mubr.bf16.vlgmr.msra.gmra.mrb[0].mxu0 %v12028_v5  ;;  %7210 = vmatmul.mubr.bf16.vlgmr.msra.gmra.mrb[0].mxu1 %v12028_v5 }
  0x9a   : > { %7055 = vmatpush1.bf16.msra.mxu0 %v10100_v4  ;;  %7219 = vmatpush1.bf16.msra.mxu1 %v10103_v6  ;;  %v10191_v4 = vld [vmem:[%s11940_s7 + $0x1078] ss:$68 sps:$4 sm:$0xff]   ;;  %v10194_v6 = vld [vmem:[%s11940_s7 + $0x1080] ss:$68 sps:$4 sm:$0xff]  }
  0x9b   : > { %7056 = vmatprep.subr.bf16.mxu0 %v10109_v7  ;;  %7220 = vmatprep.subr.bf16.mxu1 %v10112_v8  ;;  %v10200_v7 = vld [vmem:[%s11940_s7 + $0x1104] ss:$68 sps:$4 sm:$0xff]   ;;  %v10203_v8 = vld [vmem:[%s11940_s7 + $0x110c] ss:$68 sps:$4 sm:$0xff]  }
  0x9c   : > { %7086 = vmatprep.mubr.bf16.mxu0 %v12062_v30  ;;  %7250 = vmatprep.mubr.bf16.mxu1 %v12062_v30 }
  0x9e   : > { %7057 = vmatpush1.bf16.msra.mxu0 %v10107_v9  ;;  %7221 = vmatpush1.bf16.msra.mxu1 %v10110_v10  ;;  %v10198_v9 = vld [vmem:[%s11940_s7 + $0x1100] ss:$68 sps:$4 sm:$0xff]   ;;  %v12109_v10 = vcombine.low %v12058_v29, %v12058_v29  ;;  %v10226_v29 = vld [vmem:[%s11940_s7 + $0x1328] ss:$68 sps:$4 sm:$0xff]  }
  0x9f   : > { %7058 = vmatprep.subr.bf16.mxu0 %v10115_v11  ;;  %7222 = vmatprep.subr.bf16.mxu1 %v10118_v12  ;;  %v10201_v11 = vld [vmem:[%s11940_s7 + $0x1108] ss:$68 sps:$4 sm:$0xff]  }
  0xa0   : > { %v10207_v12 = vld [vmem:[%s11940_s7 + $0x118c] ss:$68 sps:$4 sm:$0xff]  }
  0xa2   : > { %7059 = vmatpush1.bf16.msra.mxu0 %v10113_v13  ;;  %7223 = vmatpush1.bf16.msra.mxu1 %v10116_v14  ;;  %v12116_v13 = vld [vmem:[%s13292_s0 + $0x10] sm:$0xff] }
  0xa3   : > { %7060 = vmatprep.subr.bf16.mxu0 %v10121_v15  ;;  %7224 = vmatprep.subr.bf16.mxu1 %v10124_v16  ;;  %v10210_v14 = vld [vmem:[%s11940_s7 + $0x1194] ss:$68 sps:$4 sm:$0xff]   ;;  %v12121_v15 = vcombine.high %v12116_v13, %v12116_v13  ;;  %v10205_v16 = vld [vmem:[%s11940_s7 + $0x1188] ss:$68 sps:$4 sm:$0xff]  }
  0xa6   : > { %7061 = vmatpush1.bf16.msra.mxu0 %v10119_v17  ;;  %7225 = vmatpush1.bf16.msra.mxu1 %v10122_v18  ;;  %v10208_v17 = vld [vmem:[%s11940_s7 + $0x1190] ss:$68 sps:$4 sm:$0xff]  }
  0xa7   : > { %7062 = vmatprep.subr.bf16.mxu0 %v10127_v19  ;;  %7226 = vmatprep.subr.bf16.mxu1 %v10130_v20  ;;  %v10213_v18 = vld [vmem:[%s11940_s7 + $0x1214] ss:$68 sps:$4 sm:$0xff]   ;;  %v10216_v19 = vld [vmem:[%s11940_s7 + $0x121c] ss:$68 sps:$4 sm:$0xff]  }
  0xa8   : > { %v10211_v20 = vld [vmem:[%s11940_s7 + $0x1210] ss:$68 sps:$4 sm:$0xff]  }
  0xaa   : > { %7063 = vmatpush1.bf16.msra.mxu0 %v10125_v21  ;;  %7227 = vmatpush1.bf16.msra.mxu1 %v10128_v22  ;;  %v10214_v21 = vld [vmem:[%s11940_s7 + $0x1218] ss:$68 sps:$4 sm:$0xff]  }
  0xab   : > { %7064 = vmatprep.subr.bf16.mxu0 %v10133_v23  ;;  %7228 = vmatprep.subr.bf16.mxu1 %v10136_v24  ;;  %v10219_v22 = vld [vmem:[%s11940_s7 + $0x129c] ss:$68 sps:$4 sm:$0xff]   ;;  %v10222_v23 = vld [vmem:[%s11940_s7 + $0x12a4] ss:$68 sps:$4 sm:$0xff]  }
  0xac   : > { %v10217_v24 = vld [vmem:[%s11940_s7 + $0x1298] ss:$68 sps:$4 sm:$0xff]  }
  0xae   : > { %7065 = vmatpush1.bf16.msra.mxu0 %v10131_v25  ;;  %7229 = vmatpush1.bf16.msra.mxu1 %v10134_v26  ;;  %v10220_v25 = vld [vmem:[%s11940_s7 + $0x12a0] ss:$68 sps:$4 sm:$0xff]  }
  0xaf   : > { %7066 = vmatprep.subr.bf16.mxu0 %v10139_v27  ;;  %7230 = vmatprep.subr.bf16.mxu1 %v10142_v28  ;;  %v10225_v26 = vld [vmem:[%s11940_s7 + $0x1324] ss:$68 sps:$4 sm:$0xff]   ;;  %v10228_v27 = vld [vmem:[%s11940_s7 + $0x132c] ss:$68 sps:$4 sm:$0xff]  }
  0xb0   : > { %v10223_v28 = vld [vmem:[%s11940_s7 + $0x1320] ss:$68 sps:$4 sm:$0xff]  }
  0xb2   : > { %7067 = vmatpush1.bf16.msra.mxu0 %v10137_v31  ;;  %7231 = vmatpush1.bf16.msra.mxu1 %v10140_v32  ;;  %v10231_v31 = vld [vmem:[%s11940_s7 + $0x13ac] ss:$68 sps:$4 sm:$0xff]   ;;  %v10234_v32 = vld [vmem:[%s11940_s7 + $0x13b4] ss:$68 sps:$4 sm:$0xff]  }
  0xb3   : > { %7068 = vmatprep.subr.bf16.mxu0 %v10145_v33  ;;  %7232 = vmatprep.subr.bf16.mxu1 %v10148_v34  ;;  %v10229_v33 = vld [vmem:[%s11940_s7 + $0x13a8] ss:$68 sps:$4 sm:$0xff]   ;;  %v10232_v34 = vld [vmem:[%s11940_s7 + $0x13b0] ss:$68 sps:$4 sm:$0xff]  }
  0xb6   : > { %7069 = vmatpush1.bf16.msra.mxu0 %v10143_v35  ;;  %7233 = vmatpush1.bf16.msra.mxu1 %v10146_v36  ;;  %v10237_v35 = vld [vmem:[%s11940_s7 + $0x1434] ss:$68 sps:$4 sm:$0xff]   ;;  %v10240_v36 = vld [vmem:[%s11940_s7 + $0x143c] ss:$68 sps:$4 sm:$0xff]  }
  0xb7   : > { %7070 = vmatprep.subr.bf16.mxu0 %v10151_v37  ;;  %7234 = vmatprep.subr.bf16.mxu1 %v10154_v38  ;;  %v10235_v37 = vld [vmem:[%s11940_s7 + $0x1430] ss:$68 sps:$4 sm:$0xff]   ;;  %v10238_v38 = vld [vmem:[%s11940_s7 + $0x1438] ss:$68 sps:$4 sm:$0xff]  }
  0xba   : > { %7071 = vmatpush1.bf16.msra.mxu0 %v10149_v39  ;;  %7235 = vmatpush1.bf16.msra.mxu1 %v10152_v40  ;;  %v10243_v39 = vld [vmem:[%s11940_s7 + $0x14bc] ss:$68 sps:$4 sm:$0xff]   ;;  %v10246_v40 = vld [vmem:[%s11940_s7 + $0x14c4] ss:$68 sps:$4 sm:$0xff]  }
  0xbb   : > { %7072 = vmatprep.subr.bf16.mxu0 %v10157_v41  ;;  %7236 = vmatprep.subr.bf16.mxu1 %v10160_v42  ;;  %v10241_v41 = vld [vmem:[%s11940_s7 + $0x14b8] ss:$68 sps:$4 sm:$0xff]   ;;  %v10244_v42 = vld [vmem:[%s11940_s7 + $0x14c0] ss:$68 sps:$4 sm:$0xff]  }
  0xbe   : > { %7073 = vmatpush1.bf16.msra.mxu0 %v10155_v43  ;;  %7237 = vmatpush1.bf16.msra.mxu1 %v10158_v44  ;;  %v10249_v43 = vld [vmem:[%s11940_s7 + $0x1544] ss:$68 sps:$4 sm:$0xff]   ;;  %v10252_v44 = vld [vmem:[%s11940_s7 + $0x154c] ss:$68 sps:$4 sm:$0xff]  }
  0xbf   : > { %7074 = vmatprep.subr.bf16.mxu0 %v10163_v45  ;;  %7238 = vmatprep.subr.bf16.mxu1 %v10166_v46  ;;  %v10247_v45 = vld [vmem:[%s11940_s7 + $0x1540] ss:$68 sps:$4 sm:$0xff]   ;;  %v10250_v46 = vld [vmem:[%s11940_s7 + $0x1548] ss:$68 sps:$4 sm:$0xff]  }
  0xc2   : > { %7075 = vmatpush1.bf16.msra.mxu0 %v10161_v47  ;;  %7239 = vmatpush1.bf16.msra.mxu1 %v10164_v49  ;;  %v10255_v47 = vld [vmem:[%s11940_s7 + $0x15cc] ss:$68 sps:$4 sm:$0xff]   ;;  %v10258_v49 = vld [vmem:[%s11940_s7 + $0x15d4] ss:$68 sps:$4 sm:$0xff]  }
  0xc3   : > { %7076 = vmatprep.subr.bf16.mxu0 %v10169_v50  ;;  %7240 = vmatprep.subr.bf16.mxu1 %v10172_v51  ;;  %v10253_v50 = vld [vmem:[%s11940_s7 + $0x15c8] ss:$68 sps:$4 sm:$0xff]   ;;  %v10256_v51 = vld [vmem:[%s11940_s7 + $0x15d0] ss:$68 sps:$4 sm:$0xff]  }
  0xc6   : > { %7077 = vmatpush1.bf16.msra.mxu0 %v10167_v52  ;;  %7241 = vmatpush1.bf16.msra.mxu1 %v10170_v53  ;;  %v10261_v52 = vld [vmem:[%s11940_s7 + $0x1654] ss:$68 sps:$4 sm:$0xff]   ;;  %v10264_v53 = vld [vmem:[%s11940_s7 + $0x165c] ss:$68 sps:$4 sm:$0xff]  }
  0xc7   : > { %7078 = vmatprep.subr.bf16.mxu0 %v10175_v54  ;;  %7242 = vmatprep.subr.bf16.mxu1 %v10178_v55  ;;  %v10259_v54 = vld [vmem:[%s11940_s7 + $0x1650] ss:$68 sps:$4 sm:$0xff]   ;;  %v10262_v55 = vld [vmem:[%s11940_s7 + $0x1658] ss:$68 sps:$4 sm:$0xff]  }
  0xca   : > { %7079 = vmatpush1.bf16.msra.mxu0 %v10173_v56  ;;  %7243 = vmatpush1.bf16.msra.mxu1 %v10176_v57  ;;  %v10267_v56 = vld [vmem:[%s11940_s7 + $0x16dc] ss:$68 sps:$4 sm:$0xff]   ;;  %v10270_v57 = vld [vmem:[%s11940_s7 + $0x16e4] ss:$68 sps:$4 sm:$0xff]  }
  0xcb   : > { %7080 = vmatprep.subr.bf16.mxu0 %v10181_v58  ;;  %7244 = vmatprep.subr.bf16.mxu1 %v10184_v59  ;;  %v10265_v58 = vld [vmem:[%s11940_s7 + $0x16d8] ss:$68 sps:$4 sm:$0xff]   ;;  %v10268_v59 = vld [vmem:[%s11940_s7 + $0x16e0] ss:$68 sps:$4 sm:$0xff]  }
  0xce   : > { %7081 = vmatpush1.bf16.msra.mxu0 %v10179_v60  ;;  %7245 = vmatpush1.bf16.msra.mxu1 %v10182_v61  ;;  %v10273_v60 = vld [vmem:[%s11940_s7 + $0x1764] ss:$68 sps:$4 sm:$0xff]   ;;  %v10276_v61 = vld [vmem:[%s11940_s7 + $0x176c] ss:$68 sps:$4 sm:$0xff]  }
  0xcf   : > { %7082 = vmatprep.subr.bf16.mxu0 %v10187_v62  ;;  %7246 = vmatprep.subr.bf16.mxu1 %v10190_v63  ;;  %v10271_v62 = vld [vmem:[%s11940_s7 + $0x1760] ss:$68 sps:$4 sm:$0xff]   ;;  %v10274_v63 = vld [vmem:[%s11940_s7 + $0x1768] ss:$68 sps:$4 sm:$0xff]  }
  0xd2   : > { %7083 = vmatpush1.bf16.msra.mxu0 %v10185_v0  ;;  %7247 = vmatpush1.bf16.msra.mxu1 %v10188_v1  ;;  %v10279_v0 = vld [vmem:[%s11940_s7 + $0x17ec] ss:$68 sps:$4 sm:$0xff]   ;;  %v10282_v1 = vld [vmem:[%s11940_s7 + $0x17f4] ss:$68 sps:$4 sm:$0xff]  }
  0xd3   : > { %7084 = vmatprep.subr.bf16.mxu0 %v10193_v2  ;;  %7248 = vmatprep.subr.bf16.mxu1 %v10196_v3  ;;  %v10277_v2 = vld [vmem:[%s11940_s7 + $0x17e8] ss:$68 sps:$4 sm:$0xff]   ;;  %v10280_v3 = vld [vmem:[%s11940_s7 + $0x17f0] ss:$68 sps:$4 sm:$0xff]  }
  0xd6   : > { %7085 = vmatpush1.bf16.msra.mxu0 %v10191_v4  ;;  %7249 = vmatpush1.bf16.msra.mxu1 %v10194_v6  ;;  %v10285_v4 = vld [vmem:[%s11940_s7 + $0x1874] ss:$68 sps:$4 sm:$0xff]   ;;  %v10288_v6 = vld [vmem:[%s11940_s7 + $0x187c] ss:$68 sps:$4 sm:$0xff]  }
  0xd7   : > { %7095 = vmatprep.subr.bf16.mxu0 %v10200_v7  ;;  %7259 = vmatprep.subr.bf16.mxu1 %v10203_v8  ;;  %v10283_v7 = vld [vmem:[%s11940_s7 + $0x1870] ss:$68 sps:$4 sm:$0xff]   ;;  %v10286_v8 = vld [vmem:[%s11940_s7 + $0x1878] ss:$68 sps:$4 sm:$0xff]  }
  0xd9   : > { %7087 = vmatmul.mubr.bf16.vlgmr.msra.gmra.mrb[0].mxu0 %v12109_v10  ;;  %7251 = vmatmul.mubr.bf16.vlgmr.msra.gmra.mrb[0].mxu1 %v12109_v10 }
  0xda   : > { %7096 = vmatpush1.bf16.msra.mxu0 %v10198_v9  ;;  %7260 = vmatpush1.bf16.msra.mxu1 %v10201_v11  ;;  %v10291_v9 = vld [vmem:[%s11940_s7 + $0x18fc] ss:$68 sps:$4 sm:$0xff]   ;;  %v10294_v11 = vld [vmem:[%s11940_s7 + $0x1904] ss:$68 sps:$4 sm:$0xff]  }
  0xdb   : > { %7097 = vmatprep.subr.bf16.mxu0 %v10207_v12  ;;  %7261 = vmatprep.subr.bf16.mxu1 %v10210_v14  ;;  %v10289_v12 = vld [vmem:[%s11940_s7 + $0x18f8] ss:$68 sps:$4 sm:$0xff]   ;;  %v10292_v14 = vld [vmem:[%s11940_s7 + $0x1900] ss:$68 sps:$4 sm:$0xff]  }
  0xdc   : > { %7127 = vmatprep.mubr.bf16.mxu0 %v12121_v15  ;;  %7291 = vmatprep.mubr.bf16.mxu1 %v12121_v15 }
  0xde   : > { %7098 = vmatpush1.bf16.msra.mxu0 %v10205_v16  ;;  %7262 = vmatpush1.bf16.msra.mxu1 %v10208_v17  ;;  %v10298_v16 = vld [vmem:[%s11940_s7 + $0x1984] ss:$68 sps:$4 sm:$0xff]   ;;  %v10301_v17 = vld [vmem:[%s11940_s7 + $0x198c] ss:$68 sps:$4 sm:$0xff]  }
  0xdf   : > { %7099 = vmatprep.subr.bf16.mxu0 %v10213_v18  ;;  %7263 = vmatprep.subr.bf16.mxu1 %v10216_v19  ;;  %v10296_v18 = vld [vmem:[%s11940_s7 + $0x1980] ss:$68 sps:$4 sm:$0xff]   ;;  %v10299_v19 = vld [vmem:[%s11940_s7 + $0x1988] ss:$68 sps:$4 sm:$0xff]  }
  0xe2   : > { %7100 = vmatpush1.bf16.msra.mxu0 %v10211_v20  ;;  %7264 = vmatpush1.bf16.msra.mxu1 %v10214_v21  ;;  %v12191_v20 = vcombine.low %v12116_v13, %v12116_v13  ;;  %v12196_v21 = vld [vmem:[%s13292_s0 + $0x18] sm:$0xff]  ;;  %v10303_v13 = vld [vmem:[%s11940_s7 + $0x1a08] ss:$68 sps:$4 sm:$0xff]  }
  0xe3   : > { %7101 = vmatprep.subr.bf16.mxu0 %v10219_v22  ;;  %7265 = vmatprep.subr.bf16.mxu1 %v10222_v23  ;;  %v10305_v22 = vld [vmem:[%s11940_s7 + $0x1a0c] ss:$68 sps:$4 sm:$0xff]   ;;  %v10308_v23 = vld [vmem:[%s11940_s7 + $0x1a14] ss:$68 sps:$4 sm:$0xff]  }
  0xe6   : > { %7102 = vmatpush1.bf16.msra.mxu0 %v10217_v24  ;;  %7266 = vmatpush1.bf16.msra.mxu1 %v10220_v25  ;;  %v12202_v24 = vcombine.high %v12196_v21, %v12196_v21  ;;  %v10306_v25 = vld [vmem:[%s11940_s7 + $0x1a10] ss:$68 sps:$4 sm:$0xff]  }
  0xe7   : > { %7103 = vmatprep.subr.bf16.mxu0 %v10225_v26  ;;  %7267 = vmatprep.subr.bf16.mxu1 %v10228_v27  ;;  %v10311_v26 = vld [vmem:[%s11940_s7 + $0x1a94] ss:$68 sps:$4 sm:$0xff]   ;;  %v10314_v27 = vld [vmem:[%s11940_s7 + $0x1a9c] ss:$68 sps:$4 sm:$0xff]  }
  0xea   : > { %7104 = vmatpush1.bf16.msra.mxu0 %v10223_v28  ;;  %7268 = vmatpush1.bf16.msra.mxu1 %v10226_v29  ;;  %v10309_v28 = vld [vmem:[%s11940_s7 + $0x1a90] ss:$68 sps:$4 sm:$0xff]   ;;  %v10312_v29 = vld [vmem:[%s11940_s7 + $0x1a98] ss:$68 sps:$4 sm:$0xff]  }
  0xeb   : > { %7105 = vmatprep.subr.bf16.mxu0 %v10231_v31  ;;  %7269 = vmatprep.subr.bf16.mxu1 %v10234_v32  ;;  %v10317_v31 = vld [vmem:[%s11940_s7 + $0x1b1c] ss:$68 sps:$4 sm:$0xff]   ;;  %v10320_v32 = vld [vmem:[%s11940_s7 + $0x1b24] ss:$68 sps:$4 sm:$0xff]  }
  0xee   : > { %7106 = vmatpush1.bf16.msra.mxu0 %v10229_v33  ;;  %7270 = vmatpush1.bf16.msra.mxu1 %v10232_v34  ;;  %v10315_v33 = vld [vmem:[%s11940_s7 + $0x1b18] ss:$68 sps:$4 sm:$0xff]   ;;  %v10318_v34 = vld [vmem:[%s11940_s7 + $0x1b20] ss:$68 sps:$4 sm:$0xff]  }
  0xef   : > { %7107 = vmatprep.subr.bf16.mxu0 %v10237_v35  ;;  %7271 = vmatprep.subr.bf16.mxu1 %v10240_v36  ;;  %v10323_v35 = vld [vmem:[%s11940_s7 + $0x1ba4] ss:$68 sps:$4 sm:$0xff]   ;;  %v10326_v36 = vld [vmem:[%s11940_s7 + $0x1bac] ss:$68 sps:$4 sm:$0xff]  }
  0xf2   : > { %7108 = vmatpush1.bf16.msra.mxu0 %v10235_v37  ;;  %7272 = vmatpush1.bf16.msra.mxu1 %v10238_v38  ;;  %v10321_v37 = vld [vmem:[%s11940_s7 + $0x1ba0] ss:$68 sps:$4 sm:$0xff]   ;;  %v10324_v38 = vld [vmem:[%s11940_s7 + $0x1ba8] ss:$68 sps:$4 sm:$0xff]  }
  0xf3   : > { %7109 = vmatprep.subr.bf16.mxu0 %v10243_v39  ;;  %7273 = vmatprep.subr.bf16.mxu1 %v10246_v40  ;;  %v10329_v39 = vld [vmem:[%s11940_s7 + $0x1c2c] ss:$68 sps:$4 sm:$0xff]   ;;  %v10332_v40 = vld [vmem:[%s11940_s7 + $0x1c34] ss:$68 sps:$4 sm:$0xff]  }
  0xf6   : > { %7110 = vmatpush1.bf16.msra.mxu0 %v10241_v41  ;;  %7274 = vmatpush1.bf16.msra.mxu1 %v10244_v42  ;;  %v10327_v41 = vld [vmem:[%s11940_s7 + $0x1c28] ss:$68 sps:$4 sm:$0xff]   ;;  %v10330_v42 = vld [vmem:[%s11940_s7 + $0x1c30] ss:$68 sps:$4 sm:$0xff]  }
  0xf7   : > { %7111 = vmatprep.subr.bf16.mxu0 %v10249_v43  ;;  %7275 = vmatprep.subr.bf16.mxu1 %v10252_v44  ;;  %v10335_v43 = vld [vmem:[%s11940_s7 + $0x1cb4] ss:$68 sps:$4 sm:$0xff]   ;;  %v10338_v44 = vld [vmem:[%s11940_s7 + $0x1cbc] ss:$68 sps:$4 sm:$0xff]  }
  0xfa   : > { %7112 = vmatpush1.bf16.msra.mxu0 %v10247_v45  ;;  %7276 = vmatpush1.bf16.msra.mxu1 %v10250_v46  ;;  %v10333_v45 = vld [vmem:[%s11940_s7 + $0x1cb0] ss:$68 sps:$4 sm:$0xff]   ;;  %v10336_v46 = vld [vmem:[%s11940_s7 + $0x1cb8] ss:$68 sps:$4 sm:$0xff]  }
  0xfb   : > { %7113 = vmatprep.subr.bf16.mxu0 %v10255_v47  ;;  %7277 = vmatprep.subr.bf16.mxu1 %v10258_v49  ;;  %v10341_v47 = vld [vmem:[%s11940_s7 + $0x1d3c] ss:$68 sps:$4 sm:$0xff]   ;;  %v10344_v49 = vld [vmem:[%s11940_s7 + $0x1d44] ss:$68 sps:$4 sm:$0xff]  }
  0xfe   : > { %7114 = vmatpush1.bf16.msra.mxu0 %v10253_v50  ;;  %7278 = vmatpush1.bf16.msra.mxu1 %v10256_v51  ;;  %v10339_v50 = vld [vmem:[%s11940_s7 + $0x1d38] ss:$68 sps:$4 sm:$0xff]   ;;  %v10342_v51 = vld [vmem:[%s11940_s7 + $0x1d40] ss:$68 sps:$4 sm:$0xff]  }
  0xff   : > { %7115 = vmatprep.subr.bf16.mxu0 %v10261_v52  ;;  %7279 = vmatprep.subr.bf16.mxu1 %v10264_v53  ;;  %v10347_v52 = vld [vmem:[%s11940_s7 + $0x1dc4] ss:$68 sps:$4 sm:$0xff]   ;;  %v10350_v53 = vld [vmem:[%s11940_s7 + $0x1dcc] ss:$68 sps:$4 sm:$0xff]  }
 0x102   : > { %7116 = vmatpush1.bf16.msra.mxu0 %v10259_v54  ;;  %7280 = vmatpush1.bf16.msra.mxu1 %v10262_v55  ;;  %v10345_v54 = vld [vmem:[%s11940_s7 + $0x1dc0] ss:$68 sps:$4 sm:$0xff]   ;;  %v10348_v55 = vld [vmem:[%s11940_s7 + $0x1dc8] ss:$68 sps:$4 sm:$0xff]  }
 0x103   : > { %7117 = vmatprep.subr.bf16.mxu0 %v10267_v56  ;;  %7281 = vmatprep.subr.bf16.mxu1 %v10270_v57  ;;  %v10353_v56 = vld [vmem:[%s11940_s7 + $0x1e4c] ss:$68 sps:$4 sm:$0xff]   ;;  %v10356_v57 = vld [vmem:[%s11940_s7 + $0x1e54] ss:$68 sps:$4 sm:$0xff]  }
 0x106   : > { %7118 = vmatpush1.bf16.msra.mxu0 %v10265_v58  ;;  %7282 = vmatpush1.bf16.msra.mxu1 %v10268_v59  ;;  %v10351_v58 = vld [vmem:[%s11940_s7 + $0x1e48] ss:$68 sps:$4 sm:$0xff]   ;;  %v10354_v59 = vld [vmem:[%s11940_s7 + $0x1e50] ss:$68 sps:$4 sm:$0xff]  }
 0x107   : > { %7119 = vmatprep.subr.bf16.mxu0 %v10273_v60  ;;  %7283 = vmatprep.subr.bf16.mxu1 %v10276_v61  ;;  %v10359_v60 = vld [vmem:[%s11940_s7 + $0x1ed4] ss:$68 sps:$4 sm:$0xff]   ;;  %v10362_v61 = vld [vmem:[%s11940_s7 + $0x1edc] ss:$68 sps:$4 sm:$0xff]  }
 0x10a   : > { %7120 = vmatpush1.bf16.msra.mxu0 %v10271_v62  ;;  %7284 = vmatpush1.bf16.msra.mxu1 %v10274_v63  ;;  %v10357_v62 = vld [vmem:[%s11940_s7 + $0x1ed0] ss:$68 sps:$4 sm:$0xff]   ;;  %v10360_v63 = vld [vmem:[%s11940_s7 + $0x1ed8] ss:$68 sps:$4 sm:$0xff]  }
 0x10b   : > { %7121 = vmatprep.subr.bf16.mxu0 %v10279_v0  ;;  %7285 = vmatprep.subr.bf16.mxu1 %v10282_v1  ;;  %v10365_v0 = vld [vmem:[%s11940_s7 + $0x1f5c] ss:$68 sps:$4 sm:$0xff]   ;;  %v10368_v1 = vld [vmem:[%s11940_s7 + $0x1f64] ss:$68 sps:$4 sm:$0xff]  }
 0x10e   : > { %7122 = vmatpush1.bf16.msra.mxu0 %v10277_v2  ;;  %7286 = vmatpush1.bf16.msra.mxu1 %v10280_v3  ;;  %v10363_v2 = vld [vmem:[%s11940_s7 + $0x1f58] ss:$68 sps:$4 sm:$0xff]   ;;  %v10366_v3 = vld [vmem:[%s11940_s7 + $0x1f60] ss:$68 sps:$4 sm:$0xff]  }
 0x10f   : > { %7123 = vmatprep.subr.bf16.mxu0 %v10285_v4  ;;  %7287 = vmatprep.subr.bf16.mxu1 %v10288_v6  ;;  %v10371_v4 = vld [vmem:[%s11940_s7 + $0x1fe4] ss:$68 sps:$4 sm:$0xff]   ;;  %v10374_v6 = vld [vmem:[%s11940_s7 + $0x1fec] ss:$68 sps:$4 sm:$0xff]  }
 0x112   : > { %7124 = vmatpush1.bf16.msra.mxu0 %v10283_v7  ;;  %7288 = vmatpush1.bf16.msra.mxu1 %v10286_v8  ;;  %v10369_v7 = vld [vmem:[%s11940_s7 + $0x1fe0] ss:$68 sps:$4 sm:$0xff]   ;;  %v10372_v8 = vld [vmem:[%s11940_s7 + $0x1fe8] ss:$68 sps:$4 sm:$0xff]  }
 0x113   : > { %7125 = vmatprep.subr.bf16.mxu0 %v10291_v9  ;;  %7289 = vmatprep.subr.bf16.mxu1 %v10294_v11  ;;  %v10377_v9 = vld [vmem:[%s11940_s7 + $0x206c] ss:$68 sps:$4 sm:$0xff]   ;;  %v10380_v11 = vld [vmem:[%s11940_s7 + $0x2074] ss:$68 sps:$4 sm:$0xff]  }
 0x116   : > { %7126 = vmatpush1.bf16.msra.mxu0 %v10289_v12  ;;  %7290 = vmatpush1.bf16.msra.mxu1 %v10292_v14  ;;  %v10375_v12 = vld [vmem:[%s11940_s7 + $0x2068] ss:$68 sps:$4 sm:$0xff]   ;;  %v10378_v14 = vld [vmem:[%s11940_s7 + $0x2070] ss:$68 sps:$4 sm:$0xff]  }
 0x117   : > { %7136 = vmatprep.subr.bf16.mxu0 %v10298_v16  ;;  %7300 = vmatprep.subr.bf16.mxu1 %v10301_v17  ;;  %v10383_v16 = vld [vmem:[%s11940_s7 + $0x20f4] ss:$68 sps:$4 sm:$0xff]   ;;  %v10386_v17 = vld [vmem:[%s11940_s7 + $0x20fc] ss:$68 sps:$4 sm:$0xff]  }
 0x119   : > { %7128 = vmatmul.mubr.bf16.vlgmr.msra.gmra.mrb[0].mxu0 %v12191_v20  ;;  %7292 = vmatmul.mubr.bf16.vlgmr.msra.gmra.mrb[0].mxu1 %v12191_v20 }
 0x11a   : > { %7137 = vmatpush1.bf16.msra.mxu0 %v10296_v18  ;;  %7301 = vmatpush1.bf16.msra.mxu1 %v10299_v19  ;;  %v10381_v18 = vld [vmem:[%s11940_s7 + $0x20f0] ss:$68 sps:$4 sm:$0xff]   ;;  %v10384_v19 = vld [vmem:[%s11940_s7 + $0x20f8] ss:$68 sps:$4 sm:$0xff]  }
 0x11b   : > { %7138 = vmatprep.subr.bf16.mxu0 %v10305_v22  ;;  %7302 = vmatprep.subr.bf16.mxu1 %v10308_v23  ;;  %v10389_v22 = vld [vmem:[%s11940_s7 + $0x217c] ss:$68 sps:$4 sm:$0xff]   ;;  %v10392_v23 = vld [vmem:[%s11940_s7 + $0x2184] ss:$68 sps:$4 sm:$0xff]  }
 0x11c   : > { %7168 = vmatprep.mubr.bf16.mxu0 %v12202_v24  ;;  %7332 = vmatprep.mubr.bf16.mxu1 %v12202_v24 }
 0x11e   : > { %7139 = vmatpush1.bf16.msra.mxu0 %v10303_v13  ;;  %7303 = vmatpush1.bf16.msra.mxu1 %v10306_v25  ;;  %v10387_v13 = vld [vmem:[%s11940_s7 + $0x2178] ss:$68 sps:$4 sm:$0xff]   ;;  %v10390_v25 = vld [vmem:[%s11940_s7 + $0x2180] ss:$68 sps:$4 sm:$0xff]  }
 0x11f   : > { %7140 = vmatprep.subr.bf16.mxu0 %v10311_v26  ;;  %7304 = vmatprep.subr.bf16.mxu1 %v10314_v27  ;;  %v10397_v26 = vld [vmem:[%s11940_s7 + $0x14] ss:$68 sps:$4 sm:$0xff]   ;;  %v10400_v27 = vld [vmem:[%s11940_s7 + $0x1c] ss:$68 sps:$4 sm:$0xff]  }
 0x122   : > { %7141 = vmatpush1.bf16.msra.mxu0 %v10309_v28  ;;  %7305 = vmatpush1.bf16.msra.mxu1 %v10312_v29  ;;  %v12270_v28 = vcombine.low %v12196_v21, %v12196_v21  ;;  %v10395_v29 = vld [vmem:[%s11940_s7 + $0x10] ss:$68 sps:$4 sm:$0xff]   ;;  %v10409_v21 = vld [vmem:[%s11940_s7 + $0x124] ss:$68 sps:$4 sm:$0xff]  }
 0x123   : > { %7142 = vmatprep.subr.bf16.mxu0 %v10317_v31  ;;  %7306 = vmatprep.subr.bf16.mxu1 %v10320_v32  ;;  %v10398_v31 = vld [vmem:[%s11940_s7 + $0x18] ss:$68 sps:$4 sm:$0xff]  }
 0x124   : > { %v10403_v32 = vld [vmem:[%s11940_s7 + $0x9c] ss:$68 sps:$4 sm:$0xff]  }
 0x126   : > { %7143 = vmatpush1.bf16.msra.mxu0 %v10315_v33  ;;  %7307 = vmatpush1.bf16.msra.mxu1 %v10318_v34  ;;  %v10406_v33 = vld [vmem:[%s11940_s7 + $0xa4] ss:$68 sps:$4 sm:$0xff]   ;;  %v10401_v34 = vld [vmem:[%s11940_s7 + $0x98] ss:$68 sps:$4 sm:$0xff]  }
 0x127   : > { %7144 = vmatprep.subr.bf16.mxu0 %v10323_v35  ;;  %7308 = vmatprep.subr.bf16.mxu1 %v10326_v36  ;;  %v10404_v35 = vld [vmem:[%s11940_s7 + $0xa0] ss:$68 sps:$4 sm:$0xff]   ;;  %v10412_v36 = vld [vmem:[%s11940_s7 + $0x12c] ss:$68 sps:$4 sm:$0xff]  }
 0x12a   : > { %7145 = vmatpush1.bf16.msra.mxu0 %v10321_v37  ;;  %7309 = vmatpush1.bf16.msra.mxu1 %v10324_v38  ;;  %v10407_v37 = vld [vmem:[%s11940_s7 + $0x120] ss:$68 sps:$4 sm:$0xff]   ;;  %v10410_v38 = vld [vmem:[%s11940_s7 + $0x128] ss:$68 sps:$4 sm:$0xff]  }
 0x12b   : > { %7146 = vmatprep.subr.bf16.mxu0 %v10329_v39  ;;  %7310 = vmatprep.subr.bf16.mxu1 %v10332_v40  ;;  %v10415_v39 = vld [vmem:[%s11940_s7 + $0x1ac] ss:$68 sps:$4 sm:$0xff]   ;;  %v10418_v40 = vld [vmem:[%s11940_s7 + $0x1b4] ss:$68 sps:$4 sm:$0xff]  }
 0x12e   : > { %7147 = vmatpush1.bf16.msra.mxu0 %v10327_v41  ;;  %7311 = vmatpush1.bf16.msra.mxu1 %v10330_v42  ;;  %v10413_v41 = vld [vmem:[%s11940_s7 + $0x1a8] ss:$68 sps:$4 sm:$0xff]   ;;  %v10416_v42 = vld [vmem:[%s11940_s7 + $0x1b0] ss:$68 sps:$4 sm:$0xff]  }
 0x12f   : > { %7148 = vmatprep.subr.bf16.mxu0 %v10335_v43  ;;  %7312 = vmatprep.subr.bf16.mxu1 %v10338_v44  ;;  %v10421_v43 = vld [vmem:[%s11940_s7 + $0x234] ss:$68 sps:$4 sm:$0xff]   ;;  %v10424_v44 = vld [vmem:[%s11940_s7 + $0x23c] ss:$68 sps:$4 sm:$0xff]  }
 0x132   : > { %7149 = vmatpush1.bf16.msra.mxu0 %v10333_v45  ;;  %7313 = vmatpush1.bf16.msra.mxu1 %v10336_v46  ;;  %v10419_v45 = vld [vmem:[%s11940_s7 + $0x230] ss:$68 sps:$4 sm:$0xff]   ;;  %v10422_v46 = vld [vmem:[%s11940_s7 + $0x238] ss:$68 sps:$4 sm:$0xff]  }
 0x133   : > { %7150 = vmatprep.subr.bf16.mxu0 %v10341_v47  ;;  %7314 = vmatprep.subr.bf16.mxu1 %v10344_v49  ;;  %v10427_v47 = vld [vmem:[%s11940_s7 + $0x2bc] ss:$68 sps:$4 sm:$0xff]   ;;  %v10430_v49 = vld [vmem:[%s11940_s7 + $0x2c4] ss:$68 sps:$4 sm:$0xff]  }
 0x136   : > { %7151 = vmatpush1.bf16.msra.mxu0 %v10339_v50  ;;  %7315 = vmatpush1.bf16.msra.mxu1 %v10342_v51  ;;  %v10425_v50 = vld [vmem:[%s11940_s7 + $0x2b8] ss:$68 sps:$4 sm:$0xff]   ;;  %v10428_v51 = vld [vmem:[%s11940_s7 + $0x2c0] ss:$68 sps:$4 sm:$0xff]  }
 0x137   : > { %7152 = vmatprep.subr.bf16.mxu0 %v10347_v52  ;;  %7316 = vmatprep.subr.bf16.mxu1 %v10350_v53  ;;  %v10433_v52 = vld [vmem:[%s11940_s7 + $0x344] ss:$68 sps:$4 sm:$0xff]   ;;  %v10436_v53 = vld [vmem:[%s11940_s7 + $0x34c] ss:$68 sps:$4 sm:$0xff]  }
 0x13a   : > { %7153 = vmatpush1.bf16.msra.mxu0 %v10345_v54  ;;  %7317 = vmatpush1.bf16.msra.mxu1 %v10348_v55  ;;  %v10431_v54 = vld [vmem:[%s11940_s7 + $0x340] ss:$68 sps:$4 sm:$0xff]   ;;  %v10434_v55 = vld [vmem:[%s11940_s7 + $0x348] ss:$68 sps:$4 sm:$0xff]  }
 0x13b   : > { %7154 = vmatprep.subr.bf16.mxu0 %v10353_v56  ;;  %7318 = vmatprep.subr.bf16.mxu1 %v10356_v57  ;;  %v10439_v56 = vld [vmem:[%s11940_s7 + $0x3cc] ss:$68 sps:$4 sm:$0xff]   ;;  %v10442_v57 = vld [vmem:[%s11940_s7 + $0x3d4] ss:$68 sps:$4 sm:$0xff]  }
 0x13e   : > { %7155 = vmatpush1.bf16.msra.mxu0 %v10351_v58  ;;  %7319 = vmatpush1.bf16.msra.mxu1 %v10354_v59  ;;  %v10437_v58 = vld [vmem:[%s11940_s7 + $0x3c8] ss:$68 sps:$4 sm:$0xff]   ;;  %v10440_v59 = vld [vmem:[%s11940_s7 + $0x3d0] ss:$68 sps:$4 sm:$0xff]  }
 0x13f   : > { %7156 = vmatprep.subr.bf16.mxu0 %v10359_v60  ;;  %7320 = vmatprep.subr.bf16.mxu1 %v10362_v61  ;;  %v10445_v60 = vld [vmem:[%s11940_s7 + $0x454] ss:$68 sps:$4 sm:$0xff]   ;;  %v10448_v61 = vld [vmem:[%s11940_s7 + $0x45c] ss:$68 sps:$4 sm:$0xff]  }
 0x142   : > { %7157 = vmatpush1.bf16.msra.mxu0 %v10357_v62  ;;  %7321 = vmatpush1.bf16.msra.mxu1 %v10360_v63  ;;  %v10443_v62 = vld [vmem:[%s11940_s7 + $0x450] ss:$68 sps:$4 sm:$0xff]   ;;  %v10446_v63 = vld [vmem:[%s11940_s7 + $0x458] ss:$68 sps:$4 sm:$0xff]  }
 0x143   : > { %7158 = vmatprep.subr.bf16.mxu0 %v10365_v0  ;;  %7322 = vmatprep.subr.bf16.mxu1 %v10368_v1  ;;  %v10451_v0 = vld [vmem:[%s11940_s7 + $0x4dc] ss:$68 sps:$4 sm:$0xff]   ;;  %v10454_v1 = vld [vmem:[%s11940_s7 + $0x4e4] ss:$68 sps:$4 sm:$0xff]  }
 0x146   : > { %7159 = vmatpush1.bf16.msra.mxu0 %v10363_v2  ;;  %7323 = vmatpush1.bf16.msra.mxu1 %v10366_v3  ;;  %v10449_v2 = vld [vmem:[%s11940_s7 + $0x4d8] ss:$68 sps:$4 sm:$0xff]   ;;  %v10452_v3 = vld [vmem:[%s11940_s7 + $0x4e0] ss:$68 sps:$4 sm:$0xff]  }
 0x147   : > { %7160 = vmatprep.subr.bf16.mxu0 %v10371_v4  ;;  %7324 = vmatprep.subr.bf16.mxu1 %v10374_v6  ;;  %v10457_v4 = vld [vmem:[%s11940_s7 + $0x564] ss:$68 sps:$4 sm:$0xff]   ;;  %v10460_v6 = vld [vmem:[%s11940_s7 + $0x56c] ss:$68 sps:$4 sm:$0xff]  }
 0x14a   : > { %7161 = vmatpush1.bf16.msra.mxu0 %v10369_v7  ;;  %7325 = vmatpush1.bf16.msra.mxu1 %v10372_v8  ;;  %v10455_v7 = vld [vmem:[%s11940_s7 + $0x560] ss:$68 sps:$4 sm:$0xff]   ;;  %v10458_v8 = vld [vmem:[%s11940_s7 + $0x568] ss:$68 sps:$4 sm:$0xff]  }
 0x14b   : > { %7162 = vmatprep.subr.bf16.mxu0 %v10377_v9  ;;  %7326 = vmatprep.subr.bf16.mxu1 %v10380_v11  ;;  %v10463_v9 = vld [vmem:[%s11940_s7 + $0x5ec] ss:$68 sps:$4 sm:$0xff]   ;;  %v10466_v11 = vld [vmem:[%s11940_s7 + $0x5f4] ss:$68 sps:$4 sm:$0xff]  }
 0x14e   : > { %7163 = vmatpush1.bf16.msra.mxu0 %v10375_v12  ;;  %7327 = vmatpush1.bf16.msra.mxu1 %v10378_v14  ;;  %v10461_v12 = vld [vmem:[%s11940_s7 + $0x5e8] ss:$68 sps:$4 sm:$0xff]   ;;  %v10464_v14 = vld [vmem:[%s11940_s7 + $0x5f0] ss:$68 sps:$4 sm:$0xff]  }
 0x14f   : > { %7164 = vmatprep.subr.bf16.mxu0 %v10383_v16  ;;  %7328 = vmatprep.subr.bf16.mxu1 %v10386_v17  ;;  %v10469_v16 = vld [vmem:[%s11940_s7 + $0x674] ss:$68 sps:$4 sm:$0xff]   ;;  %v10472_v17 = vld [vmem:[%s11940_s7 + $0x67c] ss:$68 sps:$4 sm:$0xff]  }
 0x152   : > { %7165 = vmatpush1.bf16.msra.mxu0 %v10381_v18  ;;  %7329 = vmatpush1.bf16.msra.mxu1 %v10384_v19  ;;  %v10467_v18 = vld [vmem:[%s11940_s7 + $0x670] ss:$68 sps:$4 sm:$0xff]   ;;  %v10470_v19 = vld [vmem:[%s11940_s7 + $0x678] ss:$68 sps:$4 sm:$0xff]  }
 0x153   : > { %7166 = vmatprep.subr.bf16.mxu0 %v10389_v22  ;;  %7330 = vmatprep.subr.bf16.mxu1 %v10392_v23  ;;  %v10475_v22 = vld [vmem:[%s11940_s7 + $0x6fc] ss:$68 sps:$4 sm:$0xff]   ;;  %v10478_v23 = vld [vmem:[%s11940_s7 + $0x704] ss:$68 sps:$4 sm:$0xff]  }
 0x156   : > { %7167 = vmatpush1.bf16.msra.mxu0 %v10387_v13  ;;  %7331 = vmatpush1.bf16.msra.mxu1 %v10390_v25  ;;  %v10473_v13 = vld [vmem:[%s11940_s7 + $0x6f8] ss:$68 sps:$4 sm:$0xff]   ;;  %v10476_v25 = vld [vmem:[%s11940_s7 + $0x700] ss:$68 sps:$4 sm:$0xff]  }
 0x157   : > { %7341 = vmatprep.subr.bf16.mxu0 %v10397_v26  ;;  %7505 = vmatprep.subr.bf16.mxu1 %v10400_v27  ;;  %v10481_v26 = vld [vmem:[%s11940_s7 + $0x784] ss:$68 sps:$4 sm:$0xff]   ;;  %v10484_v27 = vld [vmem:[%s11940_s7 + $0x78c] ss:$68 sps:$4 sm:$0xff]  }
 0x159   : > { %7169 = vmatmul.mubr.bf16.vlgmr.msra.gmra.mrb[0].mxu0 %v12270_v28  ;;  %7333 = vmatmul.mubr.bf16.vlgmr.msra.gmra.mrb[0].mxu1 %v12270_v28 }
 0x15a   : > { %7342 = vmatpush1.bf16.msra.mxu0 %v10395_v29  ;;  %7506 = vmatpush1.bf16.msra.mxu1 %v10398_v31  ;;  %v10479_v29 = vld [vmem:[%s11940_s7 + $0x780] ss:$68 sps:$4 sm:$0xff]   ;;  %v10482_v31 = vld [vmem:[%s11940_s7 + $0x788] ss:$68 sps:$4 sm:$0xff]  }
 0x15b   : > { %7343 = vmatprep.subr.bf16.mxu0 %v10403_v32  ;;  %7507 = vmatprep.subr.bf16.mxu1 %v10406_v33  ;;  %v10487_v32 = vld [vmem:[%s11940_s7 + $0x80c] ss:$68 sps:$4 sm:$0xff]   ;;  %v10490_v33 = vld [vmem:[%s11940_s7 + $0x814] ss:$68 sps:$4 sm:$0xff]  }
 0x15c   : > { %7373 = vmatprep.mubr.bf16.mxu0 %v12004_v48  ;;  %7537 = vmatprep.mubr.bf16.mxu1 %v12004_v48 }
 0x15e   : > { %7344 = vmatpush1.bf16.msra.mxu0 %v10401_v34  ;;  %7508 = vmatpush1.bf16.msra.mxu1 %v10404_v35  ;;  %v10485_v34 = vld [vmem:[%s11940_s7 + $0x808] ss:$68 sps:$4 sm:$0xff]   ;;  %v10488_v35 = vld [vmem:[%s11940_s7 + $0x810] ss:$68 sps:$4 sm:$0xff]  }
 0x15f   : > { %7345 = vmatprep.subr.bf16.mxu0 %v10409_v21  ;;  %7509 = vmatprep.subr.bf16.mxu1 %v10412_v36  ;;  %v10493_v21 = vld [vmem:[%s11940_s7 + $0x894] ss:$68 sps:$4 sm:$0xff]   ;;  %v10496_v36 = vld [vmem:[%s11940_s7 + $0x89c] ss:$68 sps:$4 sm:$0xff]  }
 0x162   : > { %7346 = vmatpush1.bf16.msra.mxu0 %v10407_v37  ;;  %7510 = vmatpush1.bf16.msra.mxu1 %v10410_v38  ;;  %v10491_v37 = vld [vmem:[%s11940_s7 + $0x890] ss:$68 sps:$4 sm:$0xff]   ;;  %v10494_v38 = vld [vmem:[%s11940_s7 + $0x898] ss:$68 sps:$4 sm:$0xff]  }
 0x163   : > { %7347 = vmatprep.subr.bf16.mxu0 %v10415_v39  ;;  %7511 = vmatprep.subr.bf16.mxu1 %v10418_v40  ;;  %v10499_v39 = vld [vmem:[%s11940_s7 + $0x91c] ss:$68 sps:$4 sm:$0xff]   ;;  %v10502_v40 = vld [vmem:[%s11940_s7 + $0x924] ss:$68 sps:$4 sm:$0xff]  }
 0x166   : > { %7348 = vmatpush1.bf16.msra.mxu0 %v10413_v41  ;;  %7512 = vmatpush1.bf16.msra.mxu1 %v10416_v42  ;;  %v10497_v41 = vld [vmem:[%s11940_s7 + $0x918] ss:$68 sps:$4 sm:$0xff]   ;;  %v10500_v42 = vld [vmem:[%s11940_s7 + $0x920] ss:$68 sps:$4 sm:$0xff]  }
 0x167   : > { %7349 = vmatprep.subr.bf16.mxu0 %v10421_v43  ;;  %7513 = vmatprep.subr.bf16.mxu1 %v10424_v44  ;;  %v10505_v43 = vld [vmem:[%s11940_s7 + $0x9a4] ss:$68 sps:$4 sm:$0xff]   ;;  %v10508_v44 = vld [vmem:[%s11940_s7 + $0x9ac] ss:$68 sps:$4 sm:$0xff]  }
 0x16a   : > { %7350 = vmatpush1.bf16.msra.mxu0 %v10419_v45  ;;  %7514 = vmatpush1.bf16.msra.mxu1 %v10422_v46  ;;  %v10503_v45 = vld [vmem:[%s11940_s7 + $0x9a0] ss:$68 sps:$4 sm:$0xff]   ;;  %v10506_v46 = vld [vmem:[%s11940_s7 + $0x9a8] ss:$68 sps:$4 sm:$0xff]  }
 0x16b   : > { %7351 = vmatprep.subr.bf16.mxu0 %v10427_v47  ;;  %7515 = vmatprep.subr.bf16.mxu1 %v10430_v49  ;;  %v10511_v47 = vld [vmem:[%s11940_s7 + $0xa2c] ss:$68 sps:$4 sm:$0xff]   ;;  %v10514_v49 = vld [vmem:[%s11940_s7 + $0xa34] ss:$68 sps:$4 sm:$0xff]  }
 0x16e   : > { %7352 = vmatpush1.bf16.msra.mxu0 %v10425_v50  ;;  %7516 = vmatpush1.bf16.msra.mxu1 %v10428_v51  ;;  %v10509_v50 = vld [vmem:[%s11940_s7 + $0xa28] ss:$68 sps:$4 sm:$0xff]   ;;  %v10512_v51 = vld [vmem:[%s11940_s7 + $0xa30] ss:$68 sps:$4 sm:$0xff]  }
 0x16f   : > { %7353 = vmatprep.subr.bf16.mxu0 %v10433_v52  ;;  %7517 = vmatprep.subr.bf16.mxu1 %v10436_v53  ;;  %v10517_v52 = vld [vmem:[%s11940_s7 + $0xab4] ss:$68 sps:$4 sm:$0xff]   ;;  %v10520_v53 = vld [vmem:[%s11940_s7 + $0xabc] ss:$68 sps:$4 sm:$0xff]  }
 0x172   : > { %7354 = vmatpush1.bf16.msra.mxu0 %v10431_v54  ;;  %7518 = vmatpush1.bf16.msra.mxu1 %v10434_v55  ;;  %v10515_v54 = vld [vmem:[%s11940_s7 + $0xab0] ss:$68 sps:$4 sm:$0xff]   ;;  %v10518_v55 = vld [vmem:[%s11940_s7 + $0xab8] ss:$68 sps:$4 sm:$0xff]  }
 0x173   : > { %7355 = vmatprep.subr.bf16.mxu0 %v10439_v56  ;;  %7519 = vmatprep.subr.bf16.mxu1 %v10442_v57  ;;  %v10523_v56 = vld [vmem:[%s11940_s7 + $0xb3c] ss:$68 sps:$4 sm:$0xff]   ;;  %v10526_v57 = vld [vmem:[%s11940_s7 + $0xb44] ss:$68 sps:$4 sm:$0xff]  }
 0x176   : > { %7356 = vmatpush1.bf16.msra.mxu0 %v10437_v58  ;;  %7520 = vmatpush1.bf16.msra.mxu1 %v10440_v59  ;;  %v10521_v58 = vld [vmem:[%s11940_s7 + $0xb38] ss:$68 sps:$4 sm:$0xff]   ;;  %v10524_v59 = vld [vmem:[%s11940_s7 + $0xb40] ss:$68 sps:$4 sm:$0xff]  }
 0x177   : > { %7357 = vmatprep.subr.bf16.mxu0 %v10445_v60  ;;  %7521 = vmatprep.subr.bf16.mxu1 %v10448_v61  ;;  %v10529_v60 = vld [vmem:[%s11940_s7 + $0xbc4] ss:$68 sps:$4 sm:$0xff]   ;;  %v10532_v61 = vld [vmem:[%s11940_s7 + $0xbcc] ss:$68 sps:$4 sm:$0xff]  }
 0x17a   : > { %7358 = vmatpush1.bf16.msra.mxu0 %v10443_v62  ;;  %7522 = vmatpush1.bf16.msra.mxu1 %v10446_v63  ;;  %v10527_v62 = vld [vmem:[%s11940_s7 + $0xbc0] ss:$68 sps:$4 sm:$0xff]   ;;  %v10530_v63 = vld [vmem:[%s11940_s7 + $0xbc8] ss:$68 sps:$4 sm:$0xff]  }
 0x17b   : > { %7359 = vmatprep.subr.bf16.mxu0 %v10451_v0  ;;  %7523 = vmatprep.subr.bf16.mxu1 %v10454_v1  ;;  %v10535_v0 = vld [vmem:[%s11940_s7 + $0xc4c] ss:$68 sps:$4 sm:$0xff]   ;;  %v10538_v1 = vld [vmem:[%s11940_s7 + $0xc54] ss:$68 sps:$4 sm:$0xff]  }
 0x17e   : > { %7360 = vmatpush1.bf16.msra.mxu0 %v10449_v2  ;;  %7524 = vmatpush1.bf16.msra.mxu1 %v10452_v3  ;;  %v10533_v2 = vld [vmem:[%s11940_s7 + $0xc48] ss:$68 sps:$4 sm:$0xff]   ;;  %v10536_v3 = vld [vmem:[%s11940_s7 + $0xc50] ss:$68 sps:$4 sm:$0xff]  }
 0x17f   : > { %7361 = vmatprep.subr.bf16.mxu0 %v10457_v4  ;;  %7525 = vmatprep.subr.bf16.mxu1 %v10460_v6  ;;  %v10541_v4 = vld [vmem:[%s11940_s7 + $0xcd4] ss:$68 sps:$4 sm:$0xff]   ;;  %v10544_v6 = vld [vmem:[%s11940_s7 + $0xcdc] ss:$68 sps:$4 sm:$0xff]  }
 0x182   : > { %7362 = vmatpush1.bf16.msra.mxu0 %v10455_v7  ;;  %7526 = vmatpush1.bf16.msra.mxu1 %v10458_v8  ;;  %v10539_v7 = vld [vmem:[%s11940_s7 + $0xcd0] ss:$68 sps:$4 sm:$0xff]   ;;  %v10542_v8 = vld [vmem:[%s11940_s7 + $0xcd8] ss:$68 sps:$4 sm:$0xff]  }
 0x183   : > { %7363 = vmatprep.subr.bf16.mxu0 %v10463_v9  ;;  %7527 = vmatprep.subr.bf16.mxu1 %v10466_v11  ;;  %v10547_v9 = vld [vmem:[%s11940_s7 + $0xd5c] ss:$68 sps:$4 sm:$0xff]   ;;  %v10550_v11 = vld [vmem:[%s11940_s7 + $0xd64] ss:$68 sps:$4 sm:$0xff]  }
 0x186   : > { %7364 = vmatpush1.bf16.msra.mxu0 %v10461_v12  ;;  %7528 = vmatpush1.bf16.msra.mxu1 %v10464_v14  ;;  %v10545_v12 = vld [vmem:[%s11940_s7 + $0xd58] ss:$68 sps:$4 sm:$0xff]   ;;  %v10548_v14 = vld [vmem:[%s11940_s7 + $0xd60] ss:$68 sps:$4 sm:$0xff]  }
 0x187   : > { %7365 = vmatprep.subr.bf16.mxu0 %v10469_v16  ;;  %7529 = vmatprep.subr.bf16.mxu1 %v10472_v17  ;;  %v10553_v16 = vld [vmem:[%s11940_s7 + $0xde4] ss:$68 sps:$4 sm:$0xff]   ;;  %v10556_v17 = vld [vmem:[%s11940_s7 + $0xdec] ss:$68 sps:$4 sm:$0xff]  }
 0x18a   : > { %7366 = vmatpush1.bf16.msra.mxu0 %v10467_v18  ;;  %7530 = vmatpush1.bf16.msra.mxu1 %v10470_v19  ;;  %v10551_v18 = vld [vmem:[%s11940_s7 + $0xde0] ss:$68 sps:$4 sm:$0xff]   ;;  %v10554_v19 = vld [vmem:[%s11940_s7 + $0xde8] ss:$68 sps:$4 sm:$0xff]  }
 0x18b   : > { %7367 = vmatprep.subr.bf16.mxu0 %v10475_v22  ;;  %7531 = vmatprep.subr.bf16.mxu1 %v10478_v23  ;;  %v10559_v22 = vld [vmem:[%s11940_s7 + $0xe6c] ss:$68 sps:$4 sm:$0xff]   ;;  %v10562_v23 = vld [vmem:[%s11940_s7 + $0xe74] ss:$68 sps:$4 sm:$0xff]  }
 0x18e   : > { %7368 = vmatpush1.bf16.msra.mxu0 %v10473_v13  ;;  %7532 = vmatpush1.bf16.msra.mxu1 %v10476_v25  ;;  %v10557_v13 = vld [vmem:[%s11940_s7 + $0xe68] ss:$68 sps:$4 sm:$0xff]   ;;  %v10560_v25 = vld [vmem:[%s11940_s7 + $0xe70] ss:$68 sps:$4 sm:$0xff]  }
 0x18f   : > { %7369 = vmatprep.subr.bf16.mxu0 %v10481_v26  ;;  %7533 = vmatprep.subr.bf16.mxu1 %v10484_v27  ;;  %v10565_v26 = vld [vmem:[%s11940_s7 + $0xef4] ss:$68 sps:$4 sm:$0xff]   ;;  %v10568_v27 = vld [vmem:[%s11940_s7 + $0xefc] ss:$68 sps:$4 sm:$0xff]  }
 0x192   : > { %7370 = vmatpush1.bf16.msra.mxu0 %v10479_v29  ;;  %7534 = vmatpush1.bf16.msra.mxu1 %v10482_v31  ;;  %v10563_v29 = vld [vmem:[%s11940_s7 + $0xef0] ss:$68 sps:$4 sm:$0xff]   ;;  %v10566_v31 = vld [vmem:[%s11940_s7 + $0xef8] ss:$68 sps:$4 sm:$0xff]  }
 0x193   : > { %7371 = vmatprep.subr.bf16.mxu0 %v10487_v32  ;;  %7535 = vmatprep.subr.bf16.mxu1 %v10490_v33  ;;  %v10571_v32 = vld [vmem:[%s11940_s7 + $0xf7c] ss:$68 sps:$4 sm:$0xff]   ;;  %v10574_v33 = vld [vmem:[%s11940_s7 + $0xf84] ss:$68 sps:$4 sm:$0xff]  }
 0x196   : > { %7372 = vmatpush1.bf16.msra.mxu0 %v10485_v34  ;;  %7536 = vmatpush1.bf16.msra.mxu1 %v10488_v35  ;;  %v10569_v34 = vld [vmem:[%s11940_s7 + $0xf78] ss:$68 sps:$4 sm:$0xff]   ;;  %v10572_v35 = vld [vmem:[%s11940_s7 + $0xf80] ss:$68 sps:$4 sm:$0xff]  }
 0x197   : > { %7382 = vmatprep.subr.bf16.mxu0 %v10493_v21  ;;  %7546 = vmatprep.subr.bf16.mxu1 %v10496_v36  ;;  %v10577_v21 = vld [vmem:[%s11940_s7 + $0x1004] ss:$68 sps:$4 sm:$0xff]   ;;  %v10580_v36 = vld [vmem:[%s11940_s7 + $0x100c] ss:$68 sps:$4 sm:$0xff]  }
 0x199   : > { %7374 = vmatmul.mubr.bf16.vlgmr.msra.gmra.mrb[4].mxu0 %v12028_v5  ;;  %7538 = vmatmul.mubr.bf16.vlgmr.msra.gmra.mrb[4].mxu1 %v12028_v5 }
 0x19a   : > { %7383 = vmatpush1.bf16.msra.mxu0 %v10491_v37  ;;  %7547 = vmatpush1.bf16.msra.mxu1 %v10494_v38  ;;  %v10575_v37 = vld [vmem:[%s11940_s7 + $0x1000] ss:$68 sps:$4 sm:$0xff]   ;;  %v10578_v38 = vld [vmem:[%s11940_s7 + $0x1008] ss:$68 sps:$4 sm:$0xff]  }
 0x19b   : > { %7384 = vmatprep.subr.bf16.mxu0 %v10499_v39  ;;  %7548 = vmatprep.subr.bf16.mxu1 %v10502_v40  ;;  %v10583_v39 = vld [vmem:[%s11940_s7 + $0x108c] ss:$68 sps:$4 sm:$0xff]   ;;  %v10586_v40 = vld [vmem:[%s11940_s7 + $0x1094] ss:$68 sps:$4 sm:$0xff]  }
 0x19c   : > { %7414 = vmatprep.mubr.bf16.mxu0 %v12062_v30  ;;  %7578 = vmatprep.mubr.bf16.mxu1 %v12062_v30 }
 0x19e   : > { %7385 = vmatpush1.bf16.msra.mxu0 %v10497_v41  ;;  %7549 = vmatpush1.bf16.msra.mxu1 %v10500_v42  ;;  %v10581_v41 = vld [vmem:[%s11940_s7 + $0x1088] ss:$68 sps:$4 sm:$0xff]   ;;  %v10584_v42 = vld [vmem:[%s11940_s7 + $0x1090] ss:$68 sps:$4 sm:$0xff]  }
 0x19f   : > { %7386 = vmatprep.subr.bf16.mxu0 %v10505_v43  ;;  %7550 = vmatprep.subr.bf16.mxu1 %v10508_v44  ;;  %v10589_v43 = vld [vmem:[%s11940_s7 + $0x1114] ss:$68 sps:$4 sm:$0xff]   ;;  %v10592_v44 = vld [vmem:[%s11940_s7 + $0x111c] ss:$68 sps:$4 sm:$0xff]  }
 0x1a2   : > { %7387 = vmatpush1.bf16.msra.mxu0 %v10503_v45  ;;  %7551 = vmatpush1.bf16.msra.mxu1 %v10506_v46  ;;  %v10587_v45 = vld [vmem:[%s11940_s7 + $0x1110] ss:$68 sps:$4 sm:$0xff]   ;;  %v10590_v46 = vld [vmem:[%s11940_s7 + $0x1118] ss:$68 sps:$4 sm:$0xff]  }
 0x1a3   : > { %7388 = vmatprep.subr.bf16.mxu0 %v10511_v47  ;;  %7552 = vmatprep.subr.bf16.mxu1 %v10514_v49  ;;  %v10595_v47 = vld [vmem:[%s11940_s7 + $0x119c] ss:$68 sps:$4 sm:$0xff]   ;;  %v10598_v49 = vld [vmem:[%s11940_s7 + $0x11a4] ss:$68 sps:$4 sm:$0xff]  }
 0x1a6   : > { %7389 = vmatpush1.bf16.msra.mxu0 %v10509_v50  ;;  %7553 = vmatpush1.bf16.msra.mxu1 %v10512_v51  ;;  %v10593_v50 = vld [vmem:[%s11940_s7 + $0x1198] ss:$68 sps:$4 sm:$0xff]   ;;  %v10596_v51 = vld [vmem:[%s11940_s7 + $0x11a0] ss:$68 sps:$4 sm:$0xff]  }
 0x1a7   : > { %7390 = vmatprep.subr.bf16.mxu0 %v10517_v52  ;;  %7554 = vmatprep.subr.bf16.mxu1 %v10520_v53  ;;  %v10601_v52 = vld [vmem:[%s11940_s7 + $0x1224] ss:$68 sps:$4 sm:$0xff]   ;;  %v10604_v53 = vld [vmem:[%s11940_s7 + $0x122c] ss:$68 sps:$4 sm:$0xff]  }
 0x1aa   : > { %7391 = vmatpush1.bf16.msra.mxu0 %v10515_v54  ;;  %7555 = vmatpush1.bf16.msra.mxu1 %v10518_v55  ;;  %v10599_v54 = vld [vmem:[%s11940_s7 + $0x1220] ss:$68 sps:$4 sm:$0xff]   ;;  %v10602_v55 = vld [vmem:[%s11940_s7 + $0x1228] ss:$68 sps:$4 sm:$0xff]  }
 0x1ab   : > { %7392 = vmatprep.subr.bf16.mxu0 %v10523_v56  ;;  %7556 = vmatprep.subr.bf16.mxu1 %v10526_v57  ;;  %v10607_v56 = vld [vmem:[%s11940_s7 + $0x12ac] ss:$68 sps:$4 sm:$0xff]   ;;  %v10610_v57 = vld [vmem:[%s11940_s7 + $0x12b4] ss:$68 sps:$4 sm:$0xff]  }
 0x1ae   : > { %7393 = vmatpush1.bf16.msra.mxu0 %v10521_v58  ;;  %7557 = vmatpush1.bf16.msra.mxu1 %v10524_v59  ;;  %v10605_v58 = vld [vmem:[%s11940_s7 + $0x12a8] ss:$68 sps:$4 sm:$0xff]   ;;  %v10608_v59 = vld [vmem:[%s11940_s7 + $0x12b0] ss:$68 sps:$4 sm:$0xff]  }
 0x1af   : > { %7394 = vmatprep.subr.bf16.mxu0 %v10529_v60  ;;  %7558 = vmatprep.subr.bf16.mxu1 %v10532_v61  ;;  %v10613_v60 = vld [vmem:[%s11940_s7 + $0x1334] ss:$68 sps:$4 sm:$0xff]   ;;  %v10616_v61 = vld [vmem:[%s11940_s7 + $0x133c] ss:$68 sps:$4 sm:$0xff]  }
 0x1b2   : > { %7395 = vmatpush1.bf16.msra.mxu0 %v10527_v62  ;;  %7559 = vmatpush1.bf16.msra.mxu1 %v10530_v63  ;;  %v10611_v62 = vld [vmem:[%s11940_s7 + $0x1330] ss:$68 sps:$4 sm:$0xff]   ;;  %v10614_v63 = vld [vmem:[%s11940_s7 + $0x1338] ss:$68 sps:$4 sm:$0xff]  }
 0x1b3   : > { %7396 = vmatprep.subr.bf16.mxu0 %v10535_v0  ;;  %7560 = vmatprep.subr.bf16.mxu1 %v10538_v1  ;;  %v10619_v0 = vld [vmem:[%s11940_s7 + $0x13bc] ss:$68 sps:$4 sm:$0xff]   ;;  %v10622_v1 = vld [vmem:[%s11940_s7 + $0x13c4] ss:$68 sps:$4 sm:$0xff]  }
 0x1b6   : > { %7397 = vmatpush1.bf16.msra.mxu0 %v10533_v2  ;;  %7561 = vmatpush1.bf16.msra.mxu1 %v10536_v3  ;;  %v10617_v2 = vld [vmem:[%s11940_s7 + $0x13b8] ss:$68 sps:$4 sm:$0xff]   ;;  %v10620_v3 = vld [vmem:[%s11940_s7 + $0x13c0] ss:$68 sps:$4 sm:$0xff]  }
 0x1b7   : > { %7398 = vmatprep.subr.bf16.mxu0 %v10541_v4  ;;  %7562 = vmatprep.subr.bf16.mxu1 %v10544_v6  ;;  %v10625_v4 = vld [vmem:[%s11940_s7 + $0x1444] ss:$68 sps:$4 sm:$0xff]   ;;  %v10628_v6 = vld [vmem:[%s11940_s7 + $0x144c] ss:$68 sps:$4 sm:$0xff]  }
 0x1ba   : > { %7399 = vmatpush1.bf16.msra.mxu0 %v10539_v7  ;;  %7563 = vmatpush1.bf16.msra.mxu1 %v10542_v8  ;;  %v10623_v7 = vld [vmem:[%s11940_s7 + $0x1440] ss:$68 sps:$4 sm:$0xff]   ;;  %v10626_v8 = vld [vmem:[%s11940_s7 + $0x1448] ss:$68 sps:$4 sm:$0xff]  }
 0x1bb   : > { %7400 = vmatprep.subr.bf16.mxu0 %v10547_v9  ;;  %7564 = vmatprep.subr.bf16.mxu1 %v10550_v11  ;;  %v10631_v9 = vld [vmem:[%s11940_s7 + $0x14cc] ss:$68 sps:$4 sm:$0xff]   ;;  %v10634_v11 = vld [vmem:[%s11940_s7 + $0x14d4] ss:$68 sps:$4 sm:$0xff]  }
 0x1be   : > { %7401 = vmatpush1.bf16.msra.mxu0 %v10545_v12  ;;  %7565 = vmatpush1.bf16.msra.mxu1 %v10548_v14  ;;  %v10629_v12 = vld [vmem:[%s11940_s7 + $0x14c8] ss:$68 sps:$4 sm:$0xff]   ;;  %v10632_v14 = vld [vmem:[%s11940_s7 + $0x14d0] ss:$68 sps:$4 sm:$0xff]  }
 0x1bf   : > { %7402 = vmatprep.subr.bf16.mxu0 %v10553_v16  ;;  %7566 = vmatprep.subr.bf16.mxu1 %v10556_v17  ;;  %v10637_v16 = vld [vmem:[%s11940_s7 + $0x1554] ss:$68 sps:$4 sm:$0xff]   ;;  %v10640_v17 = vld [vmem:[%s11940_s7 + $0x155c] ss:$68 sps:$4 sm:$0xff]  }
 0x1c2   : > { %7403 = vmatpush1.bf16.msra.mxu0 %v10551_v18  ;;  %7567 = vmatpush1.bf16.msra.mxu1 %v10554_v19  ;;  %v10635_v18 = vld [vmem:[%s11940_s7 + $0x1550] ss:$68 sps:$4 sm:$0xff]   ;;  %v10638_v19 = vld [vmem:[%s11940_s7 + $0x1558] ss:$68 sps:$4 sm:$0xff]  }
 0x1c3   : > { %7404 = vmatprep.subr.bf16.mxu0 %v10559_v22  ;;  %7568 = vmatprep.subr.bf16.mxu1 %v10562_v23  ;;  %v10643_v22 = vld [vmem:[%s11940_s7 + $0x15dc] ss:$68 sps:$4 sm:$0xff]   ;;  %v10646_v23 = vld [vmem:[%s11940_s7 + $0x15e4] ss:$68 sps:$4 sm:$0xff]  }
 0x1c6   : > { %7405 = vmatpush1.bf16.msra.mxu0 %v10557_v13  ;;  %7569 = vmatpush1.bf16.msra.mxu1 %v10560_v25  ;;  %v10641_v13 = vld [vmem:[%s11940_s7 + $0x15d8] ss:$68 sps:$4 sm:$0xff]   ;;  %v10644_v25 = vld [vmem:[%s11940_s7 + $0x15e0] ss:$68 sps:$4 sm:$0xff]  }
 0x1c7   : > { %7406 = vmatprep.subr.bf16.mxu0 %v10565_v26  ;;  %7570 = vmatprep.subr.bf16.mxu1 %v10568_v27  ;;  %v10649_v26 = vld [vmem:[%s11940_s7 + $0x1664] ss:$68 sps:$4 sm:$0xff]   ;;  %v10652_v27 = vld [vmem:[%s11940_s7 + $0x166c] ss:$68 sps:$4 sm:$0xff]  }
 0x1ca   : > { %7407 = vmatpush1.bf16.msra.mxu0 %v10563_v29  ;;  %7571 = vmatpush1.bf16.msra.mxu1 %v10566_v31  ;;  %v10647_v29 = vld [vmem:[%s11940_s7 + $0x1660] ss:$68 sps:$4 sm:$0xff]   ;;  %v10650_v31 = vld [vmem:[%s11940_s7 + $0x1668] ss:$68 sps:$4 sm:$0xff]  }
 0x1cb   : > { %7408 = vmatprep.subr.bf16.mxu0 %v10571_v32  ;;  %7572 = vmatprep.subr.bf16.mxu1 %v10574_v33  ;;  %v10655_v32 = vld [vmem:[%s11940_s7 + $0x16ec] ss:$68 sps:$4 sm:$0xff]   ;;  %v10658_v33 = vld [vmem:[%s11940_s7 + $0x16f4] ss:$68 sps:$4 sm:$0xff]  }
 0x1ce   : > { %7409 = vmatpush1.bf16.msra.mxu0 %v10569_v34  ;;  %7573 = vmatpush1.bf16.msra.mxu1 %v10572_v35  ;;  %v10653_v34 = vld [vmem:[%s11940_s7 + $0x16e8] ss:$68 sps:$4 sm:$0xff]   ;;  %v10656_v35 = vld [vmem:[%s11940_s7 + $0x16f0] ss:$68 sps:$4 sm:$0xff]  }
 0x1cf   : > { %7410 = vmatprep.subr.bf16.mxu0 %v10577_v21  ;;  %7574 = vmatprep.subr.bf16.mxu1 %v10580_v36  ;;  %v10661_v21 = vld [vmem:[%s11940_s7 + $0x1774] ss:$68 sps:$4 sm:$0xff]   ;;  %v10664_v36 = vld [vmem:[%s11940_s7 + $0x177c] ss:$68 sps:$4 sm:$0xff]  }
 0x1d2   : > { %7411 = vmatpush1.bf16.msra.mxu0 %v10575_v37  ;;  %7575 = vmatpush1.bf16.msra.mxu1 %v10578_v38  ;;  %v10659_v37 = vld [vmem:[%s11940_s7 + $0x1770] ss:$68 sps:$4 sm:$0xff]   ;;  %v10662_v38 = vld [vmem:[%s11940_s7 + $0x1778] ss:$68 sps:$4 sm:$0xff]  }
 0x1d3   : > { %7412 = vmatprep.subr.bf16.mxu0 %v10583_v39  ;;  %7576 = vmatprep.subr.bf16.mxu1 %v10586_v40  ;;  %v10667_v39 = vld [vmem:[%s11940_s7 + $0x17fc] ss:$68 sps:$4 sm:$0xff]   ;;  %v10670_v40 = vld [vmem:[%s11940_s7 + $0x1804] ss:$68 sps:$4 sm:$0xff]  }
 0x1d6   : > { %7413 = vmatpush1.bf16.msra.mxu0 %v10581_v41  ;;  %7577 = vmatpush1.bf16.msra.mxu1 %v10584_v42  ;;  %v10665_v41 = vld [vmem:[%s11940_s7 + $0x17f8] ss:$68 sps:$4 sm:$0xff]   ;;  %v10668_v42 = vld [vmem:[%s11940_s7 + $0x1800] ss:$68 sps:$4 sm:$0xff]  }
 0x1d7   : > { %7423 = vmatprep.subr.bf16.mxu0 %v10589_v43  ;;  %7587 = vmatprep.subr.bf16.mxu1 %v10592_v44  ;;  %v10673_v43 = vld [vmem:[%s11940_s7 + $0x1884] ss:$68 sps:$4 sm:$0xff]   ;;  %v10676_v44 = vld [vmem:[%s11940_s7 + $0x188c] ss:$68 sps:$4 sm:$0xff]  }
 0x1d9   : > { %7415 = vmatmul.mubr.bf16.vlgmr.msra.gmra.mrb[4].mxu0 %v12109_v10  ;;  %7579 = vmatmul.mubr.bf16.vlgmr.msra.gmra.mrb[4].mxu1 %v12109_v10 }
 0x1da   : > { %7424 = vmatpush1.bf16.msra.mxu0 %v10587_v45  ;;  %7588 = vmatpush1.bf16.msra.mxu1 %v10590_v46  ;;  %v10671_v45 = vld [vmem:[%s11940_s7 + $0x1880] ss:$68 sps:$4 sm:$0xff]   ;;  %v10674_v46 = vld [vmem:[%s11940_s7 + $0x1888] ss:$68 sps:$4 sm:$0xff]  }
 0x1db   : > { %7425 = vmatprep.subr.bf16.mxu0 %v10595_v47  ;;  %7589 = vmatprep.subr.bf16.mxu1 %v10598_v49  ;;  %v10679_v47 = vld [vmem:[%s11940_s7 + $0x190c] ss:$68 sps:$4 sm:$0xff]   ;;  %v10682_v49 = vld [vmem:[%s11940_s7 + $0x1914] ss:$68 sps:$4 sm:$0xff]  }
 0x1dc   : > { %7455 = vmatprep.mubr.bf16.mxu0 %v12121_v15  ;;  %7619 = vmatprep.mubr.bf16.mxu1 %v12121_v15 }
 0x1de   : > { %7426 = vmatpush1.bf16.msra.mxu0 %v10593_v50  ;;  %7590 = vmatpush1.bf16.msra.mxu1 %v10596_v51  ;;  %v10677_v50 = vld [vmem:[%s11940_s7 + $0x1908] ss:$68 sps:$4 sm:$0xff]   ;;  %v10680_v51 = vld [vmem:[%s11940_s7 + $0x1910] ss:$68 sps:$4 sm:$0xff]  }
 0x1df   : > { %7427 = vmatprep.subr.bf16.mxu0 %v10601_v52  ;;  %7591 = vmatprep.subr.bf16.mxu1 %v10604_v53  ;;  %v10685_v52 = vld [vmem:[%s11940_s7 + $0x1994] ss:$68 sps:$4 sm:$0xff]   ;;  %v10688_v53 = vld [vmem:[%s11940_s7 + $0x199c] ss:$68 sps:$4 sm:$0xff]  }
 0x1e2   : > { %7428 = vmatpush1.bf16.msra.mxu0 %v10599_v54  ;;  %7592 = vmatpush1.bf16.msra.mxu1 %v10602_v55  ;;  %v10683_v54 = vld [vmem:[%s11940_s7 + $0x1990] ss:$68 sps:$4 sm:$0xff]   ;;  %v10686_v55 = vld [vmem:[%s11940_s7 + $0x1998] ss:$68 sps:$4 sm:$0xff]  }
 0x1e3   : > { %7429 = vmatprep.subr.bf16.mxu0 %v10607_v56  ;;  %7593 = vmatprep.subr.bf16.mxu1 %v10610_v57  ;;  %v10691_v56 = vld [vmem:[%s11940_s7 + $0x1a1c] ss:$68 sps:$4 sm:$0xff]   ;;  %v10694_v57 = vld [vmem:[%s11940_s7 + $0x1a24] ss:$68 sps:$4 sm:$0xff]  }
 0x1e6   : > { %7430 = vmatpush1.bf16.msra.mxu0 %v10605_v58  ;;  %7594 = vmatpush1.bf16.msra.mxu1 %v10608_v59  ;;  %v10689_v58 = vld [vmem:[%s11940_s7 + $0x1a18] ss:$68 sps:$4 sm:$0xff]   ;;  %v10692_v59 = vld [vmem:[%s11940_s7 + $0x1a20] ss:$68 sps:$4 sm:$0xff]  }
 0x1e7   : > { %7431 = vmatprep.subr.bf16.mxu0 %v10613_v60  ;;  %7595 = vmatprep.subr.bf16.mxu1 %v10616_v61  ;;  %v10697_v60 = vld [vmem:[%s11940_s7 + $0x1aa4] ss:$68 sps:$4 sm:$0xff]   ;;  %v10700_v61 = vld [vmem:[%s11940_s7 + $0x1aac] ss:$68 sps:$4 sm:$0xff]  }
 0x1ea   : > { %7432 = vmatpush1.bf16.msra.mxu0 %v10611_v62  ;;  %7596 = vmatpush1.bf16.msra.mxu1 %v10614_v63  ;;  %v1396_v62 = vlaneseq  ;;  %v10695_v63 = vld [vmem:[%s11940_s7 + $0x1aa0] ss:$68 sps:$4 sm:$0xff]  }
 0x1eb   : > { %7433 = vmatprep.subr.bf16.mxu0 %v10619_v0  ;;  %7597 = vmatprep.subr.bf16.mxu1 %v10622_v1  ;;  %v10698_v0 = vld [vmem:[%s11940_s7 + $0x1aa8] ss:$68 sps:$4 sm:$0xff]  }
 0x1ec   : > { %v10703_v1 = vld [vmem:[%s11940_s7 + $0x1b2c] ss:$68 sps:$4 sm:$0xff]  }
 0x1ee   : > { %7434 = vmatpush1.bf16.msra.mxu0 %v10617_v2  ;;  %7598 = vmatpush1.bf16.msra.mxu1 %v10620_v3  ;;  %v10706_v2 = vld [vmem:[%s11940_s7 + $0x1b34] ss:$68 sps:$4 sm:$0xff]   ;;  %v12492_v3 = vshrl.u32 %v1396_v62, 7  ;;  %v10745_v62 = vld [vmem:[%s11940_s7 + $0x1ee4] ss:$68 sps:$4 sm:$0xff]  }
 0x1ef   : > { %7435 = vmatprep.subr.bf16.mxu0 %v10625_v4  ;;  %7599 = vmatprep.subr.bf16.mxu1 %v10628_v6  ;;  %v10701_v4 = vld [vmem:[%s11940_s7 + $0x1b28] ss:$68 sps:$4 sm:$0xff]   ;;  %v10704_v6 = vld [vmem:[%s11940_s7 + $0x1b30] ss:$68 sps:$4 sm:$0xff]  }
 0x1f2   : > { %7436 = vmatpush1.bf16.msra.mxu0 %v10623_v7  ;;  %7600 = vmatpush1.bf16.msra.mxu1 %v10626_v8  ;;  %v10709_v7 = vld [vmem:[%s11940_s7 + $0x1bb4] ss:$68 sps:$4 sm:$0xff]   ;;  %v10712_v8 = vld [vmem:[%s11940_s7 + $0x1bbc] ss:$68 sps:$4 sm:$0xff]  }
 0x1f3   : > { %7437 = vmatprep.subr.bf16.mxu0 %v10631_v9  ;;  %7601 = vmatprep.subr.bf16.mxu1 %v10634_v11  ;;  %v10707_v9 = vld [vmem:[%s11940_s7 + $0x1bb0] ss:$68 sps:$4 sm:$0xff]   ;;  %v1398_v11 = vsub.s32 0, %v12492_v3 }
 0x1f6   : > { %7438 = vmatpush1.bf16.msra.mxu0 %v10629_v12  ;;  %7602 = vmatpush1.bf16.msra.mxu1 %v10632_v14  ;;  %v1406_v12 = vsub.s32 2, %v12492_v3  ;;  %v10710_v14 = vld [vmem:[%s11940_s7 + $0x1bb8] ss:$68 sps:$4 sm:$0xff]  }
 0x1f7   : > { %7439 = vmatprep.subr.bf16.mxu0 %v10637_v16  ;;  %7603 = vmatprep.subr.bf16.mxu1 %v10640_v17  ;;  %v1390_v16 = vld [vmem:[%s11948_s19] sm:$0xff]  ;;  %v1402_v17 = vsub.s32 1, %v12492_v3 }
 0x1fa   : > { %7440 = vmatpush1.bf16.msra.mxu0 %v10635_v18  ;;  %7604 = vmatpush1.bf16.msra.mxu1 %v10638_v19  ;;  %v1410_v18 = vsub.s32 3, %v12492_v3  ;;  %v10715_v19 = vld [vmem:[%s11940_s7 + $0x1c3c] ss:$68 sps:$4 sm:$0xff]  }
 0x1fb   : > { %7441 = vmatprep.subr.bf16.mxu0 %v10643_v22  ;;  %7605 = vmatprep.subr.bf16.mxu1 %v10646_v23  ;;  %v10718_v22 = vld [vmem:[%s11940_s7 + $0x1c44] ss:$68 sps:$4 sm:$0xff]   ;;  %v1399_v23 = vrot.slane %v1390_v16, %v1398_v11 }
 0x1fe   : > { %7442 = vmatpush1.bf16.msra.mxu0 %v10641_v13  ;;  %7606 = vmatpush1.bf16.msra.mxu1 %v10644_v25  ;;  %v1407_v13 = vrot.slane %v1390_v16, %v1406_v12  ;;  %v1403_v25 = vrot.slane %v1390_v16, %v1402_v17 }
 0x1ff   : > { %7443 = vmatprep.subr.bf16.mxu0 %v10649_v26  ;;  %7607 = vmatprep.subr.bf16.mxu1 %v10652_v27  ;;  %v1411_v26 = vrot.slane %v1390_v16, %v1410_v18  ;;  %v10713_v27 = vld [vmem:[%s11940_s7 + $0x1c38] ss:$68 sps:$4 sm:$0xff]   ;;  %v10755_v16 = vld [vmem:[%s11940_s7 + $0x1ff0] ss:$68 sps:$4 sm:$0xff]  }
 0x202   : > { %7444 = vmatpush1.bf16.msra.mxu0 %v10647_v29  ;;  %7608 = vmatpush1.bf16.msra.mxu1 %v10650_v31  ;;  %v10716_v29 = vld [vmem:[%s11940_s7 + $0x1c40] ss:$68 sps:$4 sm:$0xff]  }
 0x203   : > { %7445 = vmatprep.subr.bf16.mxu0 %v10655_v32  ;;  %7609 = vmatprep.subr.bf16.mxu1 %v10658_v33  ;;  %v10721_v31 = vld [vmem:[%s11940_s7 + $0x1cc4] ss:$68 sps:$4 sm:$0xff]   ;;  %v10724_v32 = vld [vmem:[%s11940_s7 + $0x1ccc] ss:$68 sps:$4 sm:$0xff]  }
 0x206   : > { %7446 = vmatpush1.bf16.msra.mxu0 %v10653_v34  ;;  %7610 = vmatpush1.bf16.msra.mxu1 %v10656_v35 }
 0x207   : > { %7447 = vmatprep.subr.bf16.mxu0 %v10661_v21  ;;  %7611 = vmatprep.subr.bf16.mxu1 %v10664_v36 }
 0x20a   : > { %7448 = vmatpush1.bf16.msra.mxu0 %v10659_v37  ;;  %7612 = vmatpush1.bf16.msra.mxu1 %v10662_v38 }
 0x20b   : > { %7449 = vmatprep.subr.bf16.mxu0 %v10667_v39  ;;  %7613 = vmatprep.subr.bf16.mxu1 %v10670_v40 }
 0x20e   : > { %7450 = vmatpush1.bf16.msra.mxu0 %v10665_v41  ;;  %7614 = vmatpush1.bf16.msra.mxu1 %v10668_v42  ;;  %v10719_v42 = vld [vmem:[%s11940_s7 + $0x1cc0] ss:$68 sps:$4 sm:$0xff]  }
 0x20f   : > { %7451 = vmatprep.subr.bf16.mxu0 %v10673_v43  ;;  %7615 = vmatprep.subr.bf16.mxu1 %v10676_v44  ;;  %v10722_v43 = vld [vmem:[%s11940_s7 + $0x1cc8] ss:$68 sps:$4 sm:$0xff]  }
 0x212   : > { %7452 = vmatpush1.bf16.msra.mxu0 %v10671_v45  ;;  %7616 = vmatpush1.bf16.msra.mxu1 %v10674_v46  ;;  %v10727_v46 = vld [vmem:[%s11940_s7 + $0x1d4c] ss:$68 sps:$4 sm:$0xff]  }
 0x213   : > { %7453 = vmatprep.subr.bf16.mxu0 %v10679_v47  ;;  %7617 = vmatprep.subr.bf16.mxu1 %v10682_v49  ;;  %v10730_v47 = vld [vmem:[%s11940_s7 + $0x1d54] ss:$68 sps:$4 sm:$0xff]   ;;  %v10725_v49 = vld [vmem:[%s11940_s7 + $0x1d48] ss:$68 sps:$4 sm:$0xff]  }
 0x216   : > { %7454 = vmatpush1.bf16.msra.mxu0 %v10677_v50  ;;  %7618 = vmatpush1.bf16.msra.mxu1 %v10680_v51  ;;  %v10728_v50 = vld [vmem:[%s11940_s7 + $0x1d50] ss:$68 sps:$4 sm:$0xff]  }
 0x217   : > { %7464 = vmatprep.subr.bf16.mxu0 %v10685_v52  ;;  %7628 = vmatprep.subr.bf16.mxu1 %v10688_v53  ;;  %v10733_v51 = vld [vmem:[%s11940_s7 + $0x1dd4] ss:$68 sps:$4 sm:$0xff]   ;;  %v10736_v52 = vld [vmem:[%s11940_s7 + $0x1ddc] ss:$68 sps:$4 sm:$0xff]  }
 0x218   : > { %v10731_v53 = vld [vmem:[%s11940_s7 + $0x1dd0] ss:$68 sps:$4 sm:$0xff]  }
 0x219   : > { %7456 = vmatmul.mubr.bf16.vlgmr.msra.gmra.mrb[4].mxu0 %v12191_v20  ;;  %7620 = vmatmul.mubr.bf16.vlgmr.msra.gmra.mrb[4].mxu1 %v12191_v20 }
 0x21a   : > { %7465 = vmatpush1.bf16.msra.mxu0 %v10683_v54  ;;  %7629 = vmatpush1.bf16.msra.mxu1 %v10686_v55  ;;  %v10734_v54 = vld [vmem:[%s11940_s7 + $0x1dd8] ss:$68 sps:$4 sm:$0xff]  }
 0x21b   : > { %7466 = vmatprep.subr.bf16.mxu0 %v10691_v56  ;;  %7630 = vmatprep.subr.bf16.mxu1 %v10694_v57  ;;  %v10739_v55 = vld [vmem:[%s11940_s7 + $0x1e5c] ss:$68 sps:$4 sm:$0xff]   ;;  %v10742_v56 = vld [vmem:[%s11940_s7 + $0x1e64] ss:$68 sps:$4 sm:$0xff]  }
 0x21c   : > { %7496 = vmatprep.mubr.bf16.mxu0 %v12202_v24  ;;  %7660 = vmatprep.mubr.bf16.mxu1 %v12202_v24 }
 0x21e   : > { %7467 = vmatpush1.bf16.msra.mxu0 %v10689_v58  ;;  %7631 = vmatpush1.bf16.msra.mxu1 %v10692_v59  ;;  %v10737_v59 = vld [vmem:[%s11940_s7 + $0x1e58] ss:$68 sps:$4 sm:$0xff]  }
 0x21f   : > { %7468 = vmatprep.subr.bf16.mxu0 %v10697_v60  ;;  %7632 = vmatprep.subr.bf16.mxu1 %v10700_v61  ;;  %v10740_v60 = vld [vmem:[%s11940_s7 + $0x1e60] ss:$68 sps:$4 sm:$0xff]  }
 0x222   : > { %7469 = vmatpush1.bf16.msra.mxu0 %v10695_v63  ;;  %7633 = vmatpush1.bf16.msra.mxu1 %v10698_v0  ;;  %v10748_v63 = vld [vmem:[%s11940_s7 + $0x1eec] ss:$68 sps:$4 sm:$0xff]  }
 0x223   : > { %7470 = vmatprep.subr.bf16.mxu0 %v10703_v1  ;;  %7634 = vmatprep.subr.bf16.mxu1 %v10706_v2  ;;  %v10743_v1 = vld [vmem:[%s11940_s7 + $0x1ee0] ss:$68 sps:$4 sm:$0xff]   ;;  %v10746_v2 = vld [vmem:[%s11940_s7 + $0x1ee8] ss:$68 sps:$4 sm:$0xff]  }
 0x226   : > { %7471 = vmatpush1.bf16.msra.mxu0 %v10701_v4  ;;  %7635 = vmatpush1.bf16.msra.mxu1 %v10704_v6  ;;  %v10751_v4 = vld [vmem:[%s11940_s7 + $0x1f6c] ss:$68 sps:$4 sm:$0xff]   ;;  %v10754_v6 = vld [vmem:[%s11940_s7 + $0x1f74] ss:$68 sps:$4 sm:$0xff]  }
 0x227   : > { %7472 = vmatprep.subr.bf16.mxu0 %v10709_v7  ;;  %7636 = vmatprep.subr.bf16.mxu1 %v10712_v8  ;;  %v10749_v7 = vld [vmem:[%s11940_s7 + $0x1f68] ss:$68 sps:$4 sm:$0xff]   ;;  %v10752_v8 = vld [vmem:[%s11940_s7 + $0x1f70] ss:$68 sps:$4 sm:$0xff]  }
 0x22a   : > { %7473 = vmatpush1.bf16.msra.mxu0 %v10707_v9  ;;  %7637 = vmatpush1.bf16.msra.mxu1 %v10710_v14  ;;  %v10757_v9 = vld [vmem:[%s11940_s7 + $0x1ff4] ss:$68 sps:$4 sm:$0xff]   ;;  %v10760_v14 = vld [vmem:[%s11940_s7 + $0x1ffc] ss:$68 sps:$4 sm:$0xff]  }
 0x22b   : > { %7474 = vmatprep.subr.bf16.mxu0 %v10715_v19  ;;  %7638 = vmatprep.subr.bf16.mxu1 %v10718_v22  ;;  %v10758_v19 = vld [vmem:[%s11940_s7 + $0x1ff8] ss:$68 sps:$4 sm:$0xff]  }
 0x22c   : > { %v7170_v33 = vpop.f32.mrb[0].mxu0  ;;  %v7334_v34 = vpop.f32.mrb[0].mxu1  ;;  %v10763_v22 = vld [vmem:[%s11940_s7 + $0x207c] ss:$68 sps:$4 sm:$0xff]  }
 0x22d   : > { %v9833_v35 = vadd.f32 %v7170_v33, %v1399_v23  ;;  %v9835_v21 = vadd.f32 %v7334_v34, %v1407_v13  ;;  %v7172_v36 = vpop.f32.mrb[1].mxu0  ;;  %v7336_v37 = vpop.f32.mrb[1].mxu1  ;;  %v10766_v23 = vld [vmem:[%s11940_s7 + $0x2084] ss:$68 sps:$4 sm:$0xff]   ;;  %v10761_v13 = vld [vmem:[%s11940_s7 + $0x2078] ss:$68 sps:$4 sm:$0xff]  }
 0x22e   : > { %v9834_v38 = vadd.f32 %v7172_v36, %v1403_v25  ;;  %v9836_v39 = vadd.f32 %v7336_v37, %v1411_v26  ;;  %v7174_v40 = vpop.f32.mrb[2].mxu0  ;;  %v7338_v41 = vpop.f32.mrb[2].mxu1  ;;  %7475 = vmatpush1.bf16.msra.mxu0 %v10713_v27  ;;  %7639 = vmatpush1.bf16.msra.mxu1 %v10716_v29  ;;  %v10764_v25 = vld [vmem:[%s11940_s7 + $0x2080] ss:$68 sps:$4 sm:$0xff]   ;;  %v10772_v27 = vld [vmem:[%s11940_s7 + $0x210c] ss:$68 sps:$4 sm:$0xff]  }
 0x22f   : > { %11611 = vtanh.f32 %v9833_v35  ;;  %v7175_v44 = vpop.f32.mrb[3].mxu0  ;;  %v7339_v45 = vpop.f32.mrb[3].mxu1  ;;  %7476 = vmatprep.subr.bf16.mxu0 %v10721_v31  ;;  %7640 = vmatprep.subr.bf16.mxu1 %v10724_v32  ;;  %v10769_v26 = vld [vmem:[%s11940_s7 + $0x2104] ss:$68 sps:$4 sm:$0xff]   ;;  %v10775_v32 = vld [vmem:[%s11940_s7 + $0x218c] ss:$68 sps:$4 sm:$0xff]  }
 0x230   : > { %11613 = vtanh.f32 %v9835_v21  ;;  %v10767_v29 = vld [vmem:[%s11940_s7 + $0x2100] ss:$68 sps:$4 sm:$0xff]   ;;  %v10770_v31 = vld [vmem:[%s11940_s7 + $0x2108] ss:$68 sps:$4 sm:$0xff]   ;;  %v10778_v33 = vld [vmem:[%s11940_s7 + $0x2194] ss:$68 sps:$4 sm:$0xff]  }
 0x231   : > { %11615 = vtanh.f32 %v9834_v38  ;;  %v10773_v34 = vld [vmem:[%s11940_s7 + $0x2188] ss:$68 sps:$4 sm:$0xff]   ;;  %v10776_v35 = vld [vmem:[%s11940_s7 + $0x2190] ss:$68 sps:$4 sm:$0xff]   ;;  %v10779_v37 = vld [vmem:[%s11940_s7 + $0x20] ss:$68 sps:$4 sm:$0xff]  }
 0x232   : > { %11617 = vtanh.f32 %v9836_v39  ;;  %7477 = vmatpush1.bf16.msra.mxu0 %v10719_v42  ;;  %7641 = vmatpush1.bf16.msra.mxu1 %v10722_v43  ;;  %v10781_v21 = vld [vmem:[%s11940_s7 + $0x24] ss:$68 sps:$4 sm:$0xff]   ;;  %v10784_v36 = vld [vmem:[%s11940_s7 + $0x2c] ss:$68 sps:$4 sm:$0xff]   ;;  %v10790_v40 = vld [vmem:[%s11940_s7 + $0xb4] ss:$68 sps:$4 sm:$0xff]  }
 0x233   : > { %7478 = vmatprep.subr.bf16.mxu0 %v10727_v46  ;;  %7642 = vmatprep.subr.bf16.mxu1 %v10730_v47  ;;  %v10782_v38 = vld [vmem:[%s11940_s7 + $0x28] ss:$68 sps:$4 sm:$0xff]   ;;  %v10788_v42 = vld [vmem:[%s11940_s7 + $0xb0] ss:$68 sps:$4 sm:$0xff]   ;;  %v10796_v44 = vld [vmem:[%s11940_s7 + $0x13c] ss:$68 sps:$4 sm:$0xff]  }
 0x234   : > { %v10787_v39 = vld [vmem:[%s11940_s7 + $0xac] ss:$68 sps:$4 sm:$0xff]   ;;  %v10793_v43 = vld [vmem:[%s11940_s7 + $0x134] ss:$68 sps:$4 sm:$0xff]   ;;  %v10799_v47 = vld [vmem:[%s11940_s7 + $0x1bc] ss:$68 sps:$4 sm:$0xff]  }
 0x235   : > { %v10785_v41 = vld [vmem:[%s11940_s7 + $0xa8] ss:$68 sps:$4 sm:$0xff]   ;;  %v10791_v45 = vld [vmem:[%s11940_s7 + $0x130] ss:$68 sps:$4 sm:$0xff]   ;;  %v10794_v46 = vld [vmem:[%s11940_s7 + $0x138] ss:$68 sps:$4 sm:$0xff]  }
 0x236   : > { %7479 = vmatpush1.bf16.msra.mxu0 %v10725_v49  ;;  %7643 = vmatpush1.bf16.msra.mxu1 %v10728_v50  ;;  %v10802_v49 = vld [vmem:[%s11940_s7 + $0x1c4] ss:$68 sps:$4 sm:$0xff]   ;;  %v10797_v50 = vld [vmem:[%s11940_s7 + $0x1b8] ss:$68 sps:$4 sm:$0xff]  }
 0x237   : > { %7480 = vmatprep.subr.bf16.mxu0 %v10733_v51  ;;  %7644 = vmatprep.subr.bf16.mxu1 %v10736_v52  ;;  %v10800_v51 = vld [vmem:[%s11940_s7 + $0x1c0] ss:$68 sps:$4 sm:$0xff]  }
 0x238   : > { %v10805_v52 = vld [vmem:[%s11940_s7 + $0x244] ss:$68 sps:$4 sm:$0xff]  }
 0x239   : > { %v11612_v57 = vpop.eup %11611 }
 0x23a   : > { %v11614_v58 = vpop.eup %11613  ;;  %8502 = vst [vmem:[%s12532_s10] sm:$0xff] %v11612_v57  ;;  %7481 = vmatpush1.bf16.msra.mxu0 %v10731_v53  ;;  %7645 = vmatpush1.bf16.msra.mxu1 %v10734_v54  ;;  %v10808_v53 = vld [vmem:[%s11940_s7 + $0x24c] ss:$68 sps:$4 sm:$0xff]   ;;  %v10803_v54 = vld [vmem:[%s11940_s7 + $0x240] ss:$68 sps:$4 sm:$0xff]   ;;  %v10814_v57 = vld [vmem:[%s11940_s7 + $0x2d4] ss:$68 sps:$4 sm:$0xff]  }
 0x23b   : > { %v11616_v61 = vpop.eup %11615  ;;  %8504 = vst [vmem:[%s12532_s10 + $0x10] sm:$0xff] %v11614_v58  ;;  %7482 = vmatprep.subr.bf16.mxu0 %v10739_v55  ;;  %7646 = vmatprep.subr.bf16.mxu1 %v10742_v56  ;;  %v10806_v55 = vld [vmem:[%s11940_s7 + $0x248] ss:$68 sps:$4 sm:$0xff]  }
 0x23c   : > { %v11618_v0 = vpop.eup %11617  ;;  %8503 = vst [vmem:[%s12532_s10 + $0x8] sm:$0xff] %v11616_v61  ;;  %v10811_v56 = vld [vmem:[%s11940_s7 + $0x2cc] ss:$68 sps:$4 sm:$0xff]   ;;  %v10820_v61 = vld [vmem:[%s11940_s7 + $0x35c] ss:$68 sps:$4 sm:$0xff]  }
 0x23d   : > { %8505 = vst [vmem:[%s12532_s10 + $0x18] sm:$0xff] %v11618_v0  ;;  %v10809_v58 = vld [vmem:[%s11940_s7 + $0x2c8] ss:$68 sps:$4 sm:$0xff]   ;;  %v10823_v0 = vld [vmem:[%s11940_s7 + $0x3dc] ss:$68 sps:$4 sm:$0xff]  }
 0x23e   : > { %7483 = vmatpush1.bf16.msra.mxu0 %v10737_v59  ;;  %7647 = vmatpush1.bf16.msra.mxu1 %v10740_v60  ;;  %v10812_v59 = vld [vmem:[%s11940_s7 + $0x2d0] ss:$68 sps:$4 sm:$0xff]  }
 0x23f   : > { %7484 = vmatprep.subr.bf16.mxu0 %v10745_v62  ;;  %7648 = vmatprep.subr.bf16.mxu1 %v10748_v63  ;;  %v10817_v60 = vld [vmem:[%s11940_s7 + $0x354] ss:$68 sps:$4 sm:$0xff]  }
 0x240   : > { %v10815_v62 = vld [vmem:[%s11940_s7 + $0x350] ss:$68 sps:$4 sm:$0xff]   ;;  %v10818_v63 = vld [vmem:[%s11940_s7 + $0x358] ss:$68 sps:$4 sm:$0xff]  }
 0x242   : > { %7485 = vmatpush1.bf16.msra.mxu0 %v10743_v1  ;;  %7649 = vmatpush1.bf16.msra.mxu1 %v10746_v2  ;;  %v10826_v1 = vld [vmem:[%s11940_s7 + $0x3e4] ss:$68 sps:$4 sm:$0xff]   ;;  %v10821_v2 = vld [vmem:[%s11940_s7 + $0x3d8] ss:$68 sps:$4 sm:$0xff]  }
 0x243   : > { %7486 = vmatprep.subr.bf16.mxu0 %v10751_v4  ;;  %7650 = vmatprep.subr.bf16.mxu1 %v10754_v6  ;;  %v10824_v4 = vld [vmem:[%s11940_s7 + $0x3e0] ss:$68 sps:$4 sm:$0xff]  }
 0x244   : > { %v10829_v6 = vld [vmem:[%s11940_s7 + $0x464] ss:$68 sps:$4 sm:$0xff]  }
 0x246   : > { %7487 = vmatpush1.bf16.msra.mxu0 %v10749_v7  ;;  %7651 = vmatpush1.bf16.msra.mxu1 %v10752_v8  ;;  %v10832_v7 = vld [vmem:[%s11940_s7 + $0x46c] ss:$68 sps:$4 sm:$0xff]   ;;  %v10827_v8 = vld [vmem:[%s11940_s7 + $0x460] ss:$68 sps:$4 sm:$0xff]  }
 0x247   : > { %7488 = vmatprep.subr.bf16.mxu0 %v10757_v9  ;;  %7652 = vmatprep.subr.bf16.mxu1 %v10760_v14  ;;  %v10830_v9 = vld [vmem:[%s11940_s7 + $0x468] ss:$68 sps:$4 sm:$0xff]  }
 0x248   : > { %v10835_v14 = vld [vmem:[%s11940_s7 + $0x4ec] ss:$68 sps:$4 sm:$0xff]  }
 0x24a   : > { %7489 = vmatpush1.bf16.msra.mxu0 %v10755_v16  ;;  %7653 = vmatpush1.bf16.msra.mxu1 %v10758_v19  ;;  %v10838_v16 = vld [vmem:[%s11940_s7 + $0x4f4] ss:$68 sps:$4 sm:$0xff]   ;;  %v10833_v19 = vld [vmem:[%s11940_s7 + $0x4e8] ss:$68 sps:$4 sm:$0xff]  }
 0x24b   : > { %7490 = vmatprep.subr.bf16.mxu0 %v10763_v22  ;;  %7654 = vmatprep.subr.bf16.mxu1 %v10766_v23  ;;  %v10836_v22 = vld [vmem:[%s11940_s7 + $0x4f0] ss:$68 sps:$4 sm:$0xff]  }
 0x24c   : > { %v10841_v23 = vld [vmem:[%s11940_s7 + $0x574] ss:$68 sps:$4 sm:$0xff]  }
 0x24e   : > { %7491 = vmatpush1.bf16.msra.mxu0 %v10761_v13  ;;  %7655 = vmatpush1.bf16.msra.mxu1 %v10764_v25  ;;  %v10844_v13 = vld [vmem:[%s11940_s7 + $0x57c] ss:$68 sps:$4 sm:$0xff]   ;;  %v10839_v25 = vld [vmem:[%s11940_s7 + $0x570] ss:$68 sps:$4 sm:$0xff]  }
 0x24f   : > { %7492 = vmatprep.subr.bf16.mxu0 %v10769_v26  ;;  %7656 = vmatprep.subr.bf16.mxu1 %v10772_v27  ;;  %v10842_v26 = vld [vmem:[%s11940_s7 + $0x578] ss:$68 sps:$4 sm:$0xff]  }
 0x250   : > { %v10847_v27 = vld [vmem:[%s11940_s7 + $0x5fc] ss:$68 sps:$4 sm:$0xff]  }
 0x252   : > { %7493 = vmatpush1.bf16.msra.mxu0 %v10767_v29  ;;  %7657 = vmatpush1.bf16.msra.mxu1 %v10770_v31  ;;  %v10850_v29 = vld [vmem:[%s11940_s7 + $0x604] ss:$68 sps:$4 sm:$0xff]   ;;  %v10845_v31 = vld [vmem:[%s11940_s7 + $0x5f8] ss:$68 sps:$4 sm:$0xff]  }
 0x253   : > { %7494 = vmatprep.subr.bf16.mxu0 %v10775_v32  ;;  %7658 = vmatprep.subr.bf16.mxu1 %v10778_v33  ;;  %v10848_v32 = vld [vmem:[%s11940_s7 + $0x600] ss:$68 sps:$4 sm:$0xff]  }
 0x254   : > { %v10853_v33 = vld [vmem:[%s11940_s7 + $0x684] ss:$68 sps:$4 sm:$0xff]  }
 0x256   : > { %7495 = vmatpush1.bf16.msra.mxu0 %v10773_v34  ;;  %7659 = vmatpush1.bf16.msra.mxu1 %v10776_v35  ;;  %v10856_v34 = vld [vmem:[%s11940_s7 + $0x68c] ss:$68 sps:$4 sm:$0xff]   ;;  %v10851_v35 = vld [vmem:[%s11940_s7 + $0x680] ss:$68 sps:$4 sm:$0xff]  }
 0x257   : > { %7669 = vmatprep.subr.bf16.mxu0 %v10781_v21  ;;  %7833 = vmatprep.subr.bf16.mxu1 %v10784_v36  ;;  %v10854_v21 = vld [vmem:[%s11940_s7 + $0x688] ss:$68 sps:$4 sm:$0xff]  }
 0x258   : > { %v10859_v36 = vld [vmem:[%s11940_s7 + $0x70c] ss:$68 sps:$4 sm:$0xff]  }
 0x259   : > { %7497 = vmatmul.mubr.bf16.vlgmr.msra.gmra.mrb[4].mxu0 %v12270_v28  ;;  %7661 = vmatmul.mubr.bf16.vlgmr.msra.gmra.mrb[4].mxu1 %v12270_v28 }
 0x25a   : > { %7670 = vmatpush1.bf16.msra.mxu0 %v10779_v37  ;;  %7834 = vmatpush1.bf16.msra.mxu1 %v10782_v38  ;;  %v10862_v37 = vld [vmem:[%s11940_s7 + $0x714] ss:$68 sps:$4 sm:$0xff]   ;;  %v10857_v38 = vld [vmem:[%s11940_s7 + $0x708] ss:$68 sps:$4 sm:$0xff]  }
 0x25b   : > { %7671 = vmatprep.subr.bf16.mxu0 %v10787_v39  ;;  %7835 = vmatprep.subr.bf16.mxu1 %v10790_v40  ;;  %v10860_v39 = vld [vmem:[%s11940_s7 + $0x710] ss:$68 sps:$4 sm:$0xff]  }
 0x25c   : > { %7701 = vmatprep.mubr.bf16.mxu0 %v12004_v48  ;;  %7865 = vmatprep.mubr.bf16.mxu1 %v12004_v48  ;;  %v10865_v40 = vld [vmem:[%s11940_s7 + $0x794] ss:$68 sps:$4 sm:$0xff]  }
 0x25e   : > { %7672 = vmatpush1.bf16.msra.mxu0 %v10785_v41  ;;  %7836 = vmatpush1.bf16.msra.mxu1 %v10788_v42  ;;  %v10868_v41 = vld [vmem:[%s11940_s7 + $0x79c] ss:$68 sps:$4 sm:$0xff]   ;;  %v10863_v42 = vld [vmem:[%s11940_s7 + $0x790] ss:$68 sps:$4 sm:$0xff]  }
 0x25f   : > { %7673 = vmatprep.subr.bf16.mxu0 %v10793_v43  ;;  %7837 = vmatprep.subr.bf16.mxu1 %v10796_v44  ;;  %v10866_v43 = vld [vmem:[%s11940_s7 + $0x798] ss:$68 sps:$4 sm:$0xff]  }
 0x260   : > { %v10871_v44 = vld [vmem:[%s11940_s7 + $0x81c] ss:$68 sps:$4 sm:$0xff]  }
 0x262   : > { %7674 = vmatpush1.bf16.msra.mxu0 %v10791_v45  ;;  %7838 = vmatpush1.bf16.msra.mxu1 %v10794_v46  ;;  %v10874_v45 = vld [vmem:[%s11940_s7 + $0x824] ss:$68 sps:$4 sm:$0xff]   ;;  %v10869_v46 = vld [vmem:[%s11940_s7 + $0x818] ss:$68 sps:$4 sm:$0xff]  }
 0x263   : > { %7675 = vmatprep.subr.bf16.mxu0 %v10799_v47  ;;  %7839 = vmatprep.subr.bf16.mxu1 %v10802_v49  ;;  %v10872_v47 = vld [vmem:[%s11940_s7 + $0x820] ss:$68 sps:$4 sm:$0xff]  }
 0x264   : > { %v10877_v49 = vld [vmem:[%s11940_s7 + $0x8a4] ss:$68 sps:$4 sm:$0xff]  }
 0x266   : > { %7676 = vmatpush1.bf16.msra.mxu0 %v10797_v50  ;;  %7840 = vmatpush1.bf16.msra.mxu1 %v10800_v51  ;;  %v10880_v50 = vld [vmem:[%s11940_s7 + $0x8ac] ss:$68 sps:$4 sm:$0xff]   ;;  %v10875_v51 = vld [vmem:[%s11940_s7 + $0x8a0] ss:$68 sps:$4 sm:$0xff]  }
 0x267   : > { %7677 = vmatprep.subr.bf16.mxu0 %v10805_v52  ;;  %7841 = vmatprep.subr.bf16.mxu1 %v10808_v53  ;;  %v10878_v52 = vld [vmem:[%s11940_s7 + $0x8a8] ss:$68 sps:$4 sm:$0xff]  }
 0x268   : > { %v10883_v53 = vld [vmem:[%s11940_s7 + $0x92c] ss:$68 sps:$4 sm:$0xff]  }
 0x26a   : > { %7678 = vmatpush1.bf16.msra.mxu0 %v10803_v54  ;;  %7842 = vmatpush1.bf16.msra.mxu1 %v10806_v55  ;;  %v10886_v54 = vld [vmem:[%s11940_s7 + $0x934] ss:$68 sps:$4 sm:$0xff]   ;;  %v10881_v55 = vld [vmem:[%s11940_s7 + $0x928] ss:$68 sps:$4 sm:$0xff]  }
 0x26b   : > { %7679 = vmatprep.subr.bf16.mxu0 %v10811_v56  ;;  %7843 = vmatprep.subr.bf16.mxu1 %v10814_v57  ;;  %v10884_v56 = vld [vmem:[%s11940_s7 + $0x930] ss:$68 sps:$4 sm:$0xff]  }
 0x26c   : > { %v10889_v57 = vld [vmem:[%s11940_s7 + $0x9b4] ss:$68 sps:$4 sm:$0xff]  }
 0x26e   : > { %7680 = vmatpush1.bf16.msra.mxu0 %v10809_v58  ;;  %7844 = vmatpush1.bf16.msra.mxu1 %v10812_v59  ;;  %v10892_v58 = vld [vmem:[%s11940_s7 + $0x9bc] ss:$68 sps:$4 sm:$0xff]   ;;  %v10887_v59 = vld [vmem:[%s11940_s7 + $0x9b0] ss:$68 sps:$4 sm:$0xff]  }
 0x26f   : > { %7681 = vmatprep.subr.bf16.mxu0 %v10817_v60  ;;  %7845 = vmatprep.subr.bf16.mxu1 %v10820_v61  ;;  %v10890_v60 = vld [vmem:[%s11940_s7 + $0x9b8] ss:$68 sps:$4 sm:$0xff]  }
 0x270   : > { %v10895_v61 = vld [vmem:[%s11940_s7 + $0xa3c] ss:$68 sps:$4 sm:$0xff]  }
 0x272   : > { %7682 = vmatpush1.bf16.msra.mxu0 %v10815_v62  ;;  %7846 = vmatpush1.bf16.msra.mxu1 %v10818_v63  ;;  %v10898_v62 = vld [vmem:[%s11940_s7 + $0xa44] ss:$68 sps:$4 sm:$0xff]   ;;  %v10893_v63 = vld [vmem:[%s11940_s7 + $0xa38] ss:$68 sps:$4 sm:$0xff]  }
 0x273   : > { %7683 = vmatprep.subr.bf16.mxu0 %v10823_v0  ;;  %7847 = vmatprep.subr.bf16.mxu1 %v10826_v1  ;;  %v10896_v0 = vld [vmem:[%s11940_s7 + $0xa40] ss:$68 sps:$4 sm:$0xff]  }
 0x274   : > { %v10901_v1 = vld [vmem:[%s11940_s7 + $0xac4] ss:$68 sps:$4 sm:$0xff]  }
 0x276   : > { %7684 = vmatpush1.bf16.msra.mxu0 %v10821_v2  ;;  %7848 = vmatpush1.bf16.msra.mxu1 %v10824_v4  ;;  %v10904_v2 = vld [vmem:[%s11940_s7 + $0xacc] ss:$68 sps:$4 sm:$0xff]   ;;  %v10899_v4 = vld [vmem:[%s11940_s7 + $0xac0] ss:$68 sps:$4 sm:$0xff]  }
 0x277   : > { %7685 = vmatprep.subr.bf16.mxu0 %v10829_v6  ;;  %7849 = vmatprep.subr.bf16.mxu1 %v10832_v7  ;;  %v10902_v6 = vld [vmem:[%s11940_s7 + $0xac8] ss:$68 sps:$4 sm:$0xff]  }
 0x278   : > { %v10907_v7 = vld [vmem:[%s11940_s7 + $0xb4c] ss:$68 sps:$4 sm:$0xff]  }
 0x27a   : > { %7686 = vmatpush1.bf16.msra.mxu0 %v10827_v8  ;;  %7850 = vmatpush1.bf16.msra.mxu1 %v10830_v9  ;;  %v10910_v8 = vld [vmem:[%s11940_s7 + $0xb54] ss:$68 sps:$4 sm:$0xff]   ;;  %v10905_v9 = vld [vmem:[%s11940_s7 + $0xb48] ss:$68 sps:$4 sm:$0xff]  }
 0x27b   : > { %7687 = vmatprep.subr.bf16.mxu0 %v10835_v14  ;;  %7851 = vmatprep.subr.bf16.mxu1 %v10838_v16  ;;  %v10908_v14 = vld [vmem:[%s11940_s7 + $0xb50] ss:$68 sps:$4 sm:$0xff]  }
 0x27c   : > { %v10913_v16 = vld [vmem:[%s11940_s7 + $0xbd4] ss:$68 sps:$4 sm:$0xff]  }
 0x27e   : > { %7688 = vmatpush1.bf16.msra.mxu0 %v10833_v19  ;;  %7852 = vmatpush1.bf16.msra.mxu1 %v10836_v22  ;;  %v10916_v19 = vld [vmem:[%s11940_s7 + $0xbdc] ss:$68 sps:$4 sm:$0xff]   ;;  %v10911_v22 = vld [vmem:[%s11940_s7 + $0xbd0] ss:$68 sps:$4 sm:$0xff]  }
 0x27f   : > { %7689 = vmatprep.subr.bf16.mxu0 %v10841_v23  ;;  %7853 = vmatprep.subr.bf16.mxu1 %v10844_v13  ;;  %v10914_v23 = vld [vmem:[%s11940_s7 + $0xbd8] ss:$68 sps:$4 sm:$0xff]  }
 0x280   : > { %v10919_v13 = vld [vmem:[%s11940_s7 + $0xc5c] ss:$68 sps:$4 sm:$0xff]  }
 0x282   : > { %7690 = vmatpush1.bf16.msra.mxu0 %v10839_v25  ;;  %7854 = vmatpush1.bf16.msra.mxu1 %v10842_v26  ;;  %v10922_v25 = vld [vmem:[%s11940_s7 + $0xc64] ss:$68 sps:$4 sm:$0xff]   ;;  %v10917_v26 = vld [vmem:[%s11940_s7 + $0xc58] ss:$68 sps:$4 sm:$0xff]  }
 0x283   : > { %7691 = vmatprep.subr.bf16.mxu0 %v10847_v27  ;;  %7855 = vmatprep.subr.bf16.mxu1 %v10850_v29  ;;  %v10920_v27 = vld [vmem:[%s11940_s7 + $0xc60] ss:$68 sps:$4 sm:$0xff]  }
 0x284   : > { %v10925_v29 = vld [vmem:[%s11940_s7 + $0xce4] ss:$68 sps:$4 sm:$0xff]  }
 0x286   : > { %7692 = vmatpush1.bf16.msra.mxu0 %v10845_v31  ;;  %7856 = vmatpush1.bf16.msra.mxu1 %v10848_v32  ;;  %v10928_v31 = vld [vmem:[%s11940_s7 + $0xcec] ss:$68 sps:$4 sm:$0xff]   ;;  %v10923_v32 = vld [vmem:[%s11940_s7 + $0xce0] ss:$68 sps:$4 sm:$0xff]  }
 0x287   : > { %7693 = vmatprep.subr.bf16.mxu0 %v10853_v33  ;;  %7857 = vmatprep.subr.bf16.mxu1 %v10856_v34  ;;  %v10926_v33 = vld [vmem:[%s11940_s7 + $0xce8] ss:$68 sps:$4 sm:$0xff]  }
 0x288   : > { %v10931_v34 = vld [vmem:[%s11940_s7 + $0xd6c] ss:$68 sps:$4 sm:$0xff]  }
 0x28a   : > { %7694 = vmatpush1.bf16.msra.mxu0 %v10851_v35  ;;  %7858 = vmatpush1.bf16.msra.mxu1 %v10854_v21  ;;  %v10934_v35 = vld [vmem:[%s11940_s7 + $0xd74] ss:$68 sps:$4 sm:$0xff]   ;;  %v10929_v21 = vld [vmem:[%s11940_s7 + $0xd68] ss:$68 sps:$4 sm:$0xff]  }
 0x28b   : > { %7695 = vmatprep.subr.bf16.mxu0 %v10859_v36  ;;  %7859 = vmatprep.subr.bf16.mxu1 %v10862_v37  ;;  %v10932_v36 = vld [vmem:[%s11940_s7 + $0xd70] ss:$68 sps:$4 sm:$0xff]  }
 0x28c   : > { %v10937_v37 = vld [vmem:[%s11940_s7 + $0xdf4] ss:$68 sps:$4 sm:$0xff]  }
 0x28e   : > { %7696 = vmatpush1.bf16.msra.mxu0 %v10857_v38  ;;  %7860 = vmatpush1.bf16.msra.mxu1 %v10860_v39  ;;  %v10940_v38 = vld [vmem:[%s11940_s7 + $0xdfc] ss:$68 sps:$4 sm:$0xff]   ;;  %v10935_v39 = vld [vmem:[%s11940_s7 + $0xdf0] ss:$68 sps:$4 sm:$0xff]  }
 0x28f   : > { %7697 = vmatprep.subr.bf16.mxu0 %v10865_v40  ;;  %7861 = vmatprep.subr.bf16.mxu1 %v10868_v41  ;;  %v10938_v40 = vld [vmem:[%s11940_s7 + $0xdf8] ss:$68 sps:$4 sm:$0xff]  }
 0x290   : > { %v10943_v41 = vld [vmem:[%s11940_s7 + $0xe7c] ss:$68 sps:$4 sm:$0xff]  }
 0x292   : > { %7698 = vmatpush1.bf16.msra.mxu0 %v10863_v42  ;;  %7862 = vmatpush1.bf16.msra.mxu1 %v10866_v43  ;;  %v10946_v42 = vld [vmem:[%s11940_s7 + $0xe84] ss:$68 sps:$4 sm:$0xff]   ;;  %v10941_v43 = vld [vmem:[%s11940_s7 + $0xe78] ss:$68 sps:$4 sm:$0xff]  }
 0x293   : > { %7699 = vmatprep.subr.bf16.mxu0 %v10871_v44  ;;  %7863 = vmatprep.subr.bf16.mxu1 %v10874_v45  ;;  %v10944_v44 = vld [vmem:[%s11940_s7 + $0xe80] ss:$68 sps:$4 sm:$0xff]  }
 0x294   : > { %v10949_v45 = vld [vmem:[%s11940_s7 + $0xf04] ss:$68 sps:$4 sm:$0xff]  }
 0x296   : > { %7700 = vmatpush1.bf16.msra.mxu0 %v10869_v46  ;;  %7864 = vmatpush1.bf16.msra.mxu1 %v10872_v47  ;;  %v10952_v46 = vld [vmem:[%s11940_s7 + $0xf0c] ss:$68 sps:$4 sm:$0xff]   ;;  %v10947_v47 = vld [vmem:[%s11940_s7 + $0xf00] ss:$68 sps:$4 sm:$0xff]  }
 0x297   : > { %7710 = vmatprep.subr.bf16.mxu0 %v10877_v49  ;;  %7874 = vmatprep.subr.bf16.mxu1 %v10880_v50  ;;  %v10950_v49 = vld [vmem:[%s11940_s7 + $0xf08] ss:$68 sps:$4 sm:$0xff]  }
 0x298   : > { %v10955_v50 = vld [vmem:[%s11940_s7 + $0xf8c] ss:$68 sps:$4 sm:$0xff]  }
 0x299   : > { %7702 = vmatmul.mubr.bf16.vlgmr.msra.gmra.mrb[8].mxu0 %v12028_v5  ;;  %7866 = vmatmul.mubr.bf16.vlgmr.msra.gmra.mrb[8].mxu1 %v12028_v5 }
 0x29a   : > { %7711 = vmatpush1.bf16.msra.mxu0 %v10875_v51  ;;  %7875 = vmatpush1.bf16.msra.mxu1 %v10878_v52  ;;  %v10958_v51 = vld [vmem:[%s11940_s7 + $0xf94] ss:$68 sps:$4 sm:$0xff]   ;;  %v10953_v52 = vld [vmem:[%s11940_s7 + $0xf88] ss:$68 sps:$4 sm:$0xff]  }
 0x29b   : > { %7712 = vmatprep.subr.bf16.mxu0 %v10883_v53  ;;  %7876 = vmatprep.subr.bf16.mxu1 %v10886_v54  ;;  %v10956_v53 = vld [vmem:[%s11940_s7 + $0xf90] ss:$68 sps:$4 sm:$0xff]  }
 0x29c   : > { %7742 = vmatprep.mubr.bf16.mxu0 %v12062_v30  ;;  %7906 = vmatprep.mubr.bf16.mxu1 %v12062_v30  ;;  %v10961_v54 = vld [vmem:[%s11940_s7 + $0x1014] ss:$68 sps:$4 sm:$0xff]  }
 0x29e   : > { %7713 = vmatpush1.bf16.msra.mxu0 %v10881_v55  ;;  %7877 = vmatpush1.bf16.msra.mxu1 %v10884_v56  ;;  %v10964_v55 = vld [vmem:[%s11940_s7 + $0x101c] ss:$68 sps:$4 sm:$0xff]   ;;  %v10959_v56 = vld [vmem:[%s11940_s7 + $0x1010] ss:$68 sps:$4 sm:$0xff]  }
 0x29f   : > { %7714 = vmatprep.subr.bf16.mxu0 %v10889_v57  ;;  %7878 = vmatprep.subr.bf16.mxu1 %v10892_v58  ;;  %v10962_v57 = vld [vmem:[%s11940_s7 + $0x1018] ss:$68 sps:$4 sm:$0xff]  }
 0x2a0   : > { %v10967_v58 = vld [vmem:[%s11940_s7 + $0x109c] ss:$68 sps:$4 sm:$0xff]  }
 0x2a2   : > { %7715 = vmatpush1.bf16.msra.mxu0 %v10887_v59  ;;  %7879 = vmatpush1.bf16.msra.mxu1 %v10890_v60  ;;  %v10970_v59 = vld [vmem:[%s11940_s7 + $0x10a4] ss:$68 sps:$4 sm:$0xff]   ;;  %v10965_v60 = vld [vmem:[%s11940_s7 + $0x1098] ss:$68 sps:$4 sm:$0xff]  }
 0x2a3   : > { %7716 = vmatprep.subr.bf16.mxu0 %v10895_v61  ;;  %7880 = vmatprep.subr.bf16.mxu1 %v10898_v62  ;;  %v10968_v61 = vld [vmem:[%s11940_s7 + $0x10a0] ss:$68 sps:$4 sm:$0xff]  }
 0x2a4   : > { %v10973_v62 = vld [vmem:[%s11940_s7 + $0x1124] ss:$68 sps:$4 sm:$0xff]  }
 0x2a6   : > { %7717 = vmatpush1.bf16.msra.mxu0 %v10893_v63  ;;  %7881 = vmatpush1.bf16.msra.mxu1 %v10896_v0  ;;  %v10976_v63 = vld [vmem:[%s11940_s7 + $0x112c] ss:$68 sps:$4 sm:$0xff]   ;;  %v10971_v0 = vld [vmem:[%s11940_s7 + $0x1120] ss:$68 sps:$4 sm:$0xff]  }
 0x2a7   : > { %7718 = vmatprep.subr.bf16.mxu0 %v10901_v1  ;;  %7882 = vmatprep.subr.bf16.mxu1 %v10904_v2  ;;  %v10974_v1 = vld [vmem:[%s11940_s7 + $0x1128] ss:$68 sps:$4 sm:$0xff]  }
 0x2a8   : > { %v10979_v2 = vld [vmem:[%s11940_s7 + $0x11ac] ss:$68 sps:$4 sm:$0xff]  }
 0x2aa   : > { %7719 = vmatpush1.bf16.msra.mxu0 %v10899_v4  ;;  %7883 = vmatpush1.bf16.msra.mxu1 %v10902_v6  ;;  %v10982_v4 = vld [vmem:[%s11940_s7 + $0x11b4] ss:$68 sps:$4 sm:$0xff]   ;;  %v10977_v6 = vld [vmem:[%s11940_s7 + $0x11a8] ss:$68 sps:$4 sm:$0xff]  }
 0x2ab   : > { %7720 = vmatprep.subr.bf16.mxu0 %v10907_v7  ;;  %7884 = vmatprep.subr.bf16.mxu1 %v10910_v8  ;;  %v10980_v7 = vld [vmem:[%s11940_s7 + $0x11b0] ss:$68 sps:$4 sm:$0xff]  }
 0x2ac   : > { %v10985_v8 = vld [vmem:[%s11940_s7 + $0x1234] ss:$68 sps:$4 sm:$0xff]  }
 0x2ae   : > { %7721 = vmatpush1.bf16.msra.mxu0 %v10905_v9  ;;  %7885 = vmatpush1.bf16.msra.mxu1 %v10908_v14  ;;  %v10988_v9 = vld [vmem:[%s11940_s7 + $0x123c] ss:$68 sps:$4 sm:$0xff]   ;;  %v10983_v14 = vld [vmem:[%s11940_s7 + $0x1230] ss:$68 sps:$4 sm:$0xff]  }
 0x2af   : > { %7722 = vmatprep.subr.bf16.mxu0 %v10913_v16  ;;  %7886 = vmatprep.subr.bf16.mxu1 %v10916_v19  ;;  %v10986_v16 = vld [vmem:[%s11940_s7 + $0x1238] ss:$68 sps:$4 sm:$0xff]  }
 0x2b0   : > { %v10991_v19 = vld [vmem:[%s11940_s7 + $0x12bc] ss:$68 sps:$4 sm:$0xff]  }
 0x2b2   : > { %7723 = vmatpush1.bf16.msra.mxu0 %v10911_v22  ;;  %7887 = vmatpush1.bf16.msra.mxu1 %v10914_v23  ;;  %v10994_v22 = vld [vmem:[%s11940_s7 + $0x12c4] ss:$68 sps:$4 sm:$0xff]   ;;  %v10989_v23 = vld [vmem:[%s11940_s7 + $0x12b8] ss:$68 sps:$4 sm:$0xff]  }
 0x2b3   : > { %7724 = vmatprep.subr.bf16.mxu0 %v10919_v13  ;;  %7888 = vmatprep.subr.bf16.mxu1 %v10922_v25  ;;  %v10992_v13 = vld [vmem:[%s11940_s7 + $0x12c0] ss:$68 sps:$4 sm:$0xff]  }
 0x2b4   : > { %v10997_v25 = vld [vmem:[%s11940_s7 + $0x1344] ss:$68 sps:$4 sm:$0xff]  }
 0x2b6   : > { %7725 = vmatpush1.bf16.msra.mxu0 %v10917_v26  ;;  %7889 = vmatpush1.bf16.msra.mxu1 %v10920_v27  ;;  %v11000_v26 = vld [vmem:[%s11940_s7 + $0x134c] ss:$68 sps:$4 sm:$0xff]   ;;  %v10995_v27 = vld [vmem:[%s11940_s7 + $0x1340] ss:$68 sps:$4 sm:$0xff]  }
 0x2b7   : > { %7726 = vmatprep.subr.bf16.mxu0 %v10925_v29  ;;  %7890 = vmatprep.subr.bf16.mxu1 %v10928_v31  ;;  %v10998_v29 = vld [vmem:[%s11940_s7 + $0x1348] ss:$68 sps:$4 sm:$0xff]  }
 0x2b8   : > { %v11003_v31 = vld [vmem:[%s11940_s7 + $0x13cc] ss:$68 sps:$4 sm:$0xff]  }
 0x2ba   : > { %7727 = vmatpush1.bf16.msra.mxu0 %v10923_v32  ;;  %7891 = vmatpush1.bf16.msra.mxu1 %v10926_v33  ;;  %v11006_v32 = vld [vmem:[%s11940_s7 + $0x13d4] ss:$68 sps:$4 sm:$0xff]   ;;  %v11001_v33 = vld [vmem:[%s11940_s7 + $0x13c8] ss:$68 sps:$4 sm:$0xff]  }
 0x2bb   : > { %7728 = vmatprep.subr.bf16.mxu0 %v10931_v34  ;;  %7892 = vmatprep.subr.bf16.mxu1 %v10934_v35  ;;  %v11004_v34 = vld [vmem:[%s11940_s7 + $0x13d0] ss:$68 sps:$4 sm:$0xff]  }
 0x2bc   : > { %v11009_v35 = vld [vmem:[%s11940_s7 + $0x1454] ss:$68 sps:$4 sm:$0xff]  }
 0x2be   : > { %7729 = vmatpush1.bf16.msra.mxu0 %v10929_v21  ;;  %7893 = vmatpush1.bf16.msra.mxu1 %v10932_v36  ;;  %v11012_v21 = vld [vmem:[%s11940_s7 + $0x145c] ss:$68 sps:$4 sm:$0xff]   ;;  %v11007_v36 = vld [vmem:[%s11940_s7 + $0x1450] ss:$68 sps:$4 sm:$0xff]  }
 0x2bf   : > { %7730 = vmatprep.subr.bf16.mxu0 %v10937_v37  ;;  %7894 = vmatprep.subr.bf16.mxu1 %v10940_v38  ;;  %v11010_v37 = vld [vmem:[%s11940_s7 + $0x1458] ss:$68 sps:$4 sm:$0xff]  }
 0x2c0   : > { %v11015_v38 = vld [vmem:[%s11940_s7 + $0x14dc] ss:$68 sps:$4 sm:$0xff]  }
 0x2c2   : > { %7731 = vmatpush1.bf16.msra.mxu0 %v10935_v39  ;;  %7895 = vmatpush1.bf16.msra.mxu1 %v10938_v40  ;;  %v11018_v39 = vld [vmem:[%s11940_s7 + $0x14e4] ss:$68 sps:$4 sm:$0xff]   ;;  %v11013_v40 = vld [vmem:[%s11940_s7 + $0x14d8] ss:$68 sps:$4 sm:$0xff]  }
 0x2c3   : > { %7732 = vmatprep.subr.bf16.mxu0 %v10943_v41  ;;  %7896 = vmatprep.subr.bf16.mxu1 %v10946_v42  ;;  %v11016_v41 = vld [vmem:[%s11940_s7 + $0x14e0] ss:$68 sps:$4 sm:$0xff]  }
 0x2c4   : > { %v11021_v42 = vld [vmem:[%s11940_s7 + $0x1564] ss:$68 sps:$4 sm:$0xff]  }
 0x2c6   : > { %7733 = vmatpush1.bf16.msra.mxu0 %v10941_v43  ;;  %7897 = vmatpush1.bf16.msra.mxu1 %v10944_v44  ;;  %v11024_v43 = vld [vmem:[%s11940_s7 + $0x156c] ss:$68 sps:$4 sm:$0xff]   ;;  %v11019_v44 = vld [vmem:[%s11940_s7 + $0x1560] ss:$68 sps:$4 sm:$0xff]  }
 0x2c7   : > { %7734 = vmatprep.subr.bf16.mxu0 %v10949_v45  ;;  %7898 = vmatprep.subr.bf16.mxu1 %v10952_v46  ;;  %v11022_v45 = vld [vmem:[%s11940_s7 + $0x1568] ss:$68 sps:$4 sm:$0xff]  }
 0x2c8   : > { %v11027_v46 = vld [vmem:[%s11940_s7 + $0x15ec] ss:$68 sps:$4 sm:$0xff]  }
 0x2ca   : > { %7735 = vmatpush1.bf16.msra.mxu0 %v10947_v47  ;;  %7899 = vmatpush1.bf16.msra.mxu1 %v10950_v49  ;;  %v11030_v47 = vld [vmem:[%s11940_s7 + $0x15f4] ss:$68 sps:$4 sm:$0xff]   ;;  %v11025_v49 = vld [vmem:[%s11940_s7 + $0x15e8] ss:$68 sps:$4 sm:$0xff]  }
 0x2cb   : > { %7736 = vmatprep.subr.bf16.mxu0 %v10955_v50  ;;  %7900 = vmatprep.subr.bf16.mxu1 %v10958_v51  ;;  %v11028_v50 = vld [vmem:[%s11940_s7 + $0x15f0] ss:$68 sps:$4 sm:$0xff]  }
 0x2cc   : > { %v11033_v51 = vld [vmem:[%s11940_s7 + $0x1674] ss:$68 sps:$4 sm:$0xff]  }
 0x2ce   : > { %7737 = vmatpush1.bf16.msra.mxu0 %v10953_v52  ;;  %7901 = vmatpush1.bf16.msra.mxu1 %v10956_v53  ;;  %v11036_v52 = vld [vmem:[%s11940_s7 + $0x167c] ss:$68 sps:$4 sm:$0xff]   ;;  %v11031_v53 = vld [vmem:[%s11940_s7 + $0x1670] ss:$68 sps:$4 sm:$0xff]  }
 0x2cf   : > { %7738 = vmatprep.subr.bf16.mxu0 %v10961_v54  ;;  %7902 = vmatprep.subr.bf16.mxu1 %v10964_v55  ;;  %v11034_v54 = vld [vmem:[%s11940_s7 + $0x1678] ss:$68 sps:$4 sm:$0xff]  }
 0x2d0   : > { %v11039_v55 = vld [vmem:[%s11940_s7 + $0x16fc] ss:$68 sps:$4 sm:$0xff]  }
 0x2d2   : > { %7739 = vmatpush1.bf16.msra.mxu0 %v10959_v56  ;;  %7903 = vmatpush1.bf16.msra.mxu1 %v10962_v57  ;;  %v11042_v56 = vld [vmem:[%s11940_s7 + $0x1704] ss:$68 sps:$4 sm:$0xff]   ;;  %v11037_v57 = vld [vmem:[%s11940_s7 + $0x16f8] ss:$68 sps:$4 sm:$0xff]  }
 0x2d3   : > { %7740 = vmatprep.subr.bf16.mxu0 %v10967_v58  ;;  %7904 = vmatprep.subr.bf16.mxu1 %v10970_v59  ;;  %v11040_v58 = vld [vmem:[%s11940_s7 + $0x1700] ss:$68 sps:$4 sm:$0xff]  }
 0x2d4   : > { %v11045_v59 = vld [vmem:[%s11940_s7 + $0x1784] ss:$68 sps:$4 sm:$0xff]  }
 0x2d6   : > { %7741 = vmatpush1.bf16.msra.mxu0 %v10965_v60  ;;  %7905 = vmatpush1.bf16.msra.mxu1 %v10968_v61  ;;  %v11048_v60 = vld [vmem:[%s11940_s7 + $0x178c] ss:$68 sps:$4 sm:$0xff]   ;;  %v11043_v61 = vld [vmem:[%s11940_s7 + $0x1780] ss:$68 sps:$4 sm:$0xff]  }
 0x2d7   : > { %7751 = vmatprep.subr.bf16.mxu0 %v10973_v62  ;;  %7915 = vmatprep.subr.bf16.mxu1 %v10976_v63  ;;  %v11046_v62 = vld [vmem:[%s11940_s7 + $0x1788] ss:$68 sps:$4 sm:$0xff]  }
 0x2d8   : > { %v11051_v63 = vld [vmem:[%s11940_s7 + $0x180c] ss:$68 sps:$4 sm:$0xff]  }
 0x2d9   : > { %7743 = vmatmul.mubr.bf16.vlgmr.msra.gmra.mrb[8].mxu0 %v12109_v10  ;;  %7907 = vmatmul.mubr.bf16.vlgmr.msra.gmra.mrb[8].mxu1 %v12109_v10 }
 0x2da   : > { %7752 = vmatpush1.bf16.msra.mxu0 %v10971_v0  ;;  %7916 = vmatpush1.bf16.msra.mxu1 %v10974_v1  ;;  %v11054_v0 = vld [vmem:[%s11940_s7 + $0x1814] ss:$68 sps:$4 sm:$0xff]   ;;  %v11049_v1 = vld [vmem:[%s11940_s7 + $0x1808] ss:$68 sps:$4 sm:$0xff]  }
 0x2db   : > { %7753 = vmatprep.subr.bf16.mxu0 %v10979_v2  ;;  %7917 = vmatprep.subr.bf16.mxu1 %v10982_v4  ;;  %v11052_v2 = vld [vmem:[%s11940_s7 + $0x1810] ss:$68 sps:$4 sm:$0xff]  }
 0x2dc   : > { %7783 = vmatprep.mubr.bf16.mxu0 %v12121_v15  ;;  %7947 = vmatprep.mubr.bf16.mxu1 %v12121_v15  ;;  %v11057_v4 = vld [vmem:[%s11940_s7 + $0x1894] ss:$68 sps:$4 sm:$0xff]  }
 0x2de   : > { %7754 = vmatpush1.bf16.msra.mxu0 %v10977_v6  ;;  %7918 = vmatpush1.bf16.msra.mxu1 %v10980_v7  ;;  %v11060_v6 = vld [vmem:[%s11940_s7 + $0x189c] ss:$68 sps:$4 sm:$0xff]   ;;  %v11055_v7 = vld [vmem:[%s11940_s7 + $0x1890] ss:$68 sps:$4 sm:$0xff]  }
 0x2df   : > { %7755 = vmatprep.subr.bf16.mxu0 %v10985_v8  ;;  %7919 = vmatprep.subr.bf16.mxu1 %v10988_v9  ;;  %v11058_v8 = vld [vmem:[%s11940_s7 + $0x1898] ss:$68 sps:$4 sm:$0xff]  }
 0x2e0   : > { %v11063_v9 = vld [vmem:[%s11940_s7 + $0x191c] ss:$68 sps:$4 sm:$0xff]  }
 0x2e2   : > { %7756 = vmatpush1.bf16.msra.mxu0 %v10983_v14  ;;  %7920 = vmatpush1.bf16.msra.mxu1 %v10986_v16  ;;  %v11066_v14 = vld [vmem:[%s11940_s7 + $0x1924] ss:$68 sps:$4 sm:$0xff]   ;;  %v11061_v16 = vld [vmem:[%s11940_s7 + $0x1918] ss:$68 sps:$4 sm:$0xff]  }
 0x2e3   : > { %7757 = vmatprep.subr.bf16.mxu0 %v10991_v19  ;;  %7921 = vmatprep.subr.bf16.mxu1 %v10994_v22  ;;  %v11064_v19 = vld [vmem:[%s11940_s7 + $0x1920] ss:$68 sps:$4 sm:$0xff]  }
 0x2e4   : > { %v11069_v22 = vld [vmem:[%s11940_s7 + $0x19a4] ss:$68 sps:$4 sm:$0xff]  }
 0x2e6   : > { %7758 = vmatpush1.bf16.msra.mxu0 %v10989_v23  ;;  %7922 = vmatpush1.bf16.msra.mxu1 %v10992_v13  ;;  %v11072_v23 = vld [vmem:[%s11940_s7 + $0x19ac] ss:$68 sps:$4 sm:$0xff]   ;;  %v11067_v13 = vld [vmem:[%s11940_s7 + $0x19a0] ss:$68 sps:$4 sm:$0xff]  }
 0x2e7   : > { %7759 = vmatprep.subr.bf16.mxu0 %v10997_v25  ;;  %7923 = vmatprep.subr.bf16.mxu1 %v11000_v26  ;;  %v11070_v25 = vld [vmem:[%s11940_s7 + $0x19a8] ss:$68 sps:$4 sm:$0xff]  }
 0x2e8   : > { %v11075_v26 = vld [vmem:[%s11940_s7 + $0x1a2c] ss:$68 sps:$4 sm:$0xff]  }
 0x2ea   : > { %7760 = vmatpush1.bf16.msra.mxu0 %v10995_v27  ;;  %7924 = vmatpush1.bf16.msra.mxu1 %v10998_v29  ;;  %v11078_v27 = vld [vmem:[%s11940_s7 + $0x1a34] ss:$68 sps:$4 sm:$0xff]   ;;  %v11073_v29 = vld [vmem:[%s11940_s7 + $0x1a28] ss:$68 sps:$4 sm:$0xff]  }
 0x2eb   : > { %7761 = vmatprep.subr.bf16.mxu0 %v11003_v31  ;;  %7925 = vmatprep.subr.bf16.mxu1 %v11006_v32  ;;  %v11076_v31 = vld [vmem:[%s11940_s7 + $0x1a30] ss:$68 sps:$4 sm:$0xff]  }
 0x2ec   : > { %v11081_v32 = vld [vmem:[%s11940_s7 + $0x1ab4] ss:$68 sps:$4 sm:$0xff]  }
 0x2ee   : > { %7762 = vmatpush1.bf16.msra.mxu0 %v11001_v33  ;;  %7926 = vmatpush1.bf16.msra.mxu1 %v11004_v34  ;;  %v11084_v33 = vld [vmem:[%s11940_s7 + $0x1abc] ss:$68 sps:$4 sm:$0xff]   ;;  %v11079_v34 = vld [vmem:[%s11940_s7 + $0x1ab0] ss:$68 sps:$4 sm:$0xff]  }
 0x2ef   : > { %7763 = vmatprep.subr.bf16.mxu0 %v11009_v35  ;;  %7927 = vmatprep.subr.bf16.mxu1 %v11012_v21  ;;  %v11082_v35 = vld [vmem:[%s11940_s7 + $0x1ab8] ss:$68 sps:$4 sm:$0xff]  }
 0x2f0   : > { %v11087_v21 = vld [vmem:[%s11940_s7 + $0x1b3c] ss:$68 sps:$4 sm:$0xff]  }
 0x2f2   : > { %7764 = vmatpush1.bf16.msra.mxu0 %v11007_v36  ;;  %7928 = vmatpush1.bf16.msra.mxu1 %v11010_v37  ;;  %v11090_v36 = vld [vmem:[%s11940_s7 + $0x1b44] ss:$68 sps:$4 sm:$0xff]   ;;  %v11085_v37 = vld [vmem:[%s11940_s7 + $0x1b38] ss:$68 sps:$4 sm:$0xff]  }
 0x2f3   : > { %7765 = vmatprep.subr.bf16.mxu0 %v11015_v38  ;;  %7929 = vmatprep.subr.bf16.mxu1 %v11018_v39  ;;  %v11088_v38 = vld [vmem:[%s11940_s7 + $0x1b40] ss:$68 sps:$4 sm:$0xff]  }
 0x2f4   : > { %v11093_v39 = vld [vmem:[%s11940_s7 + $0x1bc4] ss:$68 sps:$4 sm:$0xff]  }
 0x2f6   : > { %7766 = vmatpush1.bf16.msra.mxu0 %v11013_v40  ;;  %7930 = vmatpush1.bf16.msra.mxu1 %v11016_v41  ;;  %v11096_v40 = vld [vmem:[%s11940_s7 + $0x1bcc] ss:$68 sps:$4 sm:$0xff]   ;;  %v1414_v41 = vsub.s32 4, %v12492_v3 }
 0x2f7   : > { %7767 = vmatprep.subr.bf16.mxu0 %v11021_v42  ;;  %7931 = vmatprep.subr.bf16.mxu1 %v11024_v43  ;;  %v1422_v42 = vsub.s32 6, %v12492_v3  ;;  %v11091_v43 = vld [vmem:[%s11940_s7 + $0x1bc0] ss:$68 sps:$4 sm:$0xff]  }
 0x2fa   : > { %7768 = vmatpush1.bf16.msra.mxu0 %v11019_v44  ;;  %7932 = vmatpush1.bf16.msra.mxu1 %v11022_v45  ;;  %v11094_v44 = vld [vmem:[%s11940_s7 + $0x1bc8] ss:$68 sps:$4 sm:$0xff]   ;;  %v1418_v45 = vsub.s32 5, %v12492_v3 }
 0x2fb   : > { %7769 = vmatprep.subr.bf16.mxu0 %v11027_v46  ;;  %7933 = vmatprep.subr.bf16.mxu1 %v11030_v47  ;;  %v1426_v46 = vsub.s32 7, %v12492_v3  ;;  %v11099_v47 = vld [vmem:[%s11940_s7 + $0x1c4c] ss:$68 sps:$4 sm:$0xff]  }
 0x2fe   : > { %7770 = vmatpush1.bf16.msra.mxu0 %v11025_v49  ;;  %7934 = vmatpush1.bf16.msra.mxu1 %v11028_v50  ;;  %v11102_v49 = vld [vmem:[%s11940_s7 + $0x1c54] ss:$68 sps:$4 sm:$0xff]  }
 0x2ff   : > { %7771 = vmatprep.subr.bf16.mxu0 %v11033_v51  ;;  %7935 = vmatprep.subr.bf16.mxu1 %v11036_v52  ;;  %v11645_v50 = vld [vmem:[%s11948_s19] sm:$0xff] }
 0x300   : > { %v1415_v51 = vrot.slane %v11645_v50, %v1414_v41  ;;  %v1423_v52 = vrot.slane %v11645_v50, %v1422_v42 }
 0x302   : > { %7772 = vmatpush1.bf16.msra.mxu0 %v11031_v53  ;;  %7936 = vmatpush1.bf16.msra.mxu1 %v11034_v54  ;;  %v1419_v53 = vrot.slane %v11645_v50, %v1418_v45  ;;  %v1427_v54 = vrot.slane %v11645_v50, %v1426_v46  ;;  %v11141_v50 = vld [vmem:[%s11940_s7 + $0x2004] ss:$68 sps:$4 sm:$0xff]  }
 0x303   : > { %7773 = vmatprep.subr.bf16.mxu0 %v11039_v55  ;;  %7937 = vmatprep.subr.bf16.mxu1 %v11042_v56  ;;  %v11097_v55 = vld [vmem:[%s11940_s7 + $0x1c48] ss:$68 sps:$4 sm:$0xff]   ;;  %v11100_v56 = vld [vmem:[%s11940_s7 + $0x1c50] ss:$68 sps:$4 sm:$0xff]  }
 0x306   : > { %7774 = vmatpush1.bf16.msra.mxu0 %v11037_v57  ;;  %7938 = vmatpush1.bf16.msra.mxu1 %v11040_v58  ;;  %v11105_v57 = vld [vmem:[%s11940_s7 + $0x1cd4] ss:$68 sps:$4 sm:$0xff]   ;;  %v11108_v58 = vld [vmem:[%s11940_s7 + $0x1cdc] ss:$68 sps:$4 sm:$0xff]  }
 0x307   : > { %7775 = vmatprep.subr.bf16.mxu0 %v11045_v59  ;;  %7939 = vmatprep.subr.bf16.mxu1 %v11048_v60 }
 0x30a   : > { %7776 = vmatpush1.bf16.msra.mxu0 %v11043_v61  ;;  %7940 = vmatpush1.bf16.msra.mxu1 %v11046_v62 }
 0x30b   : > { %7777 = vmatprep.subr.bf16.mxu0 %v11051_v63  ;;  %7941 = vmatprep.subr.bf16.mxu1 %v11054_v0 }
 0x30e   : > { %7778 = vmatpush1.bf16.msra.mxu0 %v11049_v1  ;;  %7942 = vmatpush1.bf16.msra.mxu1 %v11052_v2 }
 0x30f   : > { %7779 = vmatprep.subr.bf16.mxu0 %v11057_v4  ;;  %7943 = vmatprep.subr.bf16.mxu1 %v11060_v6 }
 0x312   : > { %7780 = vmatpush1.bf16.msra.mxu0 %v11055_v7  ;;  %7944 = vmatpush1.bf16.msra.mxu1 %v11058_v8  ;;  %v11103_v7 = vld [vmem:[%s11940_s7 + $0x1cd0] ss:$68 sps:$4 sm:$0xff]   ;;  %v11106_v8 = vld [vmem:[%s11940_s7 + $0x1cd8] ss:$68 sps:$4 sm:$0xff]  }
 0x313   : > { %7781 = vmatprep.subr.bf16.mxu0 %v11063_v9  ;;  %7945 = vmatprep.subr.bf16.mxu1 %v11066_v14 }
 0x316   : > { %7782 = vmatpush1.bf16.msra.mxu0 %v11061_v16  ;;  %7946 = vmatpush1.bf16.msra.mxu1 %v11064_v19  ;;  %v11111_v16 = vld [vmem:[%s11940_s7 + $0x1d5c] ss:$68 sps:$4 sm:$0xff]   ;;  %v11114_v19 = vld [vmem:[%s11940_s7 + $0x1d64] ss:$68 sps:$4 sm:$0xff]  }
 0x317   : > { %7792 = vmatprep.subr.bf16.mxu0 %v11069_v22  ;;  %7956 = vmatprep.subr.bf16.mxu1 %v11072_v23  ;;  %v11109_v22 = vld [vmem:[%s11940_s7 + $0x1d58] ss:$68 sps:$4 sm:$0xff]   ;;  %v11112_v23 = vld [vmem:[%s11940_s7 + $0x1d60] ss:$68 sps:$4 sm:$0xff]  }
 0x319   : > { %7784 = vmatmul.mubr.bf16.vlgmr.msra.gmra.mrb[8].mxu0 %v12191_v20  ;;  %7948 = vmatmul.mubr.bf16.vlgmr.msra.gmra.mrb[8].mxu1 %v12191_v20 }
 0x31a   : > { %7793 = vmatpush1.bf16.msra.mxu0 %v11067_v13  ;;  %7957 = vmatpush1.bf16.msra.mxu1 %v11070_v25  ;;  %v11117_v13 = vld [vmem:[%s11940_s7 + $0x1de4] ss:$68 sps:$4 sm:$0xff]   ;;  %v11120_v25 = vld [vmem:[%s11940_s7 + $0x1dec] ss:$68 sps:$4 sm:$0xff]  }
 0x31b   : > { %7794 = vmatprep.subr.bf16.mxu0 %v11075_v26  ;;  %7958 = vmatprep.subr.bf16.mxu1 %v11078_v27  ;;  %v11115_v26 = vld [vmem:[%s11940_s7 + $0x1de0] ss:$68 sps:$4 sm:$0xff]   ;;  %v11118_v27 = vld [vmem:[%s11940_s7 + $0x1de8] ss:$68 sps:$4 sm:$0xff]  }
 0x31c   : > { %7824 = vmatprep.mubr.bf16.mxu0 %v12202_v24  ;;  %7988 = vmatprep.mubr.bf16.mxu1 %v12202_v24 }
 0x31e   : > { %7795 = vmatpush1.bf16.msra.mxu0 %v11073_v29  ;;  %7959 = vmatpush1.bf16.msra.mxu1 %v11076_v31  ;;  %v11123_v29 = vld [vmem:[%s11940_s7 + $0x1e6c] ss:$68 sps:$4 sm:$0xff]   ;;  %v11126_v31 = vld [vmem:[%s11940_s7 + $0x1e74] ss:$68 sps:$4 sm:$0xff]  }
 0x31f   : > { %7796 = vmatprep.subr.bf16.mxu0 %v11081_v32  ;;  %7960 = vmatprep.subr.bf16.mxu1 %v11084_v33 }
 0x322   : > { %7797 = vmatpush1.bf16.msra.mxu0 %v11079_v34  ;;  %7961 = vmatpush1.bf16.msra.mxu1 %v11082_v35  ;;  %v11121_v34 = vld [vmem:[%s11940_s7 + $0x1e68] ss:$68 sps:$4 sm:$0xff]   ;;  %v11124_v35 = vld [vmem:[%s11940_s7 + $0x1e70] ss:$68 sps:$4 sm:$0xff]  }
 0x323   : > { %7798 = vmatprep.subr.bf16.mxu0 %v11087_v21  ;;  %7962 = vmatprep.subr.bf16.mxu1 %v11090_v36  ;;  %v11129_v36 = vld [vmem:[%s11940_s7 + $0x1ef4] ss:$68 sps:$4 sm:$0xff]  }
 0x326   : > { %7799 = vmatpush1.bf16.msra.mxu0 %v11085_v37  ;;  %7963 = vmatpush1.bf16.msra.mxu1 %v11088_v38  ;;  %v11132_v37 = vld [vmem:[%s11940_s7 + $0x1efc] ss:$68 sps:$4 sm:$0xff]  }
 0x327   : > { %7800 = vmatprep.subr.bf16.mxu0 %v11093_v39  ;;  %7964 = vmatprep.subr.bf16.mxu1 %v11096_v40  ;;  %v11127_v39 = vld [vmem:[%s11940_s7 + $0x1ef0] ss:$68 sps:$4 sm:$0xff]   ;;  %v11130_v40 = vld [vmem:[%s11940_s7 + $0x1ef8] ss:$68 sps:$4 sm:$0xff]  }
 0x32a   : > { %7801 = vmatpush1.bf16.msra.mxu0 %v11091_v43  ;;  %7965 = vmatpush1.bf16.msra.mxu1 %v11094_v44  ;;  %v11135_v43 = vld [vmem:[%s11940_s7 + $0x1f7c] ss:$68 sps:$4 sm:$0xff]   ;;  %v11138_v44 = vld [vmem:[%s11940_s7 + $0x1f84] ss:$68 sps:$4 sm:$0xff]  }
 0x32b   : > { %7802 = vmatprep.subr.bf16.mxu0 %v11099_v47  ;;  %7966 = vmatprep.subr.bf16.mxu1 %v11102_v49  ;;  %v11133_v47 = vld [vmem:[%s11940_s7 + $0x1f78] ss:$68 sps:$4 sm:$0xff]   ;;  %v11136_v49 = vld [vmem:[%s11940_s7 + $0x1f80] ss:$68 sps:$4 sm:$0xff]  }
 0x32c   : > { %v7498_v59 = vpop.f32.mrb[4].mxu0  ;;  %v7662_v60 = vpop.f32.mrb[4].mxu1 }
 0x32d   : > { %v9837_v61 = vadd.f32 %v7498_v59, %v1415_v51  ;;  %v9839_v62 = vadd.f32 %v7662_v60, %v1423_v52  ;;  %v7500_v63 = vpop.f32.mrb[5].mxu0  ;;  %v7664_v0 = vpop.f32.mrb[5].mxu1  ;;  %v11144_v51 = vld [vmem:[%s11940_s7 + $0x200c] ss:$68 sps:$4 sm:$0xff]   ;;  %v11139_v52 = vld [vmem:[%s11940_s7 + $0x2000] ss:$68 sps:$4 sm:$0xff]  }
 0x32e   : > { %v9838_v1 = vadd.f32 %v7500_v63, %v1419_v53  ;;  %v9840_v2 = vadd.f32 %v7664_v0, %v1427_v54  ;;  %v7502_v4 = vpop.f32.mrb[6].mxu0  ;;  %v7666_v6 = vpop.f32.mrb[6].mxu1  ;;  %7803 = vmatpush1.bf16.msra.mxu0 %v11097_v55  ;;  %7967 = vmatpush1.bf16.msra.mxu1 %v11100_v56  ;;  %v11142_v53 = vld [vmem:[%s11940_s7 + $0x2008] ss:$68 sps:$4 sm:$0xff]   ;;  %v11150_v55 = vld [vmem:[%s11940_s7 + $0x2094] ss:$68 sps:$4 sm:$0xff]  }
 0x32f   : > { %11619 = vtanh.f32 %v9837_v61  ;;  %v7503_v9 = vpop.f32.mrb[7].mxu0  ;;  %v7667_v14 = vpop.f32.mrb[7].mxu1  ;;  %7804 = vmatprep.subr.bf16.mxu0 %v11105_v57  ;;  %7968 = vmatprep.subr.bf16.mxu1 %v11108_v58  ;;  %v11147_v54 = vld [vmem:[%s11940_s7 + $0x208c] ss:$68 sps:$4 sm:$0xff]   ;;  %v11153_v58 = vld [vmem:[%s11940_s7 + $0x2114] ss:$68 sps:$4 sm:$0xff]  }
 0x330   : > { %11621 = vtanh.f32 %v9839_v62  ;;  %v11145_v56 = vld [vmem:[%s11940_s7 + $0x2088] ss:$68 sps:$4 sm:$0xff]   ;;  %v11148_v57 = vld [vmem:[%s11940_s7 + $0x2090] ss:$68 sps:$4 sm:$0xff]   ;;  %v11156_v59 = vld [vmem:[%s11940_s7 + $0x211c] ss:$68 sps:$4 sm:$0xff]  }
 0x331   : > { %11623 = vtanh.f32 %v9838_v1  ;;  %v11151_v60 = vld [vmem:[%s11940_s7 + $0x2110] ss:$68 sps:$4 sm:$0xff]   ;;  %v11154_v61 = vld [vmem:[%s11940_s7 + $0x2118] ss:$68 sps:$4 sm:$0xff]   ;;  %v11162_v63 = vld [vmem:[%s11940_s7 + $0x21a4] ss:$68 sps:$4 sm:$0xff]  }
 0x332   : > { %11625 = vtanh.f32 %v9840_v2  ;;  %7805 = vmatpush1.bf16.msra.mxu0 %v11103_v7  ;;  %7969 = vmatpush1.bf16.msra.mxu1 %v11106_v8  ;;  %v11159_v62 = vld [vmem:[%s11940_s7 + $0x219c] ss:$68 sps:$4 sm:$0xff]   ;;  %v11165_v2 = vld [vmem:[%s11940_s7 + $0x34] ss:$68 sps:$4 sm:$0xff]   ;;  %v11174_v9 = vld [vmem:[%s11940_s7 + $0xc4] ss:$68 sps:$4 sm:$0xff]  }
 0x333   : > { %7806 = vmatprep.subr.bf16.mxu0 %v11111_v16  ;;  %7970 = vmatprep.subr.bf16.mxu1 %v11114_v19  ;;  %v11157_v0 = vld [vmem:[%s11940_s7 + $0x2198] ss:$68 sps:$4 sm:$0xff]   ;;  %v11160_v1 = vld [vmem:[%s11940_s7 + $0x21a0] ss:$68 sps:$4 sm:$0xff]   ;;  %v11163_v6 = vld [vmem:[%s11940_s7 + $0x30] ss:$68 sps:$4 sm:$0xff]  }
 0x334   : > { %v11168_v4 = vld [vmem:[%s11940_s7 + $0x3c] ss:$68 sps:$4 sm:$0xff]   ;;  %v11177_v19 = vld [vmem:[%s11940_s7 + $0x144] ss:$68 sps:$4 sm:$0xff]  }
 0x335   : > { %v11166_v7 = vld [vmem:[%s11940_s7 + $0x38] ss:$68 sps:$4 sm:$0xff]   ;;  %v11172_v16 = vld [vmem:[%s11940_s7 + $0xc0] ss:$68 sps:$4 sm:$0xff]  }
 0x336   : > { %7807 = vmatpush1.bf16.msra.mxu0 %v11109_v22  ;;  %7971 = vmatpush1.bf16.msra.mxu1 %v11112_v23  ;;  %v11171_v8 = vld [vmem:[%s11940_s7 + $0xbc] ss:$68 sps:$4 sm:$0xff]   ;;  %v11180_v22 = vld [vmem:[%s11940_s7 + $0x14c] ss:$68 sps:$4 sm:$0xff]  }
 0x337   : > { %7808 = vmatprep.subr.bf16.mxu0 %v11117_v13  ;;  %7972 = vmatprep.subr.bf16.mxu1 %v11120_v25  ;;  %v11169_v14 = vld [vmem:[%s11940_s7 + $0xb8] ss:$68 sps:$4 sm:$0xff]   ;;  %v11175_v23 = vld [vmem:[%s11940_s7 + $0x140] ss:$68 sps:$4 sm:$0xff]   ;;  %v11178_v13 = vld [vmem:[%s11940_s7 + $0x148] ss:$68 sps:$4 sm:$0xff]  }
 0x338   : > { %v11183_v25 = vld [vmem:[%s11940_s7 + $0x1cc] ss:$68 sps:$4 sm:$0xff]  }
 0x339   : > { %v11620_v32 = vpop.eup %11619 }
 0x33a   : > { %v11622_v33 = vpop.eup %11621  ;;  %8506 = vst [vmem:[%s12532_s10 + $0x20] sm:$0xff] %v11620_v32  ;;  %7809 = vmatpush1.bf16.msra.mxu0 %v11115_v26  ;;  %7973 = vmatpush1.bf16.msra.mxu1 %v11118_v27  ;;  %v11186_v26 = vld [vmem:[%s11940_s7 + $0x1d4] ss:$68 sps:$4 sm:$0xff]   ;;  %v11181_v27 = vld [vmem:[%s11940_s7 + $0x1c8] ss:$68 sps:$4 sm:$0xff]  }
 0x33b   : > { %v11624_v21 = vpop.eup %11623  ;;  %8508 = vst [vmem:[%s12532_s10 + $0x30] sm:$0xff] %v11622_v33  ;;  %7810 = vmatprep.subr.bf16.mxu0 %v11123_v29  ;;  %7974 = vmatprep.subr.bf16.mxu1 %v11126_v31  ;;  %v11184_v29 = vld [vmem:[%s11940_s7 + $0x1d0] ss:$68 sps:$4 sm:$0xff]   ;;  %v11192_v32 = vld [vmem:[%s11940_s7 + $0x25c] ss:$68 sps:$4 sm:$0xff]  }
 0x33c   : > { %v11626_v38 = vpop.eup %11625  ;;  %8507 = vst [vmem:[%s12532_s10 + $0x28] sm:$0xff] %v11624_v21  ;;  %v11189_v31 = vld [vmem:[%s11940_s7 + $0x254] ss:$68 sps:$4 sm:$0xff]   ;;  %v11198_v21 = vld [vmem:[%s11940_s7 + $0x2e4] ss:$68 sps:$4 sm:$0xff]  }
 0x33d   : > { %8509 = vst [vmem:[%s12532_s10 + $0x38] sm:$0xff] %v11626_v38  ;;  %v11187_v33 = vld [vmem:[%s11940_s7 + $0x250] ss:$68 sps:$4 sm:$0xff]   ;;  %v11201_v38 = vld [vmem:[%s11940_s7 + $0x364] ss:$68 sps:$4 sm:$0xff]  }
 0x33e   : > { %7811 = vmatpush1.bf16.msra.mxu0 %v11121_v34  ;;  %7975 = vmatpush1.bf16.msra.mxu1 %v11124_v35  ;;  %v11190_v34 = vld [vmem:[%s11940_s7 + $0x258] ss:$68 sps:$4 sm:$0xff]  }
 0x33f   : > { %7812 = vmatprep.subr.bf16.mxu0 %v11129_v36  ;;  %7976 = vmatprep.subr.bf16.mxu1 %v11132_v37  ;;  %v11195_v35 = vld [vmem:[%s11940_s7 + $0x2dc] ss:$68 sps:$4 sm:$0xff]  }
 0x340   : > { %v11193_v36 = vld [vmem:[%s11940_s7 + $0x2d8] ss:$68 sps:$4 sm:$0xff]   ;;  %v11196_v37 = vld [vmem:[%s11940_s7 + $0x2e0] ss:$68 sps:$4 sm:$0xff]  }
 0x342   : > { %7813 = vmatpush1.bf16.msra.mxu0 %v11127_v39  ;;  %7977 = vmatpush1.bf16.msra.mxu1 %v11130_v40  ;;  %v11204_v39 = vld [vmem:[%s11940_s7 + $0x36c] ss:$68 sps:$4 sm:$0xff]   ;;  %v11199_v40 = vld [vmem:[%s11940_s7 + $0x360] ss:$68 sps:$4 sm:$0xff]  }
 0x343   : > { %7814 = vmatprep.subr.bf16.mxu0 %v11135_v43  ;;  %7978 = vmatprep.subr.bf16.mxu1 %v11138_v44  ;;  %v11202_v43 = vld [vmem:[%s11940_s7 + $0x368] ss:$68 sps:$4 sm:$0xff]  }
 0x344   : > { %v11207_v44 = vld [vmem:[%s11940_s7 + $0x3ec] ss:$68 sps:$4 sm:$0xff]  }
 0x346   : > { %7815 = vmatpush1.bf16.msra.mxu0 %v11133_v47  ;;  %7979 = vmatpush1.bf16.msra.mxu1 %v11136_v49  ;;  %v11210_v47 = vld [vmem:[%s11940_s7 + $0x3f4] ss:$68 sps:$4 sm:$0xff]   ;;  %v11205_v49 = vld [vmem:[%s11940_s7 + $0x3e8] ss:$68 sps:$4 sm:$0xff]  }
 0x347   : > { %7816 = vmatprep.subr.bf16.mxu0 %v11141_v50  ;;  %7980 = vmatprep.subr.bf16.mxu1 %v11144_v51  ;;  %v11208_v50 = vld [vmem:[%s11940_s7 + $0x3f0] ss:$68 sps:$4 sm:$0xff]  }
 0x348   : > { %v11213_v51 = vld [vmem:[%s11940_s7 + $0x474] ss:$68 sps:$4 sm:$0xff]  }
 0x34a   : > { %7817 = vmatpush1.bf16.msra.mxu0 %v11139_v52  ;;  %7981 = vmatpush1.bf16.msra.mxu1 %v11142_v53  ;;  %v11216_v52 = vld [vmem:[%s11940_s7 + $0x47c] ss:$68 sps:$4 sm:$0xff]   ;;  %v11211_v53 = vld [vmem:[%s11940_s7 + $0x470] ss:$68 sps:$4 sm:$0xff]  }
 0x34b   : > { %7818 = vmatprep.subr.bf16.mxu0 %v11147_v54  ;;  %7982 = vmatprep.subr.bf16.mxu1 %v11150_v55  ;;  %v11214_v54 = vld [vmem:[%s11940_s7 + $0x478] ss:$68 sps:$4 sm:$0xff]  }
 0x34c   : > { %v11219_v55 = vld [vmem:[%s11940_s7 + $0x4fc] ss:$68 sps:$4 sm:$0xff]  }
 0x34e   : > { %7819 = vmatpush1.bf16.msra.mxu0 %v11145_v56  ;;  %7983 = vmatpush1.bf16.msra.mxu1 %v11148_v57  ;;  %v11222_v56 = vld [vmem:[%s11940_s7 + $0x504] ss:$68 sps:$4 sm:$0xff]   ;;  %v11217_v57 = vld [vmem:[%s11940_s7 + $0x4f8] ss:$68 sps:$4 sm:$0xff]  }
 0x34f   : > { %7820 = vmatprep.subr.bf16.mxu0 %v11153_v58  ;;  %7984 = vmatprep.subr.bf16.mxu1 %v11156_v59  ;;  %v11220_v58 = vld [vmem:[%s11940_s7 + $0x500] ss:$68 sps:$4 sm:$0xff]  }
 0x350   : > { %v11225_v59 = vld [vmem:[%s11940_s7 + $0x584] ss:$68 sps:$4 sm:$0xff]  }
 0x352   : > { %7821 = vmatpush1.bf16.msra.mxu0 %v11151_v60  ;;  %7985 = vmatpush1.bf16.msra.mxu1 %v11154_v61  ;;  %v11228_v60 = vld [vmem:[%s11940_s7 + $0x58c] ss:$68 sps:$4 sm:$0xff]   ;;  %v11223_v61 = vld [vmem:[%s11940_s7 + $0x580] ss:$68 sps:$4 sm:$0xff]  }
 0x353   : > { %7822 = vmatprep.subr.bf16.mxu0 %v11159_v62  ;;  %7986 = vmatprep.subr.bf16.mxu1 %v11162_v63  ;;  %v11226_v62 = vld [vmem:[%s11940_s7 + $0x588] ss:$68 sps:$4 sm:$0xff]  }
 0x354   : > { %v11231_v63 = vld [vmem:[%s11940_s7 + $0x60c] ss:$68 sps:$4 sm:$0xff]  }
 0x356   : > { %7823 = vmatpush1.bf16.msra.mxu0 %v11157_v0  ;;  %7987 = vmatpush1.bf16.msra.mxu1 %v11160_v1  ;;  %v11234_v0 = vld [vmem:[%s11940_s7 + $0x614] ss:$68 sps:$4 sm:$0xff]   ;;  %v11229_v1 = vld [vmem:[%s11940_s7 + $0x608] ss:$68 sps:$4 sm:$0xff]  }
 0x357   : > { %7997 = vmatprep.subr.bf16.mxu0 %v11165_v2  ;;  %8161 = vmatprep.subr.bf16.mxu1 %v11168_v4  ;;  %v11232_v2 = vld [vmem:[%s11940_s7 + $0x610] ss:$68 sps:$4 sm:$0xff]  }
 0x358   : > { %v11237_v4 = vld [vmem:[%s11940_s7 + $0x694] ss:$68 sps:$4 sm:$0xff]  }
 0x359   : > { %7825 = vmatmul.mubr.bf16.vlgmr.msra.gmra.mrb[8].mxu0 %v12270_v28  ;;  %7989 = vmatmul.mubr.bf16.vlgmr.msra.gmra.mrb[8].mxu1 %v12270_v28 }
 0x35a   : > { %7998 = vmatpush1.bf16.msra.mxu0 %v11163_v6  ;;  %8162 = vmatpush1.bf16.msra.mxu1 %v11166_v7  ;;  %v11240_v6 = vld [vmem:[%s11940_s7 + $0x69c] ss:$68 sps:$4 sm:$0xff]   ;;  %v11235_v7 = vld [vmem:[%s11940_s7 + $0x690] ss:$68 sps:$4 sm:$0xff]  }
 0x35b   : > { %7999 = vmatprep.subr.bf16.mxu0 %v11171_v8  ;;  %8163 = vmatprep.subr.bf16.mxu1 %v11174_v9  ;;  %v11238_v8 = vld [vmem:[%s11940_s7 + $0x698] ss:$68 sps:$4 sm:$0xff]  }
 0x35c   : > { %8029 = vmatprep.mubr.bf16.mxu0 %v12004_v48  ;;  %8193 = vmatprep.mubr.bf16.mxu1 %v12004_v48  ;;  %v11243_v9 = vld [vmem:[%s11940_s7 + $0x71c] ss:$68 sps:$4 sm:$0xff]  }
 0x35e   : > { %8000 = vmatpush1.bf16.msra.mxu0 %v11169_v14  ;;  %8164 = vmatpush1.bf16.msra.mxu1 %v11172_v16  ;;  %v11246_v14 = vld [vmem:[%s11940_s7 + $0x724] ss:$68 sps:$4 sm:$0xff]   ;;  %v11241_v16 = vld [vmem:[%s11940_s7 + $0x718] ss:$68 sps:$4 sm:$0xff]  }
 0x35f   : > { %8001 = vmatprep.subr.bf16.mxu0 %v11177_v19  ;;  %8165 = vmatprep.subr.bf16.mxu1 %v11180_v22  ;;  %v11244_v19 = vld [vmem:[%s11940_s7 + $0x720] ss:$68 sps:$4 sm:$0xff]  }
 0x360   : > { %v11249_v22 = vld [vmem:[%s11940_s7 + $0x7a4] ss:$68 sps:$4 sm:$0xff]  }
 0x362   : > { %8002 = vmatpush1.bf16.msra.mxu0 %v11175_v23  ;;  %8166 = vmatpush1.bf16.msra.mxu1 %v11178_v13  ;;  %v11252_v23 = vld [vmem:[%s11940_s7 + $0x7ac] ss:$68 sps:$4 sm:$0xff]   ;;  %v11247_v13 = vld [vmem:[%s11940_s7 + $0x7a0] ss:$68 sps:$4 sm:$0xff]  }
 0x363   : > { %8003 = vmatprep.subr.bf16.mxu0 %v11183_v25  ;;  %8167 = vmatprep.subr.bf16.mxu1 %v11186_v26  ;;  %v11250_v25 = vld [vmem:[%s11940_s7 + $0x7a8] ss:$68 sps:$4 sm:$0xff]  }
 0x364   : > { %v11255_v26 = vld [vmem:[%s11940_s7 + $0x82c] ss:$68 sps:$4 sm:$0xff]  }
 0x366   : > { %8004 = vmatpush1.bf16.msra.mxu0 %v11181_v27  ;;  %8168 = vmatpush1.bf16.msra.mxu1 %v11184_v29  ;;  %v11258_v27 = vld [vmem:[%s11940_s7 + $0x834] ss:$68 sps:$4 sm:$0xff]   ;;  %v11253_v29 = vld [vmem:[%s11940_s7 + $0x828] ss:$68 sps:$4 sm:$0xff]  }
 0x367   : > { %8005 = vmatprep.subr.bf16.mxu0 %v11189_v31  ;;  %8169 = vmatprep.subr.bf16.mxu1 %v11192_v32  ;;  %v11256_v31 = vld [vmem:[%s11940_s7 + $0x830] ss:$68 sps:$4 sm:$0xff]  }
 0x368   : > { %v11261_v32 = vld [vmem:[%s11940_s7 + $0x8b4] ss:$68 sps:$4 sm:$0xff]  }
 0x36a   : > { %8006 = vmatpush1.bf16.msra.mxu0 %v11187_v33  ;;  %8170 = vmatpush1.bf16.msra.mxu1 %v11190_v34  ;;  %v11264_v33 = vld [vmem:[%s11940_s7 + $0x8bc] ss:$68 sps:$4 sm:$0xff]   ;;  %v11259_v34 = vld [vmem:[%s11940_s7 + $0x8b0] ss:$68 sps:$4 sm:$0xff]  }
 0x36b   : > { %8007 = vmatprep.subr.bf16.mxu0 %v11195_v35  ;;  %8171 = vmatprep.subr.bf16.mxu1 %v11198_v21  ;;  %v11262_v35 = vld [vmem:[%s11940_s7 + $0x8b8] ss:$68 sps:$4 sm:$0xff]  }
 0x36c   : > { %v11267_v21 = vld [vmem:[%s11940_s7 + $0x93c] ss:$68 sps:$4 sm:$0xff]  }
 0x36e   : > { %8008 = vmatpush1.bf16.msra.mxu0 %v11193_v36  ;;  %8172 = vmatpush1.bf16.msra.mxu1 %v11196_v37  ;;  %v11270_v36 = vld [vmem:[%s11940_s7 + $0x944] ss:$68 sps:$4 sm:$0xff]   ;;  %v11265_v37 = vld [vmem:[%s11940_s7 + $0x938] ss:$68 sps:$4 sm:$0xff]  }
 0x36f   : > { %8009 = vmatprep.subr.bf16.mxu0 %v11201_v38  ;;  %8173 = vmatprep.subr.bf16.mxu1 %v11204_v39  ;;  %v11268_v38 = vld [vmem:[%s11940_s7 + $0x940] ss:$68 sps:$4 sm:$0xff]  }
 0x370   : > { %v11273_v39 = vld [vmem:[%s11940_s7 + $0x9c4] ss:$68 sps:$4 sm:$0xff]  }
 0x372   : > { %8010 = vmatpush1.bf16.msra.mxu0 %v11199_v40  ;;  %8174 = vmatpush1.bf16.msra.mxu1 %v11202_v43  ;;  %v11276_v40 = vld [vmem:[%s11940_s7 + $0x9cc] ss:$68 sps:$4 sm:$0xff]   ;;  %v11271_v43 = vld [vmem:[%s11940_s7 + $0x9c0] ss:$68 sps:$4 sm:$0xff]  }
 0x373   : > { %8011 = vmatprep.subr.bf16.mxu0 %v11207_v44  ;;  %8175 = vmatprep.subr.bf16.mxu1 %v11210_v47  ;;  %v11274_v44 = vld [vmem:[%s11940_s7 + $0x9c8] ss:$68 sps:$4 sm:$0xff]  }
 0x374   : > { %v11279_v47 = vld [vmem:[%s11940_s7 + $0xa4c] ss:$68 sps:$4 sm:$0xff]  }
 0x376   : > { %8012 = vmatpush1.bf16.msra.mxu0 %v11205_v49  ;;  %8176 = vmatpush1.bf16.msra.mxu1 %v11208_v50  ;;  %v11282_v49 = vld [vmem:[%s11940_s7 + $0xa54] ss:$68 sps:$4 sm:$0xff]   ;;  %v11277_v50 = vld [vmem:[%s11940_s7 + $0xa48] ss:$68 sps:$4 sm:$0xff]  }
 0x377   : > { %8013 = vmatprep.subr.bf16.mxu0 %v11213_v51  ;;  %8177 = vmatprep.subr.bf16.mxu1 %v11216_v52  ;;  %v11280_v51 = vld [vmem:[%s11940_s7 + $0xa50] ss:$68 sps:$4 sm:$0xff]  }
 0x378   : > { %v11285_v52 = vld [vmem:[%s11940_s7 + $0xad4] ss:$68 sps:$4 sm:$0xff]  }
 0x37a   : > { %8014 = vmatpush1.bf16.msra.mxu0 %v11211_v53  ;;  %8178 = vmatpush1.bf16.msra.mxu1 %v11214_v54  ;;  %v11288_v53 = vld [vmem:[%s11940_s7 + $0xadc] ss:$68 sps:$4 sm:$0xff]   ;;  %v11283_v54 = vld [vmem:[%s11940_s7 + $0xad0] ss:$68 sps:$4 sm:$0xff]  }
 0x37b   : > { %8015 = vmatprep.subr.bf16.mxu0 %v11219_v55  ;;  %8179 = vmatprep.subr.bf16.mxu1 %v11222_v56  ;;  %v11286_v55 = vld [vmem:[%s11940_s7 + $0xad8] ss:$68 sps:$4 sm:$0xff]  }
 0x37c   : > { %v11291_v56 = vld [vmem:[%s11940_s7 + $0xb5c] ss:$68 sps:$4 sm:$0xff]  }
 0x37e   : > { %8016 = vmatpush1.bf16.msra.mxu0 %v11217_v57  ;;  %8180 = vmatpush1.bf16.msra.mxu1 %v11220_v58  ;;  %v11294_v57 = vld [vmem:[%s11940_s7 + $0xb64] ss:$68 sps:$4 sm:$0xff]   ;;  %v11289_v58 = vld [vmem:[%s11940_s7 + $0xb58] ss:$68 sps:$4 sm:$0xff]  }
 0x37f   : > { %8017 = vmatprep.subr.bf16.mxu0 %v11225_v59  ;;  %8181 = vmatprep.subr.bf16.mxu1 %v11228_v60  ;;  %v11292_v59 = vld [vmem:[%s11940_s7 + $0xb60] ss:$68 sps:$4 sm:$0xff]  }
 0x380   : > { %v11297_v60 = vld [vmem:[%s11940_s7 + $0xbe4] ss:$68 sps:$4 sm:$0xff]  }
 0x382   : > { %8018 = vmatpush1.bf16.msra.mxu0 %v11223_v61  ;;  %8182 = vmatpush1.bf16.msra.mxu1 %v11226_v62  ;;  %v11300_v61 = vld [vmem:[%s11940_s7 + $0xbec] ss:$68 sps:$4 sm:$0xff]   ;;  %v11295_v62 = vld [vmem:[%s11940_s7 + $0xbe0] ss:$68 sps:$4 sm:$0xff]  }
 0x383   : > { %8019 = vmatprep.subr.bf16.mxu0 %v11231_v63  ;;  %8183 = vmatprep.subr.bf16.mxu1 %v11234_v0  ;;  %v11298_v63 = vld [vmem:[%s11940_s7 + $0xbe8] ss:$68 sps:$4 sm:$0xff]  }
 0x384   : > { %v11303_v0 = vld [vmem:[%s11940_s7 + $0xc6c] ss:$68 sps:$4 sm:$0xff]  }
 0x386   : > { %8020 = vmatpush1.bf16.msra.mxu0 %v11229_v1  ;;  %8184 = vmatpush1.bf16.msra.mxu1 %v11232_v2  ;;  %v11306_v1 = vld [vmem:[%s11940_s7 + $0xc74] ss:$68 sps:$4 sm:$0xff]   ;;  %v11301_v2 = vld [vmem:[%s11940_s7 + $0xc68] ss:$68 sps:$4 sm:$0xff]  }
 0x387   : > { %8021 = vmatprep.subr.bf16.mxu0 %v11237_v4  ;;  %8185 = vmatprep.subr.bf16.mxu1 %v11240_v6  ;;  %v11304_v4 = vld [vmem:[%s11940_s7 + $0xc70] ss:$68 sps:$4 sm:$0xff]  }
 0x388   : > { %v11309_v6 = vld [vmem:[%s11940_s7 + $0xcf4] ss:$68 sps:$4 sm:$0xff]  }
 0x38a   : > { %8022 = vmatpush1.bf16.msra.mxu0 %v11235_v7  ;;  %8186 = vmatpush1.bf16.msra.mxu1 %v11238_v8  ;;  %v11312_v7 = vld [vmem:[%s11940_s7 + $0xcfc] ss:$68 sps:$4 sm:$0xff]   ;;  %v11307_v8 = vld [vmem:[%s11940_s7 + $0xcf0] ss:$68 sps:$4 sm:$0xff]  }
 0x38b   : > { %8023 = vmatprep.subr.bf16.mxu0 %v11243_v9  ;;  %8187 = vmatprep.subr.bf16.mxu1 %v11246_v14  ;;  %v11310_v9 = vld [vmem:[%s11940_s7 + $0xcf8] ss:$68 sps:$4 sm:$0xff]  }
 0x38c   : > { %v11315_v14 = vld [vmem:[%s11940_s7 + $0xd7c] ss:$68 sps:$4 sm:$0xff]  }
 0x38e   : > { %8024 = vmatpush1.bf16.msra.mxu0 %v11241_v16  ;;  %8188 = vmatpush1.bf16.msra.mxu1 %v11244_v19  ;;  %v11318_v16 = vld [vmem:[%s11940_s7 + $0xd84] ss:$68 sps:$4 sm:$0xff]   ;;  %v11313_v19 = vld [vmem:[%s11940_s7 + $0xd78] ss:$68 sps:$4 sm:$0xff]  }
 0x38f   : > { %8025 = vmatprep.subr.bf16.mxu0 %v11249_v22  ;;  %8189 = vmatprep.subr.bf16.mxu1 %v11252_v23  ;;  %v11316_v22 = vld [vmem:[%s11940_s7 + $0xd80] ss:$68 sps:$4 sm:$0xff]  }
 0x390   : > { %v11321_v23 = vld [vmem:[%s11940_s7 + $0xe04] ss:$68 sps:$4 sm:$0xff]  }
 0x392   : > { %8026 = vmatpush1.bf16.msra.mxu0 %v11247_v13  ;;  %8190 = vmatpush1.bf16.msra.mxu1 %v11250_v25  ;;  %v11324_v13 = vld [vmem:[%s11940_s7 + $0xe0c] ss:$68 sps:$4 sm:$0xff]   ;;  %v11319_v25 = vld [vmem:[%s11940_s7 + $0xe00] ss:$68 sps:$4 sm:$0xff]  }
 0x393   : > { %8027 = vmatprep.subr.bf16.mxu0 %v11255_v26  ;;  %8191 = vmatprep.subr.bf16.mxu1 %v11258_v27  ;;  %v11322_v26 = vld [vmem:[%s11940_s7 + $0xe08] ss:$68 sps:$4 sm:$0xff]  }
 0x394   : > { %v11327_v27 = vld [vmem:[%s11940_s7 + $0xe8c] ss:$68 sps:$4 sm:$0xff]  }
 0x396   : > { %8028 = vmatpush1.bf16.msra.mxu0 %v11253_v29  ;;  %8192 = vmatpush1.bf16.msra.mxu1 %v11256_v31  ;;  %v11330_v29 = vld [vmem:[%s11940_s7 + $0xe94] ss:$68 sps:$4 sm:$0xff]   ;;  %v11325_v31 = vld [vmem:[%s11940_s7 + $0xe88] ss:$68 sps:$4 sm:$0xff]  }
 0x397   : > { %8038 = vmatprep.subr.bf16.mxu0 %v11261_v32  ;;  %8202 = vmatprep.subr.bf16.mxu1 %v11264_v33  ;;  %v11328_v32 = vld [vmem:[%s11940_s7 + $0xe90] ss:$68 sps:$4 sm:$0xff]  }
 0x398   : > { %v11333_v33 = vld [vmem:[%s11940_s7 + $0xf14] ss:$68 sps:$4 sm:$0xff]  }
 0x399   : > { %8030 = vmatmul.mubr.bf16.vlgmr.msra.gmra.mrb[12].mxu0 %v12028_v5  ;;  %8194 = vmatmul.mubr.bf16.vlgmr.msra.gmra.mrb[12].mxu1 %v12028_v5 }
 0x39a   : > { %8039 = vmatpush1.bf16.msra.mxu0 %v11259_v34  ;;  %8203 = vmatpush1.bf16.msra.mxu1 %v11262_v35  ;;  %v11336_v34 = vld [vmem:[%s11940_s7 + $0xf1c] ss:$68 sps:$4 sm:$0xff]   ;;  %v11331_v35 = vld [vmem:[%s11940_s7 + $0xf10] ss:$68 sps:$4 sm:$0xff]  }
 0x39b   : > { %8040 = vmatprep.subr.bf16.mxu0 %v11267_v21  ;;  %8204 = vmatprep.subr.bf16.mxu1 %v11270_v36  ;;  %v11334_v21 = vld [vmem:[%s11940_s7 + $0xf18] ss:$68 sps:$4 sm:$0xff]  }
 0x39c   : > { %8070 = vmatprep.mubr.bf16.mxu0 %v12062_v30  ;;  %8234 = vmatprep.mubr.bf16.mxu1 %v12062_v30  ;;  %v11339_v36 = vld [vmem:[%s11940_s7 + $0xf9c] ss:$68 sps:$4 sm:$0xff]  }
 0x39e   : > { %8041 = vmatpush1.bf16.msra.mxu0 %v11265_v37  ;;  %8205 = vmatpush1.bf16.msra.mxu1 %v11268_v38  ;;  %v11342_v37 = vld [vmem:[%s11940_s7 + $0xfa4] ss:$68 sps:$4 sm:$0xff]   ;;  %v11337_v38 = vld [vmem:[%s11940_s7 + $0xf98] ss:$68 sps:$4 sm:$0xff]  }
 0x39f   : > { %8042 = vmatprep.subr.bf16.mxu0 %v11273_v39  ;;  %8206 = vmatprep.subr.bf16.mxu1 %v11276_v40  ;;  %v11340_v39 = vld [vmem:[%s11940_s7 + $0xfa0] ss:$68 sps:$4 sm:$0xff]  }
 0x3a0   : > { %v11345_v40 = vld [vmem:[%s11940_s7 + $0x1024] ss:$68 sps:$4 sm:$0xff]  }
 0x3a2   : > { %8043 = vmatpush1.bf16.msra.mxu0 %v11271_v43  ;;  %8207 = vmatpush1.bf16.msra.mxu1 %v11274_v44  ;;  %v11348_v43 = vld [vmem:[%s11940_s7 + $0x102c] ss:$68 sps:$4 sm:$0xff]   ;;  %v11343_v44 = vld [vmem:[%s11940_s7 + $0x1020] ss:$68 sps:$4 sm:$0xff]  }
 0x3a3   : > { %8044 = vmatprep.subr.bf16.mxu0 %v11279_v47  ;;  %8208 = vmatprep.subr.bf16.mxu1 %v11282_v49  ;;  %v11346_v47 = vld [vmem:[%s11940_s7 + $0x1028] ss:$68 sps:$4 sm:$0xff]  }
 0x3a4   : > { %v11351_v49 = vld [vmem:[%s11940_s7 + $0x10ac] ss:$68 sps:$4 sm:$0xff]  }
 0x3a6   : > { %8045 = vmatpush1.bf16.msra.mxu0 %v11277_v50  ;;  %8209 = vmatpush1.bf16.msra.mxu1 %v11280_v51  ;;  %v11354_v50 = vld [vmem:[%s11940_s7 + $0x10b4] ss:$68 sps:$4 sm:$0xff]   ;;  %v11349_v51 = vld [vmem:[%s11940_s7 + $0x10a8] ss:$68 sps:$4 sm:$0xff]  }
 0x3a7   : > { %8046 = vmatprep.subr.bf16.mxu0 %v11285_v52  ;;  %8210 = vmatprep.subr.bf16.mxu1 %v11288_v53  ;;  %v11352_v52 = vld [vmem:[%s11940_s7 + $0x10b0] ss:$68 sps:$4 sm:$0xff]  }
 0x3a8   : > { %v11357_v53 = vld [vmem:[%s11940_s7 + $0x1134] ss:$68 sps:$4 sm:$0xff]  }
 0x3aa   : > { %8047 = vmatpush1.bf16.msra.mxu0 %v11283_v54  ;;  %8211 = vmatpush1.bf16.msra.mxu1 %v11286_v55  ;;  %v11360_v54 = vld [vmem:[%s11940_s7 + $0x113c] ss:$68 sps:$4 sm:$0xff]   ;;  %v11355_v55 = vld [vmem:[%s11940_s7 + $0x1130] ss:$68 sps:$4 sm:$0xff]  }
 0x3ab   : > { %8048 = vmatprep.subr.bf16.mxu0 %v11291_v56  ;;  %8212 = vmatprep.subr.bf16.mxu1 %v11294_v57  ;;  %v11358_v56 = vld [vmem:[%s11940_s7 + $0x1138] ss:$68 sps:$4 sm:$0xff]  }
 0x3ac   : > { %v11363_v57 = vld [vmem:[%s11940_s7 + $0x11bc] ss:$68 sps:$4 sm:$0xff]  }
 0x3ae   : > { %8049 = vmatpush1.bf16.msra.mxu0 %v11289_v58  ;;  %8213 = vmatpush1.bf16.msra.mxu1 %v11292_v59  ;;  %v11366_v58 = vld [vmem:[%s11940_s7 + $0x11c4] ss:$68 sps:$4 sm:$0xff]   ;;  %v11361_v59 = vld [vmem:[%s11940_s7 + $0x11b8] ss:$68 sps:$4 sm:$0xff]  }
 0x3af   : > { %8050 = vmatprep.subr.bf16.mxu0 %v11297_v60  ;;  %8214 = vmatprep.subr.bf16.mxu1 %v11300_v61  ;;  %v11364_v60 = vld [vmem:[%s11940_s7 + $0x11c0] ss:$68 sps:$4 sm:$0xff]  }
 0x3b0   : > { %v11369_v61 = vld [vmem:[%s11940_s7 + $0x1244] ss:$68 sps:$4 sm:$0xff]  }
 0x3b2   : > { %8051 = vmatpush1.bf16.msra.mxu0 %v11295_v62  ;;  %8215 = vmatpush1.bf16.msra.mxu1 %v11298_v63  ;;  %v11372_v62 = vld [vmem:[%s11940_s7 + $0x124c] ss:$68 sps:$4 sm:$0xff]   ;;  %v11367_v63 = vld [vmem:[%s11940_s7 + $0x1240] ss:$68 sps:$4 sm:$0xff]  }
 0x3b3   : > { %8052 = vmatprep.subr.bf16.mxu0 %v11303_v0  ;;  %8216 = vmatprep.subr.bf16.mxu1 %v11306_v1  ;;  %v11370_v0 = vld [vmem:[%s11940_s7 + $0x1248] ss:$68 sps:$4 sm:$0xff]  }
 0x3b4   : > { %v11375_v1 = vld [vmem:[%s11940_s7 + $0x12cc] ss:$68 sps:$4 sm:$0xff]  }
 0x3b6   : > { %8053 = vmatpush1.bf16.msra.mxu0 %v11301_v2  ;;  %8217 = vmatpush1.bf16.msra.mxu1 %v11304_v4  ;;  %v11378_v2 = vld [vmem:[%s11940_s7 + $0x12d4] ss:$68 sps:$4 sm:$0xff]   ;;  %v11373_v4 = vld [vmem:[%s11940_s7 + $0x12c8] ss:$68 sps:$4 sm:$0xff]  }
 0x3b7   : > { %8054 = vmatprep.subr.bf16.mxu0 %v11309_v6  ;;  %8218 = vmatprep.subr.bf16.mxu1 %v11312_v7  ;;  %v11376_v6 = vld [vmem:[%s11940_s7 + $0x12d0] ss:$68 sps:$4 sm:$0xff]  }
 0x3b8   : > { %v11381_v7 = vld [vmem:[%s11940_s7 + $0x1354] ss:$68 sps:$4 sm:$0xff]  }
 0x3ba   : > { %8055 = vmatpush1.bf16.msra.mxu0 %v11307_v8  ;;  %8219 = vmatpush1.bf16.msra.mxu1 %v11310_v9  ;;  %v11384_v8 = vld [vmem:[%s11940_s7 + $0x135c] ss:$68 sps:$4 sm:$0xff]   ;;  %v11379_v9 = vld [vmem:[%s11940_s7 + $0x1350] ss:$68 sps:$4 sm:$0xff]  }
 0x3bb   : > { %8056 = vmatprep.subr.bf16.mxu0 %v11315_v14  ;;  %8220 = vmatprep.subr.bf16.mxu1 %v11318_v16  ;;  %v11382_v14 = vld [vmem:[%s11940_s7 + $0x1358] ss:$68 sps:$4 sm:$0xff]  }
 0x3bc   : > { %v11387_v16 = vld [vmem:[%s11940_s7 + $0x13dc] ss:$68 sps:$4 sm:$0xff]  }
 0x3be   : > { %8057 = vmatpush1.bf16.msra.mxu0 %v11313_v19  ;;  %8221 = vmatpush1.bf16.msra.mxu1 %v11316_v22  ;;  %v11390_v19 = vld [vmem:[%s11940_s7 + $0x13e4] ss:$68 sps:$4 sm:$0xff]   ;;  %v11385_v22 = vld [vmem:[%s11940_s7 + $0x13d8] ss:$68 sps:$4 sm:$0xff]  }
 0x3bf   : > { %8058 = vmatprep.subr.bf16.mxu0 %v11321_v23  ;;  %8222 = vmatprep.subr.bf16.mxu1 %v11324_v13  ;;  %v11388_v23 = vld [vmem:[%s11940_s7 + $0x13e0] ss:$68 sps:$4 sm:$0xff]  }
 0x3c0   : > { %v11393_v13 = vld [vmem:[%s11940_s7 + $0x1464] ss:$68 sps:$4 sm:$0xff]  }
 0x3c2   : > { %8059 = vmatpush1.bf16.msra.mxu0 %v11319_v25  ;;  %8223 = vmatpush1.bf16.msra.mxu1 %v11322_v26  ;;  %v11396_v25 = vld [vmem:[%s11940_s7 + $0x146c] ss:$68 sps:$4 sm:$0xff]   ;;  %v11391_v26 = vld [vmem:[%s11940_s7 + $0x1460] ss:$68 sps:$4 sm:$0xff]  }
 0x3c3   : > { %8060 = vmatprep.subr.bf16.mxu0 %v11327_v27  ;;  %8224 = vmatprep.subr.bf16.mxu1 %v11330_v29  ;;  %v11394_v27 = vld [vmem:[%s11940_s7 + $0x1468] ss:$68 sps:$4 sm:$0xff]  }
 0x3c4   : > { %v11399_v29 = vld [vmem:[%s11940_s7 + $0x14ec] ss:$68 sps:$4 sm:$0xff]  }
 0x3c6   : > { %8061 = vmatpush1.bf16.msra.mxu0 %v11325_v31  ;;  %8225 = vmatpush1.bf16.msra.mxu1 %v11328_v32  ;;  %v11402_v31 = vld [vmem:[%s11940_s7 + $0x14f4] ss:$68 sps:$4 sm:$0xff]   ;;  %v11397_v32 = vld [vmem:[%s11940_s7 + $0x14e8] ss:$68 sps:$4 sm:$0xff]  }
 0x3c7   : > { %8062 = vmatprep.subr.bf16.mxu0 %v11333_v33  ;;  %8226 = vmatprep.subr.bf16.mxu1 %v11336_v34  ;;  %v11400_v33 = vld [vmem:[%s11940_s7 + $0x14f0] ss:$68 sps:$4 sm:$0xff]  }
 0x3c8   : > { %v11405_v34 = vld [vmem:[%s11940_s7 + $0x1574] ss:$68 sps:$4 sm:$0xff]  }
 0x3ca   : > { %8063 = vmatpush1.bf16.msra.mxu0 %v11331_v35  ;;  %8227 = vmatpush1.bf16.msra.mxu1 %v11334_v21  ;;  %v11408_v35 = vld [vmem:[%s11940_s7 + $0x157c] ss:$68 sps:$4 sm:$0xff]   ;;  %v11403_v21 = vld [vmem:[%s11940_s7 + $0x1570] ss:$68 sps:$4 sm:$0xff]  }
 0x3cb   : > { %8064 = vmatprep.subr.bf16.mxu0 %v11339_v36  ;;  %8228 = vmatprep.subr.bf16.mxu1 %v11342_v37  ;;  %v11406_v36 = vld [vmem:[%s11940_s7 + $0x1578] ss:$68 sps:$4 sm:$0xff]  }
 0x3cc   : > { %v11411_v37 = vld [vmem:[%s11940_s7 + $0x15fc] ss:$68 sps:$4 sm:$0xff]  }
 0x3ce   : > { %8065 = vmatpush1.bf16.msra.mxu0 %v11337_v38  ;;  %8229 = vmatpush1.bf16.msra.mxu1 %v11340_v39  ;;  %v11414_v38 = vld [vmem:[%s11940_s7 + $0x1604] ss:$68 sps:$4 sm:$0xff]   ;;  %v11409_v39 = vld [vmem:[%s11940_s7 + $0x15f8] ss:$68 sps:$4 sm:$0xff]  }
 0x3cf   : > { %8066 = vmatprep.subr.bf16.mxu0 %v11345_v40  ;;  %8230 = vmatprep.subr.bf16.mxu1 %v11348_v43  ;;  %v11412_v40 = vld [vmem:[%s11940_s7 + $0x1600] ss:$68 sps:$4 sm:$0xff]  }
 0x3d0   : > { %v11417_v43 = vld [vmem:[%s11940_s7 + $0x1684] ss:$68 sps:$4 sm:$0xff]  }
 0x3d2   : > { %8067 = vmatpush1.bf16.msra.mxu0 %v11343_v44  ;;  %8231 = vmatpush1.bf16.msra.mxu1 %v11346_v47  ;;  %v11420_v44 = vld [vmem:[%s11940_s7 + $0x168c] ss:$68 sps:$4 sm:$0xff]   ;;  %v11415_v47 = vld [vmem:[%s11940_s7 + $0x1680] ss:$68 sps:$4 sm:$0xff]  }
 0x3d3   : > { %8068 = vmatprep.subr.bf16.mxu0 %v11351_v49  ;;  %8232 = vmatprep.subr.bf16.mxu1 %v11354_v50  ;;  %v11418_v49 = vld [vmem:[%s11940_s7 + $0x1688] ss:$68 sps:$4 sm:$0xff]  }
 0x3d4   : > { %v11423_v50 = vld [vmem:[%s11940_s7 + $0x170c] ss:$68 sps:$4 sm:$0xff]  }
 0x3d6   : > { %8069 = vmatpush1.bf16.msra.mxu0 %v11349_v51  ;;  %8233 = vmatpush1.bf16.msra.mxu1 %v11352_v52  ;;  %v11426_v51 = vld [vmem:[%s11940_s7 + $0x1714] ss:$68 sps:$4 sm:$0xff]   ;;  %v11421_v52 = vld [vmem:[%s11940_s7 + $0x1708] ss:$68 sps:$4 sm:$0xff]  }
 0x3d7   : > { %8079 = vmatprep.subr.bf16.mxu0 %v11357_v53  ;;  %8243 = vmatprep.subr.bf16.mxu1 %v11360_v54  ;;  %v11424_v53 = vld [vmem:[%s11940_s7 + $0x1710] ss:$68 sps:$4 sm:$0xff]  }
 0x3d8   : > { %v11429_v54 = vld [vmem:[%s11940_s7 + $0x1794] ss:$68 sps:$4 sm:$0xff]  }
 0x3d9   : > { %8071 = vmatmul.mubr.bf16.vlgmr.msra.gmra.mrb[12].mxu0 %v12109_v10  ;;  %8235 = vmatmul.mubr.bf16.vlgmr.msra.gmra.mrb[12].mxu1 %v12109_v10 }
 0x3da   : > { %8080 = vmatpush1.bf16.msra.mxu0 %v11355_v55  ;;  %8244 = vmatpush1.bf16.msra.mxu1 %v11358_v56  ;;  %v11432_v55 = vld [vmem:[%s11940_s7 + $0x179c] ss:$68 sps:$4 sm:$0xff]   ;;  %v11427_v56 = vld [vmem:[%s11940_s7 + $0x1790] ss:$68 sps:$4 sm:$0xff]  }
 0x3db   : > { %8081 = vmatprep.subr.bf16.mxu0 %v11363_v57  ;;  %8245 = vmatprep.subr.bf16.mxu1 %v11366_v58  ;;  %v11430_v57 = vld [vmem:[%s11940_s7 + $0x1798] ss:$68 sps:$4 sm:$0xff]  }
 0x3dc   : > { %8111 = vmatprep.mubr.bf16.mxu0 %v12121_v15  ;;  %8275 = vmatprep.mubr.bf16.mxu1 %v12121_v15  ;;  %v11435_v58 = vld [vmem:[%s11940_s7 + $0x181c] ss:$68 sps:$4 sm:$0xff]  }
 0x3de   : > { %8082 = vmatpush1.bf16.msra.mxu0 %v11361_v59  ;;  %8246 = vmatpush1.bf16.msra.mxu1 %v11364_v60  ;;  %v11438_v59 = vld [vmem:[%s11940_s7 + $0x1824] ss:$68 sps:$4 sm:$0xff]   ;;  %v11433_v60 = vld [vmem:[%s11940_s7 + $0x1818] ss:$68 sps:$4 sm:$0xff]  }
 0x3df   : > { %8083 = vmatprep.subr.bf16.mxu0 %v11369_v61  ;;  %8247 = vmatprep.subr.bf16.mxu1 %v11372_v62  ;;  %v11436_v61 = vld [vmem:[%s11940_s7 + $0x1820] ss:$68 sps:$4 sm:$0xff]  }
 0x3e0   : > { %v11441_v62 = vld [vmem:[%s11940_s7 + $0x18a4] ss:$68 sps:$4 sm:$0xff]  }
 0x3e2   : > { %8084 = vmatpush1.bf16.msra.mxu0 %v11367_v63  ;;  %8248 = vmatpush1.bf16.msra.mxu1 %v11370_v0  ;;  %v11444_v63 = vld [vmem:[%s11940_s7 + $0x18ac] ss:$68 sps:$4 sm:$0xff]   ;;  %v11439_v0 = vld [vmem:[%s11940_s7 + $0x18a0] ss:$68 sps:$4 sm:$0xff]  }
 0x3e3   : > { %8085 = vmatprep.subr.bf16.mxu0 %v11375_v1  ;;  %8249 = vmatprep.subr.bf16.mxu1 %v11378_v2  ;;  %v11442_v1 = vld [vmem:[%s11940_s7 + $0x18a8] ss:$68 sps:$4 sm:$0xff]  }
 0x3e4   : > { %v11447_v2 = vld [vmem:[%s11940_s7 + $0x192c] ss:$68 sps:$4 sm:$0xff]  }
 0x3e6   : > { %8086 = vmatpush1.bf16.msra.mxu0 %v11373_v4  ;;  %8250 = vmatpush1.bf16.msra.mxu1 %v11376_v6  ;;  %v11450_v4 = vld [vmem:[%s11940_s7 + $0x1934] ss:$68 sps:$4 sm:$0xff]   ;;  %v11445_v6 = vld [vmem:[%s11940_s7 + $0x1928] ss:$68 sps:$4 sm:$0xff]  }
 0x3e7   : > { %8087 = vmatprep.subr.bf16.mxu0 %v11381_v7  ;;  %8251 = vmatprep.subr.bf16.mxu1 %v11384_v8  ;;  %v11448_v7 = vld [vmem:[%s11940_s7 + $0x1930] ss:$68 sps:$4 sm:$0xff]  }
 0x3e8   : > { %v11453_v8 = vld [vmem:[%s11940_s7 + $0x19b4] ss:$68 sps:$4 sm:$0xff]  }
 0x3ea   : > { %8088 = vmatpush1.bf16.msra.mxu0 %v11379_v9  ;;  %8252 = vmatpush1.bf16.msra.mxu1 %v11382_v14  ;;  %v11456_v9 = vld [vmem:[%s11940_s7 + $0x19bc] ss:$68 sps:$4 sm:$0xff]   ;;  %v11451_v14 = vld [vmem:[%s11940_s7 + $0x19b0] ss:$68 sps:$4 sm:$0xff]  }
 0x3eb   : > { %8089 = vmatprep.subr.bf16.mxu0 %v11387_v16  ;;  %8253 = vmatprep.subr.bf16.mxu1 %v11390_v19  ;;  %v11454_v16 = vld [vmem:[%s11940_s7 + $0x19b8] ss:$68 sps:$4 sm:$0xff]  }
 0x3ec   : > { %v11459_v19 = vld [vmem:[%s11940_s7 + $0x1a3c] ss:$68 sps:$4 sm:$0xff]  }
 0x3ee   : > { %8090 = vmatpush1.bf16.msra.mxu0 %v11385_v22  ;;  %8254 = vmatpush1.bf16.msra.mxu1 %v11388_v23  ;;  %v11462_v22 = vld [vmem:[%s11940_s7 + $0x1a44] ss:$68 sps:$4 sm:$0xff]   ;;  %v11457_v23 = vld [vmem:[%s11940_s7 + $0x1a38] ss:$68 sps:$4 sm:$0xff]  }
 0x3ef   : > { %8091 = vmatprep.subr.bf16.mxu0 %v11393_v13  ;;  %8255 = vmatprep.subr.bf16.mxu1 %v11396_v25  ;;  %v11460_v13 = vld [vmem:[%s11940_s7 + $0x1a40] ss:$68 sps:$4 sm:$0xff]  }
 0x3f0   : > { %v11465_v25 = vld [vmem:[%s11940_s7 + $0x1ac4] ss:$68 sps:$4 sm:$0xff]  }
 0x3f2   : > { %8092 = vmatpush1.bf16.msra.mxu0 %v11391_v26  ;;  %8256 = vmatpush1.bf16.msra.mxu1 %v11394_v27  ;;  %v11468_v26 = vld [vmem:[%s11940_s7 + $0x1acc] ss:$68 sps:$4 sm:$0xff]   ;;  %v11463_v27 = vld [vmem:[%s11940_s7 + $0x1ac0] ss:$68 sps:$4 sm:$0xff]  }
 0x3f3   : > { %8093 = vmatprep.subr.bf16.mxu0 %v11399_v29  ;;  %8257 = vmatprep.subr.bf16.mxu1 %v11402_v31  ;;  %v11466_v29 = vld [vmem:[%s11940_s7 + $0x1ac8] ss:$68 sps:$4 sm:$0xff]  }
 0x3f4   : > { %v11471_v31 = vld [vmem:[%s11940_s7 + $0x1b4c] ss:$68 sps:$4 sm:$0xff]  }
 0x3f6   : > { %8094 = vmatpush1.bf16.msra.mxu0 %v11397_v32  ;;  %8258 = vmatpush1.bf16.msra.mxu1 %v11400_v33  ;;  %v11474_v32 = vld [vmem:[%s11940_s7 + $0x1b54] ss:$68 sps:$4 sm:$0xff]   ;;  %v11469_v33 = vld [vmem:[%s11940_s7 + $0x1b48] ss:$68 sps:$4 sm:$0xff]  }
 0x3f7   : > { %8095 = vmatprep.subr.bf16.mxu0 %v11405_v34  ;;  %8259 = vmatprep.subr.bf16.mxu1 %v11408_v35  ;;  %v11472_v34 = vld [vmem:[%s11940_s7 + $0x1b50] ss:$68 sps:$4 sm:$0xff]  }
 0x3f8   : > { %v11477_v35 = vld [vmem:[%s11940_s7 + $0x1bd4] ss:$68 sps:$4 sm:$0xff]  }
 0x3fa   : > { %8096 = vmatpush1.bf16.msra.mxu0 %v11403_v21  ;;  %8260 = vmatpush1.bf16.msra.mxu1 %v11406_v36  ;;  %v11480_v21 = vld [vmem:[%s11940_s7 + $0x1bdc] ss:$68 sps:$4 sm:$0xff]   ;;  %v11475_v36 = vld [vmem:[%s11940_s7 + $0x1bd0] ss:$68 sps:$4 sm:$0xff]  }
 0x3fb   : > { %8097 = vmatprep.subr.bf16.mxu0 %v11411_v37  ;;  %8261 = vmatprep.subr.bf16.mxu1 %v11414_v38  ;;  %v11478_v37 = vld [vmem:[%s11940_s7 + $0x1bd8] ss:$68 sps:$4 sm:$0xff]  }
 0x3fc   : > { %v13082_v38 = vld [vmem:[%s11948_s19 + $0x8] sm:$0xff] }
 0x3fe   : > { %8098 = vmatpush1.bf16.msra.mxu0 %v11409_v39  ;;  %8262 = vmatpush1.bf16.msra.mxu1 %v11412_v40  ;;  %v11483_v39 = vld [vmem:[%s11940_s7 + $0x1c5c] ss:$68 sps:$4 sm:$0xff]   ;;  %v11486_v40 = vld [vmem:[%s11940_s7 + $0x1c64] ss:$68 sps:$4 sm:$0xff]  }
 0x3ff   : > { %8099 = vmatprep.subr.bf16.mxu0 %v11417_v43  ;;  %8263 = vmatprep.subr.bf16.mxu1 %v11420_v44  ;;  %v1431_v43 = vrot.slane %v13082_v38, %v1398_v11  ;;  %v1439_v44 = vrot.slane %v13082_v38, %v1406_v12  ;;  %v11489_v11 = vld [vmem:[%s11940_s7 + $0x1ce4] ss:$68 sps:$4 sm:$0xff]  }
 0x402   : > { %8100 = vmatpush1.bf16.msra.mxu0 %v11415_v47  ;;  %8264 = vmatpush1.bf16.msra.mxu1 %v11418_v49  ;;  %v1435_v47 = vrot.slane %v13082_v38, %v1402_v17  ;;  %v1443_v49 = vrot.slane %v13082_v38, %v1410_v18 }
 0x403   : > { %8101 = vmatprep.subr.bf16.mxu0 %v11423_v50  ;;  %8265 = vmatprep.subr.bf16.mxu1 %v11426_v51  ;;  %v11481_v50 = vld [vmem:[%s11940_s7 + $0x1c58] ss:$68 sps:$4 sm:$0xff]   ;;  %v11484_v51 = vld [vmem:[%s11940_s7 + $0x1c60] ss:$68 sps:$4 sm:$0xff]  }
 0x406   : > { %8102 = vmatpush1.bf16.msra.mxu0 %v11421_v52  ;;  %8266 = vmatpush1.bf16.msra.mxu1 %v11424_v53  ;;  %v11492_v52 = vld [vmem:[%s11940_s7 + $0x1cec] ss:$68 sps:$4 sm:$0xff]  }
 0x407   : > { %8103 = vmatprep.subr.bf16.mxu0 %v11429_v54  ;;  %8267 = vmatprep.subr.bf16.mxu1 %v11432_v55 }
 0x40a   : > { %8104 = vmatpush1.bf16.msra.mxu0 %v11427_v56  ;;  %8268 = vmatpush1.bf16.msra.mxu1 %v11430_v57 }
 0x40b   : > { %8105 = vmatprep.subr.bf16.mxu0 %v11435_v58  ;;  %8269 = vmatprep.subr.bf16.mxu1 %v11438_v59 }
 0x40e   : > { %8106 = vmatpush1.bf16.msra.mxu0 %v11433_v60  ;;  %8270 = vmatpush1.bf16.msra.mxu1 %v11436_v61  ;;  %v11487_v60 = vld [vmem:[%s11940_s7 + $0x1ce0] ss:$68 sps:$4 sm:$0xff]   ;;  %v11490_v61 = vld [vmem:[%s11940_s7 + $0x1ce8] ss:$68 sps:$4 sm:$0xff]  }
 0x40f   : > { %8107 = vmatprep.subr.bf16.mxu0 %v11441_v62  ;;  %8271 = vmatprep.subr.bf16.mxu1 %v11444_v63 }
 0x412   : > { %8108 = vmatpush1.bf16.msra.mxu0 %v11439_v0  ;;  %8272 = vmatpush1.bf16.msra.mxu1 %v11442_v1  ;;  %v11495_v0 = vld [vmem:[%s11940_s7 + $0x1d6c] ss:$68 sps:$4 sm:$0xff]   ;;  %v11498_v1 = vld [vmem:[%s11940_s7 + $0x1d74] ss:$68 sps:$4 sm:$0xff]  }
 0x413   : > { %8109 = vmatprep.subr.bf16.mxu0 %v11447_v2  ;;  %8273 = vmatprep.subr.bf16.mxu1 %v11450_v4  ;;  %v11493_v2 = vld [vmem:[%s11940_s7 + $0x1d68] ss:$68 sps:$4 sm:$0xff]   ;;  %v11496_v4 = vld [vmem:[%s11940_s7 + $0x1d70] ss:$68 sps:$4 sm:$0xff]  }
 0x416   : > { %8110 = vmatpush1.bf16.msra.mxu0 %v11445_v6  ;;  %8274 = vmatpush1.bf16.msra.mxu1 %v11448_v7  ;;  %v11501_v6 = vld [vmem:[%s11940_s7 + $0x1df4] ss:$68 sps:$4 sm:$0xff]   ;;  %v11504_v7 = vld [vmem:[%s11940_s7 + $0x1dfc] ss:$68 sps:$4 sm:$0xff]  }
 0x417   : > { %8120 = vmatprep.subr.bf16.mxu0 %v11453_v8  ;;  %8284 = vmatprep.subr.bf16.mxu1 %v11456_v9  ;;  %v11499_v8 = vld [vmem:[%s11940_s7 + $0x1df0] ss:$68 sps:$4 sm:$0xff]   ;;  %v11502_v9 = vld [vmem:[%s11940_s7 + $0x1df8] ss:$68 sps:$4 sm:$0xff]  }
 0x419   : > { %8112 = vmatmul.mubr.bf16.vlgmr.msra.gmra.mrb[12].mxu0 %v12191_v20  ;;  %8276 = vmatmul.mubr.bf16.vlgmr.msra.gmra.mrb[12].mxu1 %v12191_v20 }
 0x41a   : > { %8121 = vmatpush1.bf16.msra.mxu0 %v11451_v14  ;;  %8285 = vmatpush1.bf16.msra.mxu1 %v11454_v16  ;;  %v11507_v14 = vld [vmem:[%s11940_s7 + $0x1e7c] ss:$68 sps:$4 sm:$0xff]   ;;  %v11510_v16 = vld [vmem:[%s11940_s7 + $0x1e84] ss:$68 sps:$4 sm:$0xff]  }
 0x41b   : > { %8122 = vmatprep.subr.bf16.mxu0 %v11459_v19  ;;  %8286 = vmatprep.subr.bf16.mxu1 %v11462_v22 }
 0x41c   : > { %8152 = vmatprep.mubr.bf16.mxu0 %v12202_v24  ;;  %8316 = vmatprep.mubr.bf16.mxu1 %v12202_v24 }
 0x41e   : > { %8123 = vmatpush1.bf16.msra.mxu0 %v11457_v23  ;;  %8287 = vmatpush1.bf16.msra.mxu1 %v11460_v13  ;;  %v11505_v23 = vld [vmem:[%s11940_s7 + $0x1e78] ss:$68 sps:$4 sm:$0xff]   ;;  %v11508_v13 = vld [vmem:[%s11940_s7 + $0x1e80] ss:$68 sps:$4 sm:$0xff]  }
 0x41f   : > { %8124 = vmatprep.subr.bf16.mxu0 %v11465_v25  ;;  %8288 = vmatprep.subr.bf16.mxu1 %v11468_v26  ;;  %v11513_v26 = vld [vmem:[%s11940_s7 + $0x1f04] ss:$68 sps:$4 sm:$0xff]  }
 0x422   : > { %8125 = vmatpush1.bf16.msra.mxu0 %v11463_v27  ;;  %8289 = vmatpush1.bf16.msra.mxu1 %v11466_v29  ;;  %v11516_v27 = vld [vmem:[%s11940_s7 + $0x1f0c] ss:$68 sps:$4 sm:$0xff]  }
 0x423   : > { %8126 = vmatprep.subr.bf16.mxu0 %v11471_v31  ;;  %8290 = vmatprep.subr.bf16.mxu1 %v11474_v32  ;;  %v11511_v31 = vld [vmem:[%s11940_s7 + $0x1f00] ss:$68 sps:$4 sm:$0xff]   ;;  %v11514_v32 = vld [vmem:[%s11940_s7 + $0x1f08] ss:$68 sps:$4 sm:$0xff]  }
 0x426   : > { %8127 = vmatpush1.bf16.msra.mxu0 %v11469_v33  ;;  %8291 = vmatpush1.bf16.msra.mxu1 %v11472_v34  ;;  %v11519_v33 = vld [vmem:[%s11940_s7 + $0x1f8c] ss:$68 sps:$4 sm:$0xff]   ;;  %v11522_v34 = vld [vmem:[%s11940_s7 + $0x1f94] ss:$68 sps:$4 sm:$0xff]  }
 0x427   : > { %8128 = vmatprep.subr.bf16.mxu0 %v11477_v35  ;;  %8292 = vmatprep.subr.bf16.mxu1 %v11480_v21  ;;  %v11517_v35 = vld [vmem:[%s11940_s7 + $0x1f88] ss:$68 sps:$4 sm:$0xff]   ;;  %v11520_v21 = vld [vmem:[%s11940_s7 + $0x1f90] ss:$68 sps:$4 sm:$0xff]  }
 0x42a   : > { %8129 = vmatpush1.bf16.msra.mxu0 %v11475_v36  ;;  %8293 = vmatpush1.bf16.msra.mxu1 %v11478_v37  ;;  %v11525_v36 = vld [vmem:[%s11940_s7 + $0x2014] ss:$68 sps:$4 sm:$0xff]   ;;  %v11528_v37 = vld [vmem:[%s11940_s7 + $0x201c] ss:$68 sps:$4 sm:$0xff]  }
 0x42b   : > { %8130 = vmatprep.subr.bf16.mxu0 %v11483_v39  ;;  %8294 = vmatprep.subr.bf16.mxu1 %v11486_v40  ;;  %v11523_v39 = vld [vmem:[%s11940_s7 + $0x2010] ss:$68 sps:$4 sm:$0xff]   ;;  %v11526_v40 = vld [vmem:[%s11940_s7 + $0x2018] ss:$68 sps:$4 sm:$0xff]  }
 0x42c   : > { %v7826_v53 = vpop.f32.mrb[8].mxu0  ;;  %v7990_v12 = vpop.f32.mrb[8].mxu1 }
 0x42d   : > { %v9841_v54 = vadd.f32 %v7826_v53, %v1431_v43  ;;  %v9843_v55 = vadd.f32 %v7990_v12, %v1439_v44  ;;  %v7828_v56 = vpop.f32.mrb[9].mxu0  ;;  %v7992_v17 = vpop.f32.mrb[9].mxu1  ;;  %v11531_v43 = vld [vmem:[%s11940_s7 + $0x209c] ss:$68 sps:$4 sm:$0xff]   ;;  %v11534_v44 = vld [vmem:[%s11940_s7 + $0x20a4] ss:$68 sps:$4 sm:$0xff]  }
 0x42e   : > { %v9842_v57 = vadd.f32 %v7828_v56, %v1435_v47  ;;  %v9844_v58 = vadd.f32 %v7992_v17, %v1443_v49  ;;  %v7830_v59 = vpop.f32.mrb[10].mxu0  ;;  %v7994_v18 = vpop.f32.mrb[10].mxu1  ;;  %8131 = vmatpush1.bf16.msra.mxu0 %v11481_v50  ;;  %8295 = vmatpush1.bf16.msra.mxu1 %v11484_v51  ;;  %v11529_v47 = vld [vmem:[%s11940_s7 + $0x2098] ss:$68 sps:$4 sm:$0xff]   ;;  %v11532_v49 = vld [vmem:[%s11940_s7 + $0x20a0] ss:$68 sps:$4 sm:$0xff]  }
 0x42f   : > { %11627 = vtanh.f32 %v9841_v54  ;;  %v7831_v62 = vpop.f32.mrb[11].mxu0  ;;  %v7995_v63 = vpop.f32.mrb[11].mxu1  ;;  %8132 = vmatprep.subr.bf16.mxu0 %v11489_v11  ;;  %8296 = vmatprep.subr.bf16.mxu1 %v11492_v52  ;;  %v11537_v50 = vld [vmem:[%s11940_s7 + $0x2124] ss:$68 sps:$4 sm:$0xff]   ;;  %v11540_v51 = vld [vmem:[%s11940_s7 + $0x212c] ss:$68 sps:$4 sm:$0xff]  }
 0x430   : > { %11629 = vtanh.f32 %v9843_v55  ;;  %v11535_v11 = vld [vmem:[%s11940_s7 + $0x2120] ss:$68 sps:$4 sm:$0xff]   ;;  %v11538_v52 = vld [vmem:[%s11940_s7 + $0x2128] ss:$68 sps:$4 sm:$0xff]   ;;  %v11546_v12 = vld [vmem:[%s11940_s7 + $0x21b4] ss:$68 sps:$4 sm:$0xff]  }
 0x431   : > { %11631 = vtanh.f32 %v9842_v57  ;;  %v11543_v53 = vld [vmem:[%s11940_s7 + $0x21ac] ss:$68 sps:$4 sm:$0xff]   ;;  %v11547_v56 = vld [vmem:[%s11940_s7 + $0x480] ss:$68 sps:$4 sm:$0xff]  }
 0x432   : > { %11633 = vtanh.f32 %v9844_v58  ;;  %8133 = vmatpush1.bf16.msra.mxu0 %v11487_v60  ;;  %8297 = vmatpush1.bf16.msra.mxu1 %v11490_v61  ;;  %v11541_v54 = vld [vmem:[%s11940_s7 + $0x21a8] ss:$68 sps:$4 sm:$0xff]   ;;  %v11544_v55 = vld [vmem:[%s11940_s7 + $0x21b0] ss:$68 sps:$4 sm:$0xff]   ;;  %v11548_v17 = vld [vmem:[%s11940_s7 + $0xd00] ss:$68 sps:$4 sm:$0xff]  }
 0x433   : > { %8134 = vmatprep.subr.bf16.mxu0 %v11495_v0  ;;  %8298 = vmatprep.subr.bf16.mxu1 %v11498_v1  ;;  %v11549_v57 = vld [vmem:[%s11940_s7 + $0x40] ss:$68 sps:$4 sm:$0xff]   ;;  %v11551_v59 = vld [vmem:[%s11940_s7 + $0x508] ss:$68 sps:$4 sm:$0xff]   ;;  %v11555_v62 = vld [vmem:[%s11940_s7 + $0x590] ss:$68 sps:$4 sm:$0xff]  }
 0x434   : > { %v11550_v58 = vld [vmem:[%s11940_s7 + $0x8c0] ss:$68 sps:$4 sm:$0xff]   ;;  %v11552_v18 = vld [vmem:[%s11940_s7 + $0xd88] ss:$68 sps:$4 sm:$0xff]   ;;  %v11556_v63 = vld [vmem:[%s11940_s7 + $0xe10] ss:$68 sps:$4 sm:$0xff]  }
 0x435   : > { %v11553_v60 = vld [vmem:[%s11940_s7 + $0xc8] ss:$68 sps:$4 sm:$0xff]   ;;  %v11557_v0 = vld [vmem:[%s11940_s7 + $0x150] ss:$68 sps:$4 sm:$0xff]  }
 0x436   : > { %8135 = vmatpush1.bf16.msra.mxu0 %v11493_v2  ;;  %8299 = vmatpush1.bf16.msra.mxu1 %v11496_v4  ;;  %v11554_v61 = vld [vmem:[%s11940_s7 + $0x948] ss:$68 sps:$4 sm:$0xff]   ;;  %v11558_v1 = vld [vmem:[%s11940_s7 + $0x9d0] ss:$68 sps:$4 sm:$0xff]   ;;  %v11559_v2 = vld [vmem:[%s11940_s7 + $0x618] ss:$68 sps:$4 sm:$0xff]  }
 0x437   : > { %8136 = vmatprep.subr.bf16.mxu0 %v11501_v6  ;;  %8300 = vmatprep.subr.bf16.mxu1 %v11504_v7  ;;  %v11560_v4 = vld [vmem:[%s11940_s7 + $0xe98] ss:$68 sps:$4 sm:$0xff]   ;;  %v11564_v7 = vld [vmem:[%s11940_s7 + $0xf20] ss:$68 sps:$4 sm:$0xff]  }
 0x438   : > { %v11561_v6 = vld [vmem:[%s11940_s7 + $0x1d8] ss:$68 sps:$4 sm:$0xff]  }
 0x439   : > { %v11628_v19 = vpop.eup %11627 }
 0x43a   : > { %v11630_v22 = vpop.eup %11629  ;;  %8510 = vst [vmem:[%s12532_s10 + $0x40] sm:$0xff] %v11628_v19  ;;  %8137 = vmatpush1.bf16.msra.mxu0 %v11499_v8  ;;  %8301 = vmatpush1.bf16.msra.mxu1 %v11502_v9  ;;  %v11565_v8 = vld [vmem:[%s11940_s7 + $0x260] ss:$68 sps:$4 sm:$0xff]   ;;  %v11569_v19 = vld [vmem:[%s11940_s7 + $0x2e8] ss:$68 sps:$4 sm:$0xff]  }
 0x43b   : > { %v11632_v25 = vpop.eup %11631  ;;  %8512 = vst [vmem:[%s12532_s10 + $0x50] sm:$0xff] %v11630_v22  ;;  %8138 = vmatprep.subr.bf16.mxu0 %v11507_v14  ;;  %8302 = vmatprep.subr.bf16.mxu1 %v11510_v16  ;;  %v11566_v9 = vld [vmem:[%s11940_s7 + $0xae0] ss:$68 sps:$4 sm:$0xff]   ;;  %v11567_v14 = vld [vmem:[%s11940_s7 + $0x728] ss:$68 sps:$4 sm:$0xff]  }
 0x43c   : > { %v11634_v29 = vpop.eup %11633  ;;  %8511 = vst [vmem:[%s12532_s10 + $0x48] sm:$0xff] %v11632_v25  ;;  %v11568_v16 = vld [vmem:[%s11940_s7 + $0xfa8] ss:$68 sps:$4 sm:$0xff]   ;;  %v11573_v25 = vld [vmem:[%s11940_s7 + $0x370] ss:$68 sps:$4 sm:$0xff]  }
 0x43d   : > { %8513 = vst [vmem:[%s12532_s10 + $0x58] sm:$0xff] %v11634_v29  ;;  %v11570_v22 = vld [vmem:[%s11940_s7 + $0xb68] ss:$68 sps:$4 sm:$0xff]   ;;  %v11576_v29 = vld [vmem:[%s11940_s7 + $0x10b8] ss:$68 sps:$4 sm:$0xff]  }
 0x43e   : > { %8139 = vmatpush1.bf16.msra.mxu0 %v11505_v23  ;;  %8303 = vmatpush1.bf16.msra.mxu1 %v11508_v13  ;;  %v11571_v23 = vld [vmem:[%s11940_s7 + $0x7b0] ss:$68 sps:$4 sm:$0xff]  }
 0x43f   : > { %8140 = vmatprep.subr.bf16.mxu0 %v11513_v26  ;;  %8304 = vmatprep.subr.bf16.mxu1 %v11516_v27  ;;  %v11572_v13 = vld [vmem:[%s11940_s7 + $0x1030] ss:$68 sps:$4 sm:$0xff]   ;;  %v11575_v27 = vld [vmem:[%s11940_s7 + $0x838] ss:$68 sps:$4 sm:$0xff]  }
 0x440   : > { %v11574_v26 = vld [vmem:[%s11940_s7 + $0xbf0] ss:$68 sps:$4 sm:$0xff]  }
 0x442   : > { %8141 = vmatpush1.bf16.msra.mxu0 %v11511_v31  ;;  %8305 = vmatpush1.bf16.msra.mxu1 %v11514_v32  ;;  %v11577_v31 = vld [vmem:[%s11940_s7 + $0x3f8] ss:$68 sps:$4 sm:$0xff]  }
 0x443   : > { %8142 = vmatprep.subr.bf16.mxu0 %v11519_v33  ;;  %8306 = vmatprep.subr.bf16.mxu1 %v11522_v34  ;;  %v11578_v32 = vld [vmem:[%s11940_s7 + $0xc78] ss:$68 sps:$4 sm:$0xff]   ;;  %v11579_v33 = vld [vmem:[%s11940_s7 + $0x1580] ss:$68 sps:$4 sm:$0xff]  }
 0x444   : > { %v11580_v34 = vld [vmem:[%s11940_s7 + $0x1e00] ss:$68 sps:$4 sm:$0xff]  }
 0x446   : > { %8143 = vmatpush1.bf16.msra.mxu0 %v11517_v35  ;;  %8307 = vmatpush1.bf16.msra.mxu1 %v11520_v21  ;;  %v11581_v35 = vld [vmem:[%s11940_s7 + $0x1140] ss:$68 sps:$4 sm:$0xff]  }
 0x447   : > { %8144 = vmatprep.subr.bf16.mxu0 %v11525_v36  ;;  %8308 = vmatprep.subr.bf16.mxu1 %v11528_v37  ;;  %v11582_v21 = vld [vmem:[%s11940_s7 + $0x19c0] ss:$68 sps:$4 sm:$0xff]   ;;  %v11583_v36 = vld [vmem:[%s11940_s7 + $0x1608] ss:$68 sps:$4 sm:$0xff]  }
 0x448   : > { %v11584_v37 = vld [vmem:[%s11940_s7 + $0x1e88] ss:$68 sps:$4 sm:$0xff]  }
 0x44a   : > { %8145 = vmatpush1.bf16.msra.mxu0 %v11523_v39  ;;  %8309 = vmatpush1.bf16.msra.mxu1 %v11526_v40  ;;  %v11585_v39 = vld [vmem:[%s11940_s7 + $0x11c8] ss:$68 sps:$4 sm:$0xff]  }
 0x44b   : > { %8146 = vmatprep.subr.bf16.mxu0 %v11531_v43  ;;  %8310 = vmatprep.subr.bf16.mxu1 %v11534_v44  ;;  %v11586_v40 = vld [vmem:[%s11940_s7 + $0x1a48] ss:$68 sps:$4 sm:$0xff]   ;;  %v11587_v43 = vld [vmem:[%s11940_s7 + $0x1690] ss:$68 sps:$4 sm:$0xff]  }
 0x44c   : > { %v11588_v44 = vld [vmem:[%s11940_s7 + $0x1f10] ss:$68 sps:$4 sm:$0xff]  }
 0x44e   : > { %8147 = vmatpush1.bf16.msra.mxu0 %v11529_v47  ;;  %8311 = vmatpush1.bf16.msra.mxu1 %v11532_v49  ;;  %v11591_v47 = vld [vmem:[%s11940_s7 + $0x1718] ss:$68 sps:$4 sm:$0xff]  }
 0x44f   : > { %8148 = vmatprep.subr.bf16.mxu0 %v11537_v50  ;;  %8312 = vmatprep.subr.bf16.mxu1 %v11540_v51  ;;  %v11592_v49 = vld [vmem:[%s11940_s7 + $0x1f98] ss:$68 sps:$4 sm:$0xff]   ;;  %v11596_v51 = vld [vmem:[%s11940_s7 + $0x2020] ss:$68 sps:$4 sm:$0xff]  }
 0x450   : > { %v11593_v50 = vld [vmem:[%s11940_s7 + $0x12d8] ss:$68 sps:$4 sm:$0xff]  }
 0x452   : > { %8149 = vmatpush1.bf16.msra.mxu0 %v11535_v11  ;;  %8313 = vmatpush1.bf16.msra.mxu1 %v11538_v52  ;;  %v11597_v11 = vld [vmem:[%s11940_s7 + $0x1360] ss:$68 sps:$4 sm:$0xff]  }
 0x453   : > { %8150 = vmatprep.subr.bf16.mxu0 %v11543_v53  ;;  %8314 = vmatprep.subr.bf16.mxu1 %v11546_v12  ;;  %v11598_v52 = vld [vmem:[%s11940_s7 + $0x1be0] ss:$68 sps:$4 sm:$0xff]   ;;  %v11599_v53 = vld [vmem:[%s11940_s7 + $0x1828] ss:$68 sps:$4 sm:$0xff]  }
 0x454   : > { %v11600_v12 = vld [vmem:[%s11940_s7 + $0x20a8] ss:$68 sps:$4 sm:$0xff]  }
 0x456   : > { %8151 = vmatpush1.bf16.msra.mxu0 %v11541_v54  ;;  %8315 = vmatpush1.bf16.msra.mxu1 %v11544_v55  ;;  %v11601_v54 = vld [vmem:[%s11940_s7 + $0x13e8] ss:$68 sps:$4 sm:$0xff]  }
 0x457   : > { %9745 = vmatprep.subr.bf16.mxu0 %v11547_v56  ;;  %9767 = vmatprep.subr.bf16.mxu1 %v11548_v17  ;;  %v11602_v55 = vld [vmem:[%s11940_s7 + $0x1c68] ss:$68 sps:$4 sm:$0xff]   ;;  %v11603_v56 = vld [vmem:[%s11940_s7 + $0x18b0] ss:$68 sps:$4 sm:$0xff]  }
 0x458   : > { %v11604_v17 = vld [vmem:[%s11940_s7 + $0x2130] ss:$68 sps:$4 sm:$0xff]  }
 0x459   : > { %8153 = vmatmul.mubr.bf16.vlgmr.msra.gmra.mrb[12].mxu0 %v12270_v28  ;;  %8317 = vmatmul.mubr.bf16.vlgmr.msra.gmra.mrb[12].mxu1 %v12270_v28 }
 0x45a   : > { %9746 = vmatpush3.bf16.msra.mxu0 %v11549_v57  ;;  %9768 = vmatpush3.bf16.msra.mxu1 %v11550_v58  ;;  %v11605_v57 = vld [vmem:[%s11940_s7 + $0x1470] ss:$68 sps:$4 sm:$0xff]  }
 0x45b   : > { %9747 = vmatprep.subr.bf16.mxu0 %v11551_v59  ;;  %9769 = vmatprep.subr.bf16.mxu1 %v11552_v18  ;;  %v11606_v58 = vld [vmem:[%s11940_s7 + $0x1cf0] ss:$68 sps:$4 sm:$0xff]   ;;  %v11607_v59 = vld [vmem:[%s11940_s7 + $0x1938] ss:$68 sps:$4 sm:$0xff]  }
 0x45c   : > { %8357 = vmatprep.mubr.bf16.mxu0 %v12004_v48  ;;  %8397 = vmatprep.mubr.bf16.mxu1 %v12062_v30  ;;  %v11562_v48 = vld [vmem:[%s11940_s7 + $0xa58] ss:$68 sps:$4 sm:$0xff]   ;;  %v11563_v30 = vld [vmem:[%s11940_s7 + $0x6a0] ss:$68 sps:$4 sm:$0xff]  }
 0x45d   : > { %v11608_v18 = vld [vmem:[%s11940_s7 + $0x21b8] ss:$68 sps:$4 sm:$0xff]  }
 0x45e   : > { %9748 = vmatpush3.bf16.msra.mxu0 %v11553_v60  ;;  %9770 = vmatpush3.bf16.msra.mxu1 %v11554_v61  ;;  %v11609_v60 = vld [vmem:[%s11940_s7 + $0x14f8] ss:$68 sps:$4 sm:$0xff]  }
 0x45f   : > { %9749 = vmatprep.subr.bf16.mxu0 %v11555_v62  ;;  %9771 = vmatprep.subr.bf16.mxu1 %v11556_v63  ;;  %v11610_v61 = vld [vmem:[%s11940_s7 + $0x1d78] ss:$68 sps:$4 sm:$0xff]   ;;  %v1447_v62 = vrot.slane %v13082_v38, %v1414_v41  ;;  %v1455_v63 = vrot.slane %v13082_v38, %v1422_v42 }
 0x462   : > { %9750 = vmatpush3.bf16.msra.mxu0 %v11557_v0  ;;  %9772 = vmatpush3.bf16.msra.mxu1 %v11558_v1  ;;  %v1451_v0 = vrot.slane %v13082_v38, %v1418_v45  ;;  %v1459_v1 = vrot.slane %v13082_v38, %v1426_v46 }
 0x463   : > { %9751 = vmatprep.subr.bf16.mxu0 %v11559_v2  ;;  %9773 = vmatprep.subr.bf16.mxu1 %v11560_v4 }
 0x466   : > { %9752 = vmatpush3.bf16.msra.mxu0 %v11561_v6  ;;  %9774 = vmatpush3.bf16.msra.mxu1 %v11562_v48 }
 0x467   : > { %9753 = vmatprep.subr.bf16.mxu0 %v11563_v30  ;;  %9775 = vmatprep.subr.bf16.mxu1 %v11564_v7 }
 0x46a   : > { %9754 = vmatpush3.bf16.msra.mxu0 %v11565_v8  ;;  %9776 = vmatpush3.bf16.msra.mxu1 %v11566_v9 }
 0x46b   : > { %9755 = vmatprep.subr.bf16.mxu0 %v11567_v14  ;;  %9777 = vmatprep.subr.bf16.mxu1 %v11568_v16 }
 0x46e   : > { %9756 = vmatpush3.bf16.msra.mxu0 %v11569_v19  ;;  %9778 = vmatpush3.bf16.msra.mxu1 %v11570_v22  ;;  %v8639_v19 = vld [vmem:[%s11948_s19 + $0x10] ss:$0 sm:$0xff] }
 0x46f   : > { %9757 = vmatprep.subr.bf16.mxu0 %v11571_v23  ;;  %9779 = vmatprep.subr.bf16.mxu1 %v11572_v13 }
 0x472   : > { %9758 = vmatpush3.bf16.msra.mxu0 %v11573_v25  ;;  %9780 = vmatpush3.bf16.msra.mxu1 %v11574_v26 }
 0x473   : > { %9759 = vmatprep.subr.bf16.mxu0 %v11575_v27  ;;  %9781 = vmatprep.subr.bf16.mxu1 %v11576_v29 }
 0x476   : > { %9760 = vmatpush3.bf16.msra.mxu0 %v11577_v31  ;;  %9782 = vmatpush3.bf16.msra.mxu1 %v11578_v32 }
 0x477   : > { %9789 = vmatprep.subr.bf16.mxu0 %v11579_v33  ;;  %9811 = vmatprep.subr.bf16.mxu1 %v11580_v34 }
 0x479   : > { %8358 = vmatmul.mubr.bf16.vlgmr.msra.gmra.mrb[16].mxu0 %v12028_v5  ;;  %8398 = vmatmul.mubr.bf16.vlgmr.msra.gmra.mrb[16].mxu1 %v12109_v10  ;;  %v11589_v5 = vld [vmem:[%s11940_s7 + $0x1250] ss:$68 sps:$4 sm:$0xff]  }
 0x47a   : > { %9790 = vmatpush3.bf16.msra.mxu0 %v11581_v35  ;;  %9812 = vmatpush3.bf16.msra.mxu1 %v11582_v21  ;;  %v11590_v10 = vld [vmem:[%s11940_s7 + $0x1ad0] ss:$68 sps:$4 sm:$0xff]  }
 0x47b   : > { %9791 = vmatprep.subr.bf16.mxu0 %v11583_v36  ;;  %9813 = vmatprep.subr.bf16.mxu1 %v11584_v37 }
 0x47c   : > { %8437 = vmatprep.mubr.bf16.mxu0 %v12121_v15  ;;  %8477 = vmatprep.mubr.bf16.mxu1 %v12202_v24  ;;  %v11594_v15 = vld [vmem:[%s11940_s7 + $0x1b58] ss:$68 sps:$4 sm:$0xff]   ;;  %v11595_v24 = vld [vmem:[%s11940_s7 + $0x17a0] ss:$68 sps:$4 sm:$0xff]  }
 0x47e   : > { %9792 = vmatpush3.bf16.msra.mxu0 %v11585_v39  ;;  %9814 = vmatpush3.bf16.msra.mxu1 %v11586_v40 }
 0x47f   : > { %9793 = vmatprep.subr.bf16.mxu0 %v11587_v43  ;;  %9815 = vmatprep.subr.bf16.mxu1 %v11588_v44 }
 0x482   : > { %9794 = vmatpush3.bf16.msra.mxu0 %v11589_v5  ;;  %9816 = vmatpush3.bf16.msra.mxu1 %v11590_v10 }
 0x483   : > { %9795 = vmatprep.subr.bf16.mxu0 %v11591_v47  ;;  %9817 = vmatprep.subr.bf16.mxu1 %v11592_v49 }
 0x486   : > { %9796 = vmatpush3.bf16.msra.mxu0 %v11593_v50  ;;  %9818 = vmatpush3.bf16.msra.mxu1 %v11594_v15 }
 0x487   : > { %9797 = vmatprep.subr.bf16.mxu0 %v11595_v24  ;;  %9819 = vmatprep.subr.bf16.mxu1 %v11596_v51 }
 0x48a   : > { %9798 = vmatpush3.bf16.msra.mxu0 %v11597_v11  ;;  %9820 = vmatpush3.bf16.msra.mxu1 %v11598_v52 }
 0x48b   : > { %9799 = vmatprep.subr.bf16.mxu0 %v11599_v53  ;;  %9821 = vmatprep.subr.bf16.mxu1 %v11600_v12 }
 0x48e   : > { %9800 = vmatpush3.bf16.msra.mxu0 %v11601_v54  ;;  %9822 = vmatpush3.bf16.msra.mxu1 %v11602_v55 }
 0x48f   : > { %9801 = vmatprep.subr.bf16.mxu0 %v11603_v56  ;;  %9823 = vmatprep.subr.bf16.mxu1 %v11604_v17 }
 0x492   : > { %9802 = vmatpush3.bf16.msra.mxu0 %v11605_v57  ;;  %9824 = vmatpush3.bf16.msra.mxu1 %v11606_v58 }
 0x493   : > { %9803 = vmatprep.subr.bf16.mxu0 %v11607_v59  ;;  %9825 = vmatprep.subr.bf16.mxu1 %v11608_v18 }
 0x496   : > { %9804 = vmatpush3.bf16.msra.mxu0 %v11609_v60  ;;  %9826 = vmatpush3.bf16.msra.mxu1 %v11610_v61 }
 0x499   : > { %8438 = vmatmul.mubr.bf16.vlgmr.msra.gmra.mrb[20].mxu0 %v12191_v20  ;;  %8478 = vmatmul.mubr.bf16.vlgmr.msra.gmra.mrb[20].mxu1 %v12270_v28 }
 0x52c   : > { %v8154_v2 = vpop.f32.mrb[12].mxu0  ;;  %v8318_v20 = vpop.f32.mrb[12].mxu1 }
 0x52d   : > { %v9845_v4 = vadd.f32 %v8154_v2, %v1447_v62  ;;  %v9847_v28 = vadd.f32 %v8318_v20, %v1455_v63  ;;  %v8156_v6 = vpop.f32.mrb[13].mxu0  ;;  %v8320_v41 = vpop.f32.mrb[13].mxu1 }
 0x52e   : > { %v9846_v48 = vadd.f32 %v8156_v6, %v1451_v0  ;;  %v9848_v30 = vadd.f32 %v8320_v41, %v1459_v1  ;;  %v8158_v42 = vpop.f32.mrb[14].mxu0  ;;  %v8322_v7 = vpop.f32.mrb[14].mxu1 }
 0x52f   : > { %11635 = vtanh.f32 %v9845_v4  ;;  %v8159_v45 = vpop.f32.mrb[15].mxu0  ;;  %v8323_v3 = vpop.f32.mrb[15].mxu1 }
 0x530   : > { %11637 = vtanh.f32 %v9847_v28 }
 0x531   : > { %11639 = vtanh.f32 %v9846_v48 }
 0x532   : > { %11641 = vtanh.f32 %v9848_v30 }
 0x539   : > { %v11636_v46 = vpop.eup %11635 }
 0x53a   : > { %v11638_v38 = vpop.eup %11637  ;;  %8514 = vst [vmem:[%s12532_s10 + $0x60] sm:$0xff] %v11636_v46 }
 0x53b   : > { %v11640_v8 = vpop.eup %11639  ;;  %8516 = vst [vmem:[%s12532_s10 + $0x70] sm:$0xff] %v11638_v38 }
 0x53c   : > { %v11642_v9 = vpop.eup %11641  ;;  %8515 = vst [vmem:[%s12532_s10 + $0x68] sm:$0xff] %v11640_v8 }
 0x53d   : > { %8517 = vst [vmem:[%s12532_s10 + $0x78] sm:$0xff] %v11642_v9 }
 0x54c   : > { %v9761_v14 = vpop.f32.mrb[16].mxu0  ;;  %v9783_v16 = vpop.f32.mrb[16].mxu1 }
 0x54d   : > { %v9762_v22 = vpop.f32.mrb[17].mxu0  ;;  %v9784_v23 = vpop.f32.mrb[17].mxu1 }
 0x54e   : > { %v9763_v13 = vadd.f32 %v9762_v22, %v9761_v14  ;;  %v9785_v25 = vadd.f32 %v9784_v23, %v9783_v16  ;;  %v9764_v26 = vpop.f32.mrb[18].mxu0  ;;  %v9786_v27 = vpop.f32.mrb[18].mxu1 }
 0x54f   : > { %v9765_v29 = vpop.f32.mrb[19].mxu0  ;;  %v9787_v31 = vpop.f32.mrb[19].mxu1 }
 0x550   : > { %v8360_v32 = vadd.f32 %v9763_v13, %v8639_v19 }
 0x552   : > { %v8400_v33 = vadd.f32 %v9785_v25, %v8360_v32 }
 0x56c   : > { %v9805_v34 = vpop.f32.mrb[20].mxu0  ;;  %v9827_v35 = vpop.f32.mrb[20].mxu1 }
 0x56d   : > { %v9806_v21 = vpop.f32.mrb[21].mxu0  ;;  %v9828_v36 = vpop.f32.mrb[21].mxu1 }
 0x56e   : > { %v9807_v37 = vadd.f32 %v9806_v21, %v9805_v34  ;;  %v9829_v39 = vadd.f32 %v9828_v36, %v9827_v35  ;;  %v9808_v40 = vpop.f32.mrb[22].mxu0  ;;  %v9830_v43 = vpop.f32.mrb[22].mxu1 }
 0x56f   : > { %v9809_v44 = vpop.f32.mrb[23].mxu0  ;;  %v9831_v5 = vpop.f32.mrb[23].mxu1 }
 0x570   : > { %v8440_v10 = vadd.f32 %v9807_v37, %v8400_v33 }
 0x572   : > { %v8480_v47 = vadd.f32 %v9829_v39, %v8440_v10 }
 0x574   : > { %11643 = vtanh.f32 %v8480_v47 }
 0x579   : > { %8526 = sbr.rel (!%p13304_p12) target bundleno = 1435 (0x59b), region = 44 }
 0x57e   : > { %v11644_v49 = vpop.eup %11643 }
 0x57f   : > { %8518 = vst [vmem:[%s12532_s10 + $0x80] sm:$0xff] %v11644_v49 }
 0x580   : > { %s13311_s6 = smov (!%p8529_p0, %s8528_s6), 17 }
 0x581   : > { %s13240_s7 = sshll.u32 %s13311_s6, 7 }
 0x582   : > { %s8533_s4 = ssub.s32 2176, %s13240_s7 }
 0x583   : > { %8534 = vsyncadd %s8520_s11, %s8533_s4  ;;  %p9737_p10 = scmp.ne.s32.totalorder %s13240_s7, 0  ;;  %s9744_s23 = smul.u32 2176, %s11824_s16 }
 0x584   : > { %s8540_s9 = sshll.u32 %s12532_s10, 4  ;;  %s11782_s27 = smov [#allocation7]   ;;  %s8541_s9 = int_to_ptr.vmem [resolvable:$true] %s8540_s9 }
 0x585   : > { %s13251_s26 = scalar_lea.hbm %s13295_s3, %s9744_s23  ;;  %s11706_s30 = scalar_lea.vmem %s8541_s9, %s13240_s7 }
 0x586   : > { %p11707_p3 = scmp.ne.s32.totalorder %s8541_s9, %s11706_s30  ;;  %s11710_s28 = sshll.u32 %s11782_s27, 4  ;;  %s11711_s28 = int_to_ptr.vmem [resolvable:$false] %s11710_s28 }
 0x587   : > { %s11712_s29 = scalar_lea.vmem %s11711_s28, 4352  ;;  %p11713_p2 = scmp.lt.s32.totalorder %s8541_s9, %s11711_s28 }
 0x588   : > { %p11708_p4 = pnand %p11707_p3, %p9737_p10  ;;  %p11714_p7 = scmp.lt.s32.totalorder %s11712_s29, %s11706_s30 }
 0x58a   : > { %p11709_p5 = pneg %p11708_p4  ;;  %p11715_p11 = por %p11714_p7, %p11713_p2 }
 0x58c   : > { %p11716_p8 = pnand %p11715_p11, %p11709_p5 }
 0x58e   : > { %11719 = shalt.err (!%p11716_p8)
}
 0x58f   : > { %s11720_s16 = scalar_lea.hbm %s13251_s26, %s13240_s7  ;;  %s11724_s8 = scalar_lea.hbm %s13295_s3, 8576 }
 0x590   : > { %p11721_p1 = scmp.ne.s32.totalorder %s13251_s26, %s11720_s16  ;;  %p11725_p6 = scmp.lt.u32.totalorder %s13251_s26, %s13295_s3 }
 0x591   : > { %p11726_p12 = scmp.lt.u32.totalorder %s11724_s8, %s11720_s16  ;;  %p11728_p3 = scmp.lt.u32.totalorder %s11720_s16, %s13251_s26 }
 0x592   : > { %p11722_p13 = pnand %p11721_p1, %p9737_p10 }
 0x593   : > { %p11727_p0 = por %p11726_p12, %p11725_p6 }
 0x594   : > { %p11723_p9 = pneg %p11722_p13 }
 0x595   : > { %p11729_p4 = por %p11728_p3, %p11727_p0 }
 0x597   : > { %p11730_p5 = pnand %p11729_p4, %p11723_p9 }
 0x599   : > { %11733 = shalt.err (!%p11730_p5)
}
 0x59a   : > { %8543 = dma.vmem_to_hbm [thread:$0]  (%p9737_p10), %s8541_s9, %s13240_s7, %s13251_s26, %s8520_s11  }
 0x59b PF: > { %p9968_p2 = scmp.ge.s32.totalorder %s11776_s15, 2  ;;  %s8552_s6 = sand.u32 1, %s11764_s12  }
 0x59c   : > { %p13305_p7 = scmp.ne.s32.totalorder %s13299_s24, 0  ;;  %s8553_s4 = scalar_lea.sflag [#allocation4], %s8552_s6 }
 0x59e   : > { %p9964_p11 = pnand %p9968_p2, %p13305_p7 }
 0x5a0   : > { %11759 = dma.done.wait (!%p9964_p11), %s8553_s4, 2176  }
 0x5a1   : > { %11761 = vsyncadd (!%p9964_p11), %s8553_s4, 4294965120  ;;  %p19_p8 = scmp.ge.s32.totalorder %s11828_s18, 6   ;;  %s13306_s12 = smov %s11768_s13 }
 0x5a2   : > { %s13307_s13 = smov %s11772_s14  ;;  %s13308_s14 = smov %s11840_s21 }
 0x5a3   : > { %s13309_s15 = smov %s11828_s18  ;;  %21 = sbr.rel (!%p19_p8) target bundleno = 7 (0x7), region = 90 }
 0x5aa   :  { %8558 = vsyncpa [#allocation3], 1 }
 0x5ab   :  { %8560 = vsyncpa [#allocation3 + $0x1], 1 }
 0x5ac   :  { %8561 = vsyncpa [#allocation6], 1 }
 0x5ad   :  { %8563 = vsyncpa [#allocation6 + $0x1], 1 }
 0x5ae   :  { %8564 = vsyncpa [#allocation4], 1 }
 0x5af   :  { %8566 = vsyncpa [#allocation4 + $0x1], 1 }

</bundles_post_ra>
